<compile_context>
chip_gen: v5e
topology: v5e:2x2
jax: 0.10.0
libtpu: 0.0.40
codegen_flags: <defaults>
</compile_context>

<pallas_src>
import jax
import jax.numpy as jnp
from jax import lax
from jax.experimental import pallas as pl
from jax.experimental.pallas import tpu as pltpu


_VMEM_LIMIT = 48 * 1024 * 1024   # explicit scoped-VMEM budget; < v7x's 64 MiB physical


def _round_up(x, m):
    return ((x + m - 1) // m) * m


# ---------------------------------------------------------------------------
# Pallas kernels
# ---------------------------------------------------------------------------

def _conv_relu_pool_kernel(x_ref, w_ref, b_ref, o_ref):
    """Fused conv-as-matmul + bias + ReLU + 2x2 max-pool.

    Grid = (M tiles [parallel], 4 pool corners [arbitrary, innermost]).
    x_ref holds one corner's im2col rows for one M tile; o_ref (same block for all
    4 corners of a tile) max-accumulates the pooled result; weights/bias resident.
    """
    p = pl.program_id(1)

    @pl.when(p == 0)
    def _():
        o_ref[...] = jnp.zeros_like(o_ref)      # ReLU output >= 0, so 0 is a safe init

    y = jnp.dot(x_ref[0], w_ref[...], preferred_element_type=jnp.float32)
    y = jnp.maximum(y + b_ref[...], 0.0)        # (1, Cout) bias broadcasts over rows
    o_ref[...] = jnp.maximum(o_ref[...], y)


def _fc_fused_kernel(x_ref, w1_ref, b1_ref, w2_ref, b2_ref, o_ref):
    """Fused fc1 + fc2 (no nonlinearity between them in the reference module).

    Grid = (M tiles [parallel], hidden tiles [arbitrary, innermost]).  fc2's
    contribution of each hidden tile is accumulated in the resident output block,
    so the padded hidden activation never touches HBM.  x/w1 are bf16; all
    accumulation is f32.
    """
    j = pl.program_id(1)

    @pl.when(j == 0)
    def _():
        o_ref[...] = jnp.zeros_like(o_ref) + b2_ref[...]

    h = jnp.dot(x_ref[...], w1_ref[...], preferred_element_type=jnp.float32) + b1_ref[...]
    o_ref[...] += jnp.dot(h, w2_ref[...], preferred_element_type=jnp.float32)


# ---------------------------------------------------------------------------
# Pallas wrappers
# ---------------------------------------------------------------------------

def conv_relu_pool(patches4, w, b2d, *, tm=512):
    """patches4: (4, M, K) corner-grouped im2col rows -> (M, Cout) pooled ReLU(conv)."""
    P, M, K = patches4.shape
    Cout = w.shape[1]
    tm = min(tm, _round_up(M, 8))               # small problems: one tall tile
    Mp = _round_up(M, tm)
    if Mp != M:
        patches4 = jnp.pad(patches4, ((0, 0), (0, Mp - M), (0, 0)))

    out = pl.pallas_call(
        _conv_relu_pool_kernel,
        out_shape=jax.ShapeDtypeStruct((Mp, Cout), jnp.float32),
        grid=(Mp // tm, P),
        in_specs=[
            pl.BlockSpec((1, tm, K), lambda i, p: (p, i, 0)),
            pl.BlockSpec((K, Cout), lambda i, p: (0, 0)),
            pl.BlockSpec((1, Cout), lambda i, p: (0, 0)),
        ],
        out_specs=pl.BlockSpec((tm, Cout), lambda i, p: (i, 0)),
        compiler_params=pltpu.CompilerParams(
            dimension_semantics=("parallel", "arbitrary"),
            vmem_limit_bytes=_VMEM_LIMIT),
    )(patches4, w, b2d)
    return out[:M] if Mp != M else out


def fc1_fc2_fused(x_bf16, w1p, b1p, w2p, b2, *, tm=256, tn=512):
    """out = (x @ w1p + b1p) @ w2p + b2 ; hidden tiled by tn, batch tiled by tm."""
    M, K = x_bf16.shape
    Hp = w1p.shape[1]
    N = w2p.shape[1]
    assert Hp % tn == 0
    tm = min(tm, _round_up(M, 8))
    Mp = _round_up(M, tm)
    if Mp != M:
        x_bf16 = jnp.pad(x_bf16, ((0, Mp - M), (0, 0)))

    out = pl.pallas_call(
        _fc_fused_kernel,
        out_shape=jax.ShapeDtypeStruct((Mp, N), jnp.float32),
        grid=(Mp // tm, Hp // tn),
        in_specs=[
            pl.BlockSpec((tm, K), lambda i, j: (i, 0)),
            pl.BlockSpec((K, tn), lambda i, j: (0, j)),
            pl.BlockSpec((1, tn), lambda i, j: (0, j)),
            pl.BlockSpec((tn, N), lambda i, j: (j, 0)),
            pl.BlockSpec((1, N), lambda i, j: (0, 0)),
        ],
        out_specs=pl.BlockSpec((tm, N), lambda i, j: (i, 0)),
        compiler_params=pltpu.CompilerParams(
            dimension_semantics=("parallel", "arbitrary"),
            vmem_limit_bytes=_VMEM_LIMIT),
    )(x_bf16, w1p, b1p, w2p, b2)
    return out[:M] if Mp != M else out


# ---------------------------------------------------------------------------
# JAX glue (corner-grouped im2col, forward pass)
# ---------------------------------------------------------------------------

def im2col_pooled(x, k=5, pad=2):
    """NHWC -> (4, B*Ho*Wo, k*k*C) im2col rows, grouped by 2x2-pool corner.

    Row (p, b*Ho*Wo + ho*Wo + wo) is the patch at spatial position
    (2*ho + ph, 2*wo + pw) with p = 2*ph + pw; feature order is (kh, kw, cin).
    Built directly from the padded input with strided slices (no separate 6-D
    corner-grouping transpose pass), so the k*k-inflated tensor is written once.
    """
    # TODO(synk): fold im2col into the conv kernel (25-tap shifted-read accumulation)
    # to avoid materializing the k*k-inflated patch tensor in HBM at all.
    B, H, W, C = x.shape
    Ho, Wo = H // 2, W // 2
    xp = jnp.pad(x, ((0, 0), (pad, pad), (pad, pad), (0, 0)))
    corners = []
    for ph in range(2):
        for pw in range(2):
            cols = [xp[:, kh:kh + H, kw:kw + W, :][:, ph::2, pw::2, :]
                    for kh in range(k) for kw in range(k)]
            corners.append(
                jnp.concatenate(cols, axis=-1).reshape(B * Ho * Wo, k * k * C))
    return jnp.stack(corners, axis=0)           # (4, B*Ho*Wo, K)


def convnet1_forward(x_nchw, kp):
    B = x_nchw.shape[0]
    x = jnp.transpose(x_nchw, (0, 2, 3, 1))                # NCHW -> NHWC

    # layer1: Conv2d(1->32, k=5, pad=2) + ReLU + MaxPool(2)   (one fused kernel)
    p1 = im2col_pooled(x, 5, 2)                            # (4, B*14*14, 25)
    y1 = conv_relu_pool(p1, kp["w1"], kp["b1"])            # (B*14*14, 32)
    y1 = y1.reshape(B, 14, 14, 32)

    # layer2: Conv2d(32->64, k=5, pad=2) + ReLU + MaxPool(2)  (one fused kernel)
    p2 = im2col_pooled(y1, 5, 2)                           # (4, B*7*7, 800)
    y2 = conv_relu_pool(p2, kp["w2"], kp["b2"])            # (B*7*7, 64)
    y2 = y2.reshape(B, 7, 7, 64)

    # flatten in PyTorch NCHW order (c, h, w)
    flat = jnp.transpose(y2, (0, 3, 1, 2)).reshape(B, -1)  # (B, 3136)

    B8 = _round_up(B, 8)
    if B8 != B:
        flat = jnp.pad(flat, ((0, B8 - B), (0, 0)))
    flat = flat.astype(jnp.bfloat16)                       # bf16 activations for fc1

    # TODO(synk): nn.Dropout() is identity in eval mode; train-mode RNG masking not done.
    out = fc1_fc2_fused(flat, kp["wfc1"], kp["bfc1"], kp["wfc2"], kp["bfc2"])  # (B8, 10)
    return out[:B]


def prepare_params(params, *, hidden_pad=1024):
    """One-time (outside the jitted forward) reshape / zero-pad / cast of params."""
    H = params["wfc1"].shape[1]                            # 1000 -> padded to 1024
    return {
        "w1": params["w1"],
        "b1": params["b1"].reshape(1, -1),
        "w2": params["w2"],
        "b2": params["b2"].reshape(1, -1),
        # fc1 weight is the dominant (12.8 MB, batch-independent) DMA -> bf16.
        # Pad columns stay exactly zero after the cast, so the 1000->1024 hidden
        # padding remains numerically inert.
        "wfc1": jnp.pad(params["wfc1"], ((0, 0), (0, hidden_pad - H))).astype(jnp.bfloat16),
        "bfc1": jnp.pad(params["bfc1"], ((0, hidden_pad - H),)).reshape(1, hidden_pad),
        # fc2 weight is only ~40 KB: keep f32 for accuracy.
        "wfc2": jnp.pad(params["wfc2"], ((0, hidden_pad - H), (0, 0))),
        "bfc2": params["bfc2"].reshape(1, -1),
    }


# ---------------------------------------------------------------------------
# Pure-JAX reference (for correctness check; full f32)
# ---------------------------------------------------------------------------

def _ref_pool(y):
    B, H, W, C = y.shape
    return y.reshape(B, H // 2, 2, W // 2, 2, C).max(axis=(2, 4))


def convnet1_reference(x_nchw, params):
    B = x_nchw.shape[0]
    x = jnp.transpose(x_nchw, (0, 2, 3, 1))
    dn = ("NHWC", "HWIO", "NHWC")

    w1 = params["w1"].reshape(5, 5, 1, 32)
    y1 = lax.conv_general_dilated(x, w1, (1, 1), "SAME", dimension_numbers=dn)
    y1 = jnp.maximum(y1 + params["b1"], 0.0)
    y1 = _ref_pool(y1)

    w2 = params["w2"].reshape(5, 5, 32, 64)
    y2 = lax.conv_general_dilated(y1, w2, (1, 1), "SAME", dimension_numbers=dn)
    y2 = jnp.maximum(y2 + params["b2"], 0.0)
    y2 = _ref_pool(y2)

    flat = jnp.transpose(y2, (0, 3, 1, 2)).reshape(B, -1)
    h = flat @ params["wfc1"] + params["bfc1"]
    return h @ params["wfc2"] + params["bfc2"]


# ---------------------------------------------------------------------------
# main
# ---------------------------------------------------------------------------

def init_params(key):
    ks = jax.random.split(key, 8)
    f32 = jnp.float32
    return {
        # conv weights stored as (KH*KW*Cin, Cout), feature order (kh, kw, cin)
        "w1":   jax.random.normal(ks[0], (5 * 5 * 1, 32), f32) * 0.10,
        "b1":   jax.random.normal(ks[1], (32,), f32) * 0.10,
        "w2":   jax.random.normal(ks[2], (5 * 5 * 32, 64), f32) * 0.02,
        "b2":   jax.random.normal(ks[3], (64,), f32) * 0.10,
        # fc weights stored as (in, out)  (== PyTorch weight.T)
        "wfc1": jax.random.normal(ks[4], (7 * 7 * 64, 1000), f32) * 0.01,
        "bfc1": jax.random.normal(ks[5], (1000,), f32) * 0.05,
        "wfc2": jax.random.normal(ks[6], (1000, 10), f32) * 0.05,
        "bfc2": jax.random.normal(ks[7], (10,), f32) * 0.05,
    }


if __name__ == "__main__":
    # Input consistent with the module: fc1 expects 7*7*64 -> 28x28x1 images, batch=2.
    x = jax.random.normal(jax.random.PRNGKey(0), (2, 1, 28, 28), jnp.float32)
    params = init_params(jax.random.PRNGKey(42))
    kparams = prepare_params(params)            # padding / bf16 cast hoisted out of forward

    out = jax.jit(convnet1_forward)(x, kparams)
    out = jax.block_until_ready(out)
    assert out.shape == (2, 10), out.shape

    ref = jax.block_until_ready(convnet1_reference(x, params))
    # Tolerance loosened from 1e-3 -> 1e-2: fc1 now runs with bf16 weights/activations
    # (f32 accumulation); observed error is well below this bound.
    assert jnp.allclose(out, ref, rtol=1e-2, atol=1e-2), \
        f"max abs err {jnp.max(jnp.abs(out - ref))}"

    print("KERNEL_OK")
</pallas_src>

<mosaic_0001>
module attributes {stable_mosaic.version = 11 : i64} {
  func.func @_conv_relu_pool_kernel(%arg0: i32, %arg1: i32, %arg2: memref<1x392x25xf32, #tpu.memory_space<vmem>>, %arg3: memref<25x32xf32, #tpu.memory_space<vmem>>, %arg4: memref<1x32xf32, #tpu.memory_space<vmem>>, %arg5: memref<392x32xf32, #tpu.memory_space<vmem>>) attributes {dimension_semantics = [#tpu.dimension_semantics<parallel>, #tpu.dimension_semantics<arbitrary>], iteration_bounds = array<i64: 1, 4>, scalar_prefetch = 0 : i64, scratch_operands = 0 : i64, tpu.core_type = #tpu.core_type<tc>, window_params = [{transform_indices = @transform_0, window_bounds = array<i64: 1, 392, 25>}, {pipeline_mode = #tpu.pipeline_mode<synchronous>, transform_indices = @transform_1, window_bounds = array<i64: 25, 32>}, {pipeline_mode = #tpu.pipeline_mode<synchronous>, transform_indices = @transform_2, window_bounds = array<i64: 1, 32>}, {transform_indices = @transform_3, window_bounds = array<i64: 392, 32>}]} {
    %c0_i32 = arith.constant 0 : i32
    %0 = arith.cmpi eq, %arg1, %c0_i32 : i32
    %1 = arith.extui %0 : i1 to i32
    %c0_i32_0 = arith.constant 0 : i32
    %2 = arith.cmpi ne, %1, %c0_i32_0 : i32
    scf.if %2 {
      %cst_12 = arith.constant 0.000000e+00 : f32
      %15 = vector.broadcast %cst_12 : f32 to vector<392x32xf32>
      %c0_13 = arith.constant 0 : index
      %c0_14 = arith.constant 0 : index
      %16 = vector.load %arg5[%c0_13, %c0_14] : memref<392x32xf32, #tpu.memory_space<vmem>>, vector<392x32xf32>
      tpu.vector_store %arg5[%c0_13, %c0_14], %15 {strides = array<i32>} : memref<392x32xf32, #tpu.memory_space<vmem>>, vector<392x32xf32>,
    } else {
    }
    %c0 = arith.constant 0 : index
    %c0_1 = arith.constant 0 : index
    %c0_2 = arith.constant 0 : index
    %3 = vector.load %arg2[%c0, %c0_1, %c0_2] : memref<1x392x25xf32, #tpu.memory_space<vmem>>, vector<1x392x25xf32>
    %4 = vector.shape_cast %3 : vector<1x392x25xf32> to vector<392x25xf32>
    %c0_3 = arith.constant 0 : index
    %c0_4 = arith.constant 0 : index
    %5 = vector.load %arg3[%c0_3, %c0_4] : memref<25x32xf32, #tpu.memory_space<vmem>>, vector<25x32xf32>
    %cst = arith.constant dense<0.000000e+00> : vector<392x32xf32>
    %6 = tpu.matmul %4, %5, %cst {dimension_numbers = #tpu.dot_dimension_numbers<[1], [0], [0], [1], [0, 0, 1, 1], [], []>} : vector<392x25xf32>, vector<25x32xf32>, vector<392x32xf32> -> vector<392x32xf32>
    %c0_5 = arith.constant 0 : index
    %c0_6 = arith.constant 0 : index
    %7 = vector.load %arg4[%c0_5, %c0_6] : memref<1x32xf32, #tpu.memory_space<vmem>>, vector<1x32xf32>
    %8 = vector.broadcast %7 : vector<1x32xf32> to vector<392x32xf32>
    %9 = arith.addf %6, %8 : vector<392x32xf32>
    %cst_7 = arith.constant 0.000000e+00 : f32
    %10 = vector.broadcast %cst_7 : f32 to vector<392x32xf32>
    %11 = arith.maximumf %9, %10 : vector<392x32xf32>
    %c0_8 = arith.constant 0 : index
    %c0_9 = arith.constant 0 : index
    %12 = vector.load %arg5[%c0_8, %c0_9] : memref<392x32xf32, #tpu.memory_space<vmem>>, vector<392x32xf32>
    %13 = arith.maximumf %12, %11 : vector<392x32xf32>
    %c0_10 = arith.constant 0 : index
    %c0_11 = arith.constant 0 : index
    %14 = vector.load %arg5[%c0_10, %c0_11] : memref<392x32xf32, #tpu.memory_space<vmem>>, vector<392x32xf32>
    tpu.vector_store %arg5[%c0_10, %c0_11], %13 {strides = array<i32>} : memref<392x32xf32, #tpu.memory_space<vmem>>, vector<392x32xf32>,
    return
  }
  func.func @transform_0(%arg0: i32, %arg1: i32) -> (i32, i32, i32) {
    %c0_i32 = arith.constant 0 : i32
    %c0_i32_0 = arith.constant 0 : i32
    return %arg1, %arg0, %c0_i32 : i32, i32, i32
  }
  func.func @transform_1(%arg0: i32, %arg1: i32) -> (i32, i32) {
    %c0_i32 = arith.constant 0 : i32
    %c0_i32_0 = arith.constant 0 : i32
    %c0_i32_1 = arith.constant 0 : i32
    return %c0_i32, %c0_i32_0 : i32, i32
  }
  func.func @transform_2(%arg0: i32, %arg1: i32) -> (i32, i32) {
    %c0_i32 = arith.constant 0 : i32
    %c0_i32_0 = arith.constant 0 : i32
    %c0_i32_1 = arith.constant 0 : i32
    return %c0_i32, %c0_i32_0 : i32, i32
  }
  func.func @transform_3(%arg0: i32, %arg1: i32) -> (i32, i32) {
    %c0_i32 = arith.constant 0 : i32
    %c0_i32_0 = arith.constant 0 : i32
    return %arg0, %c0_i32 : i32, i32
  }
}

module attributes {stable_mosaic.version = 11 : i64} {
  func.func @_conv_relu_pool_kernel(%arg0: i32, %arg1: i32, %arg2: memref<1x104x800xf32, #tpu.memory_space<vmem>>, %arg3: memref<800x64xf32, #tpu.memory_space<vmem>>, %arg4: memref<1x64xf32, #tpu.memory_space<vmem>>, %arg5: memref<104x64xf32, #tpu.memory_space<vmem>>) attributes {dimension_semantics = [#tpu.dimension_semantics<parallel>, #tpu.dimension_semantics<arbitrary>], iteration_bounds = array<i64: 1, 4>, scalar_prefetch = 0 : i64, scratch_operands = 0 : i64, tpu.core_type = #tpu.core_type<tc>, window_params = [{transform_indices = @transform_0, window_bounds = array<i64: 1, 104, 800>}, {pipeline_mode = #tpu.pipeline_mode<synchronous>, transform_indices = @transform_1, window_bounds = array<i64: 800, 64>}, {pipeline_mode = #tpu.pipeline_mode<synchronous>, transform_indices = @transform_2, window_bounds = array<i64: 1, 64>}, {transform_indices = @transform_3, window_bounds = array<i64: 104, 64>}]} {
    %c0_i32 = arith.constant 0 : i32
    %0 = arith.cmpi eq, %arg1, %c0_i32 : i32
    %1 = arith.extui %0 : i1 to i32
    %c0_i32_0 = arith.constant 0 : i32
    %2 = arith.cmpi ne, %1, %c0_i32_0 : i32
    scf.if %2 {
      %cst_12 = arith.constant 0.000000e+00 : f32
      %15 = vector.broadcast %cst_12 : f32 to vector<104x64xf32>
      %c0_13 = arith.constant 0 : index
      %c0_14 = arith.constant 0 : index
      %16 = vector.load %arg5[%c0_13, %c0_14] : memref<104x64xf32, #tpu.memory_space<vmem>>, vector<104x64xf32>
      tpu.vector_store %arg5[%c0_13, %c0_14], %15 {strides = array<i32>} : memref<104x64xf32, #tpu.memory_space<vmem>>, vector<104x64xf32>,
    } else {
    }
    %c0 = arith.constant 0 : index
    %c0_1 = arith.constant 0 : index
    %c0_2 = arith.constant 0 : index
    %3 = vector.load %arg2[%c0, %c0_1, %c0_2] : memref<1x104x800xf32, #tpu.memory_space<vmem>>, vector<1x104x800xf32>
    %4 = vector.shape_cast %3 : vector<1x104x800xf32> to vector<104x800xf32>
    %c0_3 = arith.constant 0 : index
    %c0_4 = arith.constant 0 : index
    %5 = vector.load %arg3[%c0_3, %c0_4] : memref<800x64xf32, #tpu.memory_space<vmem>>, vector<800x64xf32>
    %cst = arith.constant dense<0.000000e+00> : vector<104x64xf32>
    %6 = tpu.matmul %4, %5, %cst {dimension_numbers = #tpu.dot_dimension_numbers<[1], [0], [0], [1], [0, 0, 1, 1], [], []>} : vector<104x800xf32>, vector<800x64xf32>, vector<104x64xf32> -> vector<104x64xf32>
    %c0_5 = arith.constant 0 : index
    %c0_6 = arith.constant 0 : index
    %7 = vector.load %arg4[%c0_5, %c0_6] : memref<1x64xf32, #tpu.memory_space<vmem>>, vector<1x64xf32>
    %8 = vector.broadcast %7 : vector<1x64xf32> to vector<104x64xf32>
    %9 = arith.addf %6, %8 : vector<104x64xf32>
    %cst_7 = arith.constant 0.000000e+00 : f32
    %10 = vector.broadcast %cst_7 : f32 to vector<104x64xf32>
    %11 = arith.maximumf %9, %10 : vector<104x64xf32>
    %c0_8 = arith.constant 0 : index
    %c0_9 = arith.constant 0 : index
    %12 = vector.load %arg5[%c0_8, %c0_9] : memref<104x64xf32, #tpu.memory_space<vmem>>, vector<104x64xf32>
    %13 = arith.maximumf %12, %11 : vector<104x64xf32>
    %c0_10 = arith.constant 0 : index
    %c0_11 = arith.constant 0 : index
    %14 = vector.load %arg5[%c0_10, %c0_11] : memref<104x64xf32, #tpu.memory_space<vmem>>, vector<104x64xf32>
    tpu.vector_store %arg5[%c0_10, %c0_11], %13 {strides = array<i32>} : memref<104x64xf32, #tpu.memory_space<vmem>>, vector<104x64xf32>,
    return
  }
  func.func @transform_0(%arg0: i32, %arg1: i32) -> (i32, i32, i32) {
    %c0_i32 = arith.constant 0 : i32
    %c0_i32_0 = arith.constant 0 : i32
    return %arg1, %arg0, %c0_i32 : i32, i32, i32
  }
  func.func @transform_1(%arg0: i32, %arg1: i32) -> (i32, i32) {
    %c0_i32 = arith.constant 0 : i32
    %c0_i32_0 = arith.constant 0 : i32
    %c0_i32_1 = arith.constant 0 : i32
    return %c0_i32, %c0_i32_0 : i32, i32
  }
  func.func @transform_2(%arg0: i32, %arg1: i32) -> (i32, i32) {
    %c0_i32 = arith.constant 0 : i32
    %c0_i32_0 = arith.constant 0 : i32
    %c0_i32_1 = arith.constant 0 : i32
    return %c0_i32, %c0_i32_0 : i32, i32
  }
  func.func @transform_3(%arg0: i32, %arg1: i32) -> (i32, i32) {
    %c0_i32 = arith.constant 0 : i32
    %c0_i32_0 = arith.constant 0 : i32
    return %arg0, %c0_i32 : i32, i32
  }
}

module attributes {stable_mosaic.version = 11 : i64} {
  func.func @_fc_fused_kernel(%arg0: i32, %arg1: i32, %arg2: memref<8x3136xbf16, #tpu.memory_space<vmem>>, %arg3: memref<3136x512xbf16, #tpu.memory_space<vmem>>, %arg4: memref<1x512xf32, #tpu.memory_space<vmem>>, %arg5: memref<512x10xf32, #tpu.memory_space<vmem>>, %arg6: memref<1x10xf32, #tpu.memory_space<vmem>>, %arg7: memref<8x10xf32, #tpu.memory_space<vmem>>) attributes {dimension_semantics = [#tpu.dimension_semantics<parallel>, #tpu.dimension_semantics<arbitrary>], iteration_bounds = array<i64: 1, 2>, scalar_prefetch = 0 : i64, scratch_operands = 0 : i64, tpu.core_type = #tpu.core_type<tc>, window_params = [{transform_indices = @transform_0, window_bounds = array<i64: 8, 3136>}, {transform_indices = @transform_1, window_bounds = array<i64: 3136, 512>}, {transform_indices = @transform_2, window_bounds = array<i64: 1, 512>}, {transform_indices = @transform_3, window_bounds = array<i64: 512, 10>}, {pipeline_mode = #tpu.pipeline_mode<synchronous>, transform_indices = @transform_4, window_bounds = array<i64: 1, 10>}, {transform_indices = @transform_5, window_bounds = array<i64: 8, 10>}]} {
    %c0_i32 = arith.constant 0 : i32
    %0 = arith.cmpi eq, %arg1, %c0_i32 : i32
    %1 = arith.extui %0 : i1 to i32
    %c0_i32_0 = arith.constant 0 : i32
    %2 = arith.cmpi ne, %1, %c0_i32_0 : i32
    scf.if %2 {
      %cst_13 = arith.constant 0.000000e+00 : f32
      %14 = vector.broadcast %cst_13 : f32 to vector<8x10xf32>
      %c0_14 = arith.constant 0 : index
      %c0_15 = arith.constant 0 : index
      %15 = vector.load %arg6[%c0_14, %c0_15] : memref<1x10xf32, #tpu.memory_space<vmem>>, vector<1x10xf32>
      %16 = vector.broadcast %15 : vector<1x10xf32> to vector<8x10xf32>
      %17 = arith.addf %14, %16 : vector<8x10xf32>
      %c0_16 = arith.constant 0 : index
      %c0_17 = arith.constant 0 : index
      %18 = vector.load %arg7[%c0_16, %c0_17] : memref<8x10xf32, #tpu.memory_space<vmem>>, vector<8x10xf32>
      tpu.vector_store %arg7[%c0_16, %c0_17], %17 {strides = array<i32>} : memref<8x10xf32, #tpu.memory_space<vmem>>, vector<8x10xf32>,
    } else {
    }
    %c0 = arith.constant 0 : index
    %c0_1 = arith.constant 0 : index
    %3 = vector.load %arg2[%c0, %c0_1] : memref<8x3136xbf16, #tpu.memory_space<vmem>>, vector<8x3136xbf16>
    %c0_2 = arith.constant 0 : index
    %c0_3 = arith.constant 0 : index
    %4 = vector.load %arg3[%c0_2, %c0_3] : memref<3136x512xbf16, #tpu.memory_space<vmem>>, vector<3136x512xbf16>
    %cst = arith.constant dense<0.000000e+00> : vector<8x512xf32>
    %5 = tpu.matmul %3, %4, %cst {dimension_numbers = #tpu.dot_dimension_numbers<[1], [0], [0], [1], [0, 0, 1, 1], [], []>} : vector<8x3136xbf16>, vector<3136x512xbf16>, vector<8x512xf32> -> vector<8x512xf32>
    %c0_4 = arith.constant 0 : index
    %c0_5 = arith.constant 0 : index
    %6 = vector.load %arg4[%c0_4, %c0_5] : memref<1x512xf32, #tpu.memory_space<vmem>>, vector<1x512xf32>
    %7 = vector.broadcast %6 : vector<1x512xf32> to vector<8x512xf32>
    %8 = arith.addf %5, %7 : vector<8x512xf32>
    %c0_6 = arith.constant 0 : index
    %c0_7 = arith.constant 0 : index
    %9 = vector.load %arg7[%c0_6, %c0_7] : memref<8x10xf32, #tpu.memory_space<vmem>>, vector<8x10xf32>
    %c0_8 = arith.constant 0 : index
    %c0_9 = arith.constant 0 : index
    %10 = vector.load %arg5[%c0_8, %c0_9] : memref<512x10xf32, #tpu.memory_space<vmem>>, vector<512x10xf32>
    %cst_10 = arith.constant dense<0.000000e+00> : vector<8x10xf32>
    %11 = tpu.matmul %8, %10, %cst_10 {dimension_numbers = #tpu.dot_dimension_numbers<[1], [0], [0], [1], [0, 0, 1, 1], [], []>} : vector<8x512xf32>, vector<512x10xf32>, vector<8x10xf32> -> vector<8x10xf32>
    %12 = arith.addf %9, %11 : vector<8x10xf32>
    %c0_11 = arith.constant 0 : index
    %c0_12 = arith.constant 0 : index
    %13 = vector.load %arg7[%c0_11, %c0_12] : memref<8x10xf32, #tpu.memory_space<vmem>>, vector<8x10xf32>
    tpu.vector_store %arg7[%c0_11, %c0_12], %12 {strides = array<i32>} : memref<8x10xf32, #tpu.memory_space<vmem>>, vector<8x10xf32>,
    return
  }
  func.func @transform_0(%arg0: i32, %arg1: i32) -> (i32, i32) {
    %c0_i32 = arith.constant 0 : i32
    %c0_i32_0 = arith.constant 0 : i32
    return %arg0, %c0_i32 : i32, i32
  }
  func.func @transform_1(%arg0: i32, %arg1: i32) -> (i32, i32) {
    %c0_i32 = arith.constant 0 : i32
    %c0_i32_0 = arith.constant 0 : i32
    return %c0_i32, %arg1 : i32, i32
  }
  func.func @transform_2(%arg0: i32, %arg1: i32) -> (i32, i32) {
    %c0_i32 = arith.constant 0 : i32
    %c0_i32_0 = arith.constant 0 : i32
    return %c0_i32, %arg1 : i32, i32
  }
  func.func @transform_3(%arg0: i32, %arg1: i32) -> (i32, i32) {
    %c0_i32 = arith.constant 0 : i32
    %c0_i32_0 = arith.constant 0 : i32
    return %arg1, %c0_i32 : i32, i32
  }
  func.func @transform_4(%arg0: i32, %arg1: i32) -> (i32, i32) {
    %c0_i32 = arith.constant 0 : i32
    %c0_i32_0 = arith.constant 0 : i32
    %c0_i32_1 = arith.constant 0 : i32
    return %c0_i32, %c0_i32_0 : i32, i32
  }
  func.func @transform_5(%arg0: i32, %arg1: i32) -> (i32, i32) {
    %c0_i32 = arith.constant 0 : i32
    %c0_i32_0 = arith.constant 0 : i32
    return %arg0, %c0_i32 : i32, i32
  }
}

</mosaic_0001>

<bundles_post_ra>
// kernel: convnet1_forward.3
= control target key start
LH: loop header
LB: loop body
LE: loop exit
PB: predicated region body
PF: predicated region fallthrough
CT: control target
= control target key end

     0   :  { %s1036_s12 = smov 0   ;;  %s1038_s13 = smov 0   ;;  %s1771_s0 = inlined_call_operand.vmem [shape: f32[4,392,25], index: 0, kind: input, shape index: {}]   ;;  %s1772_s1 = inlined_call_operand.vmem [shape: f32[25,32], index: 1, kind: input, shape index: {}]   ;;  %s1773_s2 = inlined_call_operand.vmem [shape: f32[1,32], index: 2, kind: input, shape index: {}]   ;;  %s1774_s3 = inlined_call_operand.vmem [shape: f32[392,32], index: 3, kind: output, shape index: {}]  }
   0x1   :  { %s1040_s14 = smov 0  }
   0x2 LB: > { %s22_s15 = sadd.s32 1, %s1009_s13  ;;  %p895_p0 = scmp.ge.s32.totalorder %s1013_s14, 1  ;;  %s1013_s14 = sphi %s1040_s14, %s13_s14   ;;  %s1009_s13 = sphi %s1038_s13, %s1776_s13   ;;  %s1005_s12 = sphi %s1036_s12, %s1775_s12  }
   0x3   : > { %p23_p1 = scmp.ge.s32.totalorder %s22_s15, 4  ;;  %p156_p2 = scmp.lt.s32.totalorder %s1013_s14, 5 }
   0x5   : > { %s1778_s15 = smov (%p23_p1, %s22_s15), 0  ;;  %p157_p3 = pnand %p895_p0, %p156_p2 }
   0x6   : > { %p185_p4 = scmp.lt.s32.totalorder (!%p157_p3), %s1005_s12, 3  ;;  %p897_p5 = scmp.ne.s32.totalorder (!%p157_p3), %s1005_s12, 0 }
   0x7   : > { %160 = sbr.rel (%p157_p3) target bundleno = 311 (0x137), region = 32 }
   0xc   : > { %s186_s16 = scalar_select %p185_p4, %s1005_s12, 3 }
   0xd   : > { %203 = sbr.rel (%p897_p5) target bundleno = 68 (0x44), region = 36 }
   0xe   : > { %s964_s17 = smul.u32 392, %s186_s16 }
  0x10   : > { %s1057_s20 = scalar_lea.vmem %s1771_s0, %s964_s17 }
  0x12   : > { %vm204_vm0 = vcmask 261120   ;;  %v1015_v0 = vmov 0.0  }
  0x13   : > { %205 = vst.msk [vmem:[%s1774_s3] sm:$0xff] %vm204_vm0, %v1015_v0 }
  0x14   : > { %206 = vst.msk [vmem:[%s1774_s3 + $0x8] sm:$0xff] %vm204_vm0, %v1015_v0 }
  0x15   : > { %207 = vst.msk [vmem:[%s1774_s3 + $0x10] sm:$0xff] %vm204_vm0, %v1015_v0 }
  0x16   : > { %208 = vst.msk [vmem:[%s1774_s3 + $0x18] sm:$0xff] %vm204_vm0, %v1015_v0 }
  0x17   : > { %209 = vst.msk [vmem:[%s1774_s3 + $0x20] sm:$0xff] %vm204_vm0, %v1015_v0 }
  0x18   : > { %210 = vst.msk [vmem:[%s1774_s3 + $0x28] sm:$0xff] %vm204_vm0, %v1015_v0 }
  0x19   : > { %211 = vst.msk [vmem:[%s1774_s3 + $0x30] sm:$0xff] %vm204_vm0, %v1015_v0 }
  0x1a   : > { %212 = vst.msk [vmem:[%s1774_s3 + $0x38] sm:$0xff] %vm204_vm0, %v1015_v0 }
  0x1b   : > { %213 = vst.msk [vmem:[%s1774_s3 + $0x40] sm:$0xff] %vm204_vm0, %v1015_v0 }
  0x1c   : > { %214 = vst.msk [vmem:[%s1774_s3 + $0x48] sm:$0xff] %vm204_vm0, %v1015_v0 }
  0x1d   : > { %215 = vst.msk [vmem:[%s1774_s3 + $0x50] sm:$0xff] %vm204_vm0, %v1015_v0 }
  0x1e   : > { %216 = vst.msk [vmem:[%s1774_s3 + $0x58] sm:$0xff] %vm204_vm0, %v1015_v0 }
  0x1f   : > { %217 = vst.msk [vmem:[%s1774_s3 + $0x60] sm:$0xff] %vm204_vm0, %v1015_v0 }
  0x20   : > { %218 = vst.msk [vmem:[%s1774_s3 + $0x68] sm:$0xff] %vm204_vm0, %v1015_v0 }
  0x21   : > { %219 = vst.msk [vmem:[%s1774_s3 + $0x70] sm:$0xff] %vm204_vm0, %v1015_v0 }
  0x22   : > { %220 = vst.msk [vmem:[%s1774_s3 + $0x78] sm:$0xff] %vm204_vm0, %v1015_v0 }
  0x23   : > { %221 = vst.msk [vmem:[%s1774_s3 + $0x80] sm:$0xff] %vm204_vm0, %v1015_v0 }
  0x24   : > { %222 = vst.msk [vmem:[%s1774_s3 + $0x88] sm:$0xff] %vm204_vm0, %v1015_v0 }
  0x25   : > { %223 = vst.msk [vmem:[%s1774_s3 + $0x90] sm:$0xff] %vm204_vm0, %v1015_v0 }
  0x26   : > { %224 = vst.msk [vmem:[%s1774_s3 + $0x98] sm:$0xff] %vm204_vm0, %v1015_v0 }
  0x27   : > { %225 = vst.msk [vmem:[%s1774_s3 + $0xa0] sm:$0xff] %vm204_vm0, %v1015_v0 }
  0x28   : > { %226 = vst.msk [vmem:[%s1774_s3 + $0xa8] sm:$0xff] %vm204_vm0, %v1015_v0 }
  0x29   : > { %227 = vst.msk [vmem:[%s1774_s3 + $0xb0] sm:$0xff] %vm204_vm0, %v1015_v0 }
  0x2a   : > { %228 = vst.msk [vmem:[%s1774_s3 + $0xb8] sm:$0xff] %vm204_vm0, %v1015_v0 }
  0x2b   : > { %229 = vst.msk [vmem:[%s1774_s3 + $0xc0] sm:$0xff] %vm204_vm0, %v1015_v0 }
  0x2c   : > { %230 = vst.msk [vmem:[%s1774_s3 + $0xc8] sm:$0xff] %vm204_vm0, %v1015_v0 }
  0x2d   : > { %231 = vst.msk [vmem:[%s1774_s3 + $0xd0] sm:$0xff] %vm204_vm0, %v1015_v0 }
  0x2e   : > { %232 = vst.msk [vmem:[%s1774_s3 + $0xd8] sm:$0xff] %vm204_vm0, %v1015_v0 }
  0x2f   : > { %233 = vst.msk [vmem:[%s1774_s3 + $0xe0] sm:$0xff] %vm204_vm0, %v1015_v0 }
  0x30   : > { %234 = vst.msk [vmem:[%s1774_s3 + $0xe8] sm:$0xff] %vm204_vm0, %v1015_v0 }
  0x31   : > { %235 = vst.msk [vmem:[%s1774_s3 + $0xf0] sm:$0xff] %vm204_vm0, %v1015_v0 }
  0x32   : > { %236 = vst.msk [vmem:[%s1774_s3 + $0xf8] sm:$0xff] %vm204_vm0, %v1015_v0 }
  0x33   : > { %237 = vst.msk [vmem:[%s1774_s3 + $0x100] sm:$0xff] %vm204_vm0, %v1015_v0 }
  0x34   : > { %238 = vst.msk [vmem:[%s1774_s3 + $0x108] sm:$0xff] %vm204_vm0, %v1015_v0 }
  0x35   : > { %239 = vst.msk [vmem:[%s1774_s3 + $0x110] sm:$0xff] %vm204_vm0, %v1015_v0 }
  0x36   : > { %240 = vst.msk [vmem:[%s1774_s3 + $0x118] sm:$0xff] %vm204_vm0, %v1015_v0 }
  0x37   : > { %241 = vst.msk [vmem:[%s1774_s3 + $0x120] sm:$0xff] %vm204_vm0, %v1015_v0 }
  0x38   : > { %242 = vst.msk [vmem:[%s1774_s3 + $0x128] sm:$0xff] %vm204_vm0, %v1015_v0 }
  0x39   : > { %243 = vst.msk [vmem:[%s1774_s3 + $0x130] sm:$0xff] %vm204_vm0, %v1015_v0 }
  0x3a   : > { %244 = vst.msk [vmem:[%s1774_s3 + $0x138] sm:$0xff] %vm204_vm0, %v1015_v0 }
  0x3b   : > { %245 = vst.msk [vmem:[%s1774_s3 + $0x140] sm:$0xff] %vm204_vm0, %v1015_v0 }
  0x3c   : > { %246 = vst.msk [vmem:[%s1774_s3 + $0x148] sm:$0xff] %vm204_vm0, %v1015_v0 }
  0x3d   : > { %247 = vst.msk [vmem:[%s1774_s3 + $0x150] sm:$0xff] %vm204_vm0, %v1015_v0 }
  0x3e   : > { %248 = vst.msk [vmem:[%s1774_s3 + $0x158] sm:$0xff] %vm204_vm0, %v1015_v0 }
  0x3f   : > { %249 = vst.msk [vmem:[%s1774_s3 + $0x160] sm:$0xff] %vm204_vm0, %v1015_v0 }
  0x40   : > { %250 = vst.msk [vmem:[%s1774_s3 + $0x168] sm:$0xff] %vm204_vm0, %v1015_v0 }
  0x41   : > { %251 = vst.msk [vmem:[%s1774_s3 + $0x170] sm:$0xff] %vm204_vm0, %v1015_v0 }
  0x42   : > { %252 = vst.msk [vmem:[%s1774_s3 + $0x178] sm:$0xff] %vm204_vm0, %v1015_v0 }
  0x43   : > { %253 = vst.msk [vmem:[%s1774_s3 + $0x180] sm:$0xff] %vm204_vm0, %v1015_v0 }
  0x44 PF: > { %v306_v1 = vld [vmem:[%s1772_s1 + $0x18] sm:$0x1]  ;;  %vm459_vm1 = vcmask 1040384   ;;  %v305_v2 = vld [vmem:[%s1772_s1 + $0x10] sm:$0xff]  ;;  %v304_v3 = vld [vmem:[%s1772_s1 + $0x8] sm:$0xff]  ;;  %vm311_vm2 = vcmask 203776  }
  0x45   : > { %953 = vmatpush.msk.msra.mxu2 %vm459_vm1, %v306_v1  ;;  %954 = vmatpush.msk.msra.mxu3 %vm459_vm1, %v306_v1  ;;  %v303_v4 = vld [vmem:[%s1772_s1] sm:$0xff]  ;;  %v291_v6 = vld [vmem:[%s1057_s20 + $0x128] sm:$0xff]  ;;  %v292_v10 = vld [vmem:[%s1057_s20 + $0x130] sm:$0xff]  ;;  %vm774_vm3 = vcmask 261120  }
  0x46   : > { %898 = vmatpush.msk.msra.mxu0 %vm459_vm1, %v306_v1  ;;  %952 = vmatpush.msk.msra.mxu1 %vm459_vm1, %v306_v1  ;;  %v278_v5 = vld [vmem:[%s1057_s20 + $0xc0] sm:$0xff]  ;;  %v279_v9 = vld [vmem:[%s1057_s20 + $0xc8] sm:$0xff]  ;;  %v280_v13 = vld [vmem:[%s1057_s20 + $0xd0] sm:$0xff] }
  0x47   : > { %956 = vmatpush.msra.mxu2 %v305_v2  ;;  %957 = vmatpush.msra.mxu3 %v305_v2  ;;  %v254_v7 = vld [vmem:[%s1057_s20] sm:$0xff]  ;;  %v255_v11 = vld [vmem:[%s1057_s20 + $0x8] sm:$0xff]  ;;  %v293_v14 = vld [vmem:[%s1057_s20 + $0x138] sm:$0xff] }
  0x48   : > { %476 = vmatpush.msra.mxu0 %v305_v2  ;;  %955 = vmatpush.msra.mxu1 %v305_v2  ;;  %v266_v8 = vld [vmem:[%s1057_s20 + $0x60] sm:$0xff]  ;;  %v267_v12 = vld [vmem:[%s1057_s20 + $0x68] sm:$0xff]  ;;  %v256_v15 = vld [vmem:[%s1057_s20 + $0x10] sm:$0xff] }
  0x49   : > { %959 = vmatpush.msra.mxu2 %v304_v3  ;;  %960 = vmatpush.msra.mxu3 %v304_v3  ;;  %v268_v16 = vld [vmem:[%s1057_s20 + $0x70] sm:$0xff]  ;;  %v281_v17 = vld [vmem:[%s1057_s20 + $0xd8] sm:$0xff]  ;;  %v294_v18 = vld [vmem:[%s1057_s20 + $0x140] sm:$0xff] }
  0x4a   : > { %477 = vmatpush.msra.mxu0 %v304_v3  ;;  %958 = vmatpush.msra.mxu1 %v304_v3  ;;  %v257_v19 = vld [vmem:[%s1057_s20 + $0x18] sm:$0xff]  ;;  %v282_v21 = vld [vmem:[%s1057_s20 + $0xe0] sm:$0xff]  ;;  %v295_v22 = vld [vmem:[%s1057_s20 + $0x148] sm:$0xff] }
  0x4b   : > { %962 = vmatpush.msra.mxu2 %v303_v4  ;;  %963 = vmatpush.msra.mxu3 %v303_v4  ;;  %v269_v20 = vld [vmem:[%s1057_s20 + $0x78] sm:$0xff]  ;;  %v258_v23 = vld [vmem:[%s1057_s20 + $0x20] sm:$0xff]  ;;  %v283_v25 = vld [vmem:[%s1057_s20 + $0xe8] sm:$0xff] }
  0x4c   : > { %923 = vmatmul.msk.f32.vlgmr.msra.gmra.mxu2 %vm311_vm2, %v278_v5  ;;  %936 = vmatmul.msk.f32.vlgmr.msra.gmra.mxu3 %vm311_vm2, %v291_v6  ;;  %v270_v24 = vld [vmem:[%s1057_s20 + $0x80] sm:$0xff]  ;;  %v296_v26 = vld [vmem:[%s1057_s20 + $0x150] sm:$0xff]  ;;  %v259_v27 = vld [vmem:[%s1057_s20 + $0x28] sm:$0xff] }
  0x4d   : > { %478 = vmatpush.msra.mxu0 %v303_v4  ;;  %961 = vmatpush.msra.mxu1 %v303_v4  ;;  %v271_v28 = vld [vmem:[%s1057_s20 + $0x88] sm:$0xff]  ;;  %v284_v29 = vld [vmem:[%s1057_s20 + $0xf0] sm:$0xff]  ;;  %v297_v30 = vld [vmem:[%s1057_s20 + $0x158] sm:$0xff] }
  0x4e   : > { %899 = vmatmul.msk.f32.vlgmr.msra.gmra.mxu0 %vm311_vm2, %v254_v7  ;;  %911 = vmatmul.msk.f32.vlgmr.msra.gmra.mxu1 %vm311_vm2, %v266_v8  ;;  %v260_v31 = vld [vmem:[%s1057_s20 + $0x30] sm:$0xff]  ;;  %v285_v33 = vld [vmem:[%s1057_s20 + $0xf8] sm:$0xff]  ;;  %v298_v34 = vld [vmem:[%s1057_s20 + $0x160] sm:$0xff] }
  0x4f   : > { %v272_v32 = vld [vmem:[%s1057_s20 + $0x90] sm:$0xff]  ;;  %v261_v35 = vld [vmem:[%s1057_s20 + $0x38] sm:$0xff]  ;;  %v286_v37 = vld [vmem:[%s1057_s20 + $0x100] sm:$0xff] }
  0x50   : > { %v273_v36 = vld [vmem:[%s1057_s20 + $0x98] sm:$0xff]  ;;  %v299_v38 = vld [vmem:[%s1057_s20 + $0x168] sm:$0xff]  ;;  %v262_v39 = vld [vmem:[%s1057_s20 + $0x40] sm:$0xff] }
  0x51   : > { %v274_v40 = vld [vmem:[%s1057_s20 + $0xa0] sm:$0xff]  ;;  %v287_v41 = vld [vmem:[%s1057_s20 + $0x108] sm:$0xff]  ;;  %v300_v42 = vld [vmem:[%s1057_s20 + $0x170] sm:$0xff] }
  0x52   : > { %v263_v43 = vld [vmem:[%s1057_s20 + $0x48] sm:$0xff]  ;;  %v288_v45 = vld [vmem:[%s1057_s20 + $0x110] sm:$0xff]  ;;  %v301_v46 = vld [vmem:[%s1057_s20 + $0x178] sm:$0xff] }
  0x53   : > { %v275_v44 = vld [vmem:[%s1057_s20 + $0xa8] sm:$0xff]  ;;  %v264_v47 = vld [vmem:[%s1057_s20 + $0x50] sm:$0xff]  ;;  %v289_v49 = vld [vmem:[%s1057_s20 + $0x118] sm:$0xff] }
  0x54   : > { %924 = vmatmul.msk.f32.gmra.mxu2 %vm311_vm2, %v279_v9  ;;  %937 = vmatmul.msk.f32.gmra.mxu3 %vm311_vm2, %v292_v10  ;;  %v276_v48 = vld [vmem:[%s1057_s20 + $0xb0] sm:$0xff]  ;;  %v302_v50 = vld [vmem:[%s1057_s20 + $0x180] sm:$0xff]  ;;  %v265_v51 = vld [vmem:[%s1057_s20 + $0x58] sm:$0xff] }
  0x55   : > { %v277_v52 = vld [vmem:[%s1057_s20 + $0xb8] sm:$0xff]  ;;  %v290_v53 = vld [vmem:[%s1057_s20 + $0x120] sm:$0xff]  ;;  %v713_v6 = vld [vmem:[%s1774_s3 + $0x128] sm:$0xff] }
  0x56   : > { %900 = vmatmul.msk.f32.gmra.mxu0 %vm311_vm2, %v255_v11  ;;  %912 = vmatmul.msk.f32.gmra.mxu1 %vm311_vm2, %v267_v12  ;;  %v1368_v54 = vld [vmem:[%s1773_s2] ss:$0 sm:$0xff] }
  0x57   : > { %v676_v59 = vld [vmem:[%s1774_s3] sm:$0xff] }
  0x58   : > { %v688_v60 = vld [vmem:[%s1774_s3 + $0x60] sm:$0xff] }
  0x59   : > { %v700_v5 = vld [vmem:[%s1774_s3 + $0xc0] sm:$0xff] }
  0x5c   : > { %925 = vmatmul.msk.f32.gmra.mxu2 %vm311_vm2, %v280_v13  ;;  %938 = vmatmul.msk.f32.gmra.mxu3 %vm311_vm2, %v293_v14 }
  0x5e   : > { %901 = vmatmul.msk.f32.gmra.mxu0 %vm311_vm2, %v256_v15  ;;  %913 = vmatmul.msk.f32.gmra.mxu1 %vm311_vm2, %v268_v16  ;;  %v677_v15 = vld [vmem:[%s1774_s3 + $0x8] sm:$0xff] }
  0x5f   : > { %v689_v16 = vld [vmem:[%s1774_s3 + $0x68] sm:$0xff] }
  0x64   : > { %926 = vmatmul.msk.f32.gmra.mxu2 %vm311_vm2, %v281_v17  ;;  %939 = vmatmul.msk.f32.gmra.mxu3 %vm311_vm2, %v294_v18 }
  0x66   : > { %902 = vmatmul.msk.f32.gmra.mxu0 %vm311_vm2, %v257_v19  ;;  %914 = vmatmul.msk.f32.gmra.mxu1 %vm311_vm2, %v269_v20 }
  0x6c   : > { %927 = vmatmul.msk.f32.gmra.mxu2 %vm311_vm2, %v282_v21  ;;  %940 = vmatmul.msk.f32.gmra.mxu3 %vm311_vm2, %v295_v22 }
  0x6e   : > { %903 = vmatmul.msk.f32.gmra.mxu0 %vm311_vm2, %v258_v23  ;;  %915 = vmatmul.msk.f32.gmra.mxu1 %vm311_vm2, %v270_v24 }
  0x74   : > { %928 = vmatmul.msk.f32.gmra.mxu2 %vm311_vm2, %v283_v25  ;;  %941 = vmatmul.msk.f32.gmra.mxu3 %vm311_vm2, %v296_v26  ;;  %v701_v25 = vld [vmem:[%s1774_s3 + $0xc8] sm:$0xff]  ;;  %v714_v26 = vld [vmem:[%s1774_s3 + $0x130] sm:$0xff] }
  0x76   : > { %904 = vmatmul.msk.f32.gmra.mxu0 %vm311_vm2, %v259_v27  ;;  %916 = vmatmul.msk.f32.gmra.mxu1 %vm311_vm2, %v271_v28 }
  0x7c   : > { %929 = vmatmul.msk.f32.gmra.mxu2 %vm311_vm2, %v284_v29  ;;  %942 = vmatmul.msk.f32.gmra.mxu3 %vm311_vm2, %v297_v30 }
  0x7e   : > { %905 = vmatmul.msk.f32.gmra.mxu0 %vm311_vm2, %v260_v31  ;;  %917 = vmatmul.msk.f32.gmra.mxu1 %vm311_vm2, %v272_v32 }
  0x84   : > { %930 = vmatmul.msk.f32.gmra.mxu2 %vm311_vm2, %v285_v33  ;;  %943 = vmatmul.msk.f32.gmra.mxu3 %vm311_vm2, %v298_v34 }
  0x86   : > { %906 = vmatmul.msk.f32.gmra.mxu0 %vm311_vm2, %v261_v35  ;;  %918 = vmatmul.msk.f32.gmra.mxu1 %vm311_vm2, %v273_v36  ;;  %v678_v35 = vld [vmem:[%s1774_s3 + $0x10] sm:$0xff] }
  0x87   : > { %v690_v36 = vld [vmem:[%s1774_s3 + $0x70] sm:$0xff] }
  0x8c   : > { %931 = vmatmul.msk.f32.gmra.mxu2 %vm311_vm2, %v286_v37  ;;  %944 = vmatmul.msk.f32.gmra.mxu3 %vm311_vm2, %v299_v38 }
  0x8e   : > { %907 = vmatmul.msk.f32.gmra.mxu0 %vm311_vm2, %v262_v39  ;;  %919 = vmatmul.msk.f32.gmra.mxu1 %vm311_vm2, %v274_v40 }
  0x94   : > { %932 = vmatmul.msk.f32.gmra.mxu2 %vm311_vm2, %v287_v41  ;;  %945 = vmatmul.msk.f32.gmra.mxu3 %vm311_vm2, %v300_v42 }
  0x96   : > { %908 = vmatmul.msk.f32.gmra.mxu0 %vm311_vm2, %v263_v43  ;;  %920 = vmatmul.msk.f32.gmra.mxu1 %vm311_vm2, %v275_v44 }
  0x9c   : > { %933 = vmatmul.msk.f32.gmra.mxu2 %vm311_vm2, %v288_v45  ;;  %946 = vmatmul.msk.f32.gmra.mxu3 %vm311_vm2, %v301_v46  ;;  %v702_v45 = vld [vmem:[%s1774_s3 + $0xd0] sm:$0xff]  ;;  %v715_v46 = vld [vmem:[%s1774_s3 + $0x138] sm:$0xff] }
  0x9e   : > { %909 = vmatmul.msk.f32.gmra.mxu0 %vm311_vm2, %v264_v47  ;;  %921 = vmatmul.msk.f32.gmra.mxu1 %vm311_vm2, %v276_v48 }
  0xa4   : > { %934 = vmatmul.msk.f32.gmra.mxu2 %vm311_vm2, %v289_v49  ;;  %947 = vmatmul.msk.f32.gmra.mxu3 %vm311_vm2, %v302_v50 }
  0xa6   : > { %910 = vmatmul.msk.f32.gmra.mxu0 %vm311_vm2, %v265_v51  ;;  %922 = vmatmul.msk.f32.gmra.mxu1 %vm311_vm2, %v277_v52 }
  0xac   : > { %935 = vmatmul.msk.f32.gmra.mxu2 %vm311_vm2, %v290_v53 }
  0xcb   : > { %v480_v55 = vpop.f32.mrf.mxu0  ;;  %v516_v56 = vpop.f32.mrf.mxu1 }
  0xcc   : > { %v481_v57 = vadd.f32 %v1368_v54, %v480_v55  ;;  %v517_v58 = vadd.f32 %v1368_v54, %v516_v56  ;;  %v679_v56 = vld [vmem:[%s1774_s3 + $0x18] sm:$0xff] }
  0xce   : > { %v627_v61 = vmax.f32 %v481_v57, 0.0  ;;  %v639_v62 = vmax.f32 %v517_v58, 0.0  ;;  %v691_v57 = vld [vmem:[%s1774_s3 + $0x78] sm:$0xff] }
  0xcf   : > { %v552_v63 = vpop.f32.mrf.mxu2  ;;  %v591_v0 = vpop.f32.mrf.mxu3 }
  0xd0   : > { %v553_v1 = vadd.f32 %v1368_v54, %v552_v63  ;;  %v725_v2 = vmax.f32 %v676_v59, %v627_v61  ;;  %v737_v3 = vmax.f32 %v688_v60, %v639_v62  ;;  %v592_v4 = vadd.f32 %v1368_v54, %v591_v0 }
  0xd2   : > { %v651_v7 = vmax.f32 %v553_v1, 0.0  ;;  %775 = vst.msk [vmem:[%s1774_s3] sm:$0xff] %vm774_vm3, %v725_v2  ;;  %v664_v8 = vmax.f32 %v592_v4, 0.0  ;;  %v703_v2 = vld [vmem:[%s1774_s3 + $0xd8] sm:$0xff] }
  0xd3   : > { %787 = vst.msk [vmem:[%s1774_s3 + $0x60] sm:$0xff] %vm774_vm3, %v737_v3  ;;  %v483_v9 = vpop.f32.mrf.mxu0  ;;  %v519_v10 = vpop.f32.mrf.mxu1  ;;  %v716_v3 = vld [vmem:[%s1774_s3 + $0x140] sm:$0xff] }
  0xd4   : > { %v749_v11 = vmax.f32 %v700_v5, %v651_v7  ;;  %v762_v12 = vmax.f32 %v713_v6, %v664_v8  ;;  %v484_v13 = vadd.f32 %v1368_v54, %v483_v9  ;;  %v520_v14 = vadd.f32 %v1368_v54, %v519_v10 }
  0xd6   : > { %799 = vst.msk [vmem:[%s1774_s3 + $0xc0] sm:$0xff] %vm774_vm3, %v749_v11  ;;  %v628_v17 = vmax.f32 %v484_v13, 0.0  ;;  %v640_v18 = vmax.f32 %v520_v14, 0.0  ;;  %v692_v13 = vld [vmem:[%s1774_s3 + $0x80] sm:$0xff] }
  0xd7   : > { %v555_v19 = vpop.f32.mrf.mxu2  ;;  %812 = vst.msk [vmem:[%s1774_s3 + $0x128] sm:$0xff] %vm774_vm3, %v762_v12  ;;  %v594_v20 = vpop.f32.mrf.mxu3  ;;  %v680_v12 = vld [vmem:[%s1774_s3 + $0x20] sm:$0xff] }
  0xd8   : > { %v556_v21 = vadd.f32 %v1368_v54, %v555_v19  ;;  %v726_v22 = vmax.f32 %v677_v15, %v628_v17  ;;  %v738_v23 = vmax.f32 %v689_v16, %v640_v18  ;;  %v595_v24 = vadd.f32 %v1368_v54, %v594_v20 }
  0xda   : > { %v652_v27 = vmax.f32 %v556_v21, 0.0  ;;  %776 = vst.msk [vmem:[%s1774_s3 + $0x8] sm:$0xff] %vm774_vm3, %v726_v22  ;;  %v665_v28 = vmax.f32 %v595_v24, 0.0  ;;  %v704_v22 = vld [vmem:[%s1774_s3 + $0xe0] sm:$0xff] }
  0xdb   : > { %788 = vst.msk [vmem:[%s1774_s3 + $0x68] sm:$0xff] %vm774_vm3, %v738_v23  ;;  %v486_v29 = vpop.f32.mrf.mxu0  ;;  %v522_v30 = vpop.f32.mrf.mxu1  ;;  %v717_v23 = vld [vmem:[%s1774_s3 + $0x148] sm:$0xff] }
  0xdc   : > { %v750_v31 = vmax.f32 %v701_v25, %v652_v27  ;;  %v763_v32 = vmax.f32 %v714_v26, %v665_v28  ;;  %v487_v33 = vadd.f32 %v1368_v54, %v486_v29  ;;  %v523_v34 = vadd.f32 %v1368_v54, %v522_v30 }
  0xde   : > { %800 = vst.msk [vmem:[%s1774_s3 + $0xc8] sm:$0xff] %vm774_vm3, %v750_v31  ;;  %v629_v37 = vmax.f32 %v487_v33, 0.0  ;;  %v641_v38 = vmax.f32 %v523_v34, 0.0  ;;  %v693_v33 = vld [vmem:[%s1774_s3 + $0x88] sm:$0xff] }
  0xdf   : > { %v558_v39 = vpop.f32.mrf.mxu2  ;;  %813 = vst.msk [vmem:[%s1774_s3 + $0x130] sm:$0xff] %vm774_vm3, %v763_v32  ;;  %v597_v40 = vpop.f32.mrf.mxu3  ;;  %v681_v32 = vld [vmem:[%s1774_s3 + $0x28] sm:$0xff] }
  0xe0   : > { %v559_v41 = vadd.f32 %v1368_v54, %v558_v39  ;;  %v727_v42 = vmax.f32 %v678_v35, %v629_v37  ;;  %v739_v43 = vmax.f32 %v690_v36, %v641_v38  ;;  %v598_v44 = vadd.f32 %v1368_v54, %v597_v40 }
  0xe2   : > { %v653_v47 = vmax.f32 %v559_v41, 0.0  ;;  %777 = vst.msk [vmem:[%s1774_s3 + $0x10] sm:$0xff] %vm774_vm3, %v727_v42  ;;  %v666_v48 = vmax.f32 %v598_v44, 0.0  ;;  %v705_v42 = vld [vmem:[%s1774_s3 + $0xe8] sm:$0xff] }
  0xe3   : > { %789 = vst.msk [vmem:[%s1774_s3 + $0x70] sm:$0xff] %vm774_vm3, %v739_v43  ;;  %v489_v49 = vpop.f32.mrf.mxu0  ;;  %v525_v50 = vpop.f32.mrf.mxu1  ;;  %v718_v43 = vld [vmem:[%s1774_s3 + $0x150] sm:$0xff] }
  0xe4   : > { %v751_v51 = vmax.f32 %v702_v45, %v653_v47  ;;  %v764_v52 = vmax.f32 %v715_v46, %v666_v48  ;;  %v490_v53 = vadd.f32 %v1368_v54, %v489_v49  ;;  %v526_v55 = vadd.f32 %v1368_v54, %v525_v50 }
  0xe6   : > { %801 = vst.msk [vmem:[%s1774_s3 + $0xd0] sm:$0xff] %vm774_vm3, %v751_v51  ;;  %v630_v58 = vmax.f32 %v490_v53, 0.0  ;;  %v642_v59 = vmax.f32 %v526_v55, 0.0  ;;  %v694_v53 = vld [vmem:[%s1774_s3 + $0x90] sm:$0xff] }
  0xe7   : > { %v561_v60 = vpop.f32.mrf.mxu2  ;;  %814 = vst.msk [vmem:[%s1774_s3 + $0x138] sm:$0xff] %vm774_vm3, %v764_v52  ;;  %v600_v61 = vpop.f32.mrf.mxu3  ;;  %v682_v52 = vld [vmem:[%s1774_s3 + $0x30] sm:$0xff] }
  0xe8   : > { %v562_v62 = vadd.f32 %v1368_v54, %v561_v60  ;;  %v728_v63 = vmax.f32 %v679_v56, %v630_v58  ;;  %v740_v0 = vmax.f32 %v691_v57, %v642_v59  ;;  %v601_v1 = vadd.f32 %v1368_v54, %v600_v61 }
  0xea   : > { %v654_v4 = vmax.f32 %v562_v62, 0.0  ;;  %778 = vst.msk [vmem:[%s1774_s3 + $0x18] sm:$0xff] %vm774_vm3, %v728_v63  ;;  %v667_v5 = vmax.f32 %v601_v1, 0.0  ;;  %v706_v63 = vld [vmem:[%s1774_s3 + $0xf0] sm:$0xff] }
  0xeb   : > { %790 = vst.msk [vmem:[%s1774_s3 + $0x78] sm:$0xff] %vm774_vm3, %v740_v0  ;;  %v492_v6 = vpop.f32.mrf.mxu0  ;;  %v528_v7 = vpop.f32.mrf.mxu1  ;;  %v719_v0 = vld [vmem:[%s1774_s3 + $0x158] sm:$0xff] }
  0xec   : > { %v752_v8 = vmax.f32 %v703_v2, %v654_v4  ;;  %v765_v9 = vmax.f32 %v716_v3, %v667_v5  ;;  %v493_v10 = vadd.f32 %v1368_v54, %v492_v6  ;;  %v529_v11 = vadd.f32 %v1368_v54, %v528_v7 }
  0xee   : > { %802 = vst.msk [vmem:[%s1774_s3 + $0xd8] sm:$0xff] %vm774_vm3, %v752_v8  ;;  %v631_v14 = vmax.f32 %v493_v10, 0.0  ;;  %v643_v15 = vmax.f32 %v529_v11, 0.0  ;;  %v695_v10 = vld [vmem:[%s1774_s3 + $0x98] sm:$0xff] }
  0xef   : > { %v564_v16 = vpop.f32.mrf.mxu2  ;;  %815 = vst.msk [vmem:[%s1774_s3 + $0x140] sm:$0xff] %vm774_vm3, %v765_v9  ;;  %v603_v17 = vpop.f32.mrf.mxu3  ;;  %v683_v9 = vld [vmem:[%s1774_s3 + $0x38] sm:$0xff] }
  0xf0   : > { %v565_v18 = vadd.f32 %v1368_v54, %v564_v16  ;;  %v729_v19 = vmax.f32 %v680_v12, %v631_v14  ;;  %v741_v20 = vmax.f32 %v692_v13, %v643_v15  ;;  %v604_v21 = vadd.f32 %v1368_v54, %v603_v17 }
  0xf2   : > { %v655_v24 = vmax.f32 %v565_v18, 0.0  ;;  %779 = vst.msk [vmem:[%s1774_s3 + $0x20] sm:$0xff] %vm774_vm3, %v729_v19  ;;  %v668_v25 = vmax.f32 %v604_v21, 0.0  ;;  %v707_v19 = vld [vmem:[%s1774_s3 + $0xf8] sm:$0xff] }
  0xf3   : > { %791 = vst.msk [vmem:[%s1774_s3 + $0x80] sm:$0xff] %vm774_vm3, %v741_v20  ;;  %v495_v26 = vpop.f32.mrf.mxu0  ;;  %v531_v27 = vpop.f32.mrf.mxu1  ;;  %v720_v20 = vld [vmem:[%s1774_s3 + $0x160] sm:$0xff] }
  0xf4   : > { %v753_v28 = vmax.f32 %v704_v22, %v655_v24  ;;  %v766_v29 = vmax.f32 %v717_v23, %v668_v25  ;;  %v496_v30 = vadd.f32 %v1368_v54, %v495_v26  ;;  %v532_v31 = vadd.f32 %v1368_v54, %v531_v27 }
  0xf6   : > { %803 = vst.msk [vmem:[%s1774_s3 + $0xe0] sm:$0xff] %vm774_vm3, %v753_v28  ;;  %v632_v34 = vmax.f32 %v496_v30, 0.0  ;;  %v644_v35 = vmax.f32 %v532_v31, 0.0  ;;  %v696_v30 = vld [vmem:[%s1774_s3 + $0xa0] sm:$0xff] }
  0xf7   : > { %v567_v36 = vpop.f32.mrf.mxu2  ;;  %816 = vst.msk [vmem:[%s1774_s3 + $0x148] sm:$0xff] %vm774_vm3, %v766_v29  ;;  %v606_v37 = vpop.f32.mrf.mxu3  ;;  %v684_v29 = vld [vmem:[%s1774_s3 + $0x40] sm:$0xff] }
  0xf8   : > { %v568_v38 = vadd.f32 %v1368_v54, %v567_v36  ;;  %v730_v39 = vmax.f32 %v681_v32, %v632_v34  ;;  %v742_v40 = vmax.f32 %v693_v33, %v644_v35  ;;  %v607_v41 = vadd.f32 %v1368_v54, %v606_v37 }
  0xfa   : > { %v656_v44 = vmax.f32 %v568_v38, 0.0  ;;  %780 = vst.msk [vmem:[%s1774_s3 + $0x28] sm:$0xff] %vm774_vm3, %v730_v39  ;;  %v669_v45 = vmax.f32 %v607_v41, 0.0  ;;  %v708_v39 = vld [vmem:[%s1774_s3 + $0x100] sm:$0xff] }
  0xfb   : > { %792 = vst.msk [vmem:[%s1774_s3 + $0x88] sm:$0xff] %vm774_vm3, %v742_v40  ;;  %v498_v46 = vpop.f32.mrf.mxu0  ;;  %v534_v47 = vpop.f32.mrf.mxu1  ;;  %v721_v40 = vld [vmem:[%s1774_s3 + $0x168] sm:$0xff] }
  0xfc   : > { %v754_v48 = vmax.f32 %v705_v42, %v656_v44  ;;  %v767_v49 = vmax.f32 %v718_v43, %v669_v45  ;;  %v499_v50 = vadd.f32 %v1368_v54, %v498_v46  ;;  %v535_v51 = vadd.f32 %v1368_v54, %v534_v47 }
  0xfe   : > { %804 = vst.msk [vmem:[%s1774_s3 + $0xe8] sm:$0xff] %vm774_vm3, %v754_v48  ;;  %v633_v55 = vmax.f32 %v499_v50, 0.0  ;;  %v645_v56 = vmax.f32 %v535_v51, 0.0  ;;  %v697_v50 = vld [vmem:[%s1774_s3 + $0xa8] sm:$0xff] }
  0xff   : > { %v570_v57 = vpop.f32.mrf.mxu2  ;;  %817 = vst.msk [vmem:[%s1774_s3 + $0x150] sm:$0xff] %vm774_vm3, %v767_v49  ;;  %v609_v58 = vpop.f32.mrf.mxu3  ;;  %v685_v49 = vld [vmem:[%s1774_s3 + $0x48] sm:$0xff] }
 0x100   : > { %v571_v59 = vadd.f32 %v1368_v54, %v570_v57  ;;  %v731_v60 = vmax.f32 %v682_v52, %v633_v55  ;;  %v743_v61 = vmax.f32 %v694_v53, %v645_v56  ;;  %v610_v62 = vadd.f32 %v1368_v54, %v609_v58 }
 0x102   : > { %v657_v1 = vmax.f32 %v571_v59, 0.0  ;;  %781 = vst.msk [vmem:[%s1774_s3 + $0x30] sm:$0xff] %vm774_vm3, %v731_v60  ;;  %v670_v2 = vmax.f32 %v610_v62, 0.0  ;;  %v709_v60 = vld [vmem:[%s1774_s3 + $0x108] sm:$0xff] }
 0x103   : > { %793 = vst.msk [vmem:[%s1774_s3 + $0x90] sm:$0xff] %vm774_vm3, %v743_v61  ;;  %v501_v3 = vpop.f32.mrf.mxu0  ;;  %v537_v4 = vpop.f32.mrf.mxu1  ;;  %v722_v61 = vld [vmem:[%s1774_s3 + $0x170] sm:$0xff] }
 0x104   : > { %v755_v5 = vmax.f32 %v706_v63, %v657_v1  ;;  %v768_v6 = vmax.f32 %v719_v0, %v670_v2  ;;  %v502_v7 = vadd.f32 %v1368_v54, %v501_v3  ;;  %v538_v8 = vadd.f32 %v1368_v54, %v537_v4 }
 0x106   : > { %805 = vst.msk [vmem:[%s1774_s3 + $0xf0] sm:$0xff] %vm774_vm3, %v755_v5  ;;  %v634_v11 = vmax.f32 %v502_v7, 0.0  ;;  %v646_v12 = vmax.f32 %v538_v8, 0.0  ;;  %v698_v7 = vld [vmem:[%s1774_s3 + $0xb0] sm:$0xff] }
 0x107   : > { %v573_v13 = vpop.f32.mrf.mxu2  ;;  %818 = vst.msk [vmem:[%s1774_s3 + $0x158] sm:$0xff] %vm774_vm3, %v768_v6  ;;  %v612_v14 = vpop.f32.mrf.mxu3  ;;  %v686_v6 = vld [vmem:[%s1774_s3 + $0x50] sm:$0xff] }
 0x108   : > { %v574_v15 = vadd.f32 %v1368_v54, %v573_v13  ;;  %v732_v16 = vmax.f32 %v683_v9, %v634_v11  ;;  %v744_v17 = vmax.f32 %v695_v10, %v646_v12  ;;  %v613_v18 = vadd.f32 %v1368_v54, %v612_v14 }
 0x10a   : > { %v658_v21 = vmax.f32 %v574_v15, 0.0  ;;  %782 = vst.msk [vmem:[%s1774_s3 + $0x38] sm:$0xff] %vm774_vm3, %v732_v16  ;;  %v671_v22 = vmax.f32 %v613_v18, 0.0  ;;  %v710_v16 = vld [vmem:[%s1774_s3 + $0x110] sm:$0xff] }
 0x10b   : > { %794 = vst.msk [vmem:[%s1774_s3 + $0x98] sm:$0xff] %vm774_vm3, %v744_v17  ;;  %v504_v23 = vpop.f32.mrf.mxu0  ;;  %v540_v24 = vpop.f32.mrf.mxu1  ;;  %v723_v17 = vld [vmem:[%s1774_s3 + $0x178] sm:$0xff] }
 0x10c   : > { %v756_v25 = vmax.f32 %v707_v19, %v658_v21  ;;  %v769_v26 = vmax.f32 %v720_v20, %v671_v22  ;;  %v505_v27 = vadd.f32 %v1368_v54, %v504_v23  ;;  %v541_v28 = vadd.f32 %v1368_v54, %v540_v24 }
 0x10e   : > { %806 = vst.msk [vmem:[%s1774_s3 + $0xf8] sm:$0xff] %vm774_vm3, %v756_v25  ;;  %v635_v31 = vmax.f32 %v505_v27, 0.0  ;;  %v647_v32 = vmax.f32 %v541_v28, 0.0  ;;  %v699_v27 = vld [vmem:[%s1774_s3 + $0xb8] sm:$0xff] }
 0x10f   : > { %v576_v33 = vpop.f32.mrf.mxu2  ;;  %819 = vst.msk [vmem:[%s1774_s3 + $0x160] sm:$0xff] %vm774_vm3, %v769_v26  ;;  %v615_v34 = vpop.f32.mrf.mxu3  ;;  %v687_v26 = vld [vmem:[%s1774_s3 + $0x58] sm:$0xff] }
 0x110   : > { %v577_v35 = vadd.f32 %v1368_v54, %v576_v33  ;;  %v733_v36 = vmax.f32 %v684_v29, %v635_v31  ;;  %v745_v37 = vmax.f32 %v696_v30, %v647_v32  ;;  %v616_v38 = vadd.f32 %v1368_v54, %v615_v34 }
 0x112   : > { %v659_v41 = vmax.f32 %v577_v35, 0.0  ;;  %783 = vst.msk [vmem:[%s1774_s3 + $0x40] sm:$0xff] %vm774_vm3, %v733_v36  ;;  %v672_v42 = vmax.f32 %v616_v38, 0.0  ;;  %v711_v36 = vld [vmem:[%s1774_s3 + $0x118] sm:$0xff] }
 0x113   : > { %795 = vst.msk [vmem:[%s1774_s3 + $0xa0] sm:$0xff] %vm774_vm3, %v745_v37  ;;  %v507_v43 = vpop.f32.mrf.mxu0  ;;  %v543_v44 = vpop.f32.mrf.mxu1  ;;  %v724_v37 = vld [vmem:[%s1774_s3 + $0x180] sm:$0xff] }
 0x114   : > { %v757_v45 = vmax.f32 %v708_v39, %v659_v41  ;;  %v770_v46 = vmax.f32 %v721_v40, %v672_v42  ;;  %v508_v47 = vadd.f32 %v1368_v54, %v507_v43  ;;  %v544_v48 = vadd.f32 %v1368_v54, %v543_v44  ;;  %v712_v44 = vld [vmem:[%s1774_s3 + $0x120] sm:$0xff] }
 0x116   : > { %807 = vst.msk [vmem:[%s1774_s3 + $0x100] sm:$0xff] %vm774_vm3, %v757_v45  ;;  %v636_v51 = vmax.f32 %v508_v47, 0.0  ;;  %v648_v52 = vmax.f32 %v544_v48, 0.0 }
 0x117   : > { %v579_v53 = vpop.f32.mrf.mxu2  ;;  %820 = vst.msk [vmem:[%s1774_s3 + $0x168] sm:$0xff] %vm774_vm3, %v770_v46  ;;  %v618_v55 = vpop.f32.mrf.mxu3 }
 0x118   : > { %v580_v56 = vadd.f32 %v1368_v54, %v579_v53  ;;  %v734_v57 = vmax.f32 %v685_v49, %v636_v51  ;;  %v746_v58 = vmax.f32 %v697_v50, %v648_v52  ;;  %v619_v59 = vadd.f32 %v1368_v54, %v618_v55 }
 0x11a   : > { %v660_v62 = vmax.f32 %v580_v56, 0.0  ;;  %784 = vst.msk [vmem:[%s1774_s3 + $0x48] sm:$0xff] %vm774_vm3, %v734_v57  ;;  %v673_v63 = vmax.f32 %v619_v59, 0.0 }
 0x11b   : > { %796 = vst.msk [vmem:[%s1774_s3 + $0xa8] sm:$0xff] %vm774_vm3, %v746_v58  ;;  %v510_v0 = vpop.f32.mrf.mxu0  ;;  %v546_v1 = vpop.f32.mrf.mxu1 }
 0x11c   : > { %v758_v2 = vmax.f32 %v709_v60, %v660_v62  ;;  %v771_v3 = vmax.f32 %v722_v61, %v673_v63  ;;  %v511_v4 = vadd.f32 %v1368_v54, %v510_v0  ;;  %v547_v5 = vadd.f32 %v1368_v54, %v546_v1 }
 0x11e   : > { %808 = vst.msk [vmem:[%s1774_s3 + $0x108] sm:$0xff] %vm774_vm3, %v758_v2  ;;  %v637_v8 = vmax.f32 %v511_v4, 0.0  ;;  %v649_v9 = vmax.f32 %v547_v5, 0.0 }
 0x11f   : > { %v582_v10 = vpop.f32.mrf.mxu2  ;;  %821 = vst.msk [vmem:[%s1774_s3 + $0x170] sm:$0xff] %vm774_vm3, %v771_v3  ;;  %v621_v11 = vpop.f32.mrf.mxu3 }
 0x120   : > { %v583_v12 = vadd.f32 %v1368_v54, %v582_v10  ;;  %v735_v13 = vmax.f32 %v686_v6, %v637_v8  ;;  %v747_v14 = vmax.f32 %v698_v7, %v649_v9  ;;  %v622_v15 = vadd.f32 %v1368_v54, %v621_v11 }
 0x122   : > { %v661_v18 = vmax.f32 %v583_v12, 0.0  ;;  %785 = vst.msk [vmem:[%s1774_s3 + $0x50] sm:$0xff] %vm774_vm3, %v735_v13  ;;  %v674_v19 = vmax.f32 %v622_v15, 0.0 }
 0x123   : > { %797 = vst.msk [vmem:[%s1774_s3 + $0xb0] sm:$0xff] %vm774_vm3, %v747_v14  ;;  %v513_v20 = vpop.f32.mrf.mxu0  ;;  %v549_v21 = vpop.f32.mrf.mxu1 }
 0x124   : > { %v759_v22 = vmax.f32 %v710_v16, %v661_v18  ;;  %v772_v23 = vmax.f32 %v723_v17, %v674_v19  ;;  %v514_v24 = vadd.f32 %v1368_v54, %v513_v20  ;;  %v550_v25 = vadd.f32 %v1368_v54, %v549_v21 }
 0x126   : > { %809 = vst.msk [vmem:[%s1774_s3 + $0x110] sm:$0xff] %vm774_vm3, %v759_v22  ;;  %v638_v28 = vmax.f32 %v514_v24, 0.0  ;;  %v650_v29 = vmax.f32 %v550_v25, 0.0 }
 0x127   : > { %v585_v30 = vpop.f32.mrf.mxu2  ;;  %822 = vst.msk [vmem:[%s1774_s3 + $0x178] sm:$0xff] %vm774_vm3, %v772_v23  ;;  %v624_v31 = vpop.f32.mrf.mxu3 }
 0x128   : > { %v586_v32 = vadd.f32 %v1368_v54, %v585_v30  ;;  %v736_v33 = vmax.f32 %v687_v26, %v638_v28  ;;  %v748_v34 = vmax.f32 %v699_v27, %v650_v29  ;;  %v625_v35 = vadd.f32 %v1368_v54, %v624_v31 }
 0x12a   : > { %v662_v38 = vmax.f32 %v586_v32, 0.0  ;;  %786 = vst.msk [vmem:[%s1774_s3 + $0x58] sm:$0xff] %vm774_vm3, %v736_v33  ;;  %v675_v39 = vmax.f32 %v625_v35, 0.0 }
 0x12b   : > { %798 = vst.msk [vmem:[%s1774_s3 + $0xb8] sm:$0xff] %vm774_vm3, %v748_v34 }
 0x12c   : > { %v760_v40 = vmax.f32 %v711_v36, %v662_v38  ;;  %v773_v41 = vmax.f32 %v724_v37, %v675_v39 }
 0x12e   : > { %810 = vst.msk [vmem:[%s1774_s3 + $0x118] sm:$0xff] %vm774_vm3, %v760_v40 }
 0x12f   : > { %v588_v42 = vpop.f32.mrf.mxu2  ;;  %823 = vst.msk [vmem:[%s1774_s3 + $0x180] sm:$0xff] %vm774_vm3, %v773_v41 }
 0x130   : > { %v589_v43 = vadd.f32 %v1368_v54, %v588_v42 }
 0x132   : > { %v663_v45 = vmax.f32 %v589_v43, 0.0 }
 0x134   : > { %v761_v46 = vmax.f32 %v712_v44, %v663_v45 }
 0x136   : > { %811 = vst.msk [vmem:[%s1774_s3 + $0x120] sm:$0xff] %vm774_vm3, %v761_v46 }
 0x137 PF: > { %s13_s14 = sadd.s32 1, %s1013_s14   ;;  %s1775_s12 = smov %s1009_s13 }
 0x138   : > { %p10_p6 = scmp.ge.s32.totalorder %s13_s14, 6   ;;  %s1776_s13 = smov %s1778_s15 }
 0x13a   :  { %12 = sbr.rel (!%p10_p6) target bundleno = 2 (0x2), region = 66 }

// kernel: convnet1_forward.4
= control target key start
LH: loop header
LB: loop body
LE: loop exit
PB: predicated region body
PF: predicated region fallthrough
CT: control target
= control target key end

     0   :  { %s1103_s12 = smov 0   ;;  %s1105_s13 = smov 0   ;;  %s1800_s0 = inlined_call_operand.vmem [shape: f32[4,104,800], index: 0, kind: input, shape index: {}]   ;;  %s1801_s1 = inlined_call_operand.vmem [shape: f32[800,64], index: 1, kind: input, shape index: {}]   ;;  %s1802_s2 = inlined_call_operand.vmem [shape: f32[1,64], index: 2, kind: input, shape index: {}]   ;;  %s1803_s3 = inlined_call_operand.vmem [shape: f32[104,64], index: 3, kind: output, shape index: {}]  }
   0x1   :  { %s1107_s14 = smov 0  }
   0x2 LB: > { %s22_s15 = sadd.s32 1, %s1076_s13  ;;  %p975_p0 = scmp.ge.s32.totalorder %s1080_s14, 1  ;;  %s1080_s14 = sphi %s1107_s14, %s13_s14   ;;  %s1076_s13 = sphi %s1105_s13, %s1805_s13   ;;  %s1072_s12 = sphi %s1103_s12, %s1804_s12  }
   0x3   : > { %p23_p1 = scmp.ge.s32.totalorder %s22_s15, 4  ;;  %p157_p2 = scmp.lt.s32.totalorder %s1080_s14, 5 }
   0x5   : > { %s1807_s15 = smov (%p23_p1, %s22_s15), 0  ;;  %p158_p3 = pnand %p975_p0, %p157_p2 }
   0x6   : > { %p187_p4 = scmp.lt.s32.totalorder (!%p158_p3), %s1072_s12, 3  ;;  %p977_p5 = scmp.ne.s32.totalorder (!%p158_p3), %s1072_s12, 0 }
   0x7   : > { %161 = sbr.rel (%p158_p3) target bundleno = 383 (0x17f), region = 32 }
   0xc   : > { %s188_s16 = scalar_select %p187_p4, %s1072_s12, 3 }
   0xd   : > { %206 = sbr.rel (%p977_p5) target bundleno = 32 (0x20), region = 36 }
   0xe   : > { %s1031_s17 = smul.u32 728, %s188_s16 }
  0x10   : > { %s1124_s20 = scalar_lea.vmem %s1800_s0, %s1031_s17 }
  0x12   : > { %vm207_vm0 = vcmask 523264   ;;  %v1082_v0 = vmov 0.0  }
  0x13   : > { %208 = vst.msk [vmem:[%s1803_s3] sm:$0xff] %vm207_vm0, %v1082_v0 }
  0x14   : > { %209 = vst.msk [vmem:[%s1803_s3 + $0x8] sm:$0xff] %vm207_vm0, %v1082_v0 }
  0x15   : > { %210 = vst.msk [vmem:[%s1803_s3 + $0x10] sm:$0xff] %vm207_vm0, %v1082_v0 }
  0x16   : > { %211 = vst.msk [vmem:[%s1803_s3 + $0x18] sm:$0xff] %vm207_vm0, %v1082_v0 }
  0x17   : > { %212 = vst.msk [vmem:[%s1803_s3 + $0x20] sm:$0xff] %vm207_vm0, %v1082_v0 }
  0x18   : > { %213 = vst.msk [vmem:[%s1803_s3 + $0x28] sm:$0xff] %vm207_vm0, %v1082_v0 }
  0x19   : > { %214 = vst.msk [vmem:[%s1803_s3 + $0x30] sm:$0xff] %vm207_vm0, %v1082_v0 }
  0x1a   : > { %215 = vst.msk [vmem:[%s1803_s3 + $0x38] sm:$0xff] %vm207_vm0, %v1082_v0 }
  0x1b   : > { %216 = vst.msk [vmem:[%s1803_s3 + $0x40] sm:$0xff] %vm207_vm0, %v1082_v0 }
  0x1c   : > { %217 = vst.msk [vmem:[%s1803_s3 + $0x48] sm:$0xff] %vm207_vm0, %v1082_v0 }
  0x1d   : > { %218 = vst.msk [vmem:[%s1803_s3 + $0x50] sm:$0xff] %vm207_vm0, %v1082_v0 }
  0x1e   : > { %219 = vst.msk [vmem:[%s1803_s3 + $0x58] sm:$0xff] %vm207_vm0, %v1082_v0 }
  0x1f   : > { %220 = vst.msk [vmem:[%s1803_s3 + $0x60] sm:$0xff] %vm207_vm0, %v1082_v0 }
  0x20 PF: > { %v327_v1 = vld [vmem:[%s1801_s1 + $0x78] sm:$0xff]  ;;  %v326_v4 = vld [vmem:[%s1801_s1 + $0x70] sm:$0xff]  ;;  %v325_v7 = vld [vmem:[%s1801_s1 + $0x68] sm:$0xff]  ;;  %vm416_vm1 = vcmask 261120   ;;  %vm887_vm2 = vcmask 523264  }
  0x21   : > { %v343_v2 = vld [vmem:[%s1801_s1 + $0xf8] sm:$0xff]  ;;  %456 = vmatpush.msra.mxu0 %v327_v1  ;;  %995 = vmatpush.msra.mxu3 %v327_v1  ;;  %v342_v5 = vld [vmem:[%s1801_s1 + $0xf0] sm:$0xff]  ;;  %v341_v8 = vld [vmem:[%s1801_s1 + $0xe8] sm:$0xff] }
  0x22   : > { %v359_v3 = vld [vmem:[%s1801_s1 + $0x178] sm:$0xff]  ;;  %v358_v6 = vld [vmem:[%s1801_s1 + $0x170] sm:$0xff]  ;;  %512 = vmatpush.msra.mxu1 %v343_v2  ;;  %v357_v9 = vld [vmem:[%s1801_s1 + $0x168] sm:$0xff] }
  0x23   : > { %568 = vmatpush.msra.mxu2 %v359_v3  ;;  %457 = vmatpush.msra.mxu0 %v326_v4  ;;  %v324_v10 = vld [vmem:[%s1801_s1 + $0x60] sm:$0xff]  ;;  %v323_v13 = vld [vmem:[%s1801_s1 + $0x58] sm:$0xff]  ;;  %v322_v16 = vld [vmem:[%s1801_s1 + $0x50] sm:$0xff] }
  0x24   : > { %996 = vmatpush.msra.mxu3 %v326_v4  ;;  %513 = vmatpush.msra.mxu1 %v342_v5  ;;  %v340_v11 = vld [vmem:[%s1801_s1 + $0xe0] sm:$0xff]  ;;  %v339_v14 = vld [vmem:[%s1801_s1 + $0xd8] sm:$0xff]  ;;  %v338_v17 = vld [vmem:[%s1801_s1 + $0xd0] sm:$0xff] }
  0x25   : > { %569 = vmatpush.msra.mxu2 %v358_v6  ;;  %458 = vmatpush.msra.mxu0 %v325_v7  ;;  %v356_v12 = vld [vmem:[%s1801_s1 + $0x160] sm:$0xff]  ;;  %v355_v15 = vld [vmem:[%s1801_s1 + $0x158] sm:$0xff]  ;;  %v354_v18 = vld [vmem:[%s1801_s1 + $0x150] sm:$0xff] }
  0x26   : > { %997 = vmatpush.msra.mxu3 %v325_v7  ;;  %514 = vmatpush.msra.mxu1 %v341_v8  ;;  %v321_v19 = vld [vmem:[%s1801_s1 + $0x48] sm:$0xff]  ;;  %v320_v22 = vld [vmem:[%s1801_s1 + $0x40] sm:$0xff]  ;;  %v319_v25 = vld [vmem:[%s1801_s1 + $0x38] sm:$0xff] }
  0x27   : > { %570 = vmatpush.msra.mxu2 %v357_v9  ;;  %459 = vmatpush.msra.mxu0 %v324_v10  ;;  %v337_v20 = vld [vmem:[%s1801_s1 + $0xc8] sm:$0xff]  ;;  %v336_v23 = vld [vmem:[%s1801_s1 + $0xc0] sm:$0xff]  ;;  %v335_v26 = vld [vmem:[%s1801_s1 + $0xb8] sm:$0xff] }
  0x28   : > { %998 = vmatpush.msra.mxu3 %v324_v10  ;;  %515 = vmatpush.msra.mxu1 %v340_v11  ;;  %v353_v21 = vld [vmem:[%s1801_s1 + $0x148] sm:$0xff]  ;;  %v352_v24 = vld [vmem:[%s1801_s1 + $0x140] sm:$0xff]  ;;  %v351_v27 = vld [vmem:[%s1801_s1 + $0x138] sm:$0xff] }
  0x29   : > { %571 = vmatpush.msra.mxu2 %v356_v12  ;;  %460 = vmatpush.msra.mxu0 %v323_v13  ;;  %v318_v28 = vld [vmem:[%s1801_s1 + $0x30] sm:$0xff]  ;;  %v317_v31 = vld [vmem:[%s1801_s1 + $0x28] sm:$0xff]  ;;  %v316_v34 = vld [vmem:[%s1801_s1 + $0x20] sm:$0xff] }
  0x2a   : > { %999 = vmatpush.msra.mxu3 %v323_v13  ;;  %516 = vmatpush.msra.mxu1 %v339_v14  ;;  %v334_v29 = vld [vmem:[%s1801_s1 + $0xb0] sm:$0xff]  ;;  %v333_v32 = vld [vmem:[%s1801_s1 + $0xa8] sm:$0xff]  ;;  %v332_v35 = vld [vmem:[%s1801_s1 + $0xa0] sm:$0xff] }
  0x2b   : > { %572 = vmatpush.msra.mxu2 %v355_v15  ;;  %461 = vmatpush.msra.mxu0 %v322_v16  ;;  %v350_v30 = vld [vmem:[%s1801_s1 + $0x130] sm:$0xff]  ;;  %v349_v33 = vld [vmem:[%s1801_s1 + $0x128] sm:$0xff]  ;;  %v348_v36 = vld [vmem:[%s1801_s1 + $0x120] sm:$0xff] }
  0x2c   : > { %1000 = vmatpush.msra.mxu3 %v322_v16  ;;  %517 = vmatpush.msra.mxu1 %v338_v17  ;;  %v315_v37 = vld [vmem:[%s1801_s1 + $0x18] sm:$0xff]  ;;  %v314_v40 = vld [vmem:[%s1801_s1 + $0x10] sm:$0xff]  ;;  %v313_v43 = vld [vmem:[%s1801_s1 + $0x8] sm:$0xff] }
  0x2d   : > { %573 = vmatpush.msra.mxu2 %v354_v18  ;;  %462 = vmatpush.msra.mxu0 %v321_v19  ;;  %v331_v38 = vld [vmem:[%s1801_s1 + $0x98] sm:$0xff]  ;;  %v330_v41 = vld [vmem:[%s1801_s1 + $0x90] sm:$0xff]  ;;  %v329_v44 = vld [vmem:[%s1801_s1 + $0x88] sm:$0xff] }
  0x2e   : > { %1001 = vmatpush.msra.mxu3 %v321_v19  ;;  %518 = vmatpush.msra.mxu1 %v337_v20  ;;  %v347_v39 = vld [vmem:[%s1801_s1 + $0x118] sm:$0xff]  ;;  %v346_v42 = vld [vmem:[%s1801_s1 + $0x110] sm:$0xff]  ;;  %v345_v45 = vld [vmem:[%s1801_s1 + $0x108] sm:$0xff] }
  0x2f   : > { %574 = vmatpush.msra.mxu2 %v353_v21  ;;  %463 = vmatpush.msra.mxu0 %v320_v22  ;;  %v312_v46 = vld [vmem:[%s1801_s1] sm:$0xff]  ;;  %v222_v51 = vld [vmem:[%s1124_s20 + $0x8] sm:$0xff]  ;;  %v223_v52 = vld [vmem:[%s1124_s20 + $0x10] sm:$0xff] }
  0x30   : > { %1002 = vmatpush.msra.mxu3 %v320_v22  ;;  %519 = vmatpush.msra.mxu1 %v336_v23  ;;  %v328_v47 = vld [vmem:[%s1801_s1 + $0x80] sm:$0xff]  ;;  %v1316_v53 = vld [vmem:[%s1801_s1 + $0x318] sm:$0xff]  ;;  %v390_v57 = vld [vmem:[%s1801_s1 + $0x270] sm:$0xff] }
  0x31   : > { %575 = vmatpush.msra.mxu2 %v352_v24  ;;  %464 = vmatpush.msra.mxu0 %v319_v25  ;;  %v344_v48 = vld [vmem:[%s1801_s1 + $0x100] sm:$0xff]  ;;  %v391_v54 = vld [vmem:[%s1801_s1 + $0x278] sm:$0xff]  ;;  %v1335_v58 = vld [vmem:[%s1801_s1 + $0x310] sm:$0xff] }
  0x32   : > { %1003 = vmatpush.msra.mxu3 %v319_v25  ;;  %520 = vmatpush.msra.mxu1 %v335_v26  ;;  %v221_v49 = vld [vmem:[%s1124_s20] sm:$0xff]  ;;  %v375_v55 = vld [vmem:[%s1801_s1 + $0x1f8] sm:$0xff]  ;;  %v374_v59 = vld [vmem:[%s1801_s1 + $0x1f0] sm:$0xff] }
  0x33   : > { %576 = vmatpush.msra.mxu2 %v351_v27  ;;  %465 = vmatpush.msra.mxu0 %v318_v28  ;;  %v249_v50 = vld [vmem:[%s1124_s20 + $0xe0] sm:$0xff]  ;;  %v1327_v56 = vld [vmem:[%s1801_s1 + $0x2f8] sm:$0xff]  ;;  %v1344_v60 = vld [vmem:[%s1801_s1 + $0x2f0] sm:$0xff] }
  0x34   : > { %1004 = vmatpush.msra.mxu3 %v318_v28  ;;  %521 = vmatpush.msra.mxu1 %v334_v29  ;;  %v389_v61 = vld [vmem:[%s1801_s1 + $0x268] sm:$0xff]  ;;  %v388_v0 = vld [vmem:[%s1801_s1 + $0x260] sm:$0xff]  ;;  %v256_v1 = vld [vmem:[%s1124_s20 + $0x118] sm:$0xff] }
  0x35   : > { %577 = vmatpush.msra.mxu2 %v350_v30  ;;  %466 = vmatpush.msra.mxu0 %v317_v31  ;;  %v373_v62 = vld [vmem:[%s1801_s1 + $0x1e8] sm:$0xff]  ;;  %v228_v2 = vld [vmem:[%s1124_s20 + $0x38] sm:$0xff]  ;;  %v229_v3 = vld [vmem:[%s1124_s20 + $0x40] sm:$0xff] }
  0x36   : > { %1005 = vmatpush.msra.mxu3 %v317_v31  ;;  %522 = vmatpush.msra.mxu1 %v333_v32  ;;  %v1356_v63 = vld [vmem:[%s1801_s1 + $0x2e8] sm:$0xff]  ;;  %v387_v5 = vld [vmem:[%s1801_s1 + $0x258] sm:$0xff]  ;;  %v372_v6 = vld [vmem:[%s1801_s1 + $0x1e0] sm:$0xff] }
  0x37   : > { %578 = vmatpush.msra.mxu2 %v349_v33  ;;  %467 = vmatpush.msra.mxu0 %v316_v34  ;;  %v230_v4 = vld [vmem:[%s1124_s20 + $0x48] sm:$0xff]  ;;  %v1377_v7 = vld [vmem:[%s1801_s1 + $0x2e0] sm:$0xff]  ;;  %v386_v8 = vld [vmem:[%s1801_s1 + $0x250] sm:$0xff] }
  0x38   : > { %1006 = vmatpush.msra.mxu3 %v316_v34  ;;  %523 = vmatpush.msra.mxu1 %v332_v35  ;;  %v371_v9 = vld [vmem:[%s1801_s1 + $0x1d8] sm:$0xff]  ;;  %v385_v11 = vld [vmem:[%s1801_s1 + $0x248] sm:$0xff]  ;;  %v370_v12 = vld [vmem:[%s1801_s1 + $0x1d0] sm:$0xff] }
  0x39   : > { %579 = vmatpush.msra.mxu2 %v348_v36  ;;  %468 = vmatpush.msra.mxu0 %v315_v37  ;;  %v1388_v10 = vld [vmem:[%s1801_s1 + $0x2d8] sm:$0xff]  ;;  %v1400_v13 = vld [vmem:[%s1801_s1 + $0x2d0] sm:$0xff]  ;;  %v384_v14 = vld [vmem:[%s1801_s1 + $0x240] sm:$0xff] }
  0x3a   : > { %1007 = vmatpush.msra.mxu3 %v315_v37  ;;  %524 = vmatpush.msra.mxu1 %v331_v38  ;;  %v263_v15 = vld [vmem:[%s1124_s20 + $0x150] sm:$0xff]  ;;  %v236_v17 = vld [vmem:[%s1124_s20 + $0x78] sm:$0xff]  ;;  %v237_v18 = vld [vmem:[%s1124_s20 + $0x80] sm:$0xff] }
  0x3b   : > { %580 = vmatpush.msra.mxu2 %v347_v39  ;;  %469 = vmatpush.msra.mxu0 %v314_v40  ;;  %v235_v16 = vld [vmem:[%s1124_s20 + $0x70] sm:$0xff]  ;;  %v383_v19 = vld [vmem:[%s1801_s1 + $0x238] sm:$0xff]  ;;  %v369_v20 = vld [vmem:[%s1801_s1 + $0x1c8] sm:$0xff] }
  0x3c   : > { %1008 = vmatpush.msra.mxu3 %v314_v40  ;;  %525 = vmatpush.msra.mxu1 %v330_v41  ;;  %v1420_v21 = vld [vmem:[%s1801_s1 + $0x2c8] sm:$0xff]  ;;  %v382_v22 = vld [vmem:[%s1801_s1 + $0x230] sm:$0xff]  ;;  %v368_v23 = vld [vmem:[%s1801_s1 + $0x1c0] sm:$0xff] }
  0x3d   : > { %581 = vmatpush.msra.mxu2 %v346_v42  ;;  %470 = vmatpush.msra.mxu0 %v313_v43  ;;  %v1431_v24 = vld [vmem:[%s1801_s1 + $0x2c0] sm:$0xff]  ;;  %v1436_v25 = vld [vmem:[%s1801_s1 + $0x308] sm:$0xff]  ;;  %v367_v27 = vld [vmem:[%s1801_s1 + $0x1b8] sm:$0xff] }
  0x3e   : > { %1009 = vmatpush.msra.mxu3 %v313_v43  ;;  %526 = vmatpush.msra.mxu1 %v329_v44  ;;  %v381_v26 = vld [vmem:[%s1801_s1 + $0x228] sm:$0xff]  ;;  %v380_v28 = vld [vmem:[%s1801_s1 + $0x220] sm:$0xff]  ;;  %v243_v31 = vld [vmem:[%s1124_s20 + $0xb0] sm:$0xff] }
  0x3f   : > { %582 = vmatpush.msra.mxu2 %v345_v45  ;;  %471 = vmatpush.msra.mxu0 %v312_v46  ;;  %v270_v29 = vld [vmem:[%s1124_s20 + $0x188] sm:$0xff]  ;;  %v244_v32 = vld [vmem:[%s1124_s20 + $0xb8] sm:$0xff]  ;;  %v366_v34 = vld [vmem:[%s1801_s1 + $0x1b0] sm:$0xff] }
  0x40   : > { %1010 = vmatpush.msra.mxu3 %v312_v46  ;;  %527 = vmatpush.msra.mxu1 %v328_v47  ;;  %v242_v30 = vld [vmem:[%s1124_s20 + $0xa8] sm:$0xff]  ;;  %v379_v33 = vld [vmem:[%s1801_s1 + $0x218] sm:$0xff]  ;;  %v378_v35 = vld [vmem:[%s1801_s1 + $0x210] sm:$0xff] }
  0x41   : > { %583 = vmatpush.msra.mxu2 %v344_v48  ;;  %472 = vmatmul.f32.vlgmr.msra.gmra.mxu0 %v221_v49  ;;  %v365_v36 = vld [vmem:[%s1801_s1 + $0x1a8] sm:$0xff]  ;;  %v399_v37 = vld [vmem:[%s1801_s1 + $0x2b8] sm:$0xff]  ;;  %v398_v39 = vld [vmem:[%s1801_s1 + $0x2b0] sm:$0xff] }
  0x42   : > { %484 = vmatmul.f32.vlgmr.msra.gmra.mxu3 %v249_v50  ;;  %528 = vmatmul.f32.vlgmr.msra.gmra.mxu1 %v222_v51  ;;  %v377_v38 = vld [vmem:[%s1801_s1 + $0x208] sm:$0xff]  ;;  %v364_v40 = vld [vmem:[%s1801_s1 + $0x1a0] sm:$0xff]  ;;  %v251_v45 = vld [vmem:[%s1124_s20 + $0xf0] sm:$0xff] }
  0x43   : > { %584 = vmatmul.f32.vlgmr.msra.gmra.mxu2 %v223_v52  ;;  %680 = vmatpush.msrb.mxu0 %v391_v54  ;;  %v376_v41 = vld [vmem:[%s1801_s1 + $0x200] sm:$0xff]  ;;  %v250_v43 = vld [vmem:[%s1124_s20 + $0xe8] sm:$0xff]  ;;  %v363_v46 = vld [vmem:[%s1801_s1 + $0x198] sm:$0xff] }
  0x44   : > { %1027 = vmatpush.msrb.mxu2 %v1316_v53  ;;  %624 = vmatpush.msrb.mxu3 %v375_v55  ;;  %v277_v42 = vld [vmem:[%s1124_s20 + $0x1c0] sm:$0xff]  ;;  %v362_v47 = vld [vmem:[%s1801_s1 + $0x190] sm:$0xff]  ;;  %v397_v48 = vld [vmem:[%s1801_s1 + $0x2a8] sm:$0xff] }
  0x45   : > { %1011 = vmatpush.msrb.mxu1 %v1327_v56  ;;  %681 = vmatpush.msrb.mxu0 %v390_v57  ;;  %v225_v44 = vld [vmem:[%s1124_s20 + $0x20] sm:$0xff]  ;;  %v361_v49 = vld [vmem:[%s1801_s1 + $0x188] sm:$0xff]  ;;  %v284_v50 = vld [vmem:[%s1124_s20 + $0x1f8] sm:$0xff] }
  0x46   : > { %1028 = vmatpush.msrb.mxu2 %v1335_v58  ;;  %625 = vmatpush.msrb.mxu3 %v374_v59  ;;  %v257_v51 = vld [vmem:[%s1124_s20 + $0x120] sm:$0xff]  ;;  %v232_v52 = vld [vmem:[%s1124_s20 + $0x58] sm:$0xff]  ;;  %v258_v54 = vld [vmem:[%s1124_s20 + $0x128] sm:$0xff] }
  0x47   : > { %1012 = vmatpush.msrb.mxu1 %v1344_v60  ;;  %682 = vmatpush.msrb.mxu0 %v389_v61  ;;  %v360_v55 = vld [vmem:[%s1801_s1 + $0x180] sm:$0xff]  ;;  %v291_v59 = vld [vmem:[%s1124_s20 + $0x230] sm:$0xff] }
  0x48   : > { %626 = vmatpush.msrb.mxu3 %v373_v62  ;;  %1029 = vmatpush.msrb.mxu2 %v1436_v25  ;;  %v408_v57 = vld [vmem:[%s1801_s1 + $0x300] sm:$0xff]  ;;  %v239_v61 = vld [vmem:[%s1124_s20 + $0x90] sm:$0xff] }
  0x49   : > { %1013 = vmatpush.msrb.mxu1 %v1356_v63  ;;  %683 = vmatpush.msrb.mxu0 %v388_v0  ;;  %v265_v62 = vld [vmem:[%s1124_s20 + $0x160] sm:$0xff]  ;;  %v298_v0 = vld [vmem:[%s1124_s20 + $0x268] sm:$0xff] }
  0x4a   : > { %487 = vmatmul.f32.gmra.mxu3 %v256_v1  ;;  %475 = vmatmul.f32.gmra.mxu0 %v228_v2  ;;  %v271_v1 = vld [vmem:[%s1124_s20 + $0x190] sm:$0xff]  ;;  %v246_v2 = vld [vmem:[%s1124_s20 + $0xc8] sm:$0xff] }
  0x4b   : > { %531 = vmatmul.f32.gmra.mxu1 %v229_v3  ;;  %587 = vmatmul.f32.gmra.mxu2 %v230_v4  ;;  %v272_v3 = vld [vmem:[%s1124_s20 + $0x198] sm:$0xff]  ;;  %v394_v4 = vld [vmem:[%s1801_s1 + $0x290] sm:$0xff] }
  0x4c   : > { %684 = vmatpush.msrb.mxu0 %v387_v5  ;;  %627 = vmatpush.msrb.mxu3 %v372_v6  ;;  %v393_v5 = vld [vmem:[%s1801_s1 + $0x288] sm:$0xff]  ;;  %v305_v6 = vld [vmem:[%s1124_s20 + $0x2a0] sm:$0xff] }
  0x4d   : > { %1014 = vmatpush.msrb.mxu1 %v1377_v7  ;;  %1030 = vmatpush.msrb.mxu2 %v408_v57 }
  0x4e   : > { %685 = vmatpush.msrb.mxu0 %v386_v8  ;;  %628 = vmatpush.msrb.mxu3 %v371_v9  ;;  %v253_v8 = vld [vmem:[%s1124_s20 + $0x100] sm:$0xff]  ;;  %v279_v9 = vld [vmem:[%s1124_s20 + $0x1d0] sm:$0xff] }
  0x4f   : > { %1015 = vmatpush.msrb.mxu1 %v1388_v10 }
  0x50   : > { %686 = vmatpush.msrb.mxu0 %v385_v11  ;;  %629 = vmatpush.msrb.mxu3 %v370_v12  ;;  %v224_v11 = vld [vmem:[%s1124_s20 + $0x18] sm:$0xff]  ;;  %v285_v12 = vld [vmem:[%s1124_s20 + $0x200] sm:$0xff] }
  0x51   : > { %1016 = vmatpush.msrb.mxu1 %v1400_v13 }
  0x52   : > { %687 = vmatpush.msrb.mxu0 %v384_v14  ;;  %490 = vmatmul.f32.gmra.mxu3 %v263_v15  ;;  %v286_v14 = vld [vmem:[%s1124_s20 + $0x208] sm:$0xff]  ;;  %v231_v15 = vld [vmem:[%s1124_s20 + $0x50] sm:$0xff] }
  0x53   : > { %478 = vmatmul.f32.gmra.mxu0 %v235_v16  ;;  %534 = vmatmul.f32.gmra.mxu1 %v236_v17  ;;  %v267_v16 = vld [vmem:[%s1124_s20 + $0x170] sm:$0xff]  ;;  %v293_v17 = vld [vmem:[%s1124_s20 + $0x240] sm:$0xff] }
  0x54   : > { %590 = vmatmul.f32.gmra.mxu2 %v237_v18  ;;  %688 = vmatpush.msrb.mxu0 %v383_v19  ;;  %v299_v18 = vld [vmem:[%s1124_s20 + $0x270] sm:$0xff]  ;;  %v274_v19 = vld [vmem:[%s1124_s20 + $0x1a8] sm:$0xff] }
  0x55   : > { %630 = vmatpush.msrb.mxu3 %v369_v20  ;;  %1017 = vmatpush.msrb.mxu1 %v1420_v21  ;;  %v300_v20 = vld [vmem:[%s1124_s20 + $0x278] sm:$0xff] }
  0x56   : > { %689 = vmatpush.msrb.mxu0 %v382_v22  ;;  %v306_v22 = vld [vmem:[%s1124_s20 + $0x2a8] sm:$0xff] }
  0x57   : > { %631 = vmatpush.msrb.mxu3 %v368_v23  ;;  %1018 = vmatpush.msrb.mxu1 %v1431_v24  ;;  %v281_v23 = vld [vmem:[%s1124_s20 + $0x1e0] sm:$0xff] }
  0x58   : > { %690 = vmatpush.msrb.mxu0 %v381_v26  ;;  %v288_v26 = vld [vmem:[%s1124_s20 + $0x218] sm:$0xff] }
  0x59   : > { %632 = vmatpush.msrb.mxu3 %v367_v27  ;;  %1019 = vmatpush.msrb.mxu1 %v399_v37  ;;  %v247_v27 = vld [vmem:[%s1124_s20 + $0xd0] sm:$0xff] }
  0x5a   : > { %691 = vmatpush.msrb.mxu0 %v380_v28  ;;  %493 = vmatmul.f32.gmra.mxu3 %v270_v29  ;;  %v248_v28 = vld [vmem:[%s1124_s20 + $0xd8] sm:$0xff]  ;;  %v259_v29 = vld [vmem:[%s1124_s20 + $0x130] sm:$0xff] }
  0x5b   : > { %481 = vmatmul.f32.gmra.mxu0 %v242_v30  ;;  %537 = vmatmul.f32.gmra.mxu1 %v243_v31  ;;  %v295_v30 = vld [vmem:[%s1124_s20 + $0x250] sm:$0xff]  ;;  %v254_v31 = vld [vmem:[%s1124_s20 + $0x108] sm:$0xff] }
  0x5c   : > { %593 = vmatmul.f32.gmra.mxu2 %v244_v32  ;;  %692 = vmatpush.msrb.mxu0 %v379_v33  ;;  %v255_v32 = vld [vmem:[%s1124_s20 + $0x110] sm:$0xff]  ;;  %v266_v33 = vld [vmem:[%s1124_s20 + $0x168] sm:$0xff] }
  0x5d   : > { %633 = vmatpush.msrb.mxu3 %v366_v34  ;;  %1020 = vmatpush.msrb.mxu1 %v398_v39  ;;  %v302_v34 = vld [vmem:[%s1124_s20 + $0x288] sm:$0xff] }
  0x5e   : > { %693 = vmatpush.msrb.mxu0 %v378_v35  ;;  %v261_v35 = vld [vmem:[%s1124_s20 + $0x140] sm:$0xff] }
  0x5f   : > { %634 = vmatpush.msrb.mxu3 %v365_v36  ;;  %1021 = vmatpush.msrb.mxu1 %v397_v48  ;;  %v262_v36 = vld [vmem:[%s1124_s20 + $0x148] sm:$0xff] }
  0x60   : > { %694 = vmatpush.msrb.mxu0 %v377_v38 }
  0x61   : > { %635 = vmatpush.msrb.mxu3 %v364_v40 }
  0x62   : > { %695 = vmatpush.msrb.mxu0 %v376_v41  ;;  %496 = vmatmul.f32.gmra.mxu3 %v277_v42  ;;  %v309_v42 = vld [vmem:[%s1124_s20 + $0x2c0] sm:$0xff] }
  0x63   : > { %540 = vmatmul.f32.gmra.mxu1 %v250_v43  ;;  %696 = vmatmul.f32.vlgmr.msrb.gmra.mxu0 %v225_v44  ;;  %v268_v43 = vld [vmem:[%s1124_s20 + $0x178] sm:$0xff]  ;;  %v269_v44 = vld [vmem:[%s1124_s20 + $0x180] sm:$0xff] }
  0x64   : > { %596 = vmatmul.f32.gmra.mxu2 %v251_v45  ;;  %736 = vmatpush.msra.mxu0 %v1327_v56  ;;  %v396_v56 = vld [vmem:[%s1801_s1 + $0x2a0] sm:$0xff] }
  0x65   : > { %636 = vmatpush.msrb.mxu3 %v363_v46  ;;  %1022 = vmatpush.msrb.mxu1 %v396_v56 }
  0x66   : > { %737 = vmatpush.msra.mxu0 %v1344_v60  ;;  %v264_v60 = vld [vmem:[%s1124_s20 + $0x158] sm:$0xff] }
  0x67   : > { %637 = vmatpush.msrb.mxu3 %v362_v47 }
  0x68   : > { %738 = vmatpush.msra.mxu0 %v1356_v63  ;;  %v395_v63 = vld [vmem:[%s1801_s1 + $0x298] sm:$0xff] }
  0x69   : > { %638 = vmatpush.msrb.mxu3 %v361_v49  ;;  %1023 = vmatpush.msrb.mxu1 %v395_v63  ;;  %v280_v49 = vld [vmem:[%s1124_s20 + $0x1d8] sm:$0xff] }
  0x6a   : > { %499 = vmatmul.f32.gmra.mxu3 %v284_v50  ;;  %739 = vmatpush.msra.mxu0 %v1377_v7  ;;  %v278_v7 = vld [vmem:[%s1124_s20 + $0x1c8] sm:$0xff] }
  0x6b   : > { %543 = vmatmul.f32.gmra.mxu1 %v257_v51  ;;  %699 = vmatmul.f32.gmra.mxu0 %v232_v52  ;;  %v226_v52 = vld [vmem:[%s1124_s20 + $0x28] sm:$0xff] }
  0x6c   : > { %599 = vmatmul.f32.gmra.mxu2 %v258_v54  ;;  %740 = vmatpush.msra.mxu0 %v1388_v10  ;;  %v392_v10 = vld [vmem:[%s1801_s1 + $0x280] sm:$0xff]  ;;  %v275_v54 = vld [vmem:[%s1124_s20 + $0x1b0] sm:$0xff] }
  0x6d   : > { %639 = vmatpush.msrb.mxu3 %v360_v55  ;;  %1024 = vmatpush.msrb.mxu1 %v394_v4 }
  0x6e   : > { %741 = vmatpush.msra.mxu0 %v1400_v13  ;;  %v260_v13 = vld [vmem:[%s1124_s20 + $0x138] sm:$0xff] }
  0x6f   : > { %1025 = vmatpush.msrb.mxu1 %v393_v5 }
  0x70   : > { %742 = vmatpush.msra.mxu0 %v1420_v21  ;;  %v245_v21 = vld [vmem:[%s1124_s20 + $0xc0] sm:$0xff] }
  0x71   : > { %1026 = vmatpush.msrb.mxu1 %v392_v10 }
  0x72   : > { %502 = vmatmul.f32.gmra.mxu3 %v291_v59  ;;  %743 = vmatpush.msra.mxu0 %v1431_v24  ;;  %v307_v24 = vld [vmem:[%s1124_s20 + $0x2b0] sm:$0xff] }
  0x73   : > { %546 = vmatmul.f32.gmra.mxu1 %v264_v60  ;;  %702 = vmatmul.f32.gmra.mxu0 %v239_v61  ;;  %v287_v61 = vld [vmem:[%s1124_s20 + $0x210] sm:$0xff] }
  0x74   : > { %602 = vmatmul.f32.gmra.mxu2 %v265_v62  ;;  %744 = vmatpush.msra.mxu0 %v399_v37  ;;  %v1579_v37 = vld [vmem:[%s1802_s2] ss:$0 sm:$0xff] }
  0x76   : > { %745 = vmatpush.msra.mxu0 %v398_v39  ;;  %v273_v39 = vld [vmem:[%s1124_s20 + $0x1a0] sm:$0xff] }
  0x78   : > { %746 = vmatpush.msra.mxu0 %v397_v48 }
  0x7a   : > { %505 = vmatmul.f32.gmra.mxu3 %v298_v0  ;;  %747 = vmatpush.msra.mxu0 %v396_v56  ;;  %v276_v56 = vld [vmem:[%s1124_s20 + $0x1b8] sm:$0xff] }
  0x7b   : > { %549 = vmatmul.f32.gmra.mxu1 %v271_v1  ;;  %705 = vmatmul.f32.gmra.mxu0 %v246_v2  ;;  %v233_v1 = vld [vmem:[%s1124_s20 + $0x60] sm:$0xff]  ;;  %v282_v2 = vld [vmem:[%s1124_s20 + $0x1e8] sm:$0xff] }
  0x7c   : > { %605 = vmatmul.f32.gmra.mxu2 %v272_v3  ;;  %748 = vmatpush.msra.mxu0 %v395_v63 }
  0x7e   : > { %749 = vmatpush.msra.mxu0 %v394_v4  ;;  %v283_v4 = vld [vmem:[%s1124_s20 + $0x1f0] sm:$0xff] }
  0x80   : > { %750 = vmatpush.msra.mxu0 %v393_v5 }
  0x82   : > { %508 = vmatmul.f32.gmra.mxu3 %v305_v6  ;;  %751 = vmatpush.msra.mxu0 %v392_v10 }
  0x83   : > { %552 = vmatmul.f32.gmra.mxu1 %v278_v7  ;;  %708 = vmatmul.f32.gmra.mxu0 %v253_v8  ;;  %v294_v8 = vld [vmem:[%s1124_s20 + $0x248] sm:$0xff] }
  0x84   : > { %608 = vmatmul.f32.gmra.mxu2 %v279_v9  ;;  %804 = vmatpush.msrb.mxu0 %v1316_v53  ;;  %v292_v53 = vld [vmem:[%s1124_s20 + $0x238] sm:$0xff] }
  0x86   : > { %805 = vmatpush.msrb.mxu0 %v1335_v58  ;;  %v238_v58 = vld [vmem:[%s1124_s20 + $0x88] sm:$0xff] }
  0x88   : > { %806 = vmatpush.msrb.mxu0 %v1436_v25  ;;  %v252_v25 = vld [vmem:[%s1124_s20 + $0xf8] sm:$0xff] }
  0x8a   : > { %640 = vmatmul.f32.vlgmr.msrb.gmra.mxu3 %v224_v11  ;;  %807 = vmatpush.msrb.mxu0 %v408_v57 }
  0x8b   : > { %555 = vmatmul.f32.gmra.mxu1 %v285_v12  ;;  %711 = vmatmul.f32.gmra.mxu0 %v260_v13  ;;  %v240_v12 = vld [vmem:[%s1124_s20 + $0x98] sm:$0xff]  ;;  %v289_v13 = vld [vmem:[%s1124_s20 + $0x220] sm:$0xff] }
  0x8c   : > { %611 = vmatmul.f32.gmra.mxu2 %v286_v14 }
  0x92   : > { %643 = vmatmul.f32.gmra.mxu3 %v231_v15  ;;  %v290_v15 = vld [vmem:[%s1124_s20 + $0x228] sm:$0xff] }
  0x93   : > { %558 = vmatmul.f32.gmra.mxu1 %v292_v53  ;;  %714 = vmatmul.f32.gmra.mxu0 %v267_v16 }
  0x94   : > { %614 = vmatmul.f32.gmra.mxu2 %v293_v17 }
  0x9a   : > { %646 = vmatmul.f32.gmra.mxu3 %v238_v58 }
  0x9b   : > { %561 = vmatmul.f32.gmra.mxu1 %v299_v18  ;;  %717 = vmatmul.f32.gmra.mxu0 %v274_v19  ;;  %v301_v18 = vld [vmem:[%s1124_s20 + $0x280] sm:$0xff] }
  0x9c   : > { %617 = vmatmul.f32.gmra.mxu2 %v300_v20 }
  0xa2   : > { %649 = vmatmul.f32.gmra.mxu3 %v245_v21 }
  0xa3   : > { %564 = vmatmul.f32.gmra.mxu1 %v306_v22  ;;  %720 = vmatmul.f32.gmra.mxu0 %v281_v23  ;;  %v227_v22 = vld [vmem:[%s1124_s20 + $0x30] sm:$0xff]  ;;  %v296_v23 = vld [vmem:[%s1124_s20 + $0x258] sm:$0xff] }
  0xa4   : > { %620 = vmatmul.f32.gmra.mxu2 %v307_v24 }
  0xaa   : > { %652 = vmatmul.f32.gmra.mxu3 %v252_v25  ;;  %v297_v25 = vld [vmem:[%s1124_s20 + $0x260] sm:$0xff] }
  0xab   : > { %723 = vmatmul.f32.gmra.mxu0 %v288_v26  ;;  %761 = vmatmul.f32.vlgmr.msrb.gmra.mxu1 %v247_v27 }
  0xac   : > { %981 = vmatmul.msk.f32.vlgmr.msrb.gmra.mxu2 %vm416_vm1, %v248_v28 }
  0xb2   : > { %655 = vmatmul.f32.gmra.mxu3 %v259_v29  ;;  %v308_v29 = vld [vmem:[%s1124_s20 + $0x2b8] sm:$0xff] }
  0xb3   : > { %726 = vmatmul.f32.gmra.mxu0 %v295_v30  ;;  %764 = vmatmul.f32.gmra.mxu1 %v254_v31 }
  0xb4   : > { %982 = vmatmul.msk.f32.gmra.mxu2 %vm416_vm1, %v255_v32 }
  0xba   : > { %658 = vmatmul.f32.gmra.mxu3 %v266_v33  ;;  %v234_v33 = vld [vmem:[%s1124_s20 + $0x68] sm:$0xff] }
  0xbb   : > { %729 = vmatmul.f32.gmra.mxu0 %v302_v34  ;;  %767 = vmatmul.f32.gmra.mxu1 %v261_v35  ;;  %v303_v34 = vld [vmem:[%s1124_s20 + $0x290] sm:$0xff] }
  0xbc   : > { %983 = vmatmul.msk.f32.gmra.mxu2 %vm416_vm1, %v262_v36  ;;  %v304_v36 = vld [vmem:[%s1124_s20 + $0x298] sm:$0xff] }
  0xbe   : > { %v473_v38 = vpop.f32.mrf.mxu0 }
  0xbf   : > { %v474_v40 = vadd.f32 %v1579_v37, %v473_v38  ;;  %v529_v41 = vpop.f32.mrf.mxu1 }
  0xc1   : > { %v530_v45 = vadd.f32 %v529_v41, %v474_v40 }
  0xc2   : > { %661 = vmatmul.f32.gmra.mxu3 %v273_v39 }
  0xc3   : > { %732 = vmatmul.f32.gmra.mxu0 %v309_v42  ;;  %770 = vmatmul.f32.gmra.mxu1 %v268_v43 }
  0xc4   : > { %984 = vmatmul.msk.f32.gmra.mxu2 %vm416_vm1, %v269_v44  ;;  %v241_v44 = vld [vmem:[%s1124_s20 + $0xa0] sm:$0xff] }
  0xc5   : > { %v485_v46 = vpop.f32.mrf.mxu3 }
  0xc6   : > { %v585_v47 = vpop.f32.mrf.mxu2  ;;  %v486_v17 = vadd.f32 %v1579_v37, %v485_v46 }
  0xc7   : > { %v1587_v48 = vadd.f32 %v585_v47, %v530_v45  ;;  %v476_v50 = vpop.f32.mrf.mxu0  ;;  %v310_v45 = vld [vmem:[%s1124_s20 + $0x2c8] sm:$0xff]  ;;  %v311_v47 = vld [vmem:[%s1124_s20 + $0x2d0] sm:$0xff] }
  0xc8   : > { %v532_v51 = vpop.f32.mrf.mxu1  ;;  %v477_v55 = vadd.f32 %v1579_v37, %v476_v50 }
  0xca   : > { %664 = vmatmul.f32.gmra.mxu3 %v280_v49  ;;  %v533_v57 = vadd.f32 %v532_v51, %v477_v55 }
  0xcb   : > { %752 = vmatmul.f32.vlgmr.msra.gmra.mxu0 %v226_v52  ;;  %773 = vmatmul.f32.gmra.mxu1 %v275_v54 }
  0xcc   : > { %985 = vmatmul.msk.f32.gmra.mxu2 %vm416_vm1, %v276_v56 }
  0xcd   : > { %v488_v59 = vpop.f32.mrf.mxu3 }
  0xce   : > { %v588_v60 = vpop.f32.mrf.mxu2  ;;  %v489_v27 = vadd.f32 %v1579_v37, %v488_v59 }
  0xcf   : > { %v1596_v62 = vadd.f32 %v588_v60, %v533_v57 }
  0xd0   : > { %v479_v63 = vpop.f32.mrf.mxu0  ;;  %v535_v0 = vpop.f32.mrf.mxu1 }
  0xd1   : > { %v480_v3 = vadd.f32 %v1579_v37, %v479_v63 }
  0xd2   : > { %667 = vmatmul.f32.gmra.mxu3 %v287_v61 }
  0xd3   : > { %v536_v5 = vadd.f32 %v535_v0, %v480_v3  ;;  %755 = vmatmul.f32.gmra.mxu0 %v233_v1  ;;  %776 = vmatmul.f32.gmra.mxu1 %v282_v2 }
  0xd4   : > { %986 = vmatmul.msk.f32.gmra.mxu2 %vm416_vm1, %v283_v4 }
  0xd5   : > { %v491_v6 = vpop.f32.mrf.mxu3 }
  0xd6   : > { %v492_v39 = vadd.f32 %v1579_v37, %v491_v6 }
  0xd7   : > { %v591_v7 = vpop.f32.mrf.mxu2 }
  0xd8   : > { %v1604_v9 = vadd.f32 %v591_v7, %v536_v5  ;;  %v482_v10 = vpop.f32.mrf.mxu0  ;;  %v538_v11 = vpop.f32.mrf.mxu1 }
  0xd9   : > { %v483_v14 = vadd.f32 %v1579_v37, %v482_v10 }
  0xda   : > { %670 = vmatmul.f32.gmra.mxu3 %v294_v8 }
  0xdb   : > { %v539_v53 = vadd.f32 %v538_v11, %v483_v14  ;;  %758 = vmatmul.f32.gmra.mxu0 %v240_v12  ;;  %779 = vmatmul.f32.gmra.mxu1 %v289_v13 }
  0xdc   : > { %987 = vmatmul.msk.f32.gmra.mxu2 %vm416_vm1, %v290_v15 }
  0xdd   : > { %v494_v16 = vpop.f32.mrf.mxu3 }
  0xde   : > { %v495_v50 = vadd.f32 %v1579_v37, %v494_v16 }
  0xdf   : > { %v594_v58 = vpop.f32.mrf.mxu2 }
  0xe0   : > { %v1613_v19 = vadd.f32 %v594_v58, %v539_v53  ;;  %v541_v20 = vpop.f32.mrf.mxu1  ;;  %v1615_v21 = vpop.f32.mrf.mxu0 }
  0xe1   : > { %v542_v24 = vadd.f32 %v541_v20, %v486_v17 }
  0xe2   : > { %673 = vmatmul.f32.gmra.mxu3 %v301_v18 }
  0xe3   : > { %978 = vmatmul.msk.f32.vlgmr.msrb.gmra.mxu0 %vm416_vm1, %v227_v22  ;;  %782 = vmatmul.f32.gmra.mxu1 %v296_v23 }
  0xe4   : > { %988 = vmatmul.msk.f32.gmra.mxu2 %vm416_vm1, %v297_v25 }
  0xe5   : > { %v497_v26 = vpop.f32.mrf.mxu3 }
  0xe6   : > { %v498_v59 = vadd.f32 %v1579_v37, %v497_v26 }
  0xe7   : > { %v597_v28 = vpop.f32.mrf.mxu2 }
  0xe8   : > { %v1624_v30 = vadd.f32 %v597_v28, %v542_v24  ;;  %v544_v31 = vpop.f32.mrf.mxu1  ;;  %v700_v32 = vpop.f32.mrf.mxu0 }
  0xe9   : > { %v545_v35 = vadd.f32 %v544_v31, %v489_v27 }
  0xea   : > { %676 = vmatmul.f32.gmra.mxu3 %v308_v29 }
  0xeb   : > { %979 = vmatmul.msk.f32.gmra.mxu0 %vm416_vm1, %v234_v33  ;;  %785 = vmatmul.f32.gmra.mxu1 %v303_v34 }
  0xec   : > { %989 = vmatmul.msk.f32.gmra.mxu2 %vm416_vm1, %v304_v36 }
  0xed   : > { %v500_v38 = vpop.f32.mrf.mxu3 }
  0xee   : > { %v501_v3 = vadd.f32 %v1579_v37, %v500_v38 }
  0xef   : > { %v600_v40 = vpop.f32.mrf.mxu2 }
  0xf0   : > { %v1632_v41 = vadd.f32 %v600_v40, %v545_v35  ;;  %v547_v42 = vpop.f32.mrf.mxu1  ;;  %v703_v43 = vpop.f32.mrf.mxu0 }
  0xf1   : > { %v548_v46 = vadd.f32 %v547_v42, %v492_v39 }
  0xf3   : > { %980 = vmatmul.msk.f32.gmra.mxu0 %vm416_vm1, %v241_v44  ;;  %788 = vmatmul.f32.gmra.mxu1 %v310_v45 }
  0xf4   : > { %990 = vmatmul.msk.f32.gmra.mxu2 %vm416_vm1, %v311_v47 }
  0xf5   : > { %v503_v49 = vpop.f32.mrf.mxu3 }
  0xf6   : > { %v504_v12 = vadd.f32 %v1579_v37, %v503_v49 }
  0xf7   : > { %v603_v51 = vpop.f32.mrf.mxu2 }
  0xf8   : > { %v1640_v52 = vadd.f32 %v603_v51, %v548_v46  ;;  %v550_v54 = vpop.f32.mrf.mxu1  ;;  %v706_v55 = vpop.f32.mrf.mxu0 }
  0xf9   : > { %v551_v56 = vadd.f32 %v550_v54, %v495_v50 }
  0xfd   : > { %v506_v57 = vpop.f32.mrf.mxu3 }
  0xfe   : > { %v507_v20 = vadd.f32 %v1579_v37, %v506_v57 }
  0xff   : > { %v606_v60 = vpop.f32.mrf.mxu2 }
 0x100   : > { %v1643_v61 = vadd.f32 %v606_v60, %v551_v56  ;;  %v553_v63 = vpop.f32.mrf.mxu1  ;;  %v709_v0 = vpop.f32.mrf.mxu0 }
 0x101   : > { %v554_v1 = vadd.f32 %v553_v63, %v498_v59 }
 0x105   : > { %v509_v2 = vpop.f32.mrf.mxu3 }
 0x107   : > { %v609_v4 = vpop.f32.mrf.mxu2 }
 0x108   : > { %v1646_v5 = vadd.f32 %v609_v4, %v554_v1  ;;  %v556_v6 = vpop.f32.mrf.mxu1  ;;  %v712_v7 = vpop.f32.mrf.mxu0 }
 0x109   : > { %v557_v8 = vadd.f32 %v556_v6, %v501_v3 }
 0x10d   : > { %v641_v10 = vpop.f32.mrf.mxu3 }
 0x10e   : > { %v642_v11 = vadd.f32 %v641_v10, %v1587_v48 }
 0x10f   : > { %v612_v13 = vpop.f32.mrf.mxu2 }
 0x110   : > { %v1650_v14 = vadd.f32 %v612_v13, %v557_v8  ;;  %v559_v15 = vpop.f32.mrf.mxu1  ;;  %v715_v53 = vpop.f32.mrf.mxu0  ;;  %v1653_v16 = vadd.f32 %v1615_v21, %v642_v11  ;;  %v510_v21 = vadd.f32 %v1579_v37, %v509_v2  ;;  %v866_v13 = vld [vmem:[%s1803_s3 + $0x28] sm:$0xff] }
 0x111   : > { %v560_v17 = vadd.f32 %v559_v15, %v504_v12 }
 0x115   : > { %v644_v58 = vpop.f32.mrf.mxu3 }
 0x116   : > { %v645_v18 = vadd.f32 %v644_v58, %v1596_v62 }
 0x117   : > { %v615_v22 = vpop.f32.mrf.mxu2 }
 0x118   : > { %v1657_v23 = vadd.f32 %v615_v22, %v560_v17  ;;  %v562_v48 = vpop.f32.mrf.mxu1  ;;  %v1659_v24 = vpop.f32.mrf.mxu0  ;;  %v1661_v25 = vadd.f32 %v700_v32, %v645_v18 }
 0x119   : > { %v563_v26 = vadd.f32 %v562_v48, %v507_v20 }
 0x11d   : > { %v647_v27 = vpop.f32.mrf.mxu3 }
 0x11e   : > { %v648_v28 = vadd.f32 %v647_v27, %v1604_v9  ;;  %v867_v27 = vld [vmem:[%s1803_s3 + $0x30] sm:$0xff] }
 0x11f   : > { %v618_v29 = vpop.f32.mrf.mxu2 }
 0x120   : > { %v1665_v31 = vadd.f32 %v618_v29, %v563_v26  ;;  %v565_v62 = vpop.f32.mrf.mxu1  ;;  %v1667_v33 = vpop.f32.mrf.mxu0  ;;  %v1669_v34 = vadd.f32 %v703_v43, %v648_v28 }
 0x121   : > { %v566_v35 = vadd.f32 %v565_v62, %v510_v21 }
 0x125   : > { %v650_v36 = vpop.f32.mrf.mxu3 }
 0x126   : > { %v651_v38 = vadd.f32 %v650_v36, %v1613_v19  ;;  %v864_v19 = vld [vmem:[%s1803_s3 + $0x18] sm:$0xff] }
 0x127   : > { %v621_v32 = vpop.f32.mrf.mxu2 }
 0x128   : > { %v1672_v39 = vadd.f32 %v621_v32, %v566_v35  ;;  %v1674_v40 = vpop.f32.mrf.mxu0  ;;  %v762_v9 = vpop.f32.mrf.mxu1  ;;  %v707_v42 = vadd.f32 %v706_v55, %v651_v38 }
 0x12a   : > { %v763_v44 = vadd.f32 %v762_v9, %v707_v42  ;;  %v868_v9 = vld [vmem:[%s1803_s3 + $0x38] sm:$0xff] }
 0x12d   : > { %v653_v37 = vpop.f32.mrf.mxu3 }
 0x12e   : > { %v654_v45 = vadd.f32 %v653_v37, %v1624_v30 }
 0x12f   : > { %v818_v46 = vpop.f32.mrf.mxu2 }
 0x130   : > { %v819_v47 = vadd.f32 %v818_v46, %v763_v44  ;;  %v1677_v49 = vpop.f32.mrf.mxu0  ;;  %v765_v43 = vpop.f32.mrf.mxu1  ;;  %v710_v51 = vadd.f32 %v709_v0, %v654_v45  ;;  %v865_v0 = vld [vmem:[%s1803_s3 + $0x20] sm:$0xff] }
 0x132   : > { %v851_v50 = vmax.f32 %v819_v47, 0.0  ;;  %v766_v30 = vadd.f32 %v765_v43, %v710_v51 }
 0x134   : > { %v877_v54 = vmax.f32 %v864_v19, %v851_v50  ;;  %v869_v50 = vld [vmem:[%s1803_s3 + $0x40] sm:$0xff] }
 0x135   : > { %v656_v56 = vpop.f32.mrf.mxu3 }
 0x136   : > { %891 = vst.msk [vmem:[%s1803_s3 + $0x18] sm:$0xff] %vm887_vm2, %v877_v54  ;;  %v657_v55 = vadd.f32 %v656_v56, %v1632_v41 }
 0x137   : > { %v821_v57 = vpop.f32.mrf.mxu2 }
 0x138   : > { %v822_v59 = vadd.f32 %v821_v57, %v766_v30  ;;  %v1687_v60 = vpop.f32.mrf.mxu0  ;;  %v768_v63 = vpop.f32.mrf.mxu1  ;;  %v713_v2 = vadd.f32 %v712_v7, %v657_v55 }
 0x13a   : > { %v852_v1 = vmax.f32 %v822_v59, 0.0  ;;  %v769_v6 = vadd.f32 %v768_v63, %v713_v2 }
 0x13c   : > { %v878_v3 = vmax.f32 %v865_v0, %v852_v1 }
 0x13d   : > { %v659_v4 = vpop.f32.mrf.mxu3 }
 0x13e   : > { %892 = vst.msk [vmem:[%s1803_s3 + $0x20] sm:$0xff] %vm887_vm2, %v878_v3  ;;  %v660_v41 = vadd.f32 %v659_v4, %v1640_v52  ;;  %v861_v3 = vld [vmem:[%s1803_s3] sm:$0xff] }
 0x13f   : > { %v824_v8 = vpop.f32.mrf.mxu2 }
 0x140   : > { %v825_v10 = vadd.f32 %v824_v8, %v769_v6  ;;  %v1697_v11 = vpop.f32.mrf.mxu0  ;;  %v771_v12 = vpop.f32.mrf.mxu1  ;;  %v716_v15 = vadd.f32 %v715_v53, %v660_v41 }
 0x142   : > { %v853_v7 = vmax.f32 %v825_v10, 0.0  ;;  %v772_v18 = vadd.f32 %v771_v12, %v716_v15  ;;  %v871_v15 = vld [vmem:[%s1803_s3 + $0x50] sm:$0xff] }
 0x144   : > { %v879_v17 = vmax.f32 %v866_v13, %v853_v7 }
 0x145   : > { %v662_v58 = vpop.f32.mrf.mxu3 }
 0x146   : > { %893 = vst.msk [vmem:[%s1803_s3 + $0x28] sm:$0xff] %vm887_vm2, %v879_v17  ;;  %v663_v52 = vadd.f32 %v662_v58, %v1643_v61 }
 0x147   : > { %v827_v20 = vpop.f32.mrf.mxu2 }
 0x148   : > { %v828_v22 = vadd.f32 %v827_v20, %v772_v18  ;;  %v753_v48 = vpop.f32.mrf.mxu0  ;;  %v774_v26 = vpop.f32.mrf.mxu1  ;;  %v719_v53 = vadd.f32 %v1659_v24, %v663_v52 }
 0x149   : > { %v754_v55 = vadd.f32 %v753_v48, %v1653_v16 }
 0x14a   : > { %v854_v28 = vmax.f32 %v828_v22, 0.0  ;;  %v775_v62 = vadd.f32 %v774_v26, %v719_v53 }
 0x14c   : > { %v880_v21 = vmax.f32 %v867_v27, %v854_v28 }
 0x14d   : > { %v665_v29 = vpop.f32.mrf.mxu3 }
 0x14e   : > { %894 = vst.msk [vmem:[%s1803_s3 + $0x30] sm:$0xff] %vm887_vm2, %v880_v21  ;;  %v666_v61 = vadd.f32 %v665_v29, %v1646_v5  ;;  %v872_v29 = vld [vmem:[%s1803_s3 + $0x58] sm:$0xff] }
 0x14f   : > { %v830_v35 = vpop.f32.mrf.mxu2 }
 0x150   : > { %v831_v36 = vadd.f32 %v830_v35, %v775_v62  ;;  %v756_v38 = vpop.f32.mrf.mxu0  ;;  %v777_v32 = vpop.f32.mrf.mxu1  ;;  %v722_v24 = vadd.f32 %v1667_v33, %v666_v61 }
 0x151   : > { %v757_v12 = vadd.f32 %v756_v38, %v1661_v25 }
 0x152   : > { %v855_v42 = vmax.f32 %v831_v36, 0.0  ;;  %v778_v45 = vadd.f32 %v777_v32, %v722_v24 }
 0x154   : > { %v881_v37 = vmax.f32 %v868_v9, %v855_v42 }
 0x155   : > { %v668_v44 = vpop.f32.mrf.mxu3 }
 0x156   : > { %895 = vst.msk [vmem:[%s1803_s3 + $0x38] sm:$0xff] %vm887_vm2, %v881_v37  ;;  %v669_v5 = vadd.f32 %v668_v44, %v1650_v14 }
 0x157   : > { %v833_v46 = vpop.f32.mrf.mxu2 }
 0x158   : > { %v834_v47 = vadd.f32 %v833_v46, %v778_v45  ;;  %v759_v43 = vpop.f32.mrf.mxu0  ;;  %v780_v19 = vpop.f32.mrf.mxu1  ;;  %v725_v33 = vadd.f32 %v1674_v40, %v669_v5  ;;  %v870_v40 = vld [vmem:[%s1803_s3 + $0x48] sm:$0xff] }
 0x159   : > { %v760_v28 = vadd.f32 %v759_v43, %v1669_v34 }
 0x15a   : > { %v856_v51 = vmax.f32 %v834_v47, 0.0  ;;  %v781_v30 = vadd.f32 %v780_v19, %v725_v33 }
 0x15c   : > { %v882_v54 = vmax.f32 %v869_v50, %v856_v51 }
 0x15d   : > { %v671_v56 = vpop.f32.mrf.mxu3 }
 0x15e   : > { %896 = vst.msk [vmem:[%s1803_s3 + $0x40] sm:$0xff] %vm887_vm2, %v882_v54  ;;  %v672_v14 = vadd.f32 %v671_v56, %v1657_v23 }
 0x15f   : > { %v836_v57 = vpop.f32.mrf.mxu2 }
 0x160   : > { %v837_v59 = vadd.f32 %v836_v57, %v781_v30  ;;  %v809_v63 = vpop.f32.mrf.mxu0  ;;  %v783_v0 = vpop.f32.mrf.mxu1  ;;  %v728_v4 = vadd.f32 %v1677_v49, %v672_v14 }
 0x161   : > { %v810_v1 = vadd.f32 %v809_v63, %v754_v55 }
 0x162   : > { %v857_v2 = vmax.f32 %v837_v59, 0.0  ;;  %v784_v8 = vadd.f32 %v783_v0, %v728_v4 }
 0x163   : > { %v848_v6 = vmax.f32 %v810_v1, 0.0 }
 0x164   : > { %v883_v23 = vmax.f32 %v870_v40, %v857_v2 }
 0x165   : > { %v874_v41 = vmax.f32 %v861_v3, %v848_v6  ;;  %v674_v16 = vpop.f32.mrf.mxu3 }
 0x166   : > { %897 = vst.msk [vmem:[%s1803_s3 + $0x48] sm:$0xff] %vm887_vm2, %v883_v23  ;;  %v675_v10 = vadd.f32 %v674_v16, %v1665_v31  ;;  %v862_v31 = vld [vmem:[%s1803_s3 + $0x8] sm:$0xff] }
 0x167   : > { %888 = vst.msk [vmem:[%s1803_s3] sm:$0xff] %vm887_vm2, %v874_v41  ;;  %v839_v49 = vpop.f32.mrf.mxu2 }
 0x168   : > { %v840_v13 = vadd.f32 %v839_v49, %v784_v8  ;;  %v812_v7 = vpop.f32.mrf.mxu0  ;;  %v786_v58 = vpop.f32.mrf.mxu1  ;;  %v731_v25 = vadd.f32 %v1687_v60, %v675_v10 }
 0x169   : > { %v813_v17 = vadd.f32 %v812_v7, %v757_v12 }
 0x16a   : > { %v858_v18 = vmax.f32 %v840_v13, 0.0  ;;  %v787_v26 = vadd.f32 %v786_v58, %v731_v25 }
 0x16b   : > { %v849_v52 = vmax.f32 %v813_v17, 0.0 }
 0x16c   : > { %v884_v20 = vmax.f32 %v871_v15, %v858_v18 }
 0x16d   : > { %v875_v22 = vmax.f32 %v862_v31, %v849_v52  ;;  %v677_v48 = vpop.f32.mrf.mxu3 }
 0x16e   : > { %898 = vst.msk [vmem:[%s1803_s3 + $0x50] sm:$0xff] %vm887_vm2, %v884_v20  ;;  %v678_v27 = vadd.f32 %v677_v48, %v1672_v39  ;;  %v863_v39 = vld [vmem:[%s1803_s3 + $0x10] sm:$0xff] }
 0x16f   : > { %889 = vst.msk [vmem:[%s1803_s3 + $0x8] sm:$0xff] %vm887_vm2, %v875_v22  ;;  %v842_v60 = vpop.f32.mrf.mxu2 }
 0x170   : > { %v843_v53 = vadd.f32 %v842_v60, %v787_v26  ;;  %v815_v21 = vpop.f32.mrf.mxu0  ;;  %v734_v34 = vadd.f32 %v1697_v11, %v678_v27  ;;  %v789_v36 = vpop.f32.mrf.mxu1  ;;  %v873_v11 = vld [vmem:[%s1803_s3 + $0x60] sm:$0xff] }
 0x171   : > { %v816_v62 = vadd.f32 %v815_v21, %v760_v28 }
 0x172   : > { %v859_v61 = vmax.f32 %v843_v53, 0.0  ;;  %v790_v9 = vadd.f32 %v789_v36, %v734_v34 }
 0x173   : > { %v850_v35 = vmax.f32 %v816_v62, 0.0 }
 0x174   : > { %v885_v38 = vmax.f32 %v872_v29, %v859_v61 }
 0x175   : > { %v876_v32 = vmax.f32 %v863_v39, %v850_v35 }
 0x176   : > { %899 = vst.msk [vmem:[%s1803_s3 + $0x58] sm:$0xff] %vm887_vm2, %v885_v38 }
 0x177   : > { %890 = vst.msk [vmem:[%s1803_s3 + $0x10] sm:$0xff] %vm887_vm2, %v876_v32  ;;  %v845_v42 = vpop.f32.mrf.mxu2 }
 0x178   : > { %v846_v24 = vadd.f32 %v845_v42, %v790_v9 }
 0x17a   : > { %v860_v37 = vmax.f32 %v846_v24, 0.0 }
 0x17c   : > { %v886_v44 = vmax.f32 %v873_v11, %v860_v37 }
 0x17e   : > { %900 = vst.msk [vmem:[%s1803_s3 + $0x60] sm:$0xff] %vm887_vm2, %v886_v44 }
 0x17f PF: > { %s13_s14 = sadd.s32 1, %s1080_s14   ;;  %s1804_s12 = smov %s1076_s13 }
 0x180   : > { %p10_p6 = scmp.ge.s32.totalorder %s13_s14, 6   ;;  %s1805_s13 = smov %s1807_s15 }
 0x182   :  { %12 = sbr.rel (!%p10_p6) target bundleno = 2 (0x2), region = 66 }

// kernel: convnet1_forward.5
= control target key start
LH: loop header
LB: loop body
LE: loop exit
PB: predicated region body
PF: predicated region fallthrough
CT: control target
= control target key end

     0   :  { %s13221_s18 = smov 0   ;;  %s13223_s19 = smov 0   ;;  %s16033_s0 = inlined_call_operand.vmem [shape: bf16[8,3136], index: 0, kind: input, shape index: {}]   ;;  %s16034_s1 = inlined_call_operand.vmem [shape: bf16[3136,1024], index: 1, kind: input, shape index: {}]   ;;  %s16035_s2 = inlined_call_operand.vmem [shape: f32[1,1024], index: 2, kind: input, shape index: {}]   ;;  %s16036_s3 = inlined_call_operand.vmem [shape: f32[1024,10], index: 3, kind: input, shape index: {}]   ;;  %s16037_s4 = inlined_call_operand.vmem [shape: f32[1,10], index: 4, kind: input, shape index: {}]   ;;  %s16038_s5 = inlined_call_operand.vmem [shape: f32[8,10], index: 5, kind: output, shape index: {}]  }
   0x1   :  { %s13225_s20 = smov 0   ;;  %s13227_s21 = smov 0  }
   0x2   :  { %s13229_s22 = smov 0  }
   0x3 LB: > { %s24_s23 = sadd.s32 1, %s13169_s21  ;;  %p67_p1 = scmp.ne.s32.totalorder %s13161_s19, %s13157_s18  ;;  %s13173_s22 = sphi %s13229_s22, %s15_s22   ;;  %s13169_s21 = sphi %s13227_s21, %s16047_s21   ;;  %s13165_s20 = sphi %s13225_s20, %s16046_s20   ;;  %s13161_s19 = sphi %s13223_s19, %s16045_s19   ;;  %s13157_s18 = sphi %s13221_s18, %s16044_s18  }
   0x4   : > { %p25_p0 = scmp.ge.s32.totalorder %s24_s23, 2  ;;  %p68_p2 = scmp.eq.s32.totalorder %s13173_s22, 0 }
   0x5   : > { %s60_s25 = sadd.s32 1, %s13161_s19  ;;  %p9103_p5 = scmp.ge.s32.totalorder %s13173_s22, 2 }
   0x6   : > { %s16049_s23 = smov (%p25_p0, %s24_s23), 0  ;;  %p69_p3 = por %p68_p2, %p67_p1 }
   0x7   : > { %s57_s24 = ssub.s32 %s13169_s21, %s16049_s23  ;;  %203 = sbr.rel (%p9103_p5) target bundleno = 410 (0x19a), region = 24 }
   0x8   : > { %p58_p4 = scmp.eq.s32.totalorder %s57_s24, 0 }
   0xa   : > { %s13256_s26 = scalar_select %p58_p4, %s13161_s19, %s60_s25  }
   0xc   : > { %206 = sbr.rel (!%p69_p3) target bundleno = 410 (0x19a), region = 28  ;;  %s208_s27 = sand.u32 (%p69_p3), 1, %s13161_s19  }
   0xd   : > { %s12256_s28 = sshll.u32 (%p69_p3), %s13169_s21, 4  ;;  %s13261_s29 = smul.u32 (%p69_p3), 6272, %s208_s27 }
   0xe   : > { %s13266_s7 = scalar_lea.vmem (%p69_p3), %s16034_s1, %s12256_s28   ;;  %s13276_s11 = smov (%p69_p3), 0  }
   0xf   : > { %s210_s8 = scalar_lea.vmem (%p69_p3), [#allocation2], %s13261_s29   ;;  %s16040_s10 = smov (%p69_p3), %s13266_s7 }
  0x10   : > { %s16039_s9 = smov (%p69_p3), %s210_s8  ;;  %s13278_s12 = smov (%p69_p3), 0  }
  0x11 LB: >> { %v227_v0 = vld [vmem:[%s13181_s10] sm:$0xff]  ;;  %s1011_s13 = sadd.s32 1, %s13185_s11  ;;  %s223_s12 = sadd.s32 1, %s13189_s12   ;;  %s13189_s12 = sphi %s13278_s12, %s223_s12   ;;  %s13185_s11 = sphi %s13276_s11, %s16043_s11   ;;  %s13181_s10 = sphi %s16040_s10, %s16042_s10   ;;  %s13177_s9 = sphi %s16039_s9, %s16041_s9  }
  0x12   : >> { %v229_v1 = vld [vmem:[%s13181_s10 + $0x20] sm:$0xff]  ;;  %228 = vst [vmem:[%s13177_s9] sm:$0xff] %v227_v0  ;;  %p1012_p6 = scmp.ge.s32.totalorder %s1011_s13, 2  ;;  %p220_p7 = scmp.ge.s32.totalorder %s223_s12, 2  }
  0x13   : >> { %v231_v2 = vld [vmem:[%s13181_s10 + $0x40] sm:$0xff]  ;;  %230 = vst [vmem:[%s13177_s9 + $0x10] sm:$0xff] %v229_v1 }
  0x14   : >> { %v233_v3 = vld [vmem:[%s13181_s10 + $0x60] sm:$0xff]  ;;  %232 = vst [vmem:[%s13177_s9 + $0x20] sm:$0xff] %v231_v2  ;;  %s16051_s13 = smov (%p1012_p6, %s1011_s13), 0 }
  0x15   : >> { %v235_v4 = vld [vmem:[%s13181_s10 + $0x80] sm:$0xff]  ;;  %234 = vst [vmem:[%s13177_s9 + $0x30] sm:$0xff] %v233_v3  ;;  %s9106_s14 = sshll.u32 %s16051_s13, 3  ;;  %s16043_s11 = smov %s16051_s13 }
  0x16   : >> { %v237_v5 = vld [vmem:[%s13181_s10 + $0xa0] sm:$0xff]  ;;  %236 = vst [vmem:[%s13177_s9 + $0x40] sm:$0xff] %v235_v4  ;;  %s13828_s15 = scalar_lea.vmem %s13266_s7, %s9106_s14   ;;  %s13832_s16 = scalar_lea.vmem %s210_s8, %s9106_s14 [#allocation2]  }
  0x17   : >> { %v239_v6 = vld [vmem:[%s13181_s10 + $0xc0] sm:$0xff]  ;;  %238 = vst [vmem:[%s13177_s9 + $0x50] sm:$0xff] %v237_v5 }
  0x18   : >> { %v241_v7 = vld [vmem:[%s13181_s10 + $0xe0] sm:$0xff]  ;;  %240 = vst [vmem:[%s13177_s9 + $0x60] sm:$0xff] %v239_v6 }
  0x19   : >> { %v243_v8 = vld [vmem:[%s13181_s10 + $0x100] sm:$0xff]  ;;  %242 = vst [vmem:[%s13177_s9 + $0x70] sm:$0xff] %v241_v7 }
  0x1a   : >> { %v245_v9 = vld [vmem:[%s13181_s10 + $0x120] sm:$0xff]  ;;  %244 = vst [vmem:[%s13177_s9 + $0x80] sm:$0xff] %v243_v8 }
  0x1b   : >> { %v247_v10 = vld [vmem:[%s13181_s10 + $0x140] sm:$0xff]  ;;  %246 = vst [vmem:[%s13177_s9 + $0x90] sm:$0xff] %v245_v9 }
  0x1c   : >> { %v249_v11 = vld [vmem:[%s13181_s10 + $0x160] sm:$0xff]  ;;  %248 = vst [vmem:[%s13177_s9 + $0xa0] sm:$0xff] %v247_v10 }
  0x1d   : >> { %v251_v12 = vld [vmem:[%s13181_s10 + $0x180] sm:$0xff]  ;;  %250 = vst [vmem:[%s13177_s9 + $0xb0] sm:$0xff] %v249_v11 }
  0x1e   : >> { %v253_v13 = vld [vmem:[%s13181_s10 + $0x1a0] sm:$0xff]  ;;  %252 = vst [vmem:[%s13177_s9 + $0xc0] sm:$0xff] %v251_v12 }
  0x1f   : >> { %v255_v14 = vld [vmem:[%s13181_s10 + $0x1c0] sm:$0xff]  ;;  %254 = vst [vmem:[%s13177_s9 + $0xd0] sm:$0xff] %v253_v13 }
  0x20   : >> { %v257_v15 = vld [vmem:[%s13181_s10 + $0x1e0] sm:$0xff]  ;;  %256 = vst [vmem:[%s13177_s9 + $0xe0] sm:$0xff] %v255_v14 }
  0x21   : >> { %v259_v16 = vld [vmem:[%s13181_s10 + $0x200] sm:$0xff]  ;;  %258 = vst [vmem:[%s13177_s9 + $0xf0] sm:$0xff] %v257_v15 }
  0x22   : >> { %v261_v17 = vld [vmem:[%s13181_s10 + $0x220] sm:$0xff]  ;;  %260 = vst [vmem:[%s13177_s9 + $0x100] sm:$0xff] %v259_v16 }
  0x23   : >> { %v263_v18 = vld [vmem:[%s13181_s10 + $0x240] sm:$0xff]  ;;  %262 = vst [vmem:[%s13177_s9 + $0x110] sm:$0xff] %v261_v17 }
  0x24   : >> { %v265_v19 = vld [vmem:[%s13181_s10 + $0x260] sm:$0xff]  ;;  %264 = vst [vmem:[%s13177_s9 + $0x120] sm:$0xff] %v263_v18 }
  0x25   : >> { %v267_v20 = vld [vmem:[%s13181_s10 + $0x280] sm:$0xff]  ;;  %266 = vst [vmem:[%s13177_s9 + $0x130] sm:$0xff] %v265_v19 }
  0x26   : >> { %v269_v21 = vld [vmem:[%s13181_s10 + $0x2a0] sm:$0xff]  ;;  %268 = vst [vmem:[%s13177_s9 + $0x140] sm:$0xff] %v267_v20 }
  0x27   : >> { %v271_v22 = vld [vmem:[%s13181_s10 + $0x2c0] sm:$0xff]  ;;  %270 = vst [vmem:[%s13177_s9 + $0x150] sm:$0xff] %v269_v21 }
  0x28   : >> { %v273_v23 = vld [vmem:[%s13181_s10 + $0x2e0] sm:$0xff]  ;;  %272 = vst [vmem:[%s13177_s9 + $0x160] sm:$0xff] %v271_v22 }
  0x29   : >> { %v275_v24 = vld [vmem:[%s13181_s10 + $0x300] sm:$0xff]  ;;  %274 = vst [vmem:[%s13177_s9 + $0x170] sm:$0xff] %v273_v23 }
  0x2a   : >> { %v277_v25 = vld [vmem:[%s13181_s10 + $0x320] sm:$0xff]  ;;  %276 = vst [vmem:[%s13177_s9 + $0x180] sm:$0xff] %v275_v24 }
  0x2b   : >> { %v279_v26 = vld [vmem:[%s13181_s10 + $0x340] sm:$0xff]  ;;  %278 = vst [vmem:[%s13177_s9 + $0x190] sm:$0xff] %v277_v25 }
  0x2c   : >> { %v281_v27 = vld [vmem:[%s13181_s10 + $0x360] sm:$0xff]  ;;  %280 = vst [vmem:[%s13177_s9 + $0x1a0] sm:$0xff] %v279_v26 }
  0x2d   : >> { %v283_v28 = vld [vmem:[%s13181_s10 + $0x380] sm:$0xff]  ;;  %282 = vst [vmem:[%s13177_s9 + $0x1b0] sm:$0xff] %v281_v27 }
  0x2e   : >> { %v285_v29 = vld [vmem:[%s13181_s10 + $0x3a0] sm:$0xff]  ;;  %284 = vst [vmem:[%s13177_s9 + $0x1c0] sm:$0xff] %v283_v28 }
  0x2f   : >> { %v287_v30 = vld [vmem:[%s13181_s10 + $0x3c0] sm:$0xff]  ;;  %286 = vst [vmem:[%s13177_s9 + $0x1d0] sm:$0xff] %v285_v29 }
  0x30   : >> { %v289_v31 = vld [vmem:[%s13181_s10 + $0x3e0] sm:$0xff]  ;;  %288 = vst [vmem:[%s13177_s9 + $0x1e0] sm:$0xff] %v287_v30 }
  0x31   : >> { %v291_v32 = vld [vmem:[%s13181_s10 + $0x400] sm:$0xff]  ;;  %290 = vst [vmem:[%s13177_s9 + $0x1f0] sm:$0xff] %v289_v31 }
  0x32   : >> { %v293_v33 = vld [vmem:[%s13181_s10 + $0x420] sm:$0xff]  ;;  %292 = vst [vmem:[%s13177_s9 + $0x200] sm:$0xff] %v291_v32 }
  0x33   : >> { %v295_v34 = vld [vmem:[%s13181_s10 + $0x440] sm:$0xff]  ;;  %294 = vst [vmem:[%s13177_s9 + $0x210] sm:$0xff] %v293_v33 }
  0x34   : >> { %v297_v35 = vld [vmem:[%s13181_s10 + $0x460] sm:$0xff]  ;;  %296 = vst [vmem:[%s13177_s9 + $0x220] sm:$0xff] %v295_v34 }
  0x35   : >> { %v299_v36 = vld [vmem:[%s13181_s10 + $0x480] sm:$0xff]  ;;  %298 = vst [vmem:[%s13177_s9 + $0x230] sm:$0xff] %v297_v35 }
  0x36   : >> { %v301_v37 = vld [vmem:[%s13181_s10 + $0x4a0] sm:$0xff]  ;;  %300 = vst [vmem:[%s13177_s9 + $0x240] sm:$0xff] %v299_v36 }
  0x37   : >> { %v303_v38 = vld [vmem:[%s13181_s10 + $0x4c0] sm:$0xff]  ;;  %302 = vst [vmem:[%s13177_s9 + $0x250] sm:$0xff] %v301_v37 }
  0x38   : >> { %v305_v39 = vld [vmem:[%s13181_s10 + $0x4e0] sm:$0xff]  ;;  %304 = vst [vmem:[%s13177_s9 + $0x260] sm:$0xff] %v303_v38 }
  0x39   : >> { %v307_v40 = vld [vmem:[%s13181_s10 + $0x500] sm:$0xff]  ;;  %306 = vst [vmem:[%s13177_s9 + $0x270] sm:$0xff] %v305_v39 }
  0x3a   : >> { %v309_v41 = vld [vmem:[%s13181_s10 + $0x520] sm:$0xff]  ;;  %308 = vst [vmem:[%s13177_s9 + $0x280] sm:$0xff] %v307_v40 }
  0x3b   : >> { %v311_v42 = vld [vmem:[%s13181_s10 + $0x540] sm:$0xff]  ;;  %310 = vst [vmem:[%s13177_s9 + $0x290] sm:$0xff] %v309_v41 }
  0x3c   : >> { %v313_v43 = vld [vmem:[%s13181_s10 + $0x560] sm:$0xff]  ;;  %312 = vst [vmem:[%s13177_s9 + $0x2a0] sm:$0xff] %v311_v42 }
  0x3d   : >> { %v315_v44 = vld [vmem:[%s13181_s10 + $0x580] sm:$0xff]  ;;  %314 = vst [vmem:[%s13177_s9 + $0x2b0] sm:$0xff] %v313_v43 }
  0x3e   : >> { %v317_v45 = vld [vmem:[%s13181_s10 + $0x5a0] sm:$0xff]  ;;  %316 = vst [vmem:[%s13177_s9 + $0x2c0] sm:$0xff] %v315_v44 }
  0x3f   : >> { %v319_v46 = vld [vmem:[%s13181_s10 + $0x5c0] sm:$0xff]  ;;  %318 = vst [vmem:[%s13177_s9 + $0x2d0] sm:$0xff] %v317_v45 }
  0x40   : >> { %v321_v47 = vld [vmem:[%s13181_s10 + $0x5e0] sm:$0xff]  ;;  %320 = vst [vmem:[%s13177_s9 + $0x2e0] sm:$0xff] %v319_v46 }
  0x41   : >> { %v323_v48 = vld [vmem:[%s13181_s10 + $0x600] sm:$0xff]  ;;  %322 = vst [vmem:[%s13177_s9 + $0x2f0] sm:$0xff] %v321_v47 }
  0x42   : >> { %v325_v49 = vld [vmem:[%s13181_s10 + $0x620] sm:$0xff]  ;;  %324 = vst [vmem:[%s13177_s9 + $0x300] sm:$0xff] %v323_v48 }
  0x43   : >> { %v327_v50 = vld [vmem:[%s13181_s10 + $0x640] sm:$0xff]  ;;  %326 = vst [vmem:[%s13177_s9 + $0x310] sm:$0xff] %v325_v49 }
  0x44   : >> { %v329_v51 = vld [vmem:[%s13181_s10 + $0x660] sm:$0xff]  ;;  %328 = vst [vmem:[%s13177_s9 + $0x320] sm:$0xff] %v327_v50 }
  0x45   : >> { %v331_v52 = vld [vmem:[%s13181_s10 + $0x680] sm:$0xff]  ;;  %330 = vst [vmem:[%s13177_s9 + $0x330] sm:$0xff] %v329_v51 }
  0x46   : >> { %v333_v53 = vld [vmem:[%s13181_s10 + $0x6a0] sm:$0xff]  ;;  %332 = vst [vmem:[%s13177_s9 + $0x340] sm:$0xff] %v331_v52 }
  0x47   : >> { %v335_v54 = vld [vmem:[%s13181_s10 + $0x6c0] sm:$0xff]  ;;  %334 = vst [vmem:[%s13177_s9 + $0x350] sm:$0xff] %v333_v53 }
  0x48   : >> { %v337_v55 = vld [vmem:[%s13181_s10 + $0x6e0] sm:$0xff]  ;;  %336 = vst [vmem:[%s13177_s9 + $0x360] sm:$0xff] %v335_v54 }
  0x49   : >> { %v339_v56 = vld [vmem:[%s13181_s10 + $0x700] sm:$0xff]  ;;  %338 = vst [vmem:[%s13177_s9 + $0x370] sm:$0xff] %v337_v55 }
  0x4a   : >> { %v341_v57 = vld [vmem:[%s13181_s10 + $0x720] sm:$0xff]  ;;  %340 = vst [vmem:[%s13177_s9 + $0x380] sm:$0xff] %v339_v56 }
  0x4b   : >> { %v343_v58 = vld [vmem:[%s13181_s10 + $0x740] sm:$0xff]  ;;  %342 = vst [vmem:[%s13177_s9 + $0x390] sm:$0xff] %v341_v57 }
  0x4c   : >> { %v345_v59 = vld [vmem:[%s13181_s10 + $0x760] sm:$0xff]  ;;  %344 = vst [vmem:[%s13177_s9 + $0x3a0] sm:$0xff] %v343_v58 }
  0x4d   : >> { %v347_v60 = vld [vmem:[%s13181_s10 + $0x780] sm:$0xff]  ;;  %346 = vst [vmem:[%s13177_s9 + $0x3b0] sm:$0xff] %v345_v59 }
  0x4e   : >> { %v349_v61 = vld [vmem:[%s13181_s10 + $0x7a0] sm:$0xff]  ;;  %348 = vst [vmem:[%s13177_s9 + $0x3c0] sm:$0xff] %v347_v60 }
  0x4f   : >> { %v351_v62 = vld [vmem:[%s13181_s10 + $0x7c0] sm:$0xff]  ;;  %350 = vst [vmem:[%s13177_s9 + $0x3d0] sm:$0xff] %v349_v61 }
  0x50   : >> { %v353_v63 = vld [vmem:[%s13181_s10 + $0x7e0] sm:$0xff]  ;;  %352 = vst [vmem:[%s13177_s9 + $0x3e0] sm:$0xff] %v351_v62 }
  0x51   : >> { %v355_v0 = vld [vmem:[%s13181_s10 + $0x800] sm:$0xff]  ;;  %354 = vst [vmem:[%s13177_s9 + $0x3f0] sm:$0xff] %v353_v63 }
  0x52   : >> { %v357_v1 = vld [vmem:[%s13181_s10 + $0x820] sm:$0xff]  ;;  %356 = vst [vmem:[%s13177_s9 + $0x400] sm:$0xff] %v355_v0 }
  0x53   : >> { %v359_v2 = vld [vmem:[%s13181_s10 + $0x840] sm:$0xff]  ;;  %358 = vst [vmem:[%s13177_s9 + $0x410] sm:$0xff] %v357_v1 }
  0x54   : >> { %v361_v3 = vld [vmem:[%s13181_s10 + $0x860] sm:$0xff]  ;;  %360 = vst [vmem:[%s13177_s9 + $0x420] sm:$0xff] %v359_v2 }
  0x55   : >> { %v363_v4 = vld [vmem:[%s13181_s10 + $0x880] sm:$0xff]  ;;  %362 = vst [vmem:[%s13177_s9 + $0x430] sm:$0xff] %v361_v3 }
  0x56   : >> { %v365_v5 = vld [vmem:[%s13181_s10 + $0x8a0] sm:$0xff]  ;;  %364 = vst [vmem:[%s13177_s9 + $0x440] sm:$0xff] %v363_v4 }
  0x57   : >> { %v367_v6 = vld [vmem:[%s13181_s10 + $0x8c0] sm:$0xff]  ;;  %366 = vst [vmem:[%s13177_s9 + $0x450] sm:$0xff] %v365_v5 }
  0x58   : >> { %v369_v7 = vld [vmem:[%s13181_s10 + $0x8e0] sm:$0xff]  ;;  %368 = vst [vmem:[%s13177_s9 + $0x460] sm:$0xff] %v367_v6 }
  0x59   : >> { %v371_v8 = vld [vmem:[%s13181_s10 + $0x900] sm:$0xff]  ;;  %370 = vst [vmem:[%s13177_s9 + $0x470] sm:$0xff] %v369_v7 }
  0x5a   : >> { %v373_v9 = vld [vmem:[%s13181_s10 + $0x920] sm:$0xff]  ;;  %372 = vst [vmem:[%s13177_s9 + $0x480] sm:$0xff] %v371_v8 }
  0x5b   : >> { %v375_v10 = vld [vmem:[%s13181_s10 + $0x940] sm:$0xff]  ;;  %374 = vst [vmem:[%s13177_s9 + $0x490] sm:$0xff] %v373_v9 }
  0x5c   : >> { %v377_v11 = vld [vmem:[%s13181_s10 + $0x960] sm:$0xff]  ;;  %376 = vst [vmem:[%s13177_s9 + $0x4a0] sm:$0xff] %v375_v10 }
  0x5d   : >> { %v379_v12 = vld [vmem:[%s13181_s10 + $0x980] sm:$0xff]  ;;  %378 = vst [vmem:[%s13177_s9 + $0x4b0] sm:$0xff] %v377_v11 }
  0x5e   : >> { %v381_v13 = vld [vmem:[%s13181_s10 + $0x9a0] sm:$0xff]  ;;  %380 = vst [vmem:[%s13177_s9 + $0x4c0] sm:$0xff] %v379_v12 }
  0x5f   : >> { %v383_v14 = vld [vmem:[%s13181_s10 + $0x9c0] sm:$0xff]  ;;  %382 = vst [vmem:[%s13177_s9 + $0x4d0] sm:$0xff] %v381_v13 }
  0x60   : >> { %v385_v15 = vld [vmem:[%s13181_s10 + $0x9e0] sm:$0xff]  ;;  %384 = vst [vmem:[%s13177_s9 + $0x4e0] sm:$0xff] %v383_v14 }
  0x61   : >> { %v387_v16 = vld [vmem:[%s13181_s10 + $0xa00] sm:$0xff]  ;;  %386 = vst [vmem:[%s13177_s9 + $0x4f0] sm:$0xff] %v385_v15 }
  0x62   : >> { %v389_v17 = vld [vmem:[%s13181_s10 + $0xa20] sm:$0xff]  ;;  %388 = vst [vmem:[%s13177_s9 + $0x500] sm:$0xff] %v387_v16 }
  0x63   : >> { %v391_v18 = vld [vmem:[%s13181_s10 + $0xa40] sm:$0xff]  ;;  %390 = vst [vmem:[%s13177_s9 + $0x510] sm:$0xff] %v389_v17 }
  0x64   : >> { %v393_v19 = vld [vmem:[%s13181_s10 + $0xa60] sm:$0xff]  ;;  %392 = vst [vmem:[%s13177_s9 + $0x520] sm:$0xff] %v391_v18 }
  0x65   : >> { %v395_v20 = vld [vmem:[%s13181_s10 + $0xa80] sm:$0xff]  ;;  %394 = vst [vmem:[%s13177_s9 + $0x530] sm:$0xff] %v393_v19 }
  0x66   : >> { %v397_v21 = vld [vmem:[%s13181_s10 + $0xaa0] sm:$0xff]  ;;  %396 = vst [vmem:[%s13177_s9 + $0x540] sm:$0xff] %v395_v20 }
  0x67   : >> { %v399_v22 = vld [vmem:[%s13181_s10 + $0xac0] sm:$0xff]  ;;  %398 = vst [vmem:[%s13177_s9 + $0x550] sm:$0xff] %v397_v21 }
  0x68   : >> { %v401_v23 = vld [vmem:[%s13181_s10 + $0xae0] sm:$0xff]  ;;  %400 = vst [vmem:[%s13177_s9 + $0x560] sm:$0xff] %v399_v22 }
  0x69   : >> { %v403_v24 = vld [vmem:[%s13181_s10 + $0xb00] sm:$0xff]  ;;  %402 = vst [vmem:[%s13177_s9 + $0x570] sm:$0xff] %v401_v23 }
  0x6a   : >> { %v405_v25 = vld [vmem:[%s13181_s10 + $0xb20] sm:$0xff]  ;;  %404 = vst [vmem:[%s13177_s9 + $0x580] sm:$0xff] %v403_v24 }
  0x6b   : >> { %v407_v26 = vld [vmem:[%s13181_s10 + $0xb40] sm:$0xff]  ;;  %406 = vst [vmem:[%s13177_s9 + $0x590] sm:$0xff] %v405_v25 }
  0x6c   : >> { %v409_v27 = vld [vmem:[%s13181_s10 + $0xb60] sm:$0xff]  ;;  %408 = vst [vmem:[%s13177_s9 + $0x5a0] sm:$0xff] %v407_v26 }
  0x6d   : >> { %v411_v28 = vld [vmem:[%s13181_s10 + $0xb80] sm:$0xff]  ;;  %410 = vst [vmem:[%s13177_s9 + $0x5b0] sm:$0xff] %v409_v27 }
  0x6e   : >> { %v413_v29 = vld [vmem:[%s13181_s10 + $0xba0] sm:$0xff]  ;;  %412 = vst [vmem:[%s13177_s9 + $0x5c0] sm:$0xff] %v411_v28 }
  0x6f   : >> { %v415_v30 = vld [vmem:[%s13181_s10 + $0xbc0] sm:$0xff]  ;;  %414 = vst [vmem:[%s13177_s9 + $0x5d0] sm:$0xff] %v413_v29 }
  0x70   : >> { %v417_v31 = vld [vmem:[%s13181_s10 + $0xbe0] sm:$0xff]  ;;  %416 = vst [vmem:[%s13177_s9 + $0x5e0] sm:$0xff] %v415_v30 }
  0x71   : >> { %v419_v32 = vld [vmem:[%s13181_s10 + $0xc00] sm:$0xff]  ;;  %418 = vst [vmem:[%s13177_s9 + $0x5f0] sm:$0xff] %v417_v31 }
  0x72   : >> { %v421_v33 = vld [vmem:[%s13181_s10 + $0xc20] sm:$0xff]  ;;  %420 = vst [vmem:[%s13177_s9 + $0x600] sm:$0xff] %v419_v32 }
  0x73   : >> { %v423_v34 = vld [vmem:[%s13181_s10 + $0xc40] sm:$0xff]  ;;  %422 = vst [vmem:[%s13177_s9 + $0x610] sm:$0xff] %v421_v33 }
  0x74   : >> { %v425_v35 = vld [vmem:[%s13181_s10 + $0xc60] sm:$0xff]  ;;  %424 = vst [vmem:[%s13177_s9 + $0x620] sm:$0xff] %v423_v34 }
  0x75   : >> { %v427_v36 = vld [vmem:[%s13181_s10 + $0xc80] sm:$0xff]  ;;  %426 = vst [vmem:[%s13177_s9 + $0x630] sm:$0xff] %v425_v35 }
  0x76   : >> { %v429_v37 = vld [vmem:[%s13181_s10 + $0xca0] sm:$0xff]  ;;  %428 = vst [vmem:[%s13177_s9 + $0x640] sm:$0xff] %v427_v36 }
  0x77   : >> { %v431_v38 = vld [vmem:[%s13181_s10 + $0xcc0] sm:$0xff]  ;;  %430 = vst [vmem:[%s13177_s9 + $0x650] sm:$0xff] %v429_v37 }
  0x78   : >> { %v433_v39 = vld [vmem:[%s13181_s10 + $0xce0] sm:$0xff]  ;;  %432 = vst [vmem:[%s13177_s9 + $0x660] sm:$0xff] %v431_v38 }
  0x79   : >> { %v435_v40 = vld [vmem:[%s13181_s10 + $0xd00] sm:$0xff]  ;;  %434 = vst [vmem:[%s13177_s9 + $0x670] sm:$0xff] %v433_v39 }
  0x7a   : >> { %v437_v41 = vld [vmem:[%s13181_s10 + $0xd20] sm:$0xff]  ;;  %436 = vst [vmem:[%s13177_s9 + $0x680] sm:$0xff] %v435_v40 }
  0x7b   : >> { %v439_v42 = vld [vmem:[%s13181_s10 + $0xd40] sm:$0xff]  ;;  %438 = vst [vmem:[%s13177_s9 + $0x690] sm:$0xff] %v437_v41 }
  0x7c   : >> { %v441_v43 = vld [vmem:[%s13181_s10 + $0xd60] sm:$0xff]  ;;  %440 = vst [vmem:[%s13177_s9 + $0x6a0] sm:$0xff] %v439_v42 }
  0x7d   : >> { %v443_v44 = vld [vmem:[%s13181_s10 + $0xd80] sm:$0xff]  ;;  %442 = vst [vmem:[%s13177_s9 + $0x6b0] sm:$0xff] %v441_v43 }
  0x7e   : >> { %v445_v45 = vld [vmem:[%s13181_s10 + $0xda0] sm:$0xff]  ;;  %444 = vst [vmem:[%s13177_s9 + $0x6c0] sm:$0xff] %v443_v44 }
  0x7f   : >> { %v447_v46 = vld [vmem:[%s13181_s10 + $0xdc0] sm:$0xff]  ;;  %446 = vst [vmem:[%s13177_s9 + $0x6d0] sm:$0xff] %v445_v45 }
  0x80   : >> { %v449_v47 = vld [vmem:[%s13181_s10 + $0xde0] sm:$0xff]  ;;  %448 = vst [vmem:[%s13177_s9 + $0x6e0] sm:$0xff] %v447_v46 }
  0x81   : >> { %v451_v48 = vld [vmem:[%s13181_s10 + $0xe00] sm:$0xff]  ;;  %450 = vst [vmem:[%s13177_s9 + $0x6f0] sm:$0xff] %v449_v47 }
  0x82   : >> { %v453_v49 = vld [vmem:[%s13181_s10 + $0xe20] sm:$0xff]  ;;  %452 = vst [vmem:[%s13177_s9 + $0x700] sm:$0xff] %v451_v48 }
  0x83   : >> { %v455_v50 = vld [vmem:[%s13181_s10 + $0xe40] sm:$0xff]  ;;  %454 = vst [vmem:[%s13177_s9 + $0x710] sm:$0xff] %v453_v49 }
  0x84   : >> { %v457_v51 = vld [vmem:[%s13181_s10 + $0xe60] sm:$0xff]  ;;  %456 = vst [vmem:[%s13177_s9 + $0x720] sm:$0xff] %v455_v50 }
  0x85   : >> { %v459_v52 = vld [vmem:[%s13181_s10 + $0xe80] sm:$0xff]  ;;  %458 = vst [vmem:[%s13177_s9 + $0x730] sm:$0xff] %v457_v51 }
  0x86   : >> { %v461_v53 = vld [vmem:[%s13181_s10 + $0xea0] sm:$0xff]  ;;  %460 = vst [vmem:[%s13177_s9 + $0x740] sm:$0xff] %v459_v52 }
  0x87   : >> { %v463_v54 = vld [vmem:[%s13181_s10 + $0xec0] sm:$0xff]  ;;  %462 = vst [vmem:[%s13177_s9 + $0x750] sm:$0xff] %v461_v53 }
  0x88   : >> { %v465_v55 = vld [vmem:[%s13181_s10 + $0xee0] sm:$0xff]  ;;  %464 = vst [vmem:[%s13177_s9 + $0x760] sm:$0xff] %v463_v54 }
  0x89   : >> { %v467_v56 = vld [vmem:[%s13181_s10 + $0xf00] sm:$0xff]  ;;  %466 = vst [vmem:[%s13177_s9 + $0x770] sm:$0xff] %v465_v55 }
  0x8a   : >> { %v469_v57 = vld [vmem:[%s13181_s10 + $0xf20] sm:$0xff]  ;;  %468 = vst [vmem:[%s13177_s9 + $0x780] sm:$0xff] %v467_v56 }
  0x8b   : >> { %v471_v58 = vld [vmem:[%s13181_s10 + $0xf40] sm:$0xff]  ;;  %470 = vst [vmem:[%s13177_s9 + $0x790] sm:$0xff] %v469_v57 }
  0x8c   : >> { %v473_v59 = vld [vmem:[%s13181_s10 + $0xf60] sm:$0xff]  ;;  %472 = vst [vmem:[%s13177_s9 + $0x7a0] sm:$0xff] %v471_v58 }
  0x8d   : >> { %v475_v60 = vld [vmem:[%s13181_s10 + $0xf80] sm:$0xff]  ;;  %474 = vst [vmem:[%s13177_s9 + $0x7b0] sm:$0xff] %v473_v59 }
  0x8e   : >> { %v477_v61 = vld [vmem:[%s13181_s10 + $0xfa0] sm:$0xff]  ;;  %476 = vst [vmem:[%s13177_s9 + $0x7c0] sm:$0xff] %v475_v60 }
  0x8f   : >> { %v479_v62 = vld [vmem:[%s13181_s10 + $0xfc0] sm:$0xff]  ;;  %478 = vst [vmem:[%s13177_s9 + $0x7d0] sm:$0xff] %v477_v61 }
  0x90   : >> { %v481_v63 = vld [vmem:[%s13181_s10 + $0xfe0] sm:$0xff]  ;;  %480 = vst [vmem:[%s13177_s9 + $0x7e0] sm:$0xff] %v479_v62 }
  0x91   : >> { %v483_v0 = vld [vmem:[%s13181_s10 + $0x1000] sm:$0xff]  ;;  %482 = vst [vmem:[%s13177_s9 + $0x7f0] sm:$0xff] %v481_v63 }
  0x92   : >> { %v485_v1 = vld [vmem:[%s13181_s10 + $0x1020] sm:$0xff]  ;;  %484 = vst [vmem:[%s13177_s9 + $0x800] sm:$0xff] %v483_v0 }
  0x93   : >> { %v487_v2 = vld [vmem:[%s13181_s10 + $0x1040] sm:$0xff]  ;;  %486 = vst [vmem:[%s13177_s9 + $0x810] sm:$0xff] %v485_v1 }
  0x94   : >> { %v489_v3 = vld [vmem:[%s13181_s10 + $0x1060] sm:$0xff]  ;;  %488 = vst [vmem:[%s13177_s9 + $0x820] sm:$0xff] %v487_v2 }
  0x95   : >> { %v491_v4 = vld [vmem:[%s13181_s10 + $0x1080] sm:$0xff]  ;;  %490 = vst [vmem:[%s13177_s9 + $0x830] sm:$0xff] %v489_v3 }
  0x96   : >> { %v493_v5 = vld [vmem:[%s13181_s10 + $0x10a0] sm:$0xff]  ;;  %492 = vst [vmem:[%s13177_s9 + $0x840] sm:$0xff] %v491_v4 }
  0x97   : >> { %v495_v6 = vld [vmem:[%s13181_s10 + $0x10c0] sm:$0xff]  ;;  %494 = vst [vmem:[%s13177_s9 + $0x850] sm:$0xff] %v493_v5 }
  0x98   : >> { %v497_v7 = vld [vmem:[%s13181_s10 + $0x10e0] sm:$0xff]  ;;  %496 = vst [vmem:[%s13177_s9 + $0x860] sm:$0xff] %v495_v6 }
  0x99   : >> { %v499_v8 = vld [vmem:[%s13181_s10 + $0x1100] sm:$0xff]  ;;  %498 = vst [vmem:[%s13177_s9 + $0x870] sm:$0xff] %v497_v7 }
  0x9a   : >> { %v501_v9 = vld [vmem:[%s13181_s10 + $0x1120] sm:$0xff]  ;;  %500 = vst [vmem:[%s13177_s9 + $0x880] sm:$0xff] %v499_v8 }
  0x9b   : >> { %v503_v10 = vld [vmem:[%s13181_s10 + $0x1140] sm:$0xff]  ;;  %502 = vst [vmem:[%s13177_s9 + $0x890] sm:$0xff] %v501_v9 }
  0x9c   : >> { %v505_v11 = vld [vmem:[%s13181_s10 + $0x1160] sm:$0xff]  ;;  %504 = vst [vmem:[%s13177_s9 + $0x8a0] sm:$0xff] %v503_v10 }
  0x9d   : >> { %v507_v12 = vld [vmem:[%s13181_s10 + $0x1180] sm:$0xff]  ;;  %506 = vst [vmem:[%s13177_s9 + $0x8b0] sm:$0xff] %v505_v11 }
  0x9e   : >> { %v509_v13 = vld [vmem:[%s13181_s10 + $0x11a0] sm:$0xff]  ;;  %508 = vst [vmem:[%s13177_s9 + $0x8c0] sm:$0xff] %v507_v12 }
  0x9f   : >> { %v511_v14 = vld [vmem:[%s13181_s10 + $0x11c0] sm:$0xff]  ;;  %510 = vst [vmem:[%s13177_s9 + $0x8d0] sm:$0xff] %v509_v13 }
  0xa0   : >> { %v513_v15 = vld [vmem:[%s13181_s10 + $0x11e0] sm:$0xff]  ;;  %512 = vst [vmem:[%s13177_s9 + $0x8e0] sm:$0xff] %v511_v14 }
  0xa1   : >> { %v515_v16 = vld [vmem:[%s13181_s10 + $0x1200] sm:$0xff]  ;;  %514 = vst [vmem:[%s13177_s9 + $0x8f0] sm:$0xff] %v513_v15 }
  0xa2   : >> { %v517_v17 = vld [vmem:[%s13181_s10 + $0x1220] sm:$0xff]  ;;  %516 = vst [vmem:[%s13177_s9 + $0x900] sm:$0xff] %v515_v16 }
  0xa3   : >> { %v519_v18 = vld [vmem:[%s13181_s10 + $0x1240] sm:$0xff]  ;;  %518 = vst [vmem:[%s13177_s9 + $0x910] sm:$0xff] %v517_v17 }
  0xa4   : >> { %v521_v19 = vld [vmem:[%s13181_s10 + $0x1260] sm:$0xff]  ;;  %520 = vst [vmem:[%s13177_s9 + $0x920] sm:$0xff] %v519_v18 }
  0xa5   : >> { %v523_v20 = vld [vmem:[%s13181_s10 + $0x1280] sm:$0xff]  ;;  %522 = vst [vmem:[%s13177_s9 + $0x930] sm:$0xff] %v521_v19 }
  0xa6   : >> { %v525_v21 = vld [vmem:[%s13181_s10 + $0x12a0] sm:$0xff]  ;;  %524 = vst [vmem:[%s13177_s9 + $0x940] sm:$0xff] %v523_v20 }
  0xa7   : >> { %v527_v22 = vld [vmem:[%s13181_s10 + $0x12c0] sm:$0xff]  ;;  %526 = vst [vmem:[%s13177_s9 + $0x950] sm:$0xff] %v525_v21 }
  0xa8   : >> { %v529_v23 = vld [vmem:[%s13181_s10 + $0x12e0] sm:$0xff]  ;;  %528 = vst [vmem:[%s13177_s9 + $0x960] sm:$0xff] %v527_v22 }
  0xa9   : >> { %v531_v24 = vld [vmem:[%s13181_s10 + $0x1300] sm:$0xff]  ;;  %530 = vst [vmem:[%s13177_s9 + $0x970] sm:$0xff] %v529_v23 }
  0xaa   : >> { %v533_v25 = vld [vmem:[%s13181_s10 + $0x1320] sm:$0xff]  ;;  %532 = vst [vmem:[%s13177_s9 + $0x980] sm:$0xff] %v531_v24 }
  0xab   : >> { %v535_v26 = vld [vmem:[%s13181_s10 + $0x1340] sm:$0xff]  ;;  %534 = vst [vmem:[%s13177_s9 + $0x990] sm:$0xff] %v533_v25 }
  0xac   : >> { %v537_v27 = vld [vmem:[%s13181_s10 + $0x1360] sm:$0xff]  ;;  %536 = vst [vmem:[%s13177_s9 + $0x9a0] sm:$0xff] %v535_v26 }
  0xad   : >> { %v539_v28 = vld [vmem:[%s13181_s10 + $0x1380] sm:$0xff]  ;;  %538 = vst [vmem:[%s13177_s9 + $0x9b0] sm:$0xff] %v537_v27 }
  0xae   : >> { %v541_v29 = vld [vmem:[%s13181_s10 + $0x13a0] sm:$0xff]  ;;  %540 = vst [vmem:[%s13177_s9 + $0x9c0] sm:$0xff] %v539_v28 }
  0xaf   : >> { %v543_v30 = vld [vmem:[%s13181_s10 + $0x13c0] sm:$0xff]  ;;  %542 = vst [vmem:[%s13177_s9 + $0x9d0] sm:$0xff] %v541_v29 }
  0xb0   : >> { %v545_v31 = vld [vmem:[%s13181_s10 + $0x13e0] sm:$0xff]  ;;  %544 = vst [vmem:[%s13177_s9 + $0x9e0] sm:$0xff] %v543_v30 }
  0xb1   : >> { %v547_v32 = vld [vmem:[%s13181_s10 + $0x1400] sm:$0xff]  ;;  %546 = vst [vmem:[%s13177_s9 + $0x9f0] sm:$0xff] %v545_v31 }
  0xb2   : >> { %v549_v33 = vld [vmem:[%s13181_s10 + $0x1420] sm:$0xff]  ;;  %548 = vst [vmem:[%s13177_s9 + $0xa00] sm:$0xff] %v547_v32 }
  0xb3   : >> { %v551_v34 = vld [vmem:[%s13181_s10 + $0x1440] sm:$0xff]  ;;  %550 = vst [vmem:[%s13177_s9 + $0xa10] sm:$0xff] %v549_v33 }
  0xb4   : >> { %v553_v35 = vld [vmem:[%s13181_s10 + $0x1460] sm:$0xff]  ;;  %552 = vst [vmem:[%s13177_s9 + $0xa20] sm:$0xff] %v551_v34 }
  0xb5   : >> { %v555_v36 = vld [vmem:[%s13181_s10 + $0x1480] sm:$0xff]  ;;  %554 = vst [vmem:[%s13177_s9 + $0xa30] sm:$0xff] %v553_v35 }
  0xb6   : >> { %v557_v37 = vld [vmem:[%s13181_s10 + $0x14a0] sm:$0xff]  ;;  %556 = vst [vmem:[%s13177_s9 + $0xa40] sm:$0xff] %v555_v36 }
  0xb7   : >> { %v559_v38 = vld [vmem:[%s13181_s10 + $0x14c0] sm:$0xff]  ;;  %558 = vst [vmem:[%s13177_s9 + $0xa50] sm:$0xff] %v557_v37 }
  0xb8   : >> { %v561_v39 = vld [vmem:[%s13181_s10 + $0x14e0] sm:$0xff]  ;;  %560 = vst [vmem:[%s13177_s9 + $0xa60] sm:$0xff] %v559_v38 }
  0xb9   : >> { %v563_v40 = vld [vmem:[%s13181_s10 + $0x1500] sm:$0xff]  ;;  %562 = vst [vmem:[%s13177_s9 + $0xa70] sm:$0xff] %v561_v39 }
  0xba   : >> { %v565_v41 = vld [vmem:[%s13181_s10 + $0x1520] sm:$0xff]  ;;  %564 = vst [vmem:[%s13177_s9 + $0xa80] sm:$0xff] %v563_v40 }
  0xbb   : >> { %v567_v42 = vld [vmem:[%s13181_s10 + $0x1540] sm:$0xff]  ;;  %566 = vst [vmem:[%s13177_s9 + $0xa90] sm:$0xff] %v565_v41 }
  0xbc   : >> { %v569_v43 = vld [vmem:[%s13181_s10 + $0x1560] sm:$0xff]  ;;  %568 = vst [vmem:[%s13177_s9 + $0xaa0] sm:$0xff] %v567_v42 }
  0xbd   : >> { %v571_v44 = vld [vmem:[%s13181_s10 + $0x1580] sm:$0xff]  ;;  %570 = vst [vmem:[%s13177_s9 + $0xab0] sm:$0xff] %v569_v43 }
  0xbe   : >> { %v573_v45 = vld [vmem:[%s13181_s10 + $0x15a0] sm:$0xff]  ;;  %572 = vst [vmem:[%s13177_s9 + $0xac0] sm:$0xff] %v571_v44 }
  0xbf   : >> { %v575_v46 = vld [vmem:[%s13181_s10 + $0x15c0] sm:$0xff]  ;;  %574 = vst [vmem:[%s13177_s9 + $0xad0] sm:$0xff] %v573_v45 }
  0xc0   : >> { %v577_v47 = vld [vmem:[%s13181_s10 + $0x15e0] sm:$0xff]  ;;  %576 = vst [vmem:[%s13177_s9 + $0xae0] sm:$0xff] %v575_v46 }
  0xc1   : >> { %v579_v48 = vld [vmem:[%s13181_s10 + $0x1600] sm:$0xff]  ;;  %578 = vst [vmem:[%s13177_s9 + $0xaf0] sm:$0xff] %v577_v47 }
  0xc2   : >> { %v581_v49 = vld [vmem:[%s13181_s10 + $0x1620] sm:$0xff]  ;;  %580 = vst [vmem:[%s13177_s9 + $0xb00] sm:$0xff] %v579_v48 }
  0xc3   : >> { %v583_v50 = vld [vmem:[%s13181_s10 + $0x1640] sm:$0xff]  ;;  %582 = vst [vmem:[%s13177_s9 + $0xb10] sm:$0xff] %v581_v49 }
  0xc4   : >> { %v585_v51 = vld [vmem:[%s13181_s10 + $0x1660] sm:$0xff]  ;;  %584 = vst [vmem:[%s13177_s9 + $0xb20] sm:$0xff] %v583_v50 }
  0xc5   : >> { %v587_v52 = vld [vmem:[%s13181_s10 + $0x1680] sm:$0xff]  ;;  %586 = vst [vmem:[%s13177_s9 + $0xb30] sm:$0xff] %v585_v51 }
  0xc6   : >> { %v589_v53 = vld [vmem:[%s13181_s10 + $0x16a0] sm:$0xff]  ;;  %588 = vst [vmem:[%s13177_s9 + $0xb40] sm:$0xff] %v587_v52 }
  0xc7   : >> { %v591_v54 = vld [vmem:[%s13181_s10 + $0x16c0] sm:$0xff]  ;;  %590 = vst [vmem:[%s13177_s9 + $0xb50] sm:$0xff] %v589_v53 }
  0xc8   : >> { %v593_v55 = vld [vmem:[%s13181_s10 + $0x16e0] sm:$0xff]  ;;  %592 = vst [vmem:[%s13177_s9 + $0xb60] sm:$0xff] %v591_v54 }
  0xc9   : >> { %v595_v56 = vld [vmem:[%s13181_s10 + $0x1700] sm:$0xff]  ;;  %594 = vst [vmem:[%s13177_s9 + $0xb70] sm:$0xff] %v593_v55 }
  0xca   : >> { %v597_v57 = vld [vmem:[%s13181_s10 + $0x1720] sm:$0xff]  ;;  %596 = vst [vmem:[%s13177_s9 + $0xb80] sm:$0xff] %v595_v56 }
  0xcb   : >> { %v599_v58 = vld [vmem:[%s13181_s10 + $0x1740] sm:$0xff]  ;;  %598 = vst [vmem:[%s13177_s9 + $0xb90] sm:$0xff] %v597_v57 }
  0xcc   : >> { %v601_v59 = vld [vmem:[%s13181_s10 + $0x1760] sm:$0xff]  ;;  %600 = vst [vmem:[%s13177_s9 + $0xba0] sm:$0xff] %v599_v58 }
  0xcd   : >> { %v603_v60 = vld [vmem:[%s13181_s10 + $0x1780] sm:$0xff]  ;;  %602 = vst [vmem:[%s13177_s9 + $0xbb0] sm:$0xff] %v601_v59 }
  0xce   : >> { %v605_v61 = vld [vmem:[%s13181_s10 + $0x17a0] sm:$0xff]  ;;  %604 = vst [vmem:[%s13177_s9 + $0xbc0] sm:$0xff] %v603_v60 }
  0xcf   : >> { %v607_v62 = vld [vmem:[%s13181_s10 + $0x17c0] sm:$0xff]  ;;  %606 = vst [vmem:[%s13177_s9 + $0xbd0] sm:$0xff] %v605_v61 }
  0xd0   : >> { %v609_v63 = vld [vmem:[%s13181_s10 + $0x17e0] sm:$0xff]  ;;  %608 = vst [vmem:[%s13177_s9 + $0xbe0] sm:$0xff] %v607_v62 }
  0xd1   : >> { %v611_v0 = vld [vmem:[%s13181_s10 + $0x1800] sm:$0xff]  ;;  %610 = vst [vmem:[%s13177_s9 + $0xbf0] sm:$0xff] %v609_v63 }
  0xd2   : >> { %v613_v1 = vld [vmem:[%s13181_s10 + $0x1820] sm:$0xff]  ;;  %612 = vst [vmem:[%s13177_s9 + $0xc00] sm:$0xff] %v611_v0 }
  0xd3   : >> { %v615_v2 = vld [vmem:[%s13181_s10 + $0x1840] sm:$0xff]  ;;  %614 = vst [vmem:[%s13177_s9 + $0xc10] sm:$0xff] %v613_v1 }
  0xd4   : >> { %v617_v3 = vld [vmem:[%s13181_s10 + $0x1860] sm:$0xff]  ;;  %616 = vst [vmem:[%s13177_s9 + $0xc20] sm:$0xff] %v615_v2 }
  0xd5   : >> { %v619_v4 = vld [vmem:[%s13181_s10 + $0x1880] sm:$0xff]  ;;  %618 = vst [vmem:[%s13177_s9 + $0xc30] sm:$0xff] %v617_v3 }
  0xd6   : >> { %v621_v5 = vld [vmem:[%s13181_s10 + $0x18a0] sm:$0xff]  ;;  %620 = vst [vmem:[%s13177_s9 + $0xc40] sm:$0xff] %v619_v4 }
  0xd7   : >> { %v623_v6 = vld [vmem:[%s13181_s10 + $0x18c0] sm:$0xff]  ;;  %622 = vst [vmem:[%s13177_s9 + $0xc50] sm:$0xff] %v621_v5 }
  0xd8   : >> { %v625_v7 = vld [vmem:[%s13181_s10 + $0x18e0] sm:$0xff]  ;;  %624 = vst [vmem:[%s13177_s9 + $0xc60] sm:$0xff] %v623_v6 }
  0xd9   : >> { %v627_v8 = vld [vmem:[%s13181_s10 + $0x1900] sm:$0xff]  ;;  %626 = vst [vmem:[%s13177_s9 + $0xc70] sm:$0xff] %v625_v7 }
  0xda   : >> { %v629_v9 = vld [vmem:[%s13181_s10 + $0x1920] sm:$0xff]  ;;  %628 = vst [vmem:[%s13177_s9 + $0xc80] sm:$0xff] %v627_v8 }
  0xdb   : >> { %v631_v10 = vld [vmem:[%s13181_s10 + $0x1940] sm:$0xff]  ;;  %630 = vst [vmem:[%s13177_s9 + $0xc90] sm:$0xff] %v629_v9 }
  0xdc   : >> { %v633_v11 = vld [vmem:[%s13181_s10 + $0x1960] sm:$0xff]  ;;  %632 = vst [vmem:[%s13177_s9 + $0xca0] sm:$0xff] %v631_v10 }
  0xdd   : >> { %v635_v12 = vld [vmem:[%s13181_s10 + $0x1980] sm:$0xff]  ;;  %634 = vst [vmem:[%s13177_s9 + $0xcb0] sm:$0xff] %v633_v11 }
  0xde   : >> { %v637_v13 = vld [vmem:[%s13181_s10 + $0x19a0] sm:$0xff]  ;;  %636 = vst [vmem:[%s13177_s9 + $0xcc0] sm:$0xff] %v635_v12 }
  0xdf   : >> { %v639_v14 = vld [vmem:[%s13181_s10 + $0x19c0] sm:$0xff]  ;;  %638 = vst [vmem:[%s13177_s9 + $0xcd0] sm:$0xff] %v637_v13 }
  0xe0   : >> { %v641_v15 = vld [vmem:[%s13181_s10 + $0x19e0] sm:$0xff]  ;;  %640 = vst [vmem:[%s13177_s9 + $0xce0] sm:$0xff] %v639_v14 }
  0xe1   : >> { %v643_v16 = vld [vmem:[%s13181_s10 + $0x1a00] sm:$0xff]  ;;  %642 = vst [vmem:[%s13177_s9 + $0xcf0] sm:$0xff] %v641_v15 }
  0xe2   : >> { %v645_v17 = vld [vmem:[%s13181_s10 + $0x1a20] sm:$0xff]  ;;  %644 = vst [vmem:[%s13177_s9 + $0xd00] sm:$0xff] %v643_v16 }
  0xe3   : >> { %v647_v18 = vld [vmem:[%s13181_s10 + $0x1a40] sm:$0xff]  ;;  %646 = vst [vmem:[%s13177_s9 + $0xd10] sm:$0xff] %v645_v17 }
  0xe4   : >> { %v649_v19 = vld [vmem:[%s13181_s10 + $0x1a60] sm:$0xff]  ;;  %648 = vst [vmem:[%s13177_s9 + $0xd20] sm:$0xff] %v647_v18 }
  0xe5   : >> { %v651_v20 = vld [vmem:[%s13181_s10 + $0x1a80] sm:$0xff]  ;;  %650 = vst [vmem:[%s13177_s9 + $0xd30] sm:$0xff] %v649_v19 }
  0xe6   : >> { %v653_v21 = vld [vmem:[%s13181_s10 + $0x1aa0] sm:$0xff]  ;;  %652 = vst [vmem:[%s13177_s9 + $0xd40] sm:$0xff] %v651_v20 }
  0xe7   : >> { %v655_v22 = vld [vmem:[%s13181_s10 + $0x1ac0] sm:$0xff]  ;;  %654 = vst [vmem:[%s13177_s9 + $0xd50] sm:$0xff] %v653_v21 }
  0xe8   : >> { %v657_v23 = vld [vmem:[%s13181_s10 + $0x1ae0] sm:$0xff]  ;;  %656 = vst [vmem:[%s13177_s9 + $0xd60] sm:$0xff] %v655_v22 }
  0xe9   : >> { %v659_v24 = vld [vmem:[%s13181_s10 + $0x1b00] sm:$0xff]  ;;  %658 = vst [vmem:[%s13177_s9 + $0xd70] sm:$0xff] %v657_v23 }
  0xea   : >> { %v661_v25 = vld [vmem:[%s13181_s10 + $0x1b20] sm:$0xff]  ;;  %660 = vst [vmem:[%s13177_s9 + $0xd80] sm:$0xff] %v659_v24 }
  0xeb   : >> { %v663_v26 = vld [vmem:[%s13181_s10 + $0x1b40] sm:$0xff]  ;;  %662 = vst [vmem:[%s13177_s9 + $0xd90] sm:$0xff] %v661_v25 }
  0xec   : >> { %v665_v27 = vld [vmem:[%s13181_s10 + $0x1b60] sm:$0xff]  ;;  %664 = vst [vmem:[%s13177_s9 + $0xda0] sm:$0xff] %v663_v26 }
  0xed   : >> { %v667_v28 = vld [vmem:[%s13181_s10 + $0x1b80] sm:$0xff]  ;;  %666 = vst [vmem:[%s13177_s9 + $0xdb0] sm:$0xff] %v665_v27 }
  0xee   : >> { %v669_v29 = vld [vmem:[%s13181_s10 + $0x1ba0] sm:$0xff]  ;;  %668 = vst [vmem:[%s13177_s9 + $0xdc0] sm:$0xff] %v667_v28 }
  0xef   : >> { %v671_v30 = vld [vmem:[%s13181_s10 + $0x1bc0] sm:$0xff]  ;;  %670 = vst [vmem:[%s13177_s9 + $0xdd0] sm:$0xff] %v669_v29 }
  0xf0   : >> { %v673_v31 = vld [vmem:[%s13181_s10 + $0x1be0] sm:$0xff]  ;;  %672 = vst [vmem:[%s13177_s9 + $0xde0] sm:$0xff] %v671_v30 }
  0xf1   : >> { %v675_v32 = vld [vmem:[%s13181_s10 + $0x1c00] sm:$0xff]  ;;  %674 = vst [vmem:[%s13177_s9 + $0xdf0] sm:$0xff] %v673_v31 }
  0xf2   : >> { %v677_v33 = vld [vmem:[%s13181_s10 + $0x1c20] sm:$0xff]  ;;  %676 = vst [vmem:[%s13177_s9 + $0xe00] sm:$0xff] %v675_v32 }
  0xf3   : >> { %v679_v34 = vld [vmem:[%s13181_s10 + $0x1c40] sm:$0xff]  ;;  %678 = vst [vmem:[%s13177_s9 + $0xe10] sm:$0xff] %v677_v33 }
  0xf4   : >> { %v681_v35 = vld [vmem:[%s13181_s10 + $0x1c60] sm:$0xff]  ;;  %680 = vst [vmem:[%s13177_s9 + $0xe20] sm:$0xff] %v679_v34 }
  0xf5   : >> { %v683_v36 = vld [vmem:[%s13181_s10 + $0x1c80] sm:$0xff]  ;;  %682 = vst [vmem:[%s13177_s9 + $0xe30] sm:$0xff] %v681_v35 }
  0xf6   : >> { %v685_v37 = vld [vmem:[%s13181_s10 + $0x1ca0] sm:$0xff]  ;;  %684 = vst [vmem:[%s13177_s9 + $0xe40] sm:$0xff] %v683_v36 }
  0xf7   : >> { %v687_v38 = vld [vmem:[%s13181_s10 + $0x1cc0] sm:$0xff]  ;;  %686 = vst [vmem:[%s13177_s9 + $0xe50] sm:$0xff] %v685_v37 }
  0xf8   : >> { %v689_v39 = vld [vmem:[%s13181_s10 + $0x1ce0] sm:$0xff]  ;;  %688 = vst [vmem:[%s13177_s9 + $0xe60] sm:$0xff] %v687_v38 }
  0xf9   : >> { %v691_v40 = vld [vmem:[%s13181_s10 + $0x1d00] sm:$0xff]  ;;  %690 = vst [vmem:[%s13177_s9 + $0xe70] sm:$0xff] %v689_v39 }
  0xfa   : >> { %v693_v41 = vld [vmem:[%s13181_s10 + $0x1d20] sm:$0xff]  ;;  %692 = vst [vmem:[%s13177_s9 + $0xe80] sm:$0xff] %v691_v40 }
  0xfb   : >> { %v695_v42 = vld [vmem:[%s13181_s10 + $0x1d40] sm:$0xff]  ;;  %694 = vst [vmem:[%s13177_s9 + $0xe90] sm:$0xff] %v693_v41 }
  0xfc   : >> { %v697_v43 = vld [vmem:[%s13181_s10 + $0x1d60] sm:$0xff]  ;;  %696 = vst [vmem:[%s13177_s9 + $0xea0] sm:$0xff] %v695_v42 }
  0xfd   : >> { %v699_v44 = vld [vmem:[%s13181_s10 + $0x1d80] sm:$0xff]  ;;  %698 = vst [vmem:[%s13177_s9 + $0xeb0] sm:$0xff] %v697_v43 }
  0xfe   : >> { %v701_v45 = vld [vmem:[%s13181_s10 + $0x1da0] sm:$0xff]  ;;  %700 = vst [vmem:[%s13177_s9 + $0xec0] sm:$0xff] %v699_v44 }
  0xff   : >> { %v703_v46 = vld [vmem:[%s13181_s10 + $0x1dc0] sm:$0xff]  ;;  %702 = vst [vmem:[%s13177_s9 + $0xed0] sm:$0xff] %v701_v45 }
 0x100   : >> { %v705_v47 = vld [vmem:[%s13181_s10 + $0x1de0] sm:$0xff]  ;;  %704 = vst [vmem:[%s13177_s9 + $0xee0] sm:$0xff] %v703_v46 }
 0x101   : >> { %v707_v48 = vld [vmem:[%s13181_s10 + $0x1e00] sm:$0xff]  ;;  %706 = vst [vmem:[%s13177_s9 + $0xef0] sm:$0xff] %v705_v47 }
 0x102   : >> { %v709_v49 = vld [vmem:[%s13181_s10 + $0x1e20] sm:$0xff]  ;;  %708 = vst [vmem:[%s13177_s9 + $0xf00] sm:$0xff] %v707_v48 }
 0x103   : >> { %v711_v50 = vld [vmem:[%s13181_s10 + $0x1e40] sm:$0xff]  ;;  %710 = vst [vmem:[%s13177_s9 + $0xf10] sm:$0xff] %v709_v49 }
 0x104   : >> { %v713_v51 = vld [vmem:[%s13181_s10 + $0x1e60] sm:$0xff]  ;;  %712 = vst [vmem:[%s13177_s9 + $0xf20] sm:$0xff] %v711_v50 }
 0x105   : >> { %v715_v52 = vld [vmem:[%s13181_s10 + $0x1e80] sm:$0xff]  ;;  %714 = vst [vmem:[%s13177_s9 + $0xf30] sm:$0xff] %v713_v51 }
 0x106   : >> { %v717_v53 = vld [vmem:[%s13181_s10 + $0x1ea0] sm:$0xff]  ;;  %716 = vst [vmem:[%s13177_s9 + $0xf40] sm:$0xff] %v715_v52 }
 0x107   : >> { %v719_v54 = vld [vmem:[%s13181_s10 + $0x1ec0] sm:$0xff]  ;;  %718 = vst [vmem:[%s13177_s9 + $0xf50] sm:$0xff] %v717_v53 }
 0x108   : >> { %v721_v55 = vld [vmem:[%s13181_s10 + $0x1ee0] sm:$0xff]  ;;  %720 = vst [vmem:[%s13177_s9 + $0xf60] sm:$0xff] %v719_v54 }
 0x109   : >> { %v723_v56 = vld [vmem:[%s13181_s10 + $0x1f00] sm:$0xff]  ;;  %722 = vst [vmem:[%s13177_s9 + $0xf70] sm:$0xff] %v721_v55 }
 0x10a   : >> { %v725_v57 = vld [vmem:[%s13181_s10 + $0x1f20] sm:$0xff]  ;;  %724 = vst [vmem:[%s13177_s9 + $0xf80] sm:$0xff] %v723_v56 }
 0x10b   : >> { %v727_v58 = vld [vmem:[%s13181_s10 + $0x1f40] sm:$0xff]  ;;  %726 = vst [vmem:[%s13177_s9 + $0xf90] sm:$0xff] %v725_v57 }
 0x10c   : >> { %v729_v59 = vld [vmem:[%s13181_s10 + $0x1f60] sm:$0xff]  ;;  %728 = vst [vmem:[%s13177_s9 + $0xfa0] sm:$0xff] %v727_v58 }
 0x10d   : >> { %v731_v60 = vld [vmem:[%s13181_s10 + $0x1f80] sm:$0xff]  ;;  %730 = vst [vmem:[%s13177_s9 + $0xfb0] sm:$0xff] %v729_v59 }
 0x10e   : >> { %v733_v61 = vld [vmem:[%s13181_s10 + $0x1fa0] sm:$0xff]  ;;  %732 = vst [vmem:[%s13177_s9 + $0xfc0] sm:$0xff] %v731_v60 }
 0x10f   : >> { %v735_v62 = vld [vmem:[%s13181_s10 + $0x1fc0] sm:$0xff]  ;;  %734 = vst [vmem:[%s13177_s9 + $0xfd0] sm:$0xff] %v733_v61 }
 0x110   : >> { %v737_v63 = vld [vmem:[%s13181_s10 + $0x1fe0] sm:$0xff]  ;;  %736 = vst [vmem:[%s13177_s9 + $0xfe0] sm:$0xff] %v735_v62 }
 0x111   : >> { %v739_v0 = vld [vmem:[%s13181_s10 + $0x2000] sm:$0xff]  ;;  %738 = vst [vmem:[%s13177_s9 + $0xff0] sm:$0xff] %v737_v63 }
 0x112   : >> { %v741_v1 = vld [vmem:[%s13181_s10 + $0x2020] sm:$0xff]  ;;  %740 = vst [vmem:[%s13177_s9 + $0x1000] sm:$0xff] %v739_v0 }
 0x113   : >> { %v743_v2 = vld [vmem:[%s13181_s10 + $0x2040] sm:$0xff]  ;;  %742 = vst [vmem:[%s13177_s9 + $0x1010] sm:$0xff] %v741_v1 }
 0x114   : >> { %v745_v3 = vld [vmem:[%s13181_s10 + $0x2060] sm:$0xff]  ;;  %744 = vst [vmem:[%s13177_s9 + $0x1020] sm:$0xff] %v743_v2 }
 0x115   : >> { %v747_v4 = vld [vmem:[%s13181_s10 + $0x2080] sm:$0xff]  ;;  %746 = vst [vmem:[%s13177_s9 + $0x1030] sm:$0xff] %v745_v3 }
 0x116   : >> { %v749_v5 = vld [vmem:[%s13181_s10 + $0x20a0] sm:$0xff]  ;;  %748 = vst [vmem:[%s13177_s9 + $0x1040] sm:$0xff] %v747_v4 }
 0x117   : >> { %v751_v6 = vld [vmem:[%s13181_s10 + $0x20c0] sm:$0xff]  ;;  %750 = vst [vmem:[%s13177_s9 + $0x1050] sm:$0xff] %v749_v5 }
 0x118   : >> { %v753_v7 = vld [vmem:[%s13181_s10 + $0x20e0] sm:$0xff]  ;;  %752 = vst [vmem:[%s13177_s9 + $0x1060] sm:$0xff] %v751_v6 }
 0x119   : >> { %v755_v8 = vld [vmem:[%s13181_s10 + $0x2100] sm:$0xff]  ;;  %754 = vst [vmem:[%s13177_s9 + $0x1070] sm:$0xff] %v753_v7 }
 0x11a   : >> { %v757_v9 = vld [vmem:[%s13181_s10 + $0x2120] sm:$0xff]  ;;  %756 = vst [vmem:[%s13177_s9 + $0x1080] sm:$0xff] %v755_v8 }
 0x11b   : >> { %v759_v10 = vld [vmem:[%s13181_s10 + $0x2140] sm:$0xff]  ;;  %758 = vst [vmem:[%s13177_s9 + $0x1090] sm:$0xff] %v757_v9 }
 0x11c   : >> { %v761_v11 = vld [vmem:[%s13181_s10 + $0x2160] sm:$0xff]  ;;  %760 = vst [vmem:[%s13177_s9 + $0x10a0] sm:$0xff] %v759_v10 }
 0x11d   : >> { %v763_v12 = vld [vmem:[%s13181_s10 + $0x2180] sm:$0xff]  ;;  %762 = vst [vmem:[%s13177_s9 + $0x10b0] sm:$0xff] %v761_v11 }
 0x11e   : >> { %v765_v13 = vld [vmem:[%s13181_s10 + $0x21a0] sm:$0xff]  ;;  %764 = vst [vmem:[%s13177_s9 + $0x10c0] sm:$0xff] %v763_v12 }
 0x11f   : >> { %v767_v14 = vld [vmem:[%s13181_s10 + $0x21c0] sm:$0xff]  ;;  %766 = vst [vmem:[%s13177_s9 + $0x10d0] sm:$0xff] %v765_v13 }
 0x120   : >> { %v769_v15 = vld [vmem:[%s13181_s10 + $0x21e0] sm:$0xff]  ;;  %768 = vst [vmem:[%s13177_s9 + $0x10e0] sm:$0xff] %v767_v14 }
 0x121   : >> { %v771_v16 = vld [vmem:[%s13181_s10 + $0x2200] sm:$0xff]  ;;  %770 = vst [vmem:[%s13177_s9 + $0x10f0] sm:$0xff] %v769_v15 }
 0x122   : >> { %v773_v17 = vld [vmem:[%s13181_s10 + $0x2220] sm:$0xff]  ;;  %772 = vst [vmem:[%s13177_s9 + $0x1100] sm:$0xff] %v771_v16 }
 0x123   : >> { %v775_v18 = vld [vmem:[%s13181_s10 + $0x2240] sm:$0xff]  ;;  %774 = vst [vmem:[%s13177_s9 + $0x1110] sm:$0xff] %v773_v17 }
 0x124   : >> { %v777_v19 = vld [vmem:[%s13181_s10 + $0x2260] sm:$0xff]  ;;  %776 = vst [vmem:[%s13177_s9 + $0x1120] sm:$0xff] %v775_v18 }
 0x125   : >> { %v779_v20 = vld [vmem:[%s13181_s10 + $0x2280] sm:$0xff]  ;;  %778 = vst [vmem:[%s13177_s9 + $0x1130] sm:$0xff] %v777_v19 }
 0x126   : >> { %v781_v21 = vld [vmem:[%s13181_s10 + $0x22a0] sm:$0xff]  ;;  %780 = vst [vmem:[%s13177_s9 + $0x1140] sm:$0xff] %v779_v20 }
 0x127   : >> { %v783_v22 = vld [vmem:[%s13181_s10 + $0x22c0] sm:$0xff]  ;;  %782 = vst [vmem:[%s13177_s9 + $0x1150] sm:$0xff] %v781_v21 }
 0x128   : >> { %v785_v23 = vld [vmem:[%s13181_s10 + $0x22e0] sm:$0xff]  ;;  %784 = vst [vmem:[%s13177_s9 + $0x1160] sm:$0xff] %v783_v22 }
 0x129   : >> { %v787_v24 = vld [vmem:[%s13181_s10 + $0x2300] sm:$0xff]  ;;  %786 = vst [vmem:[%s13177_s9 + $0x1170] sm:$0xff] %v785_v23 }
 0x12a   : >> { %v789_v25 = vld [vmem:[%s13181_s10 + $0x2320] sm:$0xff]  ;;  %788 = vst [vmem:[%s13177_s9 + $0x1180] sm:$0xff] %v787_v24 }
 0x12b   : >> { %v791_v26 = vld [vmem:[%s13181_s10 + $0x2340] sm:$0xff]  ;;  %790 = vst [vmem:[%s13177_s9 + $0x1190] sm:$0xff] %v789_v25 }
 0x12c   : >> { %v793_v27 = vld [vmem:[%s13181_s10 + $0x2360] sm:$0xff]  ;;  %792 = vst [vmem:[%s13177_s9 + $0x11a0] sm:$0xff] %v791_v26 }
 0x12d   : >> { %v795_v28 = vld [vmem:[%s13181_s10 + $0x2380] sm:$0xff]  ;;  %794 = vst [vmem:[%s13177_s9 + $0x11b0] sm:$0xff] %v793_v27 }
 0x12e   : >> { %v797_v29 = vld [vmem:[%s13181_s10 + $0x23a0] sm:$0xff]  ;;  %796 = vst [vmem:[%s13177_s9 + $0x11c0] sm:$0xff] %v795_v28 }
 0x12f   : >> { %v799_v30 = vld [vmem:[%s13181_s10 + $0x23c0] sm:$0xff]  ;;  %798 = vst [vmem:[%s13177_s9 + $0x11d0] sm:$0xff] %v797_v29 }
 0x130   : >> { %v801_v31 = vld [vmem:[%s13181_s10 + $0x23e0] sm:$0xff]  ;;  %800 = vst [vmem:[%s13177_s9 + $0x11e0] sm:$0xff] %v799_v30 }
 0x131   : >> { %v803_v32 = vld [vmem:[%s13181_s10 + $0x2400] sm:$0xff]  ;;  %802 = vst [vmem:[%s13177_s9 + $0x11f0] sm:$0xff] %v801_v31 }
 0x132   : >> { %v805_v33 = vld [vmem:[%s13181_s10 + $0x2420] sm:$0xff]  ;;  %804 = vst [vmem:[%s13177_s9 + $0x1200] sm:$0xff] %v803_v32 }
 0x133   : >> { %v807_v34 = vld [vmem:[%s13181_s10 + $0x2440] sm:$0xff]  ;;  %806 = vst [vmem:[%s13177_s9 + $0x1210] sm:$0xff] %v805_v33 }
 0x134   : >> { %v809_v35 = vld [vmem:[%s13181_s10 + $0x2460] sm:$0xff]  ;;  %808 = vst [vmem:[%s13177_s9 + $0x1220] sm:$0xff] %v807_v34 }
 0x135   : >> { %v811_v36 = vld [vmem:[%s13181_s10 + $0x2480] sm:$0xff]  ;;  %810 = vst [vmem:[%s13177_s9 + $0x1230] sm:$0xff] %v809_v35 }
 0x136   : >> { %v813_v37 = vld [vmem:[%s13181_s10 + $0x24a0] sm:$0xff]  ;;  %812 = vst [vmem:[%s13177_s9 + $0x1240] sm:$0xff] %v811_v36 }
 0x137   : >> { %v815_v38 = vld [vmem:[%s13181_s10 + $0x24c0] sm:$0xff]  ;;  %814 = vst [vmem:[%s13177_s9 + $0x1250] sm:$0xff] %v813_v37 }
 0x138   : >> { %v817_v39 = vld [vmem:[%s13181_s10 + $0x24e0] sm:$0xff]  ;;  %816 = vst [vmem:[%s13177_s9 + $0x1260] sm:$0xff] %v815_v38 }
 0x139   : >> { %v819_v40 = vld [vmem:[%s13181_s10 + $0x2500] sm:$0xff]  ;;  %818 = vst [vmem:[%s13177_s9 + $0x1270] sm:$0xff] %v817_v39 }
 0x13a   : >> { %v821_v41 = vld [vmem:[%s13181_s10 + $0x2520] sm:$0xff]  ;;  %820 = vst [vmem:[%s13177_s9 + $0x1280] sm:$0xff] %v819_v40 }
 0x13b   : >> { %v823_v42 = vld [vmem:[%s13181_s10 + $0x2540] sm:$0xff]  ;;  %822 = vst [vmem:[%s13177_s9 + $0x1290] sm:$0xff] %v821_v41 }
 0x13c   : >> { %v825_v43 = vld [vmem:[%s13181_s10 + $0x2560] sm:$0xff]  ;;  %824 = vst [vmem:[%s13177_s9 + $0x12a0] sm:$0xff] %v823_v42 }
 0x13d   : >> { %v827_v44 = vld [vmem:[%s13181_s10 + $0x2580] sm:$0xff]  ;;  %826 = vst [vmem:[%s13177_s9 + $0x12b0] sm:$0xff] %v825_v43 }
 0x13e   : >> { %v829_v45 = vld [vmem:[%s13181_s10 + $0x25a0] sm:$0xff]  ;;  %828 = vst [vmem:[%s13177_s9 + $0x12c0] sm:$0xff] %v827_v44 }
 0x13f   : >> { %v831_v46 = vld [vmem:[%s13181_s10 + $0x25c0] sm:$0xff]  ;;  %830 = vst [vmem:[%s13177_s9 + $0x12d0] sm:$0xff] %v829_v45 }
 0x140   : >> { %v833_v47 = vld [vmem:[%s13181_s10 + $0x25e0] sm:$0xff]  ;;  %832 = vst [vmem:[%s13177_s9 + $0x12e0] sm:$0xff] %v831_v46 }
 0x141   : >> { %v835_v48 = vld [vmem:[%s13181_s10 + $0x2600] sm:$0xff]  ;;  %834 = vst [vmem:[%s13177_s9 + $0x12f0] sm:$0xff] %v833_v47 }
 0x142   : >> { %v837_v49 = vld [vmem:[%s13181_s10 + $0x2620] sm:$0xff]  ;;  %836 = vst [vmem:[%s13177_s9 + $0x1300] sm:$0xff] %v835_v48 }
 0x143   : >> { %v839_v50 = vld [vmem:[%s13181_s10 + $0x2640] sm:$0xff]  ;;  %838 = vst [vmem:[%s13177_s9 + $0x1310] sm:$0xff] %v837_v49 }
 0x144   : >> { %v841_v51 = vld [vmem:[%s13181_s10 + $0x2660] sm:$0xff]  ;;  %840 = vst [vmem:[%s13177_s9 + $0x1320] sm:$0xff] %v839_v50 }
 0x145   : >> { %v843_v52 = vld [vmem:[%s13181_s10 + $0x2680] sm:$0xff]  ;;  %842 = vst [vmem:[%s13177_s9 + $0x1330] sm:$0xff] %v841_v51 }
 0x146   : >> { %v845_v53 = vld [vmem:[%s13181_s10 + $0x26a0] sm:$0xff]  ;;  %844 = vst [vmem:[%s13177_s9 + $0x1340] sm:$0xff] %v843_v52 }
 0x147   : >> { %v847_v54 = vld [vmem:[%s13181_s10 + $0x26c0] sm:$0xff]  ;;  %846 = vst [vmem:[%s13177_s9 + $0x1350] sm:$0xff] %v845_v53 }
 0x148   : >> { %v849_v55 = vld [vmem:[%s13181_s10 + $0x26e0] sm:$0xff]  ;;  %848 = vst [vmem:[%s13177_s9 + $0x1360] sm:$0xff] %v847_v54 }
 0x149   : >> { %v851_v56 = vld [vmem:[%s13181_s10 + $0x2700] sm:$0xff]  ;;  %850 = vst [vmem:[%s13177_s9 + $0x1370] sm:$0xff] %v849_v55 }
 0x14a   : >> { %v853_v57 = vld [vmem:[%s13181_s10 + $0x2720] sm:$0xff]  ;;  %852 = vst [vmem:[%s13177_s9 + $0x1380] sm:$0xff] %v851_v56 }
 0x14b   : >> { %v855_v58 = vld [vmem:[%s13181_s10 + $0x2740] sm:$0xff]  ;;  %854 = vst [vmem:[%s13177_s9 + $0x1390] sm:$0xff] %v853_v57 }
 0x14c   : >> { %v857_v59 = vld [vmem:[%s13181_s10 + $0x2760] sm:$0xff]  ;;  %856 = vst [vmem:[%s13177_s9 + $0x13a0] sm:$0xff] %v855_v58 }
 0x14d   : >> { %v859_v60 = vld [vmem:[%s13181_s10 + $0x2780] sm:$0xff]  ;;  %858 = vst [vmem:[%s13177_s9 + $0x13b0] sm:$0xff] %v857_v59 }
 0x14e   : >> { %v861_v61 = vld [vmem:[%s13181_s10 + $0x27a0] sm:$0xff]  ;;  %860 = vst [vmem:[%s13177_s9 + $0x13c0] sm:$0xff] %v859_v60 }
 0x14f   : >> { %v863_v62 = vld [vmem:[%s13181_s10 + $0x27c0] sm:$0xff]  ;;  %862 = vst [vmem:[%s13177_s9 + $0x13d0] sm:$0xff] %v861_v61 }
 0x150   : >> { %v865_v63 = vld [vmem:[%s13181_s10 + $0x27e0] sm:$0xff]  ;;  %864 = vst [vmem:[%s13177_s9 + $0x13e0] sm:$0xff] %v863_v62 }
 0x151   : >> { %v867_v0 = vld [vmem:[%s13181_s10 + $0x2800] sm:$0xff]  ;;  %866 = vst [vmem:[%s13177_s9 + $0x13f0] sm:$0xff] %v865_v63 }
 0x152   : >> { %v869_v1 = vld [vmem:[%s13181_s10 + $0x2820] sm:$0xff]  ;;  %868 = vst [vmem:[%s13177_s9 + $0x1400] sm:$0xff] %v867_v0 }
 0x153   : >> { %v871_v2 = vld [vmem:[%s13181_s10 + $0x2840] sm:$0xff]  ;;  %870 = vst [vmem:[%s13177_s9 + $0x1410] sm:$0xff] %v869_v1 }
 0x154   : >> { %v873_v3 = vld [vmem:[%s13181_s10 + $0x2860] sm:$0xff]  ;;  %872 = vst [vmem:[%s13177_s9 + $0x1420] sm:$0xff] %v871_v2 }
 0x155   : >> { %v875_v4 = vld [vmem:[%s13181_s10 + $0x2880] sm:$0xff]  ;;  %874 = vst [vmem:[%s13177_s9 + $0x1430] sm:$0xff] %v873_v3 }
 0x156   : >> { %v877_v5 = vld [vmem:[%s13181_s10 + $0x28a0] sm:$0xff]  ;;  %876 = vst [vmem:[%s13177_s9 + $0x1440] sm:$0xff] %v875_v4 }
 0x157   : >> { %v879_v6 = vld [vmem:[%s13181_s10 + $0x28c0] sm:$0xff]  ;;  %878 = vst [vmem:[%s13177_s9 + $0x1450] sm:$0xff] %v877_v5 }
 0x158   : >> { %v881_v7 = vld [vmem:[%s13181_s10 + $0x28e0] sm:$0xff]  ;;  %880 = vst [vmem:[%s13177_s9 + $0x1460] sm:$0xff] %v879_v6 }
 0x159   : >> { %v883_v8 = vld [vmem:[%s13181_s10 + $0x2900] sm:$0xff]  ;;  %882 = vst [vmem:[%s13177_s9 + $0x1470] sm:$0xff] %v881_v7 }
 0x15a   : >> { %v885_v9 = vld [vmem:[%s13181_s10 + $0x2920] sm:$0xff]  ;;  %884 = vst [vmem:[%s13177_s9 + $0x1480] sm:$0xff] %v883_v8 }
 0x15b   : >> { %v887_v10 = vld [vmem:[%s13181_s10 + $0x2940] sm:$0xff]  ;;  %886 = vst [vmem:[%s13177_s9 + $0x1490] sm:$0xff] %v885_v9 }
 0x15c   : >> { %v889_v11 = vld [vmem:[%s13181_s10 + $0x2960] sm:$0xff]  ;;  %888 = vst [vmem:[%s13177_s9 + $0x14a0] sm:$0xff] %v887_v10 }
 0x15d   : >> { %v891_v12 = vld [vmem:[%s13181_s10 + $0x2980] sm:$0xff]  ;;  %890 = vst [vmem:[%s13177_s9 + $0x14b0] sm:$0xff] %v889_v11 }
 0x15e   : >> { %v893_v13 = vld [vmem:[%s13181_s10 + $0x29a0] sm:$0xff]  ;;  %892 = vst [vmem:[%s13177_s9 + $0x14c0] sm:$0xff] %v891_v12 }
 0x15f   : >> { %v895_v14 = vld [vmem:[%s13181_s10 + $0x29c0] sm:$0xff]  ;;  %894 = vst [vmem:[%s13177_s9 + $0x14d0] sm:$0xff] %v893_v13 }
 0x160   : >> { %v897_v15 = vld [vmem:[%s13181_s10 + $0x29e0] sm:$0xff]  ;;  %896 = vst [vmem:[%s13177_s9 + $0x14e0] sm:$0xff] %v895_v14 }
 0x161   : >> { %v899_v16 = vld [vmem:[%s13181_s10 + $0x2a00] sm:$0xff]  ;;  %898 = vst [vmem:[%s13177_s9 + $0x14f0] sm:$0xff] %v897_v15 }
 0x162   : >> { %v901_v17 = vld [vmem:[%s13181_s10 + $0x2a20] sm:$0xff]  ;;  %900 = vst [vmem:[%s13177_s9 + $0x1500] sm:$0xff] %v899_v16 }
 0x163   : >> { %v903_v18 = vld [vmem:[%s13181_s10 + $0x2a40] sm:$0xff]  ;;  %902 = vst [vmem:[%s13177_s9 + $0x1510] sm:$0xff] %v901_v17 }
 0x164   : >> { %v905_v19 = vld [vmem:[%s13181_s10 + $0x2a60] sm:$0xff]  ;;  %904 = vst [vmem:[%s13177_s9 + $0x1520] sm:$0xff] %v903_v18 }
 0x165   : >> { %v907_v20 = vld [vmem:[%s13181_s10 + $0x2a80] sm:$0xff]  ;;  %906 = vst [vmem:[%s13177_s9 + $0x1530] sm:$0xff] %v905_v19 }
 0x166   : >> { %v909_v21 = vld [vmem:[%s13181_s10 + $0x2aa0] sm:$0xff]  ;;  %908 = vst [vmem:[%s13177_s9 + $0x1540] sm:$0xff] %v907_v20 }
 0x167   : >> { %v911_v22 = vld [vmem:[%s13181_s10 + $0x2ac0] sm:$0xff]  ;;  %910 = vst [vmem:[%s13177_s9 + $0x1550] sm:$0xff] %v909_v21 }
 0x168   : >> { %v913_v23 = vld [vmem:[%s13181_s10 + $0x2ae0] sm:$0xff]  ;;  %912 = vst [vmem:[%s13177_s9 + $0x1560] sm:$0xff] %v911_v22 }
 0x169   : >> { %v915_v24 = vld [vmem:[%s13181_s10 + $0x2b00] sm:$0xff]  ;;  %914 = vst [vmem:[%s13177_s9 + $0x1570] sm:$0xff] %v913_v23 }
 0x16a   : >> { %v917_v25 = vld [vmem:[%s13181_s10 + $0x2b20] sm:$0xff]  ;;  %916 = vst [vmem:[%s13177_s9 + $0x1580] sm:$0xff] %v915_v24 }
 0x16b   : >> { %v919_v26 = vld [vmem:[%s13181_s10 + $0x2b40] sm:$0xff]  ;;  %918 = vst [vmem:[%s13177_s9 + $0x1590] sm:$0xff] %v917_v25 }
 0x16c   : >> { %v921_v27 = vld [vmem:[%s13181_s10 + $0x2b60] sm:$0xff]  ;;  %920 = vst [vmem:[%s13177_s9 + $0x15a0] sm:$0xff] %v919_v26 }
 0x16d   : >> { %v923_v28 = vld [vmem:[%s13181_s10 + $0x2b80] sm:$0xff]  ;;  %922 = vst [vmem:[%s13177_s9 + $0x15b0] sm:$0xff] %v921_v27 }
 0x16e   : >> { %v925_v29 = vld [vmem:[%s13181_s10 + $0x2ba0] sm:$0xff]  ;;  %924 = vst [vmem:[%s13177_s9 + $0x15c0] sm:$0xff] %v923_v28 }
 0x16f   : >> { %v927_v30 = vld [vmem:[%s13181_s10 + $0x2bc0] sm:$0xff]  ;;  %926 = vst [vmem:[%s13177_s9 + $0x15d0] sm:$0xff] %v925_v29 }
 0x170   : >> { %v929_v31 = vld [vmem:[%s13181_s10 + $0x2be0] sm:$0xff]  ;;  %928 = vst [vmem:[%s13177_s9 + $0x15e0] sm:$0xff] %v927_v30 }
 0x171   : >> { %v931_v32 = vld [vmem:[%s13181_s10 + $0x2c00] sm:$0xff]  ;;  %930 = vst [vmem:[%s13177_s9 + $0x15f0] sm:$0xff] %v929_v31 }
 0x172   : >> { %v933_v33 = vld [vmem:[%s13181_s10 + $0x2c20] sm:$0xff]  ;;  %932 = vst [vmem:[%s13177_s9 + $0x1600] sm:$0xff] %v931_v32 }
 0x173   : >> { %v935_v34 = vld [vmem:[%s13181_s10 + $0x2c40] sm:$0xff]  ;;  %934 = vst [vmem:[%s13177_s9 + $0x1610] sm:$0xff] %v933_v33 }
 0x174   : >> { %v937_v35 = vld [vmem:[%s13181_s10 + $0x2c60] sm:$0xff]  ;;  %936 = vst [vmem:[%s13177_s9 + $0x1620] sm:$0xff] %v935_v34 }
 0x175   : >> { %v939_v36 = vld [vmem:[%s13181_s10 + $0x2c80] sm:$0xff]  ;;  %938 = vst [vmem:[%s13177_s9 + $0x1630] sm:$0xff] %v937_v35 }
 0x176   : >> { %v941_v37 = vld [vmem:[%s13181_s10 + $0x2ca0] sm:$0xff]  ;;  %940 = vst [vmem:[%s13177_s9 + $0x1640] sm:$0xff] %v939_v36 }
 0x177   : >> { %v943_v38 = vld [vmem:[%s13181_s10 + $0x2cc0] sm:$0xff]  ;;  %942 = vst [vmem:[%s13177_s9 + $0x1650] sm:$0xff] %v941_v37 }
 0x178   : >> { %v945_v39 = vld [vmem:[%s13181_s10 + $0x2ce0] sm:$0xff]  ;;  %944 = vst [vmem:[%s13177_s9 + $0x1660] sm:$0xff] %v943_v38 }
 0x179   : >> { %v947_v40 = vld [vmem:[%s13181_s10 + $0x2d00] sm:$0xff]  ;;  %946 = vst [vmem:[%s13177_s9 + $0x1670] sm:$0xff] %v945_v39 }
 0x17a   : >> { %v949_v41 = vld [vmem:[%s13181_s10 + $0x2d20] sm:$0xff]  ;;  %948 = vst [vmem:[%s13177_s9 + $0x1680] sm:$0xff] %v947_v40 }
 0x17b   : >> { %v951_v42 = vld [vmem:[%s13181_s10 + $0x2d40] sm:$0xff]  ;;  %950 = vst [vmem:[%s13177_s9 + $0x1690] sm:$0xff] %v949_v41 }
 0x17c   : >> { %v953_v43 = vld [vmem:[%s13181_s10 + $0x2d60] sm:$0xff]  ;;  %952 = vst [vmem:[%s13177_s9 + $0x16a0] sm:$0xff] %v951_v42 }
 0x17d   : >> { %v955_v44 = vld [vmem:[%s13181_s10 + $0x2d80] sm:$0xff]  ;;  %954 = vst [vmem:[%s13177_s9 + $0x16b0] sm:$0xff] %v953_v43 }
 0x17e   : >> { %v957_v45 = vld [vmem:[%s13181_s10 + $0x2da0] sm:$0xff]  ;;  %956 = vst [vmem:[%s13177_s9 + $0x16c0] sm:$0xff] %v955_v44 }
 0x17f   : >> { %v959_v46 = vld [vmem:[%s13181_s10 + $0x2dc0] sm:$0xff]  ;;  %958 = vst [vmem:[%s13177_s9 + $0x16d0] sm:$0xff] %v957_v45 }
 0x180   : >> { %v961_v47 = vld [vmem:[%s13181_s10 + $0x2de0] sm:$0xff]  ;;  %960 = vst [vmem:[%s13177_s9 + $0x16e0] sm:$0xff] %v959_v46 }
 0x181   : >> { %v963_v48 = vld [vmem:[%s13181_s10 + $0x2e00] sm:$0xff]  ;;  %962 = vst [vmem:[%s13177_s9 + $0x16f0] sm:$0xff] %v961_v47 }
 0x182   : >> { %v965_v49 = vld [vmem:[%s13181_s10 + $0x2e20] sm:$0xff]  ;;  %964 = vst [vmem:[%s13177_s9 + $0x1700] sm:$0xff] %v963_v48 }
 0x183   : >> { %v967_v50 = vld [vmem:[%s13181_s10 + $0x2e40] sm:$0xff]  ;;  %966 = vst [vmem:[%s13177_s9 + $0x1710] sm:$0xff] %v965_v49 }
 0x184   : >> { %v969_v51 = vld [vmem:[%s13181_s10 + $0x2e60] sm:$0xff]  ;;  %968 = vst [vmem:[%s13177_s9 + $0x1720] sm:$0xff] %v967_v50 }
 0x185   : >> { %v971_v52 = vld [vmem:[%s13181_s10 + $0x2e80] sm:$0xff]  ;;  %970 = vst [vmem:[%s13177_s9 + $0x1730] sm:$0xff] %v969_v51 }
 0x186   : >> { %v973_v53 = vld [vmem:[%s13181_s10 + $0x2ea0] sm:$0xff]  ;;  %972 = vst [vmem:[%s13177_s9 + $0x1740] sm:$0xff] %v971_v52 }
 0x187   : >> { %v975_v54 = vld [vmem:[%s13181_s10 + $0x2ec0] sm:$0xff]  ;;  %974 = vst [vmem:[%s13177_s9 + $0x1750] sm:$0xff] %v973_v53 }
 0x188   : >> { %v977_v55 = vld [vmem:[%s13181_s10 + $0x2ee0] sm:$0xff]  ;;  %976 = vst [vmem:[%s13177_s9 + $0x1760] sm:$0xff] %v975_v54 }
 0x189   : >> { %v979_v56 = vld [vmem:[%s13181_s10 + $0x2f00] sm:$0xff]  ;;  %978 = vst [vmem:[%s13177_s9 + $0x1770] sm:$0xff] %v977_v55 }
 0x18a   : >> { %v981_v57 = vld [vmem:[%s13181_s10 + $0x2f20] sm:$0xff]  ;;  %980 = vst [vmem:[%s13177_s9 + $0x1780] sm:$0xff] %v979_v56 }
 0x18b   : >> { %v983_v58 = vld [vmem:[%s13181_s10 + $0x2f40] sm:$0xff]  ;;  %982 = vst [vmem:[%s13177_s9 + $0x1790] sm:$0xff] %v981_v57 }
 0x18c   : >> { %v985_v59 = vld [vmem:[%s13181_s10 + $0x2f60] sm:$0xff]  ;;  %984 = vst [vmem:[%s13177_s9 + $0x17a0] sm:$0xff] %v983_v58 }
 0x18d   : >> { %v987_v60 = vld [vmem:[%s13181_s10 + $0x2f80] sm:$0xff]  ;;  %986 = vst [vmem:[%s13177_s9 + $0x17b0] sm:$0xff] %v985_v59 }
 0x18e   : >> { %v989_v61 = vld [vmem:[%s13181_s10 + $0x2fa0] sm:$0xff]  ;;  %988 = vst [vmem:[%s13177_s9 + $0x17c0] sm:$0xff] %v987_v60 }
 0x18f   : >> { %v991_v62 = vld [vmem:[%s13181_s10 + $0x2fc0] sm:$0xff]  ;;  %990 = vst [vmem:[%s13177_s9 + $0x17d0] sm:$0xff] %v989_v61 }
 0x190   : >> { %v993_v63 = vld [vmem:[%s13181_s10 + $0x2fe0] sm:$0xff]  ;;  %992 = vst [vmem:[%s13177_s9 + $0x17e0] sm:$0xff] %v991_v62 }
 0x191   : >> { %v995_v0 = vld [vmem:[%s13181_s10 + $0x3000] sm:$0xff]  ;;  %994 = vst [vmem:[%s13177_s9 + $0x17f0] sm:$0xff] %v993_v63 }
 0x192   : >> { %v997_v1 = vld [vmem:[%s13181_s10 + $0x3020] sm:$0xff]  ;;  %996 = vst [vmem:[%s13177_s9 + $0x1800] sm:$0xff] %v995_v0 }
 0x193   : >> { %v999_v2 = vld [vmem:[%s13181_s10 + $0x3040] sm:$0xff]  ;;  %998 = vst [vmem:[%s13177_s9 + $0x1810] sm:$0xff] %v997_v1 }
 0x194   : >> { %v1001_v3 = vld [vmem:[%s13181_s10 + $0x3060] sm:$0xff]  ;;  %1000 = vst [vmem:[%s13177_s9 + $0x1820] sm:$0xff] %v999_v2 }
 0x195   : >> { %v1003_v4 = vld [vmem:[%s13181_s10 + $0x3080] sm:$0xff]  ;;  %1002 = vst [vmem:[%s13177_s9 + $0x1830] sm:$0xff] %v1001_v3  ;;  %222 = sbr.rel (!%p220_p7) target bundleno = 17 (0x11), region = 127 }
 0x196   : >> { %v1005_v5 = vld [vmem:[%s13181_s10 + $0x30a0] sm:$0xff]  ;;  %1004 = vst [vmem:[%s13177_s9 + $0x1840] sm:$0xff] %v1003_v4 }
 0x197   : >> { %v1007_v6 = vld [vmem:[%s13181_s10 + $0x30c0] sm:$0xff]  ;;  %1006 = vst [vmem:[%s13177_s9 + $0x1850] sm:$0xff] %v1005_v5 }
 0x198   : >> { %v1009_v7 = vld [vmem:[%s13181_s10 + $0x30e0] sm:$0xff]  ;;  %1008 = vst [vmem:[%s13177_s9 + $0x1860] sm:$0xff] %v1007_v6  ;;  %s16042_s10 = smov %s13828_s15 }
 0x199   : >> { %1010 = vst [vmem:[%s13177_s9 + $0x1870] sm:$0xff] %v1009_v7  ;;  %s16041_s9 = smov %s13832_s16 }
 0x19a PF: > { %p9108_p8 = scmp.ge.s32.totalorder %s13173_s22, 1  ;;  %p2635_p9 = scmp.lt.s32.totalorder %s13173_s22, 3 }
 0x19c   : > { %p2636_p10 = pnand %p9108_p8, %p2635_p9 }
 0x19d   : > { %s2642_s17 = sand.u32 (!%p2636_p10), 1, %s13157_s18   ;;  %s9109_s24 = sshll.u32 (!%p2636_p10), %s13165_s20, 2 }
 0x19e   : > { %2639 = sbr.rel (%p2636_p10) target bundleno = 1493 (0x5d5), region = 73  ;;  %p2689_p11 = scmp.lt.s32.totalorder (!%p2636_p10), %s9109_s24, 7 }
 0x19f   : > { %s13042_s25 = smul.u32 (!%p2636_p10), 6272, %s2642_s17  ;;  %s9110_s27 = sshll.u32 (!%p2636_p10), %s13165_s20, 6 }
 0x1a0   : > { %p2694_p12 = scmp.lt.s32.totalorder (!%p2636_p10), %s9110_s27, 127  ;;  %p9112_p13 = scmp.ne.s32.totalorder (!%p2636_p10), %s13165_s20, 0 }
 0x1a1   : > { %s14114_s10 = scalar_lea.vmem (!%p2636_p10), [#allocation2], %s13042_s25 }
 0x1a3   : > { %s16053_s24 = smov (!%p2689_p11, %s9109_s24), 7  ;;  %s16055_s27 = smov (!%p2694_p12, %s9110_s27), 127 }
 0x1a4   : > { %s14107_s30 = scalar_lea.vmem %s16035_s2, %s16053_s24  ;;  %s9111_s6 = sshll.u32 %s16055_s27, 3 }
 0x1a5   : > { %s14112_s9 = scalar_lea.vmem %s16036_s3, %s9111_s6  ;;  %2707 = sbr.rel (%p9112_p13) target bundleno = 428 (0x1ac), region = 81 }
 0x1aa   : > { %v13115_v8 = vld [vmem:[%s16037_s4] ss:$0 sm:$0xff]  ;;  %vm2713_vm0 = vcmask 80896  }
 0x1ab   : > { %2714 = vst.msk [vmem:[%s16038_s5] sm:$0xff] %vm2713_vm0, %v13115_v8 }
 0x1ac PF: > { %v9227_v9 = vld [vmem:[%s14114_s10 + $0xe0] sm:$0xf]  ;;  %v12287_v10 = vld [vmem:[%s14114_s10 + $0xec] sm:$0xf0]  ;;  %vm7529_vm1 = vcmask 523264   ;;  %vm8979_vm2 = vcmask 80896  }
 0x1ad   : > { %v9355_v11 = vld [vmem:[%s14114_s10 + $0x1e0] sm:$0xf]  ;;  %v9228_v12 = vor.u32 %v12287_v10, %v9227_v9  ;;  %v12319_v13 = vld [vmem:[%s14114_s10 + $0x1ec] sm:$0xf0] }
 0x1ae   : > { %v9483_v14 = vld [vmem:[%s14114_s10 + $0x2e0] sm:$0xf]  ;;  %v12351_v15 = vld [vmem:[%s14114_s10 + $0x2ec] sm:$0xf0]  ;;  %v9356_v16 = vor.u32 %v12319_v13, %v9355_v11 }
 0x1af   : > { %v9484_v17 = vor.u32 %v12351_v15, %v9483_v14  ;;  %v9611_v18 = vld [vmem:[%s14114_s10 + $0x3e0] sm:$0xf]  ;;  %v12383_v19 = vld [vmem:[%s14114_s10 + $0x3ec] sm:$0xf0]  ;;  %7533 = vmatpush.bf16.msra.mxu0 %v9228_v12 }
 0x1b0   : > { %v9211_v20 = vld [vmem:[%s14114_s10 + $0xc0] sm:$0xf]  ;;  %v9612_v21 = vor.u32 %v12383_v19, %v9611_v18  ;;  %v12283_v22 = vld [vmem:[%s14114_s10 + $0xcc] sm:$0xf0]  ;;  %7546 = vmatpush.bf16.msra.mxu1 %v9356_v16 }
 0x1b1   : > { %v9339_v23 = vld [vmem:[%s14114_s10 + $0x1c0] sm:$0xf]  ;;  %v12315_v24 = vld [vmem:[%s14114_s10 + $0x1cc] sm:$0xf0]  ;;  %7559 = vmatpush.bf16.msra.mxu2 %v9484_v17  ;;  %v9212_v25 = vor.u32 %v12283_v22, %v9211_v20 }
 0x1b2   : > { %v9340_v26 = vor.u32 %v12315_v24, %v9339_v23  ;;  %v9467_v27 = vld [vmem:[%s14114_s10 + $0x2c0] sm:$0xf]  ;;  %v12347_v28 = vld [vmem:[%s14114_s10 + $0x2cc] sm:$0xf0]  ;;  %7572 = vmatpush.bf16.msra.mxu3 %v9612_v21 }
 0x1b3   : > { %v9595_v29 = vld [vmem:[%s14114_s10 + $0x3c0] sm:$0xf]  ;;  %v9468_v30 = vor.u32 %v12347_v28, %v9467_v27  ;;  %v12379_v31 = vld [vmem:[%s14114_s10 + $0x3cc] sm:$0xf0]  ;;  %7534 = vmatpush.bf16.msra.mxu0 %v9212_v25 }
 0x1b4   : > { %v9195_v32 = vld [vmem:[%s14114_s10 + $0xa0] sm:$0xf]  ;;  %v12279_v33 = vld [vmem:[%s14114_s10 + $0xac] sm:$0xf0]  ;;  %v9596_v34 = vor.u32 %v12379_v31, %v9595_v29  ;;  %7547 = vmatpush.bf16.msra.mxu1 %v9340_v26 }
 0x1b5   : > { %v9323_v35 = vld [vmem:[%s14114_s10 + $0x1a0] sm:$0xf]  ;;  %v12311_v36 = vld [vmem:[%s14114_s10 + $0x1ac] sm:$0xf0]  ;;  %v9196_v38 = vor.u32 %v12279_v33, %v9195_v32  ;;  %7560 = vmatpush.bf16.msra.mxu2 %v9468_v30 }
 0x1b6   : > { %v9451_v37 = vld [vmem:[%s14114_s10 + $0x2a0] sm:$0xf]  ;;  %v12343_v39 = vld [vmem:[%s14114_s10 + $0x2ac] sm:$0xf0]  ;;  %v9324_v42 = vor.u32 %v12311_v36, %v9323_v35  ;;  %7573 = vmatpush.bf16.msra.mxu3 %v9596_v34 }
 0x1b7   : > { %v9579_v40 = vld [vmem:[%s14114_s10 + $0x3a0] sm:$0xf]  ;;  %v12375_v41 = vld [vmem:[%s14114_s10 + $0x3ac] sm:$0xf0]  ;;  %v9452_v43 = vor.u32 %v12343_v39, %v9451_v37  ;;  %7535 = vmatpush.bf16.msra.mxu0 %v9196_v38 }
 0x1b8   : > { %v9179_v44 = vld [vmem:[%s14114_s10 + $0x80] sm:$0xf]  ;;  %v12275_v45 = vld [vmem:[%s14114_s10 + $0x8c] sm:$0xf0]  ;;  %v9580_v47 = vor.u32 %v12375_v41, %v9579_v40  ;;  %7548 = vmatpush.bf16.msra.mxu1 %v9324_v42 }
 0x1b9   : > { %v9307_v46 = vld [vmem:[%s14114_s10 + $0x180] sm:$0xf]  ;;  %v12307_v48 = vld [vmem:[%s14114_s10 + $0x18c] sm:$0xf0]  ;;  %v9180_v53 = vor.u32 %v12275_v45, %v9179_v44  ;;  %7561 = vmatpush.bf16.msra.mxu2 %v9452_v43 }
 0x1ba   : > { %v9435_v49 = vld [vmem:[%s14114_s10 + $0x280] sm:$0xf]  ;;  %v12339_v50 = vld [vmem:[%s14114_s10 + $0x28c] sm:$0xf0]  ;;  %v9308_v54 = vor.u32 %v12307_v48, %v9307_v46  ;;  %7574 = vmatpush.bf16.msra.mxu3 %v9580_v47 }
 0x1bb   : > { %v9563_v51 = vld [vmem:[%s14114_s10 + $0x380] sm:$0xf]  ;;  %v12371_v52 = vld [vmem:[%s14114_s10 + $0x38c] sm:$0xf0]  ;;  %v9436_v55 = vor.u32 %v12339_v50, %v9435_v49  ;;  %7536 = vmatpush.bf16.msra.mxu0 %v9180_v53 }
 0x1bc   : > { %v9163_v56 = vld [vmem:[%s14114_s10 + $0x60] sm:$0xf]  ;;  %v12271_v57 = vld [vmem:[%s14114_s10 + $0x6c] sm:$0xf0]  ;;  %v9564_v59 = vor.u32 %v12371_v52, %v9563_v51  ;;  %7549 = vmatpush.bf16.msra.mxu1 %v9308_v54 }
 0x1bd   : > { %v9291_v58 = vld [vmem:[%s14114_s10 + $0x160] sm:$0xf]  ;;  %v12303_v60 = vld [vmem:[%s14114_s10 + $0x16c] sm:$0xf0]  ;;  %v9164_v1 = vor.u32 %v12271_v57, %v9163_v56  ;;  %7562 = vmatpush.bf16.msra.mxu2 %v9436_v55 }
 0x1be   : > { %v9419_v61 = vld [vmem:[%s14114_s10 + $0x260] sm:$0xf]  ;;  %v12335_v62 = vld [vmem:[%s14114_s10 + $0x26c] sm:$0xf0]  ;;  %v9292_v2 = vor.u32 %v12303_v60, %v9291_v58  ;;  %7575 = vmatpush.bf16.msra.mxu3 %v9564_v59 }
 0x1bf   : > { %v9547_v63 = vld [vmem:[%s14114_s10 + $0x360] sm:$0xf]  ;;  %v12367_v0 = vld [vmem:[%s14114_s10 + $0x36c] sm:$0xf0]  ;;  %v9420_v3 = vor.u32 %v12335_v62, %v9419_v61  ;;  %7537 = vmatpush.bf16.msra.mxu0 %v9164_v1 }
 0x1c0   : > { %v9147_v4 = vld [vmem:[%s14114_s10 + $0x40] sm:$0xf]  ;;  %v12267_v5 = vld [vmem:[%s14114_s10 + $0x4c] sm:$0xf0]  ;;  %v9548_v7 = vor.u32 %v12367_v0, %v9547_v63  ;;  %7550 = vmatpush.bf16.msra.mxu1 %v9292_v2 }
 0x1c1   : > { %v9275_v6 = vld [vmem:[%s14114_s10 + $0x140] sm:$0xf]  ;;  %v12299_v8 = vld [vmem:[%s14114_s10 + $0x14c] sm:$0xf0]  ;;  %v9148_v13 = vor.u32 %v12267_v5, %v9147_v4  ;;  %7563 = vmatpush.bf16.msra.mxu2 %v9420_v3  ;;  %v2716_v3 = vld [vmem:[%s16033_s0 + $0x8] sm:$0xff] }
 0x1c2   : > { %v9403_v9 = vld [vmem:[%s14114_s10 + $0x240] sm:$0xf]  ;;  %v12331_v10 = vld [vmem:[%s14114_s10 + $0x24c] sm:$0xf0]  ;;  %v9276_v14 = vor.u32 %v12299_v8, %v9275_v6  ;;  %7576 = vmatpush.bf16.msra.mxu3 %v9548_v7  ;;  %v3537_v8 = vunpack.c.l.b16 %v2716_v3 }
 0x1c3   : > { %v9531_v11 = vld [vmem:[%s14114_s10 + $0x340] sm:$0xf]  ;;  %v12363_v12 = vld [vmem:[%s14114_s10 + $0x34c] sm:$0xf0]  ;;  %v9404_v15 = vor.u32 %v12331_v10, %v9403_v9  ;;  %7538 = vmatpush.bf16.msra.mxu0 %v9148_v13  ;;  %v3538_v9 = vunpack.c.h.b16 %v2716_v3 }
 0x1c4   : > { %v9131_v16 = vld [vmem:[%s14114_s10 + $0x20] sm:$0xf]  ;;  %v12263_v17 = vld [vmem:[%s14114_s10 + $0x2c] sm:$0xf0]  ;;  %v9532_v19 = vor.u32 %v12363_v12, %v9531_v11  ;;  %7551 = vmatpush.bf16.msra.mxu1 %v9276_v14  ;;  %v14214_v13 = vpack.c.b16 %v3537_v8, %v3537_v8 }
 0x1c5   : > { %v9259_v18 = vld [vmem:[%s14114_s10 + $0x120] sm:$0xf]  ;;  %v12295_v20 = vld [vmem:[%s14114_s10 + $0x12c] sm:$0xf0]  ;;  %v9132_v25 = vor.u32 %v12263_v17, %v9131_v16  ;;  %7564 = vmatpush.bf16.msra.mxu2 %v9404_v15  ;;  %v14219_v15 = vpack.c.b16 %v3538_v9, %v3538_v9 }
 0x1c6   : > { %v9387_v21 = vld [vmem:[%s14114_s10 + $0x220] sm:$0xf]  ;;  %v12327_v22 = vld [vmem:[%s14114_s10 + $0x22c] sm:$0xf0]  ;;  %v9260_v28 = vor.u32 %v12295_v20, %v9259_v18  ;;  %7577 = vmatpush.bf16.msra.mxu3 %v9532_v19 }
 0x1c7   : > { %v9515_v23 = vld [vmem:[%s14114_s10 + $0x320] sm:$0xf]  ;;  %v12359_v24 = vld [vmem:[%s14114_s10 + $0x32c] sm:$0xf0]  ;;  %v9388_v29 = vor.u32 %v12327_v22, %v9387_v21  ;;  %7539 = vmatpush.bf16.msra.mxu0 %v9132_v25 }
 0x1c8   : > { %v9115_v26 = vld [vmem:[%s14114_s10] sm:$0xf]  ;;  %v12259_v27 = vld [vmem:[%s14114_s10 + $0xc] sm:$0xf0]  ;;  %v9516_v33 = vor.u32 %v12359_v24, %v9515_v23  ;;  %7552 = vmatpush.bf16.msra.mxu1 %v9260_v28 }
 0x1c9   : > { %v9243_v30 = vld [vmem:[%s14114_s10 + $0x100] sm:$0xf]  ;;  %v12291_v31 = vld [vmem:[%s14114_s10 + $0x10c] sm:$0xf0]  ;;  %v9116_v40 = vor.u32 %v12259_v27, %v9115_v26  ;;  %7565 = vmatpush.bf16.msra.mxu2 %v9388_v29 }
 0x1ca   : > { %v9371_v32 = vld [vmem:[%s14114_s10 + $0x200] sm:$0xf]  ;;  %v12323_v34 = vld [vmem:[%s14114_s10 + $0x20c] sm:$0xf0]  ;;  %v9244_v44 = vor.u32 %v12291_v31, %v9243_v30  ;;  %7578 = vmatpush.bf16.msra.mxu3 %v9516_v33 }
 0x1cb   : > { %v9499_v35 = vld [vmem:[%s14114_s10 + $0x300] sm:$0xf]  ;;  %v12355_v36 = vld [vmem:[%s14114_s10 + $0x30c] sm:$0xf0]  ;;  %v9372_v45 = vor.u32 %v12323_v34, %v9371_v32  ;;  %7540 = vmatpush.bf16.msra.mxu0 %v9116_v40 }
 0x1cc   : > { %v9739_v37 = vld [vmem:[%s14114_s10 + $0x4e0] sm:$0xf]  ;;  %v12415_v38 = vld [vmem:[%s14114_s10 + $0x4ec] sm:$0xf0]  ;;  %v9500_v48 = vor.u32 %v12355_v36, %v9499_v35  ;;  %7553 = vmatpush.bf16.msra.mxu1 %v9244_v44 }
 0x1cd   : > { %v9867_v39 = vld [vmem:[%s14114_s10 + $0x5e0] sm:$0xf]  ;;  %v12447_v41 = vld [vmem:[%s14114_s10 + $0x5ec] sm:$0xf0]  ;;  %v9740_v49 = vor.u32 %v12415_v38, %v9739_v37  ;;  %7566 = vmatpush.bf16.msra.mxu2 %v9372_v45 }
 0x1ce   : > { %v9995_v42 = vld [vmem:[%s14114_s10 + $0x6e0] sm:$0xf]  ;;  %v12479_v43 = vld [vmem:[%s14114_s10 + $0x6ec] sm:$0xf0]  ;;  %v9868_v50 = vor.u32 %v12447_v41, %v9867_v39  ;;  %7579 = vmatpush.bf16.msra.mxu3 %v9500_v48 }
 0x1cf   : > { %v10123_v46 = vld [vmem:[%s14114_s10 + $0x7e0] sm:$0xf]  ;;  %v12511_v47 = vld [vmem:[%s14114_s10 + $0x7ec] sm:$0xf0]  ;;  %v9996_v51 = vor.u32 %v12479_v43, %v9995_v42  ;;  %7585 = vmatpush.bf16.msrb.mxu0 %v9740_v49 }
 0x1d0   : > { %v9723_v52 = vld [vmem:[%s14114_s10 + $0x4c0] sm:$0xf]  ;;  %v12411_v53 = vld [vmem:[%s14114_s10 + $0x4cc] sm:$0xf0]  ;;  %v10124_v55 = vor.u32 %v12511_v47, %v10123_v46  ;;  %7598 = vmatpush.bf16.msrb.mxu1 %v9868_v50  ;;  %7567 = vmatmul.bf16.vlgmr.msra.gmra.mxu2 %v14214_v13 }
 0x1d1   : > { %v9851_v54 = vld [vmem:[%s14114_s10 + $0x5c0] sm:$0xf]  ;;  %v12443_v56 = vld [vmem:[%s14114_s10 + $0x5cc] sm:$0xf0]  ;;  %v9724_v61 = vor.u32 %v12411_v53, %v9723_v52  ;;  %7611 = vmatpush.bf16.msrb.mxu2 %v9996_v51  ;;  %7580 = vmatmul.bf16.vlgmr.msra.gmra.mxu3 %v14219_v15 }
 0x1d2   : > { %v9979_v57 = vld [vmem:[%s14114_s10 + $0x6c0] sm:$0xf]  ;;  %v12475_v58 = vld [vmem:[%s14114_s10 + $0x6cc] sm:$0xf0]  ;;  %v9852_v63 = vor.u32 %v12443_v56, %v9851_v54  ;;  %7624 = vmatpush.bf16.msrb.mxu3 %v10124_v55 }
 0x1d3   : > { %v10107_v59 = vld [vmem:[%s14114_s10 + $0x7c0] sm:$0xf]  ;;  %v12507_v60 = vld [vmem:[%s14114_s10 + $0x7cc] sm:$0xf0]  ;;  %v9980_v0 = vor.u32 %v12475_v58, %v9979_v57  ;;  %7586 = vmatpush.bf16.msrb.mxu0 %v9724_v61 }
 0x1d4   : > { %v9707_v62 = vld [vmem:[%s14114_s10 + $0x4a0] sm:$0xf]  ;;  %v12407_v1 = vld [vmem:[%s14114_s10 + $0x4ac] sm:$0xf0]  ;;  %v10108_v4 = vor.u32 %v12507_v60, %v10107_v59  ;;  %7599 = vmatpush.bf16.msrb.mxu1 %v9852_v63 }
 0x1d5   : > { %v9835_v2 = vld [vmem:[%s14114_s10 + $0x5a0] sm:$0xf]  ;;  %v12439_v5 = vld [vmem:[%s14114_s10 + $0x5ac] sm:$0xf0]  ;;  %v9708_v12 = vor.u32 %v12407_v1, %v9707_v62  ;;  %7612 = vmatpush.bf16.msrb.mxu2 %v9980_v0 }
 0x1d6   : > { %v9963_v6 = vld [vmem:[%s14114_s10 + $0x6a0] sm:$0xf]  ;;  %v12471_v7 = vld [vmem:[%s14114_s10 + $0x6ac] sm:$0xf0]  ;;  %v9836_v16 = vor.u32 %v12439_v5, %v9835_v2  ;;  %7625 = vmatpush.bf16.msrb.mxu3 %v10108_v4 }
 0x1d7   : > { %v10091_v10 = vld [vmem:[%s14114_s10 + $0x7a0] sm:$0xf]  ;;  %v12503_v11 = vld [vmem:[%s14114_s10 + $0x7ac] sm:$0xf0]  ;;  %v9964_v17 = vor.u32 %v12471_v7, %v9963_v6  ;;  %7587 = vmatpush.bf16.msrb.mxu0 %v9708_v12  ;;  %v2718_v12 = vld [vmem:[%s16033_s0 + $0x18] sm:$0xff] }
 0x1d8   : > { %v2715_v14 = vld [vmem:[%s16033_s0] sm:$0xff]  ;;  %v12403_v19 = vld [vmem:[%s14114_s10 + $0x48c] sm:$0xf0]  ;;  %v10092_v23 = vor.u32 %v12503_v11, %v10091_v10  ;;  %7600 = vmatpush.bf16.msrb.mxu1 %v9836_v16 }
 0x1d9   : > { %v9691_v18 = vld [vmem:[%s14114_s10 + $0x480] sm:$0xf]  ;;  %v3535_v21 = vunpack.c.l.b16 %v2715_v14  ;;  %v3536_v22 = vunpack.c.h.b16 %v2715_v14  ;;  %v12435_v24 = vld [vmem:[%s14114_s10 + $0x58c] sm:$0xf0]  ;;  %7613 = vmatpush.bf16.msrb.mxu2 %v9964_v17 }
 0x1da   : > { %v9819_v20 = vld [vmem:[%s14114_s10 + $0x580] sm:$0xf]  ;;  %v12467_v26 = vld [vmem:[%s14114_s10 + $0x68c] sm:$0xf0]  ;;  %v9692_v31 = vor.u32 %v12403_v19, %v9691_v18  ;;  %7626 = vmatpush.bf16.msrb.mxu3 %v10092_v23 }
 0x1db   : > { %v9947_v25 = vld [vmem:[%s14114_s10 + $0x680] sm:$0xf]  ;;  %v12499_v28 = vld [vmem:[%s14114_s10 + $0x78c] sm:$0xf0]  ;;  %v14230_v29 = vpack.c.b16 %v3535_v21, %v3535_v21  ;;  %v14233_v30 = vpack.c.b16 %v3536_v22, %v3536_v22  ;;  %v9820_v32 = vor.u32 %v12435_v24, %v9819_v20 }
 0x1dc   : > { %v10075_v27 = vld [vmem:[%s14114_s10 + $0x780] sm:$0xf]  ;;  %v9948_v33 = vor.u32 %v12467_v26, %v9947_v25  ;;  %v12399_v35 = vld [vmem:[%s14114_s10 + $0x46c] sm:$0xf0]  ;;  %7588 = vmatpush.bf16.msrb.mxu0 %v9692_v31  ;;  %v3541_v26 = vunpack.c.l.b16 %v2718_v12 }
 0x1dd   : > { %v9675_v34 = vld [vmem:[%s14114_s10 + $0x460] sm:$0xf]  ;;  %v10076_v37 = vor.u32 %v12499_v28, %v10075_v27  ;;  %v12431_v38 = vld [vmem:[%s14114_s10 + $0x56c] sm:$0xf0]  ;;  %7541 = vmatmul.bf16.vlgmr.msra.gmra.mxu0 %v14230_v29  ;;  %7554 = vmatmul.bf16.vlgmr.msra.gmra.mxu1 %v14233_v30 }
 0x1de   : > { %v9803_v36 = vld [vmem:[%s14114_s10 + $0x560] sm:$0xf]  ;;  %v12463_v40 = vld [vmem:[%s14114_s10 + $0x66c] sm:$0xf0]  ;;  %v9676_v43 = vor.u32 %v12399_v35, %v9675_v34  ;;  %7601 = vmatpush.bf16.msrb.mxu1 %v9820_v32  ;;  %7614 = vmatpush.bf16.msrb.mxu2 %v9948_v33  ;;  %v3542_v34 = vunpack.c.h.b16 %v2718_v12 }
 0x1df   : > { %v9931_v39 = vld [vmem:[%s14114_s10 + $0x660] sm:$0xf]  ;;  %v12495_v42 = vld [vmem:[%s14114_s10 + $0x76c] sm:$0xf0]  ;;  %v9804_v44 = vor.u32 %v12431_v38, %v9803_v36  ;;  %7627 = vmatpush.bf16.msrb.mxu3 %v10076_v37 }
 0x1e0   : > { %v10059_v41 = vld [vmem:[%s14114_s10 + $0x760] sm:$0xf]  ;;  %v9932_v45 = vor.u32 %v12463_v40, %v9931_v39  ;;  %v12395_v47 = vld [vmem:[%s14114_s10 + $0x44c] sm:$0xf0]  ;;  %7589 = vmatpush.bf16.msrb.mxu0 %v9676_v43 }
 0x1e1   : > { %v9659_v46 = vld [vmem:[%s14114_s10 + $0x440] sm:$0xf]  ;;  %v10060_v49 = vor.u32 %v12495_v42, %v10059_v41  ;;  %v12427_v50 = vld [vmem:[%s14114_s10 + $0x54c] sm:$0xf0] }
 0x1e2   : > { %v9787_v48 = vld [vmem:[%s14114_s10 + $0x540] sm:$0xf]  ;;  %v12459_v52 = vld [vmem:[%s14114_s10 + $0x64c] sm:$0xf0]  ;;  %v9660_v55 = vor.u32 %v12395_v47, %v9659_v46  ;;  %7602 = vmatpush.bf16.msrb.mxu1 %v9804_v44  ;;  %7615 = vmatpush.bf16.msrb.mxu2 %v9932_v45  ;;  %v14289_v47 = vpack.c.b16 %v3541_v26, %v3541_v26 }
 0x1e3   : > { %v9915_v51 = vld [vmem:[%s14114_s10 + $0x640] sm:$0xf]  ;;  %v12491_v54 = vld [vmem:[%s14114_s10 + $0x74c] sm:$0xf0]  ;;  %v9788_v56 = vor.u32 %v12427_v50, %v9787_v48  ;;  %7628 = vmatpush.bf16.msrb.mxu3 %v10060_v49 }
 0x1e4   : > { %v10043_v53 = vld [vmem:[%s14114_s10 + $0x740] sm:$0xf]  ;;  %v9916_v57 = vor.u32 %v12459_v52, %v9915_v51  ;;  %v12391_v59 = vld [vmem:[%s14114_s10 + $0x42c] sm:$0xf0]  ;;  %7590 = vmatpush.bf16.msrb.mxu0 %v9660_v55  ;;  %v14295_v51 = vpack.c.b16 %v3542_v34, %v3542_v34 }
 0x1e5   : > { %v9643_v58 = vld [vmem:[%s14114_s10 + $0x420] sm:$0xf]  ;;  %v10044_v61 = vor.u32 %v12491_v54, %v10043_v53  ;;  %v12423_v62 = vld [vmem:[%s14114_s10 + $0x52c] sm:$0xf0] }
 0x1e6   : > { %v9771_v60 = vld [vmem:[%s14114_s10 + $0x520] sm:$0xf]  ;;  %v12455_v0 = vld [vmem:[%s14114_s10 + $0x62c] sm:$0xf0]  ;;  %v9644_v4 = vor.u32 %v12391_v59, %v9643_v58  ;;  %7603 = vmatpush.bf16.msrb.mxu1 %v9788_v56  ;;  %7616 = vmatpush.bf16.msrb.mxu2 %v9916_v57 }
 0x1e7   : > { %v9899_v63 = vld [vmem:[%s14114_s10 + $0x620] sm:$0xf]  ;;  %v12487_v2 = vld [vmem:[%s14114_s10 + $0x72c] sm:$0xf0]  ;;  %v9772_v8 = vor.u32 %v12423_v62, %v9771_v60  ;;  %7629 = vmatpush.bf16.msrb.mxu3 %v10044_v61 }
 0x1e8   : > { %v10027_v1 = vld [vmem:[%s14114_s10 + $0x720] sm:$0xf]  ;;  %v12387_v5 = vld [vmem:[%s14114_s10 + $0x40c] sm:$0xf0]  ;;  %v9900_v9 = vor.u32 %v12455_v0, %v9899_v63  ;;  %7591 = vmatpush.bf16.msrb.mxu0 %v9644_v4 }
 0x1e9   : > { %v9627_v3 = vld [vmem:[%s14114_s10 + $0x400] sm:$0xf]  ;;  %v12419_v7 = vld [vmem:[%s14114_s10 + $0x50c] sm:$0xf0]  ;;  %v10028_v14 = vor.u32 %v12487_v2, %v10027_v1 }
 0x1ea   : > { %v9755_v6 = vld [vmem:[%s14114_s10 + $0x500] sm:$0xf]  ;;  %v12451_v11 = vld [vmem:[%s14114_s10 + $0x60c] sm:$0xf0]  ;;  %v9628_v22 = vor.u32 %v12387_v5, %v9627_v3  ;;  %7604 = vmatpush.bf16.msrb.mxu1 %v9772_v8  ;;  %7617 = vmatpush.bf16.msrb.mxu2 %v9900_v9 }
 0x1eb   : > { %v9883_v10 = vld [vmem:[%s14114_s10 + $0x600] sm:$0xf]  ;;  %v12483_v17 = vld [vmem:[%s14114_s10 + $0x70c] sm:$0xf0]  ;;  %v9756_v27 = vor.u32 %v12419_v7, %v9755_v6  ;;  %7630 = vmatpush.bf16.msrb.mxu3 %v10028_v14 }
 0x1ec   : > { %v10011_v16 = vld [vmem:[%s14114_s10 + $0x700] sm:$0xf]  ;;  %v2717_v18 = vld [vmem:[%s16033_s0 + $0x10] sm:$0xff]  ;;  %v9884_v28 = vor.u32 %v12451_v11, %v9883_v10  ;;  %7592 = vmatpush.bf16.msrb.mxu0 %v9628_v22 }
 0x1ed   : > { %v10251_v19 = vld [vmem:[%s14114_s10 + $0x8e0] sm:$0xf]  ;;  %v12543_v20 = vld [vmem:[%s14114_s10 + $0x8ec] sm:$0xf0]  ;;  %v3539_v33 = vunpack.c.l.b16 %v2717_v18  ;;  %v10012_v35 = vor.u32 %v12483_v17, %v10011_v16  ;;  %v3540_v37 = vunpack.c.h.b16 %v2717_v18 }
 0x1ee   : > { %v10379_v21 = vld [vmem:[%s14114_s10 + $0x9e0] sm:$0xf]  ;;  %v12575_v23 = vld [vmem:[%s14114_s10 + $0x9ec] sm:$0xf0]  ;;  %v10252_v36 = vor.u32 %v12543_v20, %v10251_v19  ;;  %7605 = vmatpush.bf16.msrb.mxu1 %v9756_v27  ;;  %7618 = vmatpush.bf16.msrb.mxu2 %v9884_v28 }
 0x1ef   : > { %v10507_v24 = vld [vmem:[%s14114_s10 + $0xae0] sm:$0xf]  ;;  %v12607_v25 = vld [vmem:[%s14114_s10 + $0xaec] sm:$0xf0]  ;;  %v10380_v38 = vor.u32 %v12575_v23, %v10379_v21  ;;  %v14293_v50 = vpack.c.b16 %v3539_v33, %v3539_v33  ;;  %7631 = vmatpush.bf16.msrb.mxu3 %v10012_v35  ;;  %v14297_v53 = vpack.c.b16 %v3540_v37, %v3540_v37 }
 0x1f0   : > { %v10635_v31 = vld [vmem:[%s14114_s10 + $0xbe0] sm:$0xf]  ;;  %v12639_v32 = vld [vmem:[%s14114_s10 + $0xbec] sm:$0xf0]  ;;  %v10508_v39 = vor.u32 %v12607_v25, %v10507_v24  ;;  %7637 = vmatpush.bf16.msra.mxu0 %v10252_v36 }
 0x1f1   : > { %v10235_v40 = vld [vmem:[%s14114_s10 + $0x8c0] sm:$0xf]  ;;  %v12539_v41 = vld [vmem:[%s14114_s10 + $0x8cc] sm:$0xf0]  ;;  %v10636_v43 = vor.u32 %v12639_v32, %v10635_v31  ;;  %7619 = vmatmul.bf16.vlgmr.msrb.gmra.mxu2 %v14289_v47  ;;  %7593 = vmatmul.bf16.vlgmr.msrb.gmra.mxu0 %v14293_v50 }
 0x1f2   : > { %v10363_v42 = vld [vmem:[%s14114_s10 + $0x9c0] sm:$0xf]  ;;  %v12571_v44 = vld [vmem:[%s14114_s10 + $0x9cc] sm:$0xf0]  ;;  %v10236_v52 = vor.u32 %v12539_v41, %v10235_v40  ;;  %7650 = vmatpush.bf16.msra.mxu1 %v10380_v38  ;;  %7663 = vmatpush.bf16.msra.mxu2 %v10508_v39 }
 0x1f3   : > { %v10491_v45 = vld [vmem:[%s14114_s10 + $0xac0] sm:$0xf]  ;;  %v12603_v46 = vld [vmem:[%s14114_s10 + $0xacc] sm:$0xf0]  ;;  %v10364_v54 = vor.u32 %v12571_v44, %v10363_v42  ;;  %7676 = vmatpush.bf16.msra.mxu3 %v10636_v43  ;;  %7606 = vmatmul.bf16.vlgmr.msrb.gmra.mxu1 %v14297_v53 }
 0x1f4   : > { %v10619_v48 = vld [vmem:[%s14114_s10 + $0xbc0] sm:$0xf]  ;;  %v12635_v49 = vld [vmem:[%s14114_s10 + $0xbcc] sm:$0xf0]  ;;  %v10492_v55 = vor.u32 %v12603_v46, %v10491_v45  ;;  %7632 = vmatmul.bf16.vlgmr.msrb.gmra.mxu3 %v14295_v51  ;;  %7638 = vmatpush.bf16.msra.mxu0 %v10236_v52 }
 0x1f5   : > { %v10219_v56 = vld [vmem:[%s14114_s10 + $0x8a0] sm:$0xf]  ;;  %v12535_v57 = vld [vmem:[%s14114_s10 + $0x8ac] sm:$0xf0]  ;;  %v10620_v59 = vor.u32 %v12635_v49, %v10619_v48 }
 0x1f6   : > { %v10347_v58 = vld [vmem:[%s14114_s10 + $0x9a0] sm:$0xf]  ;;  %v12567_v60 = vld [vmem:[%s14114_s10 + $0x9ac] sm:$0xf0]  ;;  %v10220_v1 = vor.u32 %v12535_v57, %v10219_v56  ;;  %7651 = vmatpush.bf16.msra.mxu1 %v10364_v54  ;;  %7664 = vmatpush.bf16.msra.mxu2 %v10492_v55 }
 0x1f7   : > { %v10475_v61 = vld [vmem:[%s14114_s10 + $0xaa0] sm:$0xf]  ;;  %v12599_v62 = vld [vmem:[%s14114_s10 + $0xaac] sm:$0xf0]  ;;  %v10348_v2 = vor.u32 %v12567_v60, %v10347_v58  ;;  %7677 = vmatpush.bf16.msra.mxu3 %v10620_v59 }
 0x1f8   : > { %v10603_v63 = vld [vmem:[%s14114_s10 + $0xba0] sm:$0xf]  ;;  %v12631_v0 = vld [vmem:[%s14114_s10 + $0xbac] sm:$0xf0]  ;;  %v10476_v3 = vor.u32 %v12599_v62, %v10475_v61  ;;  %7639 = vmatpush.bf16.msra.mxu0 %v10220_v1 }
 0x1f9   : > { %v10203_v4 = vld [vmem:[%s14114_s10 + $0x880] sm:$0xf]  ;;  %v12531_v5 = vld [vmem:[%s14114_s10 + $0x88c] sm:$0xf0]  ;;  %v10604_v7 = vor.u32 %v12631_v0, %v10603_v63 }
 0x1fa   : > { %v10331_v6 = vld [vmem:[%s14114_s10 + $0x980] sm:$0xf]  ;;  %v12563_v8 = vld [vmem:[%s14114_s10 + $0x98c] sm:$0xf0]  ;;  %v10204_v14 = vor.u32 %v12531_v5, %v10203_v4  ;;  %7652 = vmatpush.bf16.msra.mxu1 %v10348_v2  ;;  %7665 = vmatpush.bf16.msra.mxu2 %v10476_v3 }
 0x1fb   : > { %v10459_v9 = vld [vmem:[%s14114_s10 + $0xa80] sm:$0xf]  ;;  %v12595_v10 = vld [vmem:[%s14114_s10 + $0xa8c] sm:$0xf0]  ;;  %v10332_v16 = vor.u32 %v12563_v8, %v10331_v6  ;;  %7678 = vmatpush.bf16.msra.mxu3 %v10604_v7  ;;  %v2720_v6 = vld [vmem:[%s16033_s0 + $0x28] sm:$0xff] }
 0x1fc   : > { %v10587_v11 = vld [vmem:[%s14114_s10 + $0xb80] sm:$0xf]  ;;  %v12627_v12 = vld [vmem:[%s14114_s10 + $0xb8c] sm:$0xf0]  ;;  %v10460_v17 = vor.u32 %v12595_v10, %v10459_v9  ;;  %7640 = vmatpush.bf16.msra.mxu0 %v10204_v14 }
 0x1fd   : > { %v10187_v18 = vld [vmem:[%s14114_s10 + $0x860] sm:$0xf]  ;;  %v12527_v19 = vld [vmem:[%s14114_s10 + $0x86c] sm:$0xf0]  ;;  %v10588_v21 = vor.u32 %v12627_v12, %v10587_v11 }
 0x1fe   : > { %v10315_v20 = vld [vmem:[%s14114_s10 + $0x960] sm:$0xf]  ;;  %v12559_v22 = vld [vmem:[%s14114_s10 + $0x96c] sm:$0xf0]  ;;  %v10188_v27 = vor.u32 %v12527_v19, %v10187_v18  ;;  %7653 = vmatpush.bf16.msra.mxu1 %v10332_v16  ;;  %7666 = vmatpush.bf16.msra.mxu2 %v10460_v17 }
 0x1ff   : > { %v10443_v23 = vld [vmem:[%s14114_s10 + $0xa60] sm:$0xf]  ;;  %v12591_v24 = vld [vmem:[%s14114_s10 + $0xa6c] sm:$0xf0]  ;;  %v10316_v28 = vor.u32 %v12559_v22, %v10315_v20  ;;  %7679 = vmatpush.bf16.msra.mxu3 %v10588_v21  ;;  %v3545_v21 = vunpack.c.l.b16 %v2720_v6 }
 0x200   : > { %v10571_v25 = vld [vmem:[%s14114_s10 + $0xb60] sm:$0xf]  ;;  %v12623_v26 = vld [vmem:[%s14114_s10 + $0xb6c] sm:$0xf0]  ;;  %v10444_v31 = vor.u32 %v12591_v24, %v10443_v23  ;;  %7641 = vmatpush.bf16.msra.mxu0 %v10188_v27 }
 0x201   : > { %v10171_v32 = vld [vmem:[%s14114_s10 + $0x840] sm:$0xf]  ;;  %v12523_v33 = vld [vmem:[%s14114_s10 + $0x84c] sm:$0xf0]  ;;  %v10572_v35 = vor.u32 %v12623_v26, %v10571_v25  ;;  %v3546_v25 = vunpack.c.h.b16 %v2720_v6 }
 0x202   : > { %v10299_v34 = vld [vmem:[%s14114_s10 + $0x940] sm:$0xf]  ;;  %v12555_v36 = vld [vmem:[%s14114_s10 + $0x94c] sm:$0xf0]  ;;  %v10172_v41 = vor.u32 %v12523_v33, %v10171_v32  ;;  %7654 = vmatpush.bf16.msra.mxu1 %v10316_v28  ;;  %7667 = vmatpush.bf16.msra.mxu2 %v10444_v31 }
 0x203   : > { %v10427_v37 = vld [vmem:[%s14114_s10 + $0xa40] sm:$0xf]  ;;  %v12587_v38 = vld [vmem:[%s14114_s10 + $0xa4c] sm:$0xf0]  ;;  %v10300_v42 = vor.u32 %v12555_v36, %v10299_v34  ;;  %7680 = vmatpush.bf16.msra.mxu3 %v10572_v35 }
 0x204   : > { %v10555_v39 = vld [vmem:[%s14114_s10 + $0xb40] sm:$0xf]  ;;  %v12619_v40 = vld [vmem:[%s14114_s10 + $0xb4c] sm:$0xf0]  ;;  %v10428_v43 = vor.u32 %v12587_v38, %v10427_v37  ;;  %7642 = vmatpush.bf16.msra.mxu0 %v10172_v41  ;;  %v14373_v38 = vpack.c.b16 %v3545_v21, %v3545_v21 }
 0x205   : > { %v10155_v44 = vld [vmem:[%s14114_s10 + $0x820] sm:$0xf]  ;;  %v12519_v45 = vld [vmem:[%s14114_s10 + $0x82c] sm:$0xf0]  ;;  %v10556_v48 = vor.u32 %v12619_v40, %v10555_v39 }
 0x206   : > { %v10283_v46 = vld [vmem:[%s14114_s10 + $0x920] sm:$0xf]  ;;  %v12551_v49 = vld [vmem:[%s14114_s10 + $0x92c] sm:$0xf0]  ;;  %v10156_v58 = vor.u32 %v12519_v45, %v10155_v44  ;;  %7655 = vmatpush.bf16.msra.mxu1 %v10300_v42  ;;  %7668 = vmatpush.bf16.msra.mxu2 %v10428_v43  ;;  %v14379_v42 = vpack.c.b16 %v3546_v25, %v3546_v25 }
 0x207   : > { %v10411_v52 = vld [vmem:[%s14114_s10 + $0xa20] sm:$0xf]  ;;  %v12583_v54 = vld [vmem:[%s14114_s10 + $0xa2c] sm:$0xf0]  ;;  %v10284_v62 = vor.u32 %v12551_v49, %v10283_v46  ;;  %7681 = vmatpush.bf16.msra.mxu3 %v10556_v48 }
 0x208   : > { %v10539_v55 = vld [vmem:[%s14114_s10 + $0xb20] sm:$0xf]  ;;  %v12615_v56 = vld [vmem:[%s14114_s10 + $0xb2c] sm:$0xf0]  ;;  %v10412_v63 = vor.u32 %v12583_v54, %v10411_v52  ;;  %7643 = vmatpush.bf16.msra.mxu0 %v10156_v58 }
 0x209   : > { %v10139_v57 = vld [vmem:[%s14114_s10 + $0x800] sm:$0xf]  ;;  %v12515_v59 = vld [vmem:[%s14114_s10 + $0x80c] sm:$0xf0]  ;;  %v10540_v3 = vor.u32 %v12615_v56, %v10539_v55 }
 0x20a   : > { %v10267_v60 = vld [vmem:[%s14114_s10 + $0x900] sm:$0xf]  ;;  %v12547_v61 = vld [vmem:[%s14114_s10 + $0x90c] sm:$0xf0]  ;;  %v10140_v10 = vor.u32 %v12515_v59, %v10139_v57  ;;  %7656 = vmatpush.bf16.msra.mxu1 %v10284_v62  ;;  %7669 = vmatpush.bf16.msra.mxu2 %v10412_v63 }
 0x20b   : > { %v10395_v0 = vld [vmem:[%s14114_s10 + $0xa00] sm:$0xf]  ;;  %v12579_v1 = vld [vmem:[%s14114_s10 + $0xa0c] sm:$0xf0]  ;;  %v10268_v17 = vor.u32 %v12547_v61, %v10267_v60  ;;  %7682 = vmatpush.bf16.msra.mxu3 %v10540_v3 }
 0x20c   : > { %v2719_v2 = vld [vmem:[%s16033_s0 + $0x20] sm:$0xff]  ;;  %v12611_v5 = vld [vmem:[%s14114_s10 + $0xb0c] sm:$0xf0]  ;;  %v10396_v18 = vor.u32 %v12579_v1, %v10395_v0  ;;  %7644 = vmatpush.bf16.msra.mxu0 %v10140_v10 }
 0x20d   : > { %v10523_v4 = vld [vmem:[%s14114_s10 + $0xb00] sm:$0xf]  ;;  %v12671_v8 = vld [vmem:[%s14114_s10 + $0xcec] sm:$0xf0]  ;;  %v3543_v16 = vunpack.c.l.b16 %v2719_v2  ;;  %v3544_v22 = vunpack.c.h.b16 %v2719_v2 }
 0x20e   : > { %v10763_v7 = vld [vmem:[%s14114_s10 + $0xce0] sm:$0xf]  ;;  %v12703_v11 = vld [vmem:[%s14114_s10 + $0xdec] sm:$0xf0]  ;;  %v10524_v23 = vor.u32 %v12611_v5, %v10523_v4  ;;  %7657 = vmatpush.bf16.msra.mxu1 %v10268_v17  ;;  %7670 = vmatpush.bf16.msra.mxu2 %v10396_v18 }
 0x20f   : > { %v10891_v9 = vld [vmem:[%s14114_s10 + $0xde0] sm:$0xf]  ;;  %v12735_v14 = vld [vmem:[%s14114_s10 + $0xeec] sm:$0xf0]  ;;  %v10764_v24 = vor.u32 %v12671_v8, %v10763_v7  ;;  %v14368_v34 = vpack.c.b16 %v3543_v16, %v3543_v16  ;;  %v14375_v39 = vpack.c.b16 %v3544_v22, %v3544_v22 }
 0x210   : > { %v11019_v12 = vld [vmem:[%s14114_s10 + $0xee0] sm:$0xf]  ;;  %v12767_v20 = vld [vmem:[%s14114_s10 + $0xfec] sm:$0xf0]  ;;  %v10892_v26 = vor.u32 %v12703_v11, %v10891_v9  ;;  %7683 = vmatpush.bf16.msra.mxu3 %v10524_v23 }
 0x211   : > { %v11147_v19 = vld [vmem:[%s14114_s10 + $0xfe0] sm:$0xf]  ;;  %v11020_v27 = vor.u32 %v12735_v14, %v11019_v12  ;;  %v12667_v31 = vld [vmem:[%s14114_s10 + $0xccc] sm:$0xf0]  ;;  %7689 = vmatpush.bf16.msrb.mxu0 %v10764_v24  ;;  %7671 = vmatmul.bf16.vlgmr.msra.gmra.mxu2 %v14373_v38 }
 0x212   : > { %v10747_v28 = vld [vmem:[%s14114_s10 + $0xcc0] sm:$0xf]  ;;  %v11148_v33 = vor.u32 %v12767_v20, %v11147_v19  ;;  %v12699_v35 = vld [vmem:[%s14114_s10 + $0xdcc] sm:$0xf0]  ;;  %7702 = vmatpush.bf16.msrb.mxu1 %v10892_v26  ;;  %7645 = vmatmul.bf16.vlgmr.msra.gmra.mxu0 %v14368_v34 }
 0x213   : > { %v10875_v32 = vld [vmem:[%s14114_s10 + $0xdc0] sm:$0xf]  ;;  %v12731_v37 = vld [vmem:[%s14114_s10 + $0xecc] sm:$0xf0]  ;;  %v10748_v43 = vor.u32 %v12667_v31, %v10747_v28  ;;  %7715 = vmatpush.bf16.msrb.mxu2 %v11020_v27  ;;  %7658 = vmatmul.bf16.vlgmr.msra.gmra.mxu1 %v14375_v39 }
 0x214   : > { %v11003_v36 = vld [vmem:[%s14114_s10 + $0xec0] sm:$0xf]  ;;  %v12763_v41 = vld [vmem:[%s14114_s10 + $0xfcc] sm:$0xf0]  ;;  %v10876_v44 = vor.u32 %v12699_v35, %v10875_v32  ;;  %7728 = vmatpush.bf16.msrb.mxu3 %v11148_v33 }
 0x215   : > { %v11131_v40 = vld [vmem:[%s14114_s10 + $0xfc0] sm:$0xf]  ;;  %v11004_v45 = vor.u32 %v12731_v37, %v11003_v36  ;;  %v12663_v48 = vld [vmem:[%s14114_s10 + $0xcac] sm:$0xf0]  ;;  %7684 = vmatmul.bf16.vlgmr.msra.gmra.mxu3 %v14379_v42  ;;  %7690 = vmatpush.bf16.msrb.mxu0 %v10748_v43 }
 0x216   : > { %v10731_v46 = vld [vmem:[%s14114_s10 + $0xca0] sm:$0xf]  ;;  %v11132_v52 = vor.u32 %v12763_v41, %v11131_v40  ;;  %v12695_v54 = vld [vmem:[%s14114_s10 + $0xdac] sm:$0xf0]  ;;  %7703 = vmatpush.bf16.msrb.mxu1 %v10876_v44 }
 0x217   : > { %v10859_v49 = vld [vmem:[%s14114_s10 + $0xda0] sm:$0xf]  ;;  %v12727_v56 = vld [vmem:[%s14114_s10 + $0xeac] sm:$0xf0]  ;;  %v10732_v59 = vor.u32 %v12663_v48, %v10731_v46  ;;  %7716 = vmatpush.bf16.msrb.mxu2 %v11004_v45 }
 0x218   : > { %v10987_v55 = vld [vmem:[%s14114_s10 + $0xea0] sm:$0xf]  ;;  %v12759_v58 = vld [vmem:[%s14114_s10 + $0xfac] sm:$0xf0]  ;;  %v10860_v60 = vor.u32 %v12695_v54, %v10859_v49  ;;  %7729 = vmatpush.bf16.msrb.mxu3 %v11132_v52 }
 0x219   : > { %v11115_v57 = vld [vmem:[%s14114_s10 + $0xfa0] sm:$0xf]  ;;  %v10988_v61 = vor.u32 %v12727_v56, %v10987_v55  ;;  %v12659_v63 = vld [vmem:[%s14114_s10 + $0xc8c] sm:$0xf0]  ;;  %7691 = vmatpush.bf16.msrb.mxu0 %v10732_v59 }
 0x21a   : > { %v10715_v62 = vld [vmem:[%s14114_s10 + $0xc80] sm:$0xf]  ;;  %v11116_v1 = vor.u32 %v12759_v58, %v11115_v57  ;;  %v12691_v2 = vld [vmem:[%s14114_s10 + $0xd8c] sm:$0xf0]  ;;  %7704 = vmatpush.bf16.msrb.mxu1 %v10860_v60 }
 0x21b   : > { %v10843_v0 = vld [vmem:[%s14114_s10 + $0xd80] sm:$0xf]  ;;  %v12723_v4 = vld [vmem:[%s14114_s10 + $0xe8c] sm:$0xf0]  ;;  %v10716_v7 = vor.u32 %v12659_v63, %v10715_v62  ;;  %7717 = vmatpush.bf16.msrb.mxu2 %v10988_v61 }
 0x21c   : > { %v10971_v3 = vld [vmem:[%s14114_s10 + $0xe80] sm:$0xf]  ;;  %v12755_v6 = vld [vmem:[%s14114_s10 + $0xf8c] sm:$0xf0]  ;;  %v10844_v8 = vor.u32 %v12691_v2, %v10843_v0  ;;  %7730 = vmatpush.bf16.msrb.mxu3 %v11116_v1 }
 0x21d   : > { %v11099_v5 = vld [vmem:[%s14114_s10 + $0xf80] sm:$0xf]  ;;  %v10972_v9 = vor.u32 %v12723_v4, %v10971_v3  ;;  %v12655_v11 = vld [vmem:[%s14114_s10 + $0xc6c] sm:$0xf0]  ;;  %7692 = vmatpush.bf16.msrb.mxu0 %v10716_v7  ;;  %v2722_v4 = vld [vmem:[%s16033_s0 + $0x38] sm:$0xff] }
 0x21e   : > { %v10699_v10 = vld [vmem:[%s14114_s10 + $0xc60] sm:$0xf]  ;;  %v11100_v14 = vor.u32 %v12755_v6, %v11099_v5  ;;  %v12687_v16 = vld [vmem:[%s14114_s10 + $0xd6c] sm:$0xf0]  ;;  %7705 = vmatpush.bf16.msrb.mxu1 %v10844_v8 }
 0x21f   : > { %v10827_v12 = vld [vmem:[%s14114_s10 + $0xd60] sm:$0xf]  ;;  %v12719_v18 = vld [vmem:[%s14114_s10 + $0xe6c] sm:$0xf0]  ;;  %v10700_v21 = vor.u32 %v12655_v11, %v10699_v10  ;;  %7718 = vmatpush.bf16.msrb.mxu2 %v10972_v9 }
 0x220   : > { %v10955_v17 = vld [vmem:[%s14114_s10 + $0xe60] sm:$0xf]  ;;  %v12751_v20 = vld [vmem:[%s14114_s10 + $0xf6c] sm:$0xf0]  ;;  %v10828_v22 = vor.u32 %v12687_v16, %v10827_v12  ;;  %7731 = vmatpush.bf16.msrb.mxu3 %v11100_v14 }
 0x221   : > { %v11083_v19 = vld [vmem:[%s14114_s10 + $0xf60] sm:$0xf]  ;;  %v10956_v23 = vor.u32 %v12719_v18, %v10955_v17  ;;  %v12651_v25 = vld [vmem:[%s14114_s10 + $0xc4c] sm:$0xf0]  ;;  %7693 = vmatpush.bf16.msrb.mxu0 %v10700_v21 }
 0x222   : > { %v10683_v24 = vld [vmem:[%s14114_s10 + $0xc40] sm:$0xf]  ;;  %v11084_v27 = vor.u32 %v12751_v20, %v11083_v19  ;;  %v12683_v28 = vld [vmem:[%s14114_s10 + $0xd4c] sm:$0xf0]  ;;  %7706 = vmatpush.bf16.msrb.mxu1 %v10828_v22  ;;  %v3549_v19 = vunpack.c.l.b16 %v2722_v4 }
 0x223   : > { %v10811_v26 = vld [vmem:[%s14114_s10 + $0xd40] sm:$0xf]  ;;  %v12715_v32 = vld [vmem:[%s14114_s10 + $0xe4c] sm:$0xf0]  ;;  %v10684_v36 = vor.u32 %v12651_v25, %v10683_v24  ;;  %7719 = vmatpush.bf16.msrb.mxu2 %v10956_v23  ;;  %v3550_v23 = vunpack.c.h.b16 %v2722_v4 }
 0x224   : > { %v10939_v31 = vld [vmem:[%s14114_s10 + $0xe40] sm:$0xf]  ;;  %v12747_v35 = vld [vmem:[%s14114_s10 + $0xf4c] sm:$0xf0]  ;;  %v10812_v37 = vor.u32 %v12683_v28, %v10811_v26  ;;  %7732 = vmatpush.bf16.msrb.mxu3 %v11084_v27 }
 0x225   : > { %v11067_v33 = vld [vmem:[%s14114_s10 + $0xf40] sm:$0xf]  ;;  %v10940_v40 = vor.u32 %v12715_v32, %v10939_v31  ;;  %v12647_v43 = vld [vmem:[%s14114_s10 + $0xc2c] sm:$0xf0]  ;;  %7694 = vmatpush.bf16.msrb.mxu0 %v10684_v36 }
 0x226   : > { %v10667_v41 = vld [vmem:[%s14114_s10 + $0xc20] sm:$0xf]  ;;  %v11068_v45 = vor.u32 %v12747_v35, %v11067_v33  ;;  %v12679_v46 = vld [vmem:[%s14114_s10 + $0xd2c] sm:$0xf0]  ;;  %7707 = vmatpush.bf16.msrb.mxu1 %v10812_v37  ;;  %v14455_v37 = vpack.c.b16 %v3549_v19, %v3549_v19 }
 0x227   : > { %v10795_v44 = vld [vmem:[%s14114_s10 + $0xd20] sm:$0xf]  ;;  %v12711_v49 = vld [vmem:[%s14114_s10 + $0xe2c] sm:$0xf0]  ;;  %v10668_v56 = vor.u32 %v12647_v43, %v10667_v41  ;;  %7720 = vmatpush.bf16.msrb.mxu2 %v10940_v40 }
 0x228   : > { %v10923_v48 = vld [vmem:[%s14114_s10 + $0xe20] sm:$0xf]  ;;  %v12743_v54 = vld [vmem:[%s14114_s10 + $0xf2c] sm:$0xf0]  ;;  %v10796_v60 = vor.u32 %v12679_v46, %v10795_v44  ;;  %7733 = vmatpush.bf16.msrb.mxu3 %v11068_v45  ;;  %v14461_v44 = vpack.c.b16 %v3550_v23, %v3550_v23 }
 0x229   : > { %v11051_v52 = vld [vmem:[%s14114_s10 + $0xf20] sm:$0xf]  ;;  %v12643_v57 = vld [vmem:[%s14114_s10 + $0xc0c] sm:$0xf0]  ;;  %v10924_v61 = vor.u32 %v12711_v49, %v10923_v48  ;;  %7695 = vmatpush.bf16.msrb.mxu0 %v10668_v56 }
 0x22a   : > { %v10651_v55 = vld [vmem:[%s14114_s10 + $0xc00] sm:$0xf]  ;;  %v12675_v59 = vld [vmem:[%s14114_s10 + $0xd0c] sm:$0xf0]  ;;  %v11052_v1 = vor.u32 %v12743_v54, %v11051_v52  ;;  %7708 = vmatpush.bf16.msrb.mxu1 %v10796_v60 }
 0x22b   : > { %v10779_v58 = vld [vmem:[%s14114_s10 + $0xd00] sm:$0xf]  ;;  %v12707_v63 = vld [vmem:[%s14114_s10 + $0xe0c] sm:$0xf0]  ;;  %v10652_v8 = vor.u32 %v12643_v57, %v10651_v55  ;;  %7721 = vmatpush.bf16.msrb.mxu2 %v10924_v61 }
 0x22c   : > { %v10907_v62 = vld [vmem:[%s14114_s10 + $0xe00] sm:$0xf]  ;;  %v2721_v0 = vld [vmem:[%s16033_s0 + $0x30] sm:$0xff]  ;;  %v10780_v14 = vor.u32 %v12675_v59, %v10779_v58  ;;  %7734 = vmatpush.bf16.msrb.mxu3 %v11052_v1 }
 0x22d   : > { %v11035_v2 = vld [vmem:[%s14114_s10 + $0xf00] sm:$0xf]  ;;  %v12739_v3 = vld [vmem:[%s14114_s10 + $0xf0c] sm:$0xf0]  ;;  %v3547_v12 = vunpack.c.l.b16 %v2721_v0  ;;  %v10908_v16 = vor.u32 %v12707_v63, %v10907_v62  ;;  %v3548_v20 = vunpack.c.h.b16 %v2721_v0  ;;  %7696 = vmatpush.bf16.msrb.mxu0 %v10652_v8 }
 0x22e   : > { %v11275_v5 = vld [vmem:[%s14114_s10 + $0x10e0] sm:$0xf]  ;;  %v12799_v6 = vld [vmem:[%s14114_s10 + $0x10ec] sm:$0xf0]  ;;  %v11036_v21 = vor.u32 %v12739_v3, %v11035_v2  ;;  %7709 = vmatpush.bf16.msrb.mxu1 %v10780_v14 }
 0x22f   : > { %v11403_v7 = vld [vmem:[%s14114_s10 + $0x11e0] sm:$0xf]  ;;  %v12831_v9 = vld [vmem:[%s14114_s10 + $0x11ec] sm:$0xf0]  ;;  %v11276_v22 = vor.u32 %v12799_v6, %v11275_v5  ;;  %v14450_v32 = vpack.c.b16 %v3547_v12, %v3547_v12  ;;  %7722 = vmatpush.bf16.msrb.mxu2 %v10908_v16  ;;  %v14457_v40 = vpack.c.b16 %v3548_v20, %v3548_v20 }
 0x230   : > { %v11531_v10 = vld [vmem:[%s14114_s10 + $0x12e0] sm:$0xf]  ;;  %v12863_v11 = vld [vmem:[%s14114_s10 + $0x12ec] sm:$0xf0]  ;;  %v11404_v24 = vor.u32 %v12831_v9, %v11403_v7  ;;  %7735 = vmatpush.bf16.msrb.mxu3 %v11036_v21 }
 0x231   : > { %v11659_v17 = vld [vmem:[%s14114_s10 + $0x13e0] sm:$0xf]  ;;  %v12895_v18 = vld [vmem:[%s14114_s10 + $0x13ec] sm:$0xf0]  ;;  %v11532_v25 = vor.u32 %v12863_v11, %v11531_v10  ;;  %7741 = vmatpush.bf16.msra.mxu0 %v11276_v22  ;;  %7710 = vmatmul.bf16.vlgmr.msrb.gmra.mxu1 %v14457_v40 }
 0x232   : > { %v11259_v26 = vld [vmem:[%s14114_s10 + $0x10c0] sm:$0xf]  ;;  %v12795_v27 = vld [vmem:[%s14114_s10 + $0x10cc] sm:$0xf0]  ;;  %v11660_v31 = vor.u32 %v12895_v18, %v11659_v17  ;;  %7754 = vmatpush.bf16.msra.mxu1 %v11404_v24  ;;  %7697 = vmatmul.bf16.vlgmr.msrb.gmra.mxu0 %v14450_v32 }
 0x233   : > { %v11387_v28 = vld [vmem:[%s14114_s10 + $0x11c0] sm:$0xf]  ;;  %v12827_v33 = vld [vmem:[%s14114_s10 + $0x11cc] sm:$0xf0]  ;;  %v11260_v45 = vor.u32 %v12795_v27, %v11259_v26  ;;  %7767 = vmatpush.bf16.msra.mxu2 %v11532_v25  ;;  %7736 = vmatmul.bf16.vlgmr.msrb.gmra.mxu3 %v14461_v44 }
 0x234   : > { %v11515_v35 = vld [vmem:[%s14114_s10 + $0x12c0] sm:$0xf]  ;;  %v12859_v36 = vld [vmem:[%s14114_s10 + $0x12cc] sm:$0xf0]  ;;  %v11388_v46 = vor.u32 %v12827_v33, %v11387_v28  ;;  %7780 = vmatpush.bf16.msra.mxu3 %v11660_v31  ;;  %7723 = vmatmul.bf16.vlgmr.msrb.gmra.mxu2 %v14455_v37 }
 0x235   : > { %v11643_v41 = vld [vmem:[%s14114_s10 + $0x13c0] sm:$0xf]  ;;  %v12891_v43 = vld [vmem:[%s14114_s10 + $0x13cc] sm:$0xf0]  ;;  %v11516_v48 = vor.u32 %v12859_v36, %v11515_v35  ;;  %7742 = vmatpush.bf16.msra.mxu0 %v11260_v45 }
 0x236   : > { %v11243_v49 = vld [vmem:[%s14114_s10 + $0x10a0] sm:$0xf]  ;;  %v12791_v52 = vld [vmem:[%s14114_s10 + $0x10ac] sm:$0xf0]  ;;  %v11644_v55 = vor.u32 %v12891_v43, %v11643_v41  ;;  %7755 = vmatpush.bf16.msra.mxu1 %v11388_v46 }
 0x237   : > { %v11371_v54 = vld [vmem:[%s14114_s10 + $0x11a0] sm:$0xf]  ;;  %v12823_v56 = vld [vmem:[%s14114_s10 + $0x11ac] sm:$0xf0]  ;;  %v11244_v61 = vor.u32 %v12791_v52, %v11243_v49  ;;  %7768 = vmatpush.bf16.msra.mxu2 %v11516_v48 }
 0x238   : > { %v11499_v57 = vld [vmem:[%s14114_s10 + $0x12a0] sm:$0xf]  ;;  %v12855_v58 = vld [vmem:[%s14114_s10 + $0x12ac] sm:$0xf0]  ;;  %v11372_v62 = vor.u32 %v12823_v56, %v11371_v54  ;;  %7781 = vmatpush.bf16.msra.mxu3 %v11644_v55 }
 0x239   : > { %v11627_v59 = vld [vmem:[%s14114_s10 + $0x13a0] sm:$0xf]  ;;  %v12887_v60 = vld [vmem:[%s14114_s10 + $0x13ac] sm:$0xf0]  ;;  %v11500_v63 = vor.u32 %v12855_v58, %v11499_v57  ;;  %7743 = vmatpush.bf16.msra.mxu0 %v11244_v61 }
 0x23a   : > { %v11227_v0 = vld [vmem:[%s14114_s10 + $0x1080] sm:$0xf]  ;;  %v12787_v1 = vld [vmem:[%s14114_s10 + $0x108c] sm:$0xf0]  ;;  %v11628_v3 = vor.u32 %v12887_v60, %v11627_v59  ;;  %7756 = vmatpush.bf16.msra.mxu1 %v11372_v62 }
 0x23b   : > { %v11355_v2 = vld [vmem:[%s14114_s10 + $0x1180] sm:$0xf]  ;;  %v12819_v4 = vld [vmem:[%s14114_s10 + $0x118c] sm:$0xf0]  ;;  %v11228_v9 = vor.u32 %v12787_v1, %v11227_v0  ;;  %7769 = vmatpush.bf16.msra.mxu2 %v11500_v63 }
 0x23c   : > { %v11483_v5 = vld [vmem:[%s14114_s10 + $0x1280] sm:$0xf]  ;;  %v12851_v6 = vld [vmem:[%s14114_s10 + $0x128c] sm:$0xf0]  ;;  %v11356_v10 = vor.u32 %v12819_v4, %v11355_v2  ;;  %7782 = vmatpush.bf16.msra.mxu3 %v11628_v3 }
 0x23d   : > { %v11611_v7 = vld [vmem:[%s14114_s10 + $0x1380] sm:$0xf]  ;;  %v12883_v8 = vld [vmem:[%s14114_s10 + $0x138c] sm:$0xf0]  ;;  %v11484_v11 = vor.u32 %v12851_v6, %v11483_v5  ;;  %7744 = vmatpush.bf16.msra.mxu0 %v11228_v9 }
 0x23e   : > { %v11211_v12 = vld [vmem:[%s14114_s10 + $0x1060] sm:$0xf]  ;;  %v12783_v14 = vld [vmem:[%s14114_s10 + $0x106c] sm:$0xf0]  ;;  %v11612_v17 = vor.u32 %v12883_v8, %v11611_v7  ;;  %7757 = vmatpush.bf16.msra.mxu1 %v11356_v10  ;;  %v2724_v10 = vld [vmem:[%s16033_s0 + $0x48] sm:$0xff] }
 0x23f   : > { %v11339_v16 = vld [vmem:[%s14114_s10 + $0x1160] sm:$0xf]  ;;  %v12815_v18 = vld [vmem:[%s14114_s10 + $0x116c] sm:$0xf0]  ;;  %v11212_v23 = vor.u32 %v12783_v14, %v11211_v12  ;;  %7770 = vmatpush.bf16.msra.mxu2 %v11484_v11 }
 0x240   : > { %v11467_v19 = vld [vmem:[%s14114_s10 + $0x1260] sm:$0xf]  ;;  %v12847_v20 = vld [vmem:[%s14114_s10 + $0x126c] sm:$0xf0]  ;;  %v11340_v24 = vor.u32 %v12815_v18, %v11339_v16  ;;  %7783 = vmatpush.bf16.msra.mxu3 %v11612_v17 }
 0x241   : > { %v11595_v21 = vld [vmem:[%s14114_s10 + $0x1360] sm:$0xf]  ;;  %v12879_v22 = vld [vmem:[%s14114_s10 + $0x136c] sm:$0xf0]  ;;  %v11468_v25 = vor.u32 %v12847_v20, %v11467_v19  ;;  %7745 = vmatpush.bf16.msra.mxu0 %v11212_v23 }
 0x242   : > { %v11195_v26 = vld [vmem:[%s14114_s10 + $0x1040] sm:$0xf]  ;;  %v12779_v27 = vld [vmem:[%s14114_s10 + $0x104c] sm:$0xf0]  ;;  %v11596_v31 = vor.u32 %v12879_v22, %v11595_v21  ;;  %7758 = vmatpush.bf16.msra.mxu1 %v11340_v24 }
 0x243   : > { %v11323_v28 = vld [vmem:[%s14114_s10 + $0x1140] sm:$0xf]  ;;  %v12811_v33 = vld [vmem:[%s14114_s10 + $0x114c] sm:$0xf0]  ;;  %v11196_v45 = vor.u32 %v12779_v27, %v11195_v26  ;;  %7771 = vmatpush.bf16.msra.mxu2 %v11468_v25  ;;  %v3553_v25 = vunpack.c.l.b16 %v2724_v10 }
 0x244   : > { %v11451_v35 = vld [vmem:[%s14114_s10 + $0x1240] sm:$0xf]  ;;  %v12843_v36 = vld [vmem:[%s14114_s10 + $0x124c] sm:$0xf0]  ;;  %v11324_v46 = vor.u32 %v12811_v33, %v11323_v28  ;;  %7784 = vmatpush.bf16.msra.mxu3 %v11596_v31  ;;  %v3554_v31 = vunpack.c.h.b16 %v2724_v10 }
 0x245   : > { %v11579_v41 = vld [vmem:[%s14114_s10 + $0x1340] sm:$0xf]  ;;  %v12875_v43 = vld [vmem:[%s14114_s10 + $0x134c] sm:$0xf0]  ;;  %v11452_v48 = vor.u32 %v12843_v36, %v11451_v35  ;;  %7746 = vmatpush.bf16.msra.mxu0 %v11196_v45 }
 0x246   : > { %v11179_v49 = vld [vmem:[%s14114_s10 + $0x1020] sm:$0xf]  ;;  %v12775_v52 = vld [vmem:[%s14114_s10 + $0x102c] sm:$0xf0]  ;;  %v11580_v55 = vor.u32 %v12875_v43, %v11579_v41  ;;  %7759 = vmatpush.bf16.msra.mxu1 %v11324_v46 }
 0x247   : > { %v11307_v54 = vld [vmem:[%s14114_s10 + $0x1120] sm:$0xf]  ;;  %v12807_v56 = vld [vmem:[%s14114_s10 + $0x112c] sm:$0xf0]  ;;  %v11180_v62 = vor.u32 %v12775_v52, %v11179_v49  ;;  %7772 = vmatpush.bf16.msra.mxu2 %v11452_v48 }
 0x248   : > { %v11435_v57 = vld [vmem:[%s14114_s10 + $0x1220] sm:$0xf]  ;;  %v12839_v58 = vld [vmem:[%s14114_s10 + $0x122c] sm:$0xf0]  ;;  %v11308_v2 = vor.u32 %v12807_v56, %v11307_v54  ;;  %7785 = vmatpush.bf16.msra.mxu3 %v11580_v55  ;;  %v14537_v54 = vpack.c.b16 %v3553_v25, %v3553_v25 }
 0x249   : > { %v11563_v59 = vld [vmem:[%s14114_s10 + $0x1320] sm:$0xf]  ;;  %v12871_v60 = vld [vmem:[%s14114_s10 + $0x132c] sm:$0xf0]  ;;  %v11436_v3 = vor.u32 %v12839_v58, %v11435_v57  ;;  %7747 = vmatpush.bf16.msra.mxu0 %v11180_v62  ;;  %v14543_v58 = vpack.c.b16 %v3554_v31, %v3554_v31 }
 0x24a   : > { %v11163_v61 = vld [vmem:[%s14114_s10 + $0x1000] sm:$0xf]  ;;  %v12771_v63 = vld [vmem:[%s14114_s10 + $0x100c] sm:$0xf0]  ;;  %v11564_v7 = vor.u32 %v12871_v60, %v11563_v59  ;;  %7760 = vmatpush.bf16.msra.mxu1 %v11308_v2 }
 0x24b   : > { %v11291_v0 = vld [vmem:[%s14114_s10 + $0x1100] sm:$0xf]  ;;  %v12803_v1 = vld [vmem:[%s14114_s10 + $0x110c] sm:$0xf0]  ;;  %v11164_v16 = vor.u32 %v12771_v63, %v11163_v61  ;;  %7773 = vmatpush.bf16.msra.mxu2 %v11436_v3 }
 0x24c   : > { %v11419_v4 = vld [vmem:[%s14114_s10 + $0x1200] sm:$0xf]  ;;  %v12835_v5 = vld [vmem:[%s14114_s10 + $0x120c] sm:$0xf0]  ;;  %v11292_v21 = vor.u32 %v12803_v1, %v11291_v0  ;;  %7786 = vmatpush.bf16.msra.mxu3 %v11564_v7 }
 0x24d   : > { %v2723_v6 = vld [vmem:[%s16033_s0 + $0x40] sm:$0xff]  ;;  %v12867_v9 = vld [vmem:[%s14114_s10 + $0x130c] sm:$0xf0]  ;;  %v11420_v22 = vor.u32 %v12835_v5, %v11419_v4  ;;  %7748 = vmatpush.bf16.msra.mxu0 %v11164_v16 }
 0x24e   : > { %v11547_v8 = vld [vmem:[%s14114_s10 + $0x1300] sm:$0xf]  ;;  %v12927_v12 = vld [vmem:[%s14114_s10 + $0x14ec] sm:$0xf0]  ;;  %v3551_v20 = vunpack.c.l.b16 %v2723_v6  ;;  %v3552_v26 = vunpack.c.h.b16 %v2723_v6  ;;  %7761 = vmatpush.bf16.msra.mxu1 %v11292_v21 }
 0x24f   : > { %v11787_v11 = vld [vmem:[%s14114_s10 + $0x14e0] sm:$0xf]  ;;  %v12959_v17 = vld [vmem:[%s14114_s10 + $0x15ec] sm:$0xf0]  ;;  %v11548_v27 = vor.u32 %v12867_v9, %v11547_v8  ;;  %7774 = vmatpush.bf16.msra.mxu2 %v11420_v22 }
 0x250   : > { %v11915_v14 = vld [vmem:[%s14114_s10 + $0x15e0] sm:$0xf]  ;;  %v12991_v19 = vld [vmem:[%s14114_s10 + $0x16ec] sm:$0xf0]  ;;  %v11788_v28 = vor.u32 %v12927_v12, %v11787_v11  ;;  %v14532_v46 = vpack.c.b16 %v3551_v20, %v3551_v20  ;;  %v14539_v55 = vpack.c.b16 %v3552_v26, %v3552_v26 }
 0x251   : > { %v12043_v18 = vld [vmem:[%s14114_s10 + $0x16e0] sm:$0xf]  ;;  %v13023_v24 = vld [vmem:[%s14114_s10 + $0x17ec] sm:$0xf0]  ;;  %v11916_v33 = vor.u32 %v12959_v17, %v11915_v14  ;;  %7787 = vmatpush.bf16.msra.mxu3 %v11548_v27 }
 0x252   : > { %v12171_v23 = vld [vmem:[%s14114_s10 + $0x17e0] sm:$0xf]  ;;  %v12044_v35 = vor.u32 %v12991_v19, %v12043_v18  ;;  %v12923_v41 = vld [vmem:[%s14114_s10 + $0x14cc] sm:$0xf0]  ;;  %7793 = vmatpush.bf16.msrb.mxu0 %v11788_v28  ;;  %7775 = vmatmul.bf16.vlgmr.msra.gmra.mxu2 %v14537_v54 }
 0x253   : > { %v11771_v36 = vld [vmem:[%s14114_s10 + $0x14c0] sm:$0xf]  ;;  %v12172_v45 = vor.u32 %v13023_v24, %v12171_v23  ;;  %v12955_v48 = vld [vmem:[%s14114_s10 + $0x15cc] sm:$0xf0]  ;;  %7806 = vmatpush.bf16.msrb.mxu1 %v11916_v33  ;;  %7749 = vmatmul.bf16.vlgmr.msra.gmra.mxu0 %v14532_v46 }
 0x254   : > { %v11899_v43 = vld [vmem:[%s14114_s10 + $0x15c0] sm:$0xf]  ;;  %v12987_v52 = vld [vmem:[%s14114_s10 + $0x16cc] sm:$0xf0]  ;;  %v11772_v59 = vor.u32 %v12923_v41, %v11771_v36  ;;  %7819 = vmatpush.bf16.msrb.mxu2 %v12044_v35  ;;  %7762 = vmatmul.bf16.vlgmr.msra.gmra.mxu1 %v14539_v55 }
 0x255   : > { %v12027_v49 = vld [vmem:[%s14114_s10 + $0x16c0] sm:$0xf]  ;;  %v13019_v57 = vld [vmem:[%s14114_s10 + $0x17cc] sm:$0xf0]  ;;  %v11900_v60 = vor.u32 %v12955_v48, %v11899_v43  ;;  %7832 = vmatpush.bf16.msrb.mxu3 %v12172_v45 }
 0x256   : > { %v12155_v56 = vld [vmem:[%s14114_s10 + $0x17c0] sm:$0xf]  ;;  %v12028_v61 = vor.u32 %v12987_v52, %v12027_v49  ;;  %v12919_v63 = vld [vmem:[%s14114_s10 + $0x14ac] sm:$0xf0]  ;;  %7788 = vmatmul.bf16.vlgmr.msra.gmra.mxu3 %v14543_v58  ;;  %7794 = vmatpush.bf16.msrb.mxu0 %v11772_v59 }
 0x257   : > { %v11755_v62 = vld [vmem:[%s14114_s10 + $0x14a0] sm:$0xf]  ;;  %v12156_v1 = vor.u32 %v13019_v57, %v12155_v56  ;;  %v12951_v2 = vld [vmem:[%s14114_s10 + $0x15ac] sm:$0xf0]  ;;  %7807 = vmatpush.bf16.msrb.mxu1 %v11900_v60 }
 0x258   : > { %v11883_v0 = vld [vmem:[%s14114_s10 + $0x15a0] sm:$0xf]  ;;  %v12983_v4 = vld [vmem:[%s14114_s10 + $0x16ac] sm:$0xf0]  ;;  %v11756_v7 = vor.u32 %v12919_v63, %v11755_v62  ;;  %7820 = vmatpush.bf16.msrb.mxu2 %v12028_v61 }
 0x259   : > { %v12011_v3 = vld [vmem:[%s14114_s10 + $0x16a0] sm:$0xf]  ;;  %v13015_v6 = vld [vmem:[%s14114_s10 + $0x17ac] sm:$0xf0]  ;;  %v11884_v8 = vor.u32 %v12951_v2, %v11883_v0  ;;  %7833 = vmatpush.bf16.msrb.mxu3 %v12156_v1 }
 0x25a   : > { %v12139_v5 = vld [vmem:[%s14114_s10 + $0x17a0] sm:$0xf]  ;;  %v12012_v9 = vor.u32 %v12983_v4, %v12011_v3  ;;  %v12915_v11 = vld [vmem:[%s14114_s10 + $0x148c] sm:$0xf0]  ;;  %7795 = vmatpush.bf16.msrb.mxu0 %v11756_v7  ;;  %v7542_v1 = vpop.f32.mrf.mxu0  ;;  %v7555_v4 = vpop.f32.mrf.mxu1 }
 0x25b   : > { %v11739_v10 = vld [vmem:[%s14114_s10 + $0x1480] sm:$0xf]  ;;  %v12140_v14 = vor.u32 %v13015_v6, %v12139_v5  ;;  %v12947_v16 = vld [vmem:[%s14114_s10 + $0x158c] sm:$0xf0]  ;;  %7808 = vmatpush.bf16.msrb.mxu1 %v11884_v8 }
 0x25c   : > { %v11867_v12 = vld [vmem:[%s14114_s10 + $0x1580] sm:$0xf]  ;;  %v12979_v18 = vld [vmem:[%s14114_s10 + $0x168c] sm:$0xf0]  ;;  %v11740_v21 = vor.u32 %v12915_v11, %v11739_v10  ;;  %7821 = vmatpush.bf16.msrb.mxu2 %v12012_v9  ;;  %v7568_v10 = vpop.f32.mrf.mxu2 }
 0x25d   : > { %v11995_v17 = vld [vmem:[%s14114_s10 + $0x1680] sm:$0xf]  ;;  %v13011_v20 = vld [vmem:[%s14114_s10 + $0x178c] sm:$0xf0]  ;;  %v11868_v23 = vor.u32 %v12947_v16, %v11867_v12  ;;  %7834 = vmatpush.bf16.msrb.mxu3 %v12140_v14 }
 0x25e   : > { %v12123_v19 = vld [vmem:[%s14114_s10 + $0x1780] sm:$0xf]  ;;  %v11996_v24 = vor.u32 %v12979_v18, %v11995_v17  ;;  %v12911_v25 = vld [vmem:[%s14114_s10 + $0x146c] sm:$0xf0]  ;;  %7796 = vmatpush.bf16.msrb.mxu0 %v11740_v21  ;;  %v7581_v18 = vpop.f32.mrf.mxu3 }
 0x25f   : > { %v11723_v22 = vld [vmem:[%s14114_s10 + $0x1460] sm:$0xf]  ;;  %v12124_v28 = vor.u32 %v13011_v20, %v12123_v19  ;;  %v12943_v31 = vld [vmem:[%s14114_s10 + $0x156c] sm:$0xf0]  ;;  %7809 = vmatpush.bf16.msrb.mxu1 %v11868_v23 }
 0x260   : > { %v11851_v26 = vld [vmem:[%s14114_s10 + $0x1560] sm:$0xf]  ;;  %v12975_v35 = vld [vmem:[%s14114_s10 + $0x166c] sm:$0xf0]  ;;  %v11724_v43 = vor.u32 %v12911_v25, %v11723_v22  ;;  %7822 = vmatpush.bf16.msrb.mxu2 %v11996_v24 }
 0x261   : > { %v3512_v27 = vld [vmem:[%s14107_s30] sm:$0xf]  ;;  %v13007_v41 = vld [vmem:[%s14114_s10 + $0x176c] sm:$0xf0]  ;;  %v11852_v48 = vor.u32 %v12943_v31, %v11851_v26  ;;  %7835 = vmatpush.bf16.msrb.mxu3 %v12124_v28 }
 0x262   : > { %v11979_v33 = vld [vmem:[%s14114_s10 + $0x1660] sm:$0xf]  ;;  %v3514_v45 = vperm.slane %v3512_v27, 0  ;;  %v12907_v56 = vld [vmem:[%s14114_s10 + $0x144c] sm:$0xf0]  ;;  %7797 = vmatpush.bf16.msrb.mxu0 %v11724_v43 }
 0x263   : > { %v12107_v36 = vld [vmem:[%s14114_s10 + $0x1760] sm:$0xf]  ;;  %v11980_v49 = vor.u32 %v12975_v35, %v11979_v33  ;;  %v12939_v60 = vld [vmem:[%s14114_s10 + $0x154c] sm:$0xf0]  ;;  %7810 = vmatpush.bf16.msrb.mxu1 %v11852_v48 }
 0x264   : > { %v11707_v52 = vld [vmem:[%s14114_s10 + $0x1440] sm:$0xf]  ;;  %v12108_v59 = vor.u32 %v13007_v41, %v12107_v36  ;;  %v12971_v62 = vld [vmem:[%s14114_s10 + $0x164c] sm:$0xf0]  ;;  %v7543_v3 = vadd.f32 %v7542_v1, %v3514_v45  ;;  %v2726_v45 = vld [vmem:[%s16033_s0 + $0x58] sm:$0xff] }
 0x265   : > { %v11835_v57 = vld [vmem:[%s14114_s10 + $0x1540] sm:$0xf]  ;;  %v13003_v0 = vld [vmem:[%s14114_s10 + $0x174c] sm:$0xf0]  ;;  %v11708_v2 = vor.u32 %v12907_v56, %v11707_v52  ;;  %7823 = vmatpush.bf16.msrb.mxu2 %v11980_v49  ;;  %v12285_v56 = vld [vmem:[%s14114_s10 + $0xe4] sm:$0xf] }
 0x266   : > { %v11963_v61 = vld [vmem:[%s14114_s10 + $0x1640] sm:$0xf]  ;;  %v11836_v5 = vor.u32 %v12939_v60, %v11835_v57  ;;  %v12903_v8 = vld [vmem:[%s14114_s10 + $0x142c] sm:$0xf0]  ;;  %7836 = vmatpush.bf16.msrb.mxu3 %v12108_v59  ;;  %v7556_v17 = vadd.f32 %v7555_v4, %v7543_v3  ;;  %v7544_v57 = vpop.f32.mrf.mxu0  ;;  %v9229_v60 = vld [vmem:[%s14114_s10 + $0xf0] sm:$0xf0] }
 0x267   : > { %v12091_v63 = vld [vmem:[%s14114_s10 + $0x1740] sm:$0xf]  ;;  %v11964_v6 = vor.u32 %v12971_v62, %v11963_v61  ;;  %v12935_v12 = vld [vmem:[%s14114_s10 + $0x152c] sm:$0xf0]  ;;  %7798 = vmatpush.bf16.msrb.mxu0 %v11708_v2  ;;  %v12317_v61 = vld [vmem:[%s14114_s10 + $0x1e4] sm:$0xf] }
 0x268   : > { %v11691_v7 = vld [vmem:[%s14114_s10 + $0x1420] sm:$0xf]  ;;  %v12092_v11 = vor.u32 %v13003_v0, %v12091_v63  ;;  %v12967_v16 = vld [vmem:[%s14114_s10 + $0x162c] sm:$0xf0]  ;;  %v7569_v26 = vadd.f32 %v7568_v10, %v7556_v17  ;;  %7811 = vmatpush.bf16.msrb.mxu1 %v11836_v5  ;;  %v9357_v62 = vld [vmem:[%s14114_s10 + $0x1f0] sm:$0xf0]  ;;  %v7557_v0 = vpop.f32.mrf.mxu1  ;;  %v3557_v5 = vunpack.c.l.b16 %v2726_v45  ;;  %v3558_v10 = vunpack.c.h.b16 %v2726_v45 }
 0x269   : > { %v11819_v9 = vld [vmem:[%s14114_s10 + $0x1520] sm:$0xf]  ;;  %v12999_v20 = vld [vmem:[%s14114_s10 + $0x172c] sm:$0xf0]  ;;  %v11692_v22 = vor.u32 %v12903_v8, %v11691_v7  ;;  %7824 = vmatpush.bf16.msrb.mxu2 %v11964_v6  ;;  %v12349_v3 = vld [vmem:[%s14114_s10 + $0x2e4] sm:$0xf]  ;;  %v7570_v7 = vpop.f32.mrf.mxu2 }
 0x26a   : > { %v11947_v14 = vld [vmem:[%s14114_s10 + $0x1620] sm:$0xf]  ;;  %v12899_v23 = vld [vmem:[%s14114_s10 + $0x140c] sm:$0xf0]  ;;  %v11820_v27 = vor.u32 %v12935_v12, %v11819_v9  ;;  %7837 = vmatpush.bf16.msrb.mxu3 %v12092_v11  ;;  %v14604_v48 = vadd.f32 %v7581_v18, %v7569_v26  ;;  %v9485_v4 = vld [vmem:[%s14114_s10 + $0x2f0] sm:$0xf0]  ;;  %v7583_v11 = vpop.f32.mrf.mxu3  ;;  %v9232_v12 = vor.u32 %v12285_v56, %v9229_v60 }
 0x26b   : > { %v12075_v19 = vld [vmem:[%s14114_s10 + $0x1720] sm:$0xf]  ;;  %v12931_v25 = vld [vmem:[%s14114_s10 + $0x150c] sm:$0xf0]  ;;  %v11948_v28 = vor.u32 %v12967_v16, %v11947_v14  ;;  %7799 = vmatpush.bf16.msrb.mxu0 %v11692_v22  ;;  %v9360_v14 = vor.u32 %v12317_v61, %v9357_v62  ;;  %v12281_v18 = vld [vmem:[%s14114_s10 + $0xc4] sm:$0xf] }
 0x26c   : > { %v11675_v21 = vld [vmem:[%s14114_s10 + $0x1400] sm:$0xf]  ;;  %v12963_v33 = vld [vmem:[%s14114_s10 + $0x160c] sm:$0xf0]  ;;  %v12076_v36 = vor.u32 %v12999_v20, %v12075_v19  ;;  %7812 = vmatpush.bf16.msrb.mxu1 %v11820_v27  ;;  %v9488_v19 = vor.u32 %v12349_v3, %v9485_v4  ;;  %v12313_v22 = vld [vmem:[%s14114_s10 + $0x1c4] sm:$0xf] }
 0x26d   : > { %v11803_v24 = vld [vmem:[%s14114_s10 + $0x1500] sm:$0xf]  ;;  %v2725_v35 = vld [vmem:[%s16033_s0 + $0x50] sm:$0xff]  ;;  %v11676_v59 = vor.u32 %v12899_v23, %v11675_v21  ;;  %7825 = vmatpush.bf16.msrb.mxu2 %v11948_v28  ;;  %v12345_v26 = vld [vmem:[%s14114_s10 + $0x2c4] sm:$0xf]  ;;  %v14628_v28 = vpack.c.b16 %v3558_v10, %v3558_v10 }
 0x26e   : > { %v11931_v31 = vld [vmem:[%s14114_s10 + $0x1600] sm:$0xf]  ;;  %v12995_v43 = vld [vmem:[%s14114_s10 + $0x170c] sm:$0xf0]  ;;  %v3555_v63 = vunpack.c.l.b16 %v2725_v35  ;;  %v11804_v1 = vor.u32 %v12931_v25, %v11803_v24  ;;  %v3556_v6 = vunpack.c.h.b16 %v2725_v35  ;;  %7838 = vmatpush.bf16.msrb.mxu3 %v12076_v36  ;;  %v9213_v21 = vld [vmem:[%s14114_s10 + $0xd0] sm:$0xf0]  ;;  %v14622_v24 = vpack.c.b16 %v3557_v5, %v3557_v5  ;;  %v7594_v11 = vpop.f32.mrf.mxu0 }
 0x26f   : > { %v12059_v41 = vld [vmem:[%s14114_s10 + $0x1700] sm:$0xf]  ;;  %v13039_v52 = vld [vmem:[%s14114_s10 + $0x186c] sm:$0xf0]  ;;  %v11932_v2 = vor.u32 %v12963_v33, %v11931_v31  ;;  %7800 = vmatpush.bf16.msrb.mxu0 %v11676_v59  ;;  %v9341_v23 = vld [vmem:[%s14114_s10 + $0x1d0] sm:$0xf0]  ;;  %v9216_v33 = vor.u32 %v12281_v18, %v9213_v21 }
 0x270   : > { %v12235_v49 = vld [vmem:[%s14114_s10 + $0x1860] sm:$0xf]  ;;  %v12060_v8 = vor.u32 %v12995_v43, %v12059_v41  ;;  %v13035_v17 = vld [vmem:[%s14114_s10 + $0x184c] sm:$0xf0]  ;;  %v14617_v20 = vpack.c.b16 %v3555_v63, %v3555_v63  ;;  %7813 = vmatpush.bf16.msrb.mxu1 %v11804_v1  ;;  %v14624_v25 = vpack.c.b16 %v3556_v6, %v3556_v6  ;;  %v9469_v27 = vld [vmem:[%s14114_s10 + $0x2d0] sm:$0xf0]  ;;  %v9344_v35 = vor.u32 %v12313_v22, %v9341_v23  ;;  %v7607_v21 = vpop.f32.mrf.mxu1 }
 0x271   : > { %v12236_v9 = vor.u32 %v13039_v52, %v12235_v49  ;;  %v12219_v16 = vld [vmem:[%s14114_s10 + $0x1840] sm:$0xf]  ;;  %7826 = vmatpush.bf16.msrb.mxu2 %v11932_v2  ;;  %v13031_v41 = vld [vmem:[%s14114_s10 + $0x182c] sm:$0xf0]  ;;  %v12277_v43 = vld [vmem:[%s14114_s10 + $0xa4] sm:$0xf]  ;;  %v9472_v45 = vor.u32 %v12345_v26, %v9469_v27 }
 0x272   : > { %7839 = vmatpush.bf16.msrb.mxu3 %v12060_v8  ;;  %v12220_v31 = vor.u32 %v13035_v17, %v12219_v16  ;;  %v12203_v36 = vld [vmem:[%s14114_s10 + $0x1820] sm:$0xf]  ;;  %7801 = vmatmul.bf16.vlgmr.msrb.gmra.mxu0 %v14617_v20  ;;  %v9197_v49 = vld [vmem:[%s14114_s10 + $0xb0] sm:$0xf0]  ;;  %v12309_v52 = vld [vmem:[%s14114_s10 + $0x1a4] sm:$0xf] }
 0x273   : > { %7849 = vmatpush.bf16.msra.mxu0 %v12236_v9  ;;  %v9325_v56 = vld [vmem:[%s14114_s10 + $0x1b0] sm:$0xf0]  ;;  %7814 = vmatmul.bf16.vlgmr.msrb.gmra.mxu1 %v14624_v25  ;;  %v12341_v57 = vld [vmem:[%s14114_s10 + $0x2a4] sm:$0xf]  ;;  %v12204_v60 = vor.u32 %v13031_v41, %v12203_v36  ;;  %v12187_v61 = vld [vmem:[%s14114_s10 + $0x1800] sm:$0xf]  ;;  %v9200_v62 = vor.u32 %v12277_v43, %v9197_v49 }
 0x274   : > { %7858 = vmatpush.bf16.msra.mxu1 %v9232_v12  ;;  %7827 = vmatmul.bf16.vlgmr.msrb.gmra.mxu2 %v14622_v24  ;;  %v9453_v59 = vld [vmem:[%s14114_s10 + $0x2b0] sm:$0xf0]  ;;  %v9328_v63 = vor.u32 %v12309_v52, %v9325_v56  ;;  %v13027_v0 = vld [vmem:[%s14114_s10 + $0x180c] sm:$0xf0]  ;;  %v12273_v1 = vld [vmem:[%s14114_s10 + $0x84] sm:$0xf]  ;;  %v7620_v56 = vpop.f32.mrf.mxu2 }
 0x275   : > { %7871 = vmatpush.bf16.msra.mxu2 %v9360_v14  ;;  %7840 = vmatmul.bf16.vlgmr.msrb.gmra.mxu3 %v14628_v28  ;;  %v9181_v2 = vld [vmem:[%s14114_s10 + $0x90] sm:$0xf0]  ;;  %v9456_v3 = vor.u32 %v12341_v57, %v9453_v59  ;;  %v12305_v4 = vld [vmem:[%s14114_s10 + $0x184] sm:$0xf]  ;;  %v12188_v10 = vor.u32 %v13027_v0, %v12187_v61  ;;  %v2727_v12 = vld [vmem:[%s16033_s0 + $0x60] sm:$0xf] }
 0x276   : > { %7884 = vmatpush.bf16.msra.mxu3 %v9488_v19  ;;  %v9309_v5 = vld [vmem:[%s14114_s10 + $0x190] sm:$0xf0]  ;;  %v12337_v6 = vld [vmem:[%s14114_s10 + $0x284] sm:$0xf]  ;;  %v9184_v14 = vor.u32 %v12273_v1, %v9181_v2  ;;  %v7595_v19 = vadd.f32 %v7594_v11, %v14604_v48  ;;  %v3559_v41 = vunpack.c.l.b16 %v2727_v12 }
 0x277   : > { %7850 = vmatpush.bf16.msra.mxu0 %v12220_v31  ;;  %v9437_v7 = vld [vmem:[%s14114_s10 + $0x290] sm:$0xf0]  ;;  %v12381_v8 = vld [vmem:[%s14114_s10 + $0x3e4] sm:$0xf]  ;;  %v9312_v16 = vor.u32 %v12305_v4, %v9309_v5  ;;  %v7633_v0 = vpop.f32.mrf.mxu3 }
 0x278   : > { %7859 = vmatpush.bf16.msra.mxu1 %v9216_v33  ;;  %v9613_v9 = vld [vmem:[%s14114_s10 + $0x3f0] sm:$0xf0]  ;;  %v12269_v17 = vld [vmem:[%s14114_s10 + $0x64] sm:$0xf]  ;;  %v9440_v22 = vor.u32 %v12337_v6, %v9437_v7  ;;  %v7608_v43 = vadd.f32 %v7607_v21, %v7595_v19  ;;  %v14669_v1 = vpack.c.b16 %v3559_v41, %v3559_v41  ;;  %v7596_v6 = vpop.f32.mrf.mxu0  ;;  %v7609_v11 = vpop.f32.mrf.mxu1 }
 0x279   : > { %7872 = vmatpush.bf16.msra.mxu2 %v9344_v35  ;;  %v9165_v18 = vld [vmem:[%s14114_s10 + $0x70] sm:$0xf0]  ;;  %v9616_v23 = vor.u32 %v12381_v8, %v9613_v9  ;;  %v12301_v26 = vld [vmem:[%s14114_s10 + $0x164] sm:$0xf] }
 0x27a   : > { %7885 = vmatpush.bf16.msra.mxu3 %v9472_v45  ;;  %v9293_v27 = vld [vmem:[%s14114_s10 + $0x170] sm:$0xf0]  ;;  %v12333_v31 = vld [vmem:[%s14114_s10 + $0x264] sm:$0xf]  ;;  %v9168_v48 = vor.u32 %v12269_v17, %v9165_v18 }
 0x27b   : > { %7851 = vmatpush.bf16.msra.mxu0 %v12204_v60  ;;  %v9421_v33 = vld [vmem:[%s14114_s10 + $0x270] sm:$0xf0]  ;;  %v12377_v35 = vld [vmem:[%s14114_s10 + $0x3c4] sm:$0xf]  ;;  %v9296_v45 = vor.u32 %v12301_v26, %v9293_v27 }
 0x27c   : > { %7860 = vmatpush.bf16.msra.mxu1 %v9200_v62  ;;  %v9597_v36 = vld [vmem:[%s14114_s10 + $0x3d0] sm:$0xf0]  ;;  %v12265_v49 = vld [vmem:[%s14114_s10 + $0x44] sm:$0xf]  ;;  %v9424_v57 = vor.u32 %v12333_v31, %v9421_v33 }
 0x27d   : > { %7873 = vmatpush.bf16.msra.mxu2 %v9328_v63  ;;  %v9149_v52 = vld [vmem:[%s14114_s10 + $0x50] sm:$0xf0]  ;;  %v9600_v59 = vor.u32 %v12377_v35, %v9597_v36  ;;  %v12297_v60 = vld [vmem:[%s14114_s10 + $0x144] sm:$0xf]  ;;  %v7621_v63 = vadd.f32 %v7620_v56, %v7608_v43  ;;  %v7622_v35 = vpop.f32.mrf.mxu2 }
 0x27e   : > { %7886 = vmatpush.bf16.msra.mxu3 %v9456_v3  ;;  %v9277_v61 = vld [vmem:[%s14114_s10 + $0x150] sm:$0xf0]  ;;  %v12329_v62 = vld [vmem:[%s14114_s10 + $0x244] sm:$0xf]  ;;  %v9152_v7 = vor.u32 %v12265_v49, %v9149_v52 }
 0x27f   : > { %7852 = vmatpush.bf16.msra.mxu0 %v12188_v10  ;;  %v9405_v2 = vld [vmem:[%s14114_s10 + $0x250] sm:$0xf0]  ;;  %v12373_v3 = vld [vmem:[%s14114_s10 + $0x3a4] sm:$0xf]  ;;  %v14674_v5 = vadd.f32 %v7633_v0, %v7621_v63  ;;  %v9280_v8 = vor.u32 %v12297_v60, %v9277_v61  ;;  %v7635_v49 = vpop.f32.mrf.mxu3 }
 0x280   : > { %7861 = vmatpush.bf16.msra.mxu1 %v9184_v14  ;;  %v9581_v4 = vld [vmem:[%s14114_s10 + $0x3b0] sm:$0xf0]  ;;  %v12261_v9 = vld [vmem:[%s14114_s10 + $0x24] sm:$0xf]  ;;  %v9408_v12 = vor.u32 %v12329_v62, %v9405_v2 }
 0x281   : > { %7874 = vmatpush.bf16.msra.mxu2 %v9312_v16  ;;  %v9133_v10 = vld [vmem:[%s14114_s10 + $0x30] sm:$0xf0]  ;;  %v9584_v14 = vor.u32 %v12373_v3, %v9581_v4  ;;  %v12293_v16 = vld [vmem:[%s14114_s10 + $0x124] sm:$0xf] }
 0x282   : > { %7887 = vmatpush.bf16.msra.mxu3 %v9440_v22  ;;  %v9261_v17 = vld [vmem:[%s14114_s10 + $0x130] sm:$0xf0]  ;;  %v12325_v18 = vld [vmem:[%s14114_s10 + $0x224] sm:$0xf]  ;;  %12249 = vmatmul.msk.bf16.vlgmr.msra.gmra.mxu0 %vm7529_vm1, %v14669_v1 }
 0x283   : > { %7897 = vmatpush.bf16.msrb.mxu0 %v9616_v23  ;;  %v9389_v19 = vld [vmem:[%s14114_s10 + $0x230] sm:$0xf0]  ;;  %v12369_v21 = vld [vmem:[%s14114_s10 + $0x384] sm:$0xf]  ;;  %v9136_v23 = vor.u32 %v12261_v9, %v9133_v10  ;;  %v9264_v26 = vor.u32 %v12293_v16, %v9261_v17 }
 0x284   : > { %7862 = vmatpush.bf16.msra.mxu1 %v9168_v48  ;;  %v9565_v22 = vld [vmem:[%s14114_s10 + $0x390] sm:$0xf0]  ;;  %v12257_v27 = vld [vmem:[%s14114_s10 + $0x4] sm:$0xf]  ;;  %v9392_v36 = vor.u32 %v12325_v18, %v9389_v19 }
 0x285   : > { %7875 = vmatpush.bf16.msra.mxu2 %v9296_v45  ;;  %v9117_v31 = vld [vmem:[%s14114_s10 + $0x10] sm:$0xf0]  ;;  %v12289_v33 = vld [vmem:[%s14114_s10 + $0x104] sm:$0xf]  ;;  %v9568_v41 = vor.u32 %v12369_v21, %v9565_v22 }
 0x286   : > { %7888 = vmatpush.bf16.msra.mxu3 %v9424_v57  ;;  %v9245_v43 = vld [vmem:[%s14114_s10 + $0x110] sm:$0xf0]  ;;  %v12321_v48 = vld [vmem:[%s14114_s10 + $0x204] sm:$0xf]  ;;  %v9120_v62 = vor.u32 %v12257_v27, %v9117_v31 }
 0x287   : > { %7898 = vmatpush.bf16.msrb.mxu0 %v9600_v59  ;;  %v9373_v45 = vld [vmem:[%s14114_s10 + $0x210] sm:$0xf0]  ;;  %v12365_v52 = vld [vmem:[%s14114_s10 + $0x364] sm:$0xf]  ;;  %v9248_v63 = vor.u32 %v12289_v33, %v9245_v43 }
 0x288   : > { %7863 = vmatpush.bf16.msra.mxu1 %v9152_v7  ;;  %v9549_v56 = vld [vmem:[%s14114_s10 + $0x370] sm:$0xf0]  ;;  %v12413_v57 = vld [vmem:[%s14114_s10 + $0x4e4] sm:$0xf]  ;;  %v9376_v3 = vor.u32 %v12321_v48, %v9373_v45 }
 0x289   : > { %7876 = vmatpush.bf16.msra.mxu2 %v9280_v8  ;;  %v9741_v59 = vld [vmem:[%s14114_s10 + $0x4f0] sm:$0xf0]  ;;  %v12445_v60 = vld [vmem:[%s14114_s10 + $0x5e4] sm:$0xf]  ;;  %v9552_v4 = vor.u32 %v12365_v52, %v9549_v56 }
 0x28a   : > { %7889 = vmatpush.bf16.msra.mxu3 %v9408_v12  ;;  %v9869_v61 = vld [vmem:[%s14114_s10 + $0x5f0] sm:$0xf0]  ;;  %v12477_v0 = vld [vmem:[%s14114_s10 + $0x6e4] sm:$0xf]  ;;  %v9744_v6 = vor.u32 %v12413_v57, %v9741_v59 }
 0x28b   : > { %7899 = vmatpush.bf16.msrb.mxu0 %v9584_v14  ;;  %v9997_v2 = vld [vmem:[%s14114_s10 + $0x6f0] sm:$0xf0]  ;;  %v9872_v7 = vor.u32 %v12445_v60, %v9869_v61  ;;  %v12361_v8 = vld [vmem:[%s14114_s10 + $0x344] sm:$0xf] }
 0x28c   : > { %7864 = vmatpush.bf16.msra.mxu1 %v9136_v23  ;;  %v9533_v9 = vld [vmem:[%s14114_s10 + $0x350] sm:$0xf0]  ;;  %v12409_v10 = vld [vmem:[%s14114_s10 + $0x4c4] sm:$0xf]  ;;  %v10000_v11 = vor.u32 %v12477_v0, %v9997_v2 }
 0x28d   : > { %7877 = vmatpush.bf16.msra.mxu2 %v9264_v26  ;;  %v9725_v12 = vld [vmem:[%s14114_s10 + $0x4d0] sm:$0xf0]  ;;  %v12441_v14 = vld [vmem:[%s14114_s10 + $0x5c4] sm:$0xf]  ;;  %v9536_v19 = vor.u32 %v12361_v8, %v9533_v9 }
 0x28e   : > { %7890 = vmatpush.bf16.msra.mxu3 %v9392_v36  ;;  %v9853_v16 = vld [vmem:[%s14114_s10 + $0x5d0] sm:$0xf0]  ;;  %v12473_v17 = vld [vmem:[%s14114_s10 + $0x6c4] sm:$0xf]  ;;  %v9728_v21 = vor.u32 %v12409_v10, %v9725_v12 }
 0x28f   : > { %7900 = vmatpush.bf16.msrb.mxu0 %v9568_v41  ;;  %v9981_v18 = vld [vmem:[%s14114_s10 + $0x6d0] sm:$0xf0]  ;;  %v9856_v22 = vor.u32 %v12441_v14, %v9853_v16  ;;  %v12357_v23 = vld [vmem:[%s14114_s10 + $0x324] sm:$0xf]  ;;  %v7646_v0 = vpop.f32.mrf.mxu0 }
 0x290   : > { %7865 = vmatpush.bf16.msra.mxu1 %v9120_v62  ;;  %v9517_v26 = vld [vmem:[%s14114_s10 + $0x330] sm:$0xf0]  ;;  %v12405_v27 = vld [vmem:[%s14114_s10 + $0x4a4] sm:$0xf]  ;;  %v9984_v31 = vor.u32 %v12473_v17, %v9981_v18  ;;  %v7659_v8 = vpop.f32.mrf.mxu1 }
 0x291   : > { %7878 = vmatpush.bf16.msra.mxu2 %v9248_v63  ;;  %v9709_v33 = vld [vmem:[%s14114_s10 + $0x4b0] sm:$0xf0]  ;;  %v12437_v35 = vld [vmem:[%s14114_s10 + $0x5a4] sm:$0xf]  ;;  %v9520_v48 = vor.u32 %v12357_v23, %v9517_v26 }
 0x292   : > { %7891 = vmatpush.bf16.msra.mxu3 %v9376_v3  ;;  %v9837_v36 = vld [vmem:[%s14114_s10 + $0x5b0] sm:$0xf0]  ;;  %v12469_v41 = vld [vmem:[%s14114_s10 + $0x6a4] sm:$0xf]  ;;  %v9712_v49 = vor.u32 %v12405_v27, %v9709_v33 }
 0x293   : > { %7901 = vmatpush.bf16.msrb.mxu0 %v9552_v4  ;;  %v9965_v43 = vld [vmem:[%s14114_s10 + $0x6b0] sm:$0xf0]  ;;  %7866 = vmatmul.bf16.vlgmr.msra.gmra.mxu1 %v14230_v29  ;;  %v12353_v45 = vld [vmem:[%s14114_s10 + $0x304] sm:$0xf]  ;;  %v9840_v52 = vor.u32 %v12437_v35, %v9837_v36 }
 0x294   : > { %7910 = vmatpush.bf16.msrb.mxu1 %v9744_v6  ;;  %7879 = vmatmul.bf16.vlgmr.msra.gmra.mxu2 %v14233_v30  ;;  %v9501_v56 = vld [vmem:[%s14114_s10 + $0x310] sm:$0xf0]  ;;  %v12401_v57 = vld [vmem:[%s14114_s10 + $0x484] sm:$0xf]  ;;  %v9968_v60 = vor.u32 %v12469_v41, %v9965_v43  ;;  %v7647_v6 = vadd.f32 %v7646_v0, %v14674_v5  ;;  %v7672_v36 = vpop.f32.mrf.mxu2 }
 0x295   : > { %7923 = vmatpush.bf16.msrb.mxu2 %v9872_v7  ;;  %7892 = vmatmul.bf16.vlgmr.msra.gmra.mxu3 %v14214_v13  ;;  %v9693_v59 = vld [vmem:[%s14114_s10 + $0x490] sm:$0xf0]  ;;  %v12433_v61 = vld [vmem:[%s14114_s10 + $0x584] sm:$0xf]  ;;  %v9504_v7 = vor.u32 %v12353_v45, %v9501_v56 }
 0x296   : > { %7936 = vmatpush.bf16.msrb.mxu3 %v10000_v11  ;;  %v9821_v62 = vld [vmem:[%s14114_s10 + $0x590] sm:$0xf0]  ;;  %v12465_v63 = vld [vmem:[%s14114_s10 + $0x684] sm:$0xf]  ;;  %v9696_v9 = vor.u32 %v12401_v57, %v9693_v59  ;;  %v7660_v16 = vadd.f32 %v7659_v8, %v7647_v6 }
 0x297   : > { %7902 = vmatpush.bf16.msrb.mxu0 %v9536_v19  ;;  %v9949_v2 = vld [vmem:[%s14114_s10 + $0x690] sm:$0xf0]  ;;  %v12509_v3 = vld [vmem:[%s14114_s10 + $0x7e4] sm:$0xf]  ;;  %v9824_v10 = vor.u32 %v12433_v61, %v9821_v62 }
 0x298   : > { %7911 = vmatpush.bf16.msrb.mxu1 %v9728_v21  ;;  %v10125_v4 = vld [vmem:[%s14114_s10 + $0x7f0] sm:$0xf0]  ;;  %v12397_v11 = vld [vmem:[%s14114_s10 + $0x464] sm:$0xf]  ;;  %v9952_v14 = vor.u32 %v12465_v63, %v9949_v2  ;;  %v7661_v61 = vpop.f32.mrf.mxu1 }
 0x299   : > { %7924 = vmatpush.bf16.msrb.mxu2 %v9856_v22  ;;  %v9677_v12 = vld [vmem:[%s14114_s10 + $0x470] sm:$0xf0]  ;;  %v10128_v17 = vor.u32 %v12509_v3, %v10125_v4  ;;  %v12429_v18 = vld [vmem:[%s14114_s10 + $0x564] sm:$0xf] }
 0x29a   : > { %7937 = vmatpush.bf16.msrb.mxu3 %v9984_v31  ;;  %v9805_v19 = vld [vmem:[%s14114_s10 + $0x570] sm:$0xf0]  ;;  %v12461_v5 = vld [vmem:[%s14114_s10 + $0x664] sm:$0xf]  ;;  %v9680_v26 = vor.u32 %v12397_v11, %v9677_v12 }
 0x29b   : > { %7903 = vmatpush.bf16.msrb.mxu0 %v9520_v48  ;;  %v9933_v21 = vld [vmem:[%s14114_s10 + $0x670] sm:$0xf0]  ;;  %v12505_v22 = vld [vmem:[%s14114_s10 + $0x7c4] sm:$0xf]  ;;  %v9808_v27 = vor.u32 %v12429_v18, %v9805_v19 }
 0x29c   : > { %7912 = vmatpush.bf16.msrb.mxu1 %v9712_v49  ;;  %v10109_v23 = vld [vmem:[%s14114_s10 + $0x7d0] sm:$0xf0]  ;;  %v12393_v31 = vld [vmem:[%s14114_s10 + $0x444] sm:$0xf]  ;;  %v9936_v35 = vor.u32 %v12461_v5, %v9933_v21  ;;  %v7673_v49 = vadd.f32 %v7672_v36, %v7660_v16 }
 0x29d   : > { %7925 = vmatpush.bf16.msrb.mxu2 %v9840_v52  ;;  %v9661_v33 = vld [vmem:[%s14114_s10 + $0x450] sm:$0xf0]  ;;  %v10112_v41 = vor.u32 %v12505_v22, %v10109_v23  ;;  %v12425_v43 = vld [vmem:[%s14114_s10 + $0x544] sm:$0xf]  ;;  %v7685_v52 = vpop.f32.mrf.mxu3 }
 0x29e   : > { %7938 = vmatpush.bf16.msrb.mxu3 %v9968_v60  ;;  %v9789_v48 = vld [vmem:[%s14114_s10 + $0x550] sm:$0xf0]  ;;  %v12457_v45 = vld [vmem:[%s14114_s10 + $0x644] sm:$0xf]  ;;  %v7648_v60 = vpop.f32.mrf.mxu0  ;;  %v14747_v62 = vadd.f32 %v7685_v52, %v7673_v49  ;;  %v9664_v63 = vor.u32 %v12393_v31, %v9661_v33 }
 0x29f   : > { %7904 = vmatpush.bf16.msrb.mxu0 %v9504_v7  ;;  %v9917_v56 = vld [vmem:[%s14114_s10 + $0x650] sm:$0xf0]  ;;  %v12501_v57 = vld [vmem:[%s14114_s10 + $0x7a4] sm:$0xf]  ;;  %v9792_v0 = vor.u32 %v12425_v43, %v9789_v48 }
 0x2a0   : > { %7913 = vmatpush.bf16.msrb.mxu1 %v9696_v9  ;;  %v10093_v59 = vld [vmem:[%s14114_s10 + $0x7b0] sm:$0xf0]  ;;  %v12389_v2 = vld [vmem:[%s14114_s10 + $0x424] sm:$0xf]  ;;  %v9920_v4 = vor.u32 %v12457_v45, %v9917_v56 }
 0x2a1   : > { %7926 = vmatpush.bf16.msrb.mxu2 %v9824_v10  ;;  %v9645_v3 = vld [vmem:[%s14114_s10 + $0x430] sm:$0xf0]  ;;  %v10096_v6 = vor.u32 %v12501_v57, %v10093_v59  ;;  %v12421_v7 = vld [vmem:[%s14114_s10 + $0x524] sm:$0xf] }
 0x2a2   : > { %7939 = vmatpush.bf16.msrb.mxu3 %v9952_v14  ;;  %7905 = vmatmul.bf16.vlgmr.msrb.gmra.mxu0 %v14219_v15  ;;  %v9773_v8 = vld [vmem:[%s14114_s10 + $0x530] sm:$0xf0]  ;;  %v12453_v9 = vld [vmem:[%s14114_s10 + $0x624] sm:$0xf]  ;;  %v9648_v14 = vor.u32 %v12389_v2, %v9645_v3 }
 0x2a3   : > { %7949 = vmatpush.bf16.msra.mxu0 %v10128_v17  ;;  %v9901_v10 = vld [vmem:[%s14114_s10 + $0x630] sm:$0xf0]  ;;  %v12497_v11 = vld [vmem:[%s14114_s10 + $0x784] sm:$0xf]  ;;  %v9776_v16 = vor.u32 %v12421_v7, %v9773_v8 }
 0x2a4   : > { %7914 = vmatpush.bf16.msrb.mxu1 %v9680_v26  ;;  %v10077_v12 = vld [vmem:[%s14114_s10 + $0x790] sm:$0xf0]  ;;  %v12385_v17 = vld [vmem:[%s14114_s10 + $0x404] sm:$0xf]  ;;  %v9904_v5 = vor.u32 %v12453_v9, %v9901_v10 }
 0x2a5   : > { %7927 = vmatpush.bf16.msrb.mxu2 %v9808_v27  ;;  %v9629_v18 = vld [vmem:[%s14114_s10 + $0x410] sm:$0xf0]  ;;  %v12417_v19 = vld [vmem:[%s14114_s10 + $0x504] sm:$0xf]  ;;  %v10080_v21 = vor.u32 %v12497_v11, %v10077_v12  ;;  %v7674_v27 = vpop.f32.mrf.mxu2  ;;  %v7687_v36 = vpop.f32.mrf.mxu3 }
 0x2a6   : > { %7940 = vmatpush.bf16.msrb.mxu3 %v9936_v35  ;;  %v9757_v22 = vld [vmem:[%s14114_s10 + $0x510] sm:$0xf0]  ;;  %v12449_v23 = vld [vmem:[%s14114_s10 + $0x604] sm:$0xf]  ;;  %v9632_v45 = vor.u32 %v12385_v17, %v9629_v18 }
 0x2a7   : > { %7950 = vmatpush.bf16.msra.mxu0 %v10112_v41  ;;  %v9885_v26 = vld [vmem:[%s14114_s10 + $0x610] sm:$0xf0]  ;;  %v12493_v31 = vld [vmem:[%s14114_s10 + $0x764] sm:$0xf]  ;;  %v9760_v49 = vor.u32 %v12417_v19, %v9757_v22 }
 0x2a8   : > { %7915 = vmatpush.bf16.msrb.mxu1 %v9664_v63  ;;  %v10061_v33 = vld [vmem:[%s14114_s10 + $0x770] sm:$0xf0]  ;;  %v12541_v35 = vld [vmem:[%s14114_s10 + $0x8e4] sm:$0xf]  ;;  %v9888_v57 = vor.u32 %v12449_v23, %v9885_v26 }
 0x2a9   : > { %7928 = vmatpush.bf16.msrb.mxu2 %v9792_v0  ;;  %v10253_v41 = vld [vmem:[%s14114_s10 + $0x8f0] sm:$0xf0]  ;;  %v12573_v43 = vld [vmem:[%s14114_s10 + $0x9e4] sm:$0xf]  ;;  %v10064_v59 = vor.u32 %v12493_v31, %v10061_v33 }
 0x2aa   : > { %7941 = vmatpush.bf16.msrb.mxu3 %v9920_v4  ;;  %v10381_v48 = vld [vmem:[%s14114_s10 + $0x9f0] sm:$0xf0]  ;;  %v12605_v52 = vld [vmem:[%s14114_s10 + $0xae4] sm:$0xf]  ;;  %v10256_v60 = vor.u32 %v12541_v35, %v10253_v41 }
 0x2ab   : > { %7951 = vmatpush.bf16.msra.mxu0 %v10096_v6  ;;  %v10509_v56 = vld [vmem:[%s14114_s10 + $0xaf0] sm:$0xf0]  ;;  %v10384_v61 = vor.u32 %v12573_v43, %v10381_v48  ;;  %v12489_v63 = vld [vmem:[%s14114_s10 + $0x744] sm:$0xf] }
 0x2ac   : > { %7916 = vmatpush.bf16.msrb.mxu1 %v9648_v14  ;;  %v10045_v0 = vld [vmem:[%s14114_s10 + $0x750] sm:$0xf0]  ;;  %v12537_v2 = vld [vmem:[%s14114_s10 + $0x8c4] sm:$0xf]  ;;  %v10512_v3 = vor.u32 %v12605_v52, %v10509_v56 }
 0x2ad   : > { %7929 = vmatpush.bf16.msrb.mxu2 %v9776_v16  ;;  %v10237_v4 = vld [vmem:[%s14114_s10 + $0x8d0] sm:$0xf0]  ;;  %v12569_v6 = vld [vmem:[%s14114_s10 + $0x9c4] sm:$0xf]  ;;  %v10048_v10 = vor.u32 %v12489_v63, %v10045_v0 }
 0x2ae   : > { %7942 = vmatpush.bf16.msrb.mxu3 %v9904_v5  ;;  %v10365_v7 = vld [vmem:[%s14114_s10 + $0x9d0] sm:$0xf0]  ;;  %v12601_v8 = vld [vmem:[%s14114_s10 + $0xac4] sm:$0xf]  ;;  %v10240_v11 = vor.u32 %v12537_v2, %v10237_v4  ;;  %v7711_v63 = vpop.f32.mrf.mxu1 }
 0x2af   : > { %7952 = vmatpush.bf16.msra.mxu0 %v10080_v21  ;;  %v10493_v9 = vld [vmem:[%s14114_s10 + $0xad0] sm:$0xf0]  ;;  %v10368_v12 = vor.u32 %v12569_v6, %v10365_v7  ;;  %v12485_v14 = vld [vmem:[%s14114_s10 + $0x724] sm:$0xf]  ;;  %v7698_v52 = vpop.f32.mrf.mxu0 }
 0x2b0   : > { %7917 = vmatpush.bf16.msrb.mxu1 %v9632_v45  ;;  %v10029_v16 = vld [vmem:[%s14114_s10 + $0x730] sm:$0xf0]  ;;  %v12533_v17 = vld [vmem:[%s14114_s10 + $0x8a4] sm:$0xf]  ;;  %v10496_v18 = vor.u32 %v12601_v8, %v10493_v9 }
 0x2b1   : > { %7930 = vmatpush.bf16.msrb.mxu2 %v9760_v49  ;;  %v10221_v19 = vld [vmem:[%s14114_s10 + $0x8b0] sm:$0xf0]  ;;  %v12565_v5 = vld [vmem:[%s14114_s10 + $0x9a4] sm:$0xf]  ;;  %v10032_v26 = vor.u32 %v12485_v14, %v10029_v16 }
 0x2b2   : > { %7943 = vmatpush.bf16.msrb.mxu3 %v9888_v57  ;;  %v10349_v21 = vld [vmem:[%s14114_s10 + $0x9b0] sm:$0xf0]  ;;  %v12597_v22 = vld [vmem:[%s14114_s10 + $0xaa4] sm:$0xf]  ;;  %v10224_v31 = vor.u32 %v12533_v17, %v10221_v19 }
 0x2b3   : > { %7953 = vmatpush.bf16.msra.mxu0 %v10064_v59  ;;  %v10477_v23 = vld [vmem:[%s14114_s10 + $0xab0] sm:$0xf0]  ;;  %7918 = vmatmul.bf16.vlgmr.msrb.gmra.mxu1 %v14293_v50  ;;  %v12481_v27 = vld [vmem:[%s14114_s10 + $0x704] sm:$0xf]  ;;  %v10352_v33 = vor.u32 %v12565_v5, %v10349_v21 }
 0x2b4   : > { %7962 = vmatpush.bf16.msra.mxu1 %v10256_v60  ;;  %7931 = vmatmul.bf16.vlgmr.msrb.gmra.mxu2 %v14297_v53  ;;  %v10013_v35 = vld [vmem:[%s14114_s10 + $0x710] sm:$0xf0]  ;;  %v12529_v36 = vld [vmem:[%s14114_s10 + $0x884] sm:$0xf]  ;;  %v10480_v43 = vor.u32 %v12597_v22, %v10477_v23  ;;  %v7699_v60 = vadd.f32 %v7698_v52, %v14747_v62 }
 0x2b5   : > { %7975 = vmatpush.bf16.msra.mxu2 %v10384_v61  ;;  %7944 = vmatmul.bf16.vlgmr.msrb.gmra.mxu3 %v14289_v47  ;;  %v10205_v41 = vld [vmem:[%s14114_s10 + $0x890] sm:$0xf0]  ;;  %v12561_v48 = vld [vmem:[%s14114_s10 + $0x984] sm:$0xf]  ;;  %v10016_v61 = vor.u32 %v12481_v27, %v10013_v35 }
 0x2b6   : > { %7988 = vmatpush.bf16.msra.mxu3 %v10512_v3  ;;  %v10333_v45 = vld [vmem:[%s14114_s10 + $0x990] sm:$0xf0]  ;;  %v12593_v49 = vld [vmem:[%s14114_s10 + $0xa84] sm:$0xf]  ;;  %v10208_v0 = vor.u32 %v12529_v36, %v10205_v41  ;;  %v7712_v7 = vadd.f32 %v7711_v63, %v7699_v60 }
 0x2b7   : > { %7954 = vmatpush.bf16.msra.mxu0 %v10048_v10  ;;  %v10461_v56 = vld [vmem:[%s14114_s10 + $0xa90] sm:$0xf0]  ;;  %v12637_v57 = vld [vmem:[%s14114_s10 + $0xbe4] sm:$0xf]  ;;  %v10336_v2 = vor.u32 %v12561_v48, %v10333_v45  ;;  %v7724_v21 = vpop.f32.mrf.mxu2  ;;  %v7713_v48 = vpop.f32.mrf.mxu1 }
 0x2b8   : > { %7963 = vmatpush.bf16.msra.mxu1 %v10240_v11  ;;  %v10637_v59 = vld [vmem:[%s14114_s10 + $0xbf0] sm:$0xf0]  ;;  %v12525_v3 = vld [vmem:[%s14114_s10 + $0x864] sm:$0xf]  ;;  %v10464_v6 = vor.u32 %v12593_v49, %v10461_v56 }
 0x2b9   : > { %7976 = vmatpush.bf16.msra.mxu2 %v10368_v12  ;;  %v10189_v4 = vld [vmem:[%s14114_s10 + $0x870] sm:$0xf0]  ;;  %v10640_v8 = vor.u32 %v12637_v57, %v10637_v59  ;;  %v12557_v9 = vld [vmem:[%s14114_s10 + $0x964] sm:$0xf] }
 0x2ba   : > { %7989 = vmatpush.bf16.msra.mxu3 %v10496_v18  ;;  %v10317_v10 = vld [vmem:[%s14114_s10 + $0x970] sm:$0xf0]  ;;  %v12589_v62 = vld [vmem:[%s14114_s10 + $0xa64] sm:$0xf]  ;;  %v10192_v16 = vor.u32 %v12525_v3, %v10189_v4 }
 0x2bb   : > { %7955 = vmatpush.bf16.msra.mxu0 %v10032_v26  ;;  %v10445_v11 = vld [vmem:[%s14114_s10 + $0xa70] sm:$0xf0]  ;;  %v12633_v12 = vld [vmem:[%s14114_s10 + $0xbc4] sm:$0xf]  ;;  %v10320_v17 = vor.u32 %v12557_v9, %v10317_v10 }
 0x2bc   : > { %7964 = vmatpush.bf16.msra.mxu1 %v10224_v31  ;;  %v10621_v14 = vld [vmem:[%s14114_s10 + $0xbd0] sm:$0xf0]  ;;  %v12521_v18 = vld [vmem:[%s14114_s10 + $0x844] sm:$0xf]  ;;  %v10448_v5 = vor.u32 %v12589_v62, %v10445_v11  ;;  %v7725_v31 = vadd.f32 %v7724_v21, %v7712_v7 }
 0x2bd   : > { %7977 = vmatpush.bf16.msra.mxu2 %v10352_v33  ;;  %v10173_v19 = vld [vmem:[%s14114_s10 + $0x850] sm:$0xf0]  ;;  %v10624_v22 = vor.u32 %v12633_v12, %v10621_v14  ;;  %v12553_v23 = vld [vmem:[%s14114_s10 + $0x944] sm:$0xf]  ;;  %v7737_v33 = vpop.f32.mrf.mxu3 }
 0x2be   : > { %7990 = vmatpush.bf16.msra.mxu3 %v10480_v43  ;;  %v10301_v26 = vld [vmem:[%s14114_s10 + $0x950] sm:$0xf0]  ;;  %v12585_v27 = vld [vmem:[%s14114_s10 + $0xa44] sm:$0xf]  ;;  %v7700_v43 = vpop.f32.mrf.mxu0  ;;  %v14818_v45 = vadd.f32 %v7737_v33, %v7725_v31  ;;  %v10176_v49 = vor.u32 %v12521_v18, %v10173_v19 }
 0x2bf   : > { %7956 = vmatpush.bf16.msra.mxu0 %v10016_v61  ;;  %v10429_v35 = vld [vmem:[%s14114_s10 + $0xa50] sm:$0xf0]  ;;  %v12629_v36 = vld [vmem:[%s14114_s10 + $0xba4] sm:$0xf]  ;;  %v10304_v52 = vor.u32 %v12553_v23, %v10301_v26 }
 0x2c0   : > { %7965 = vmatpush.bf16.msra.mxu1 %v10208_v0  ;;  %v10605_v41 = vld [vmem:[%s14114_s10 + $0xbb0] sm:$0xf0]  ;;  %v12517_v56 = vld [vmem:[%s14114_s10 + $0x824] sm:$0xf]  ;;  %v10432_v59 = vor.u32 %v12585_v27, %v10429_v35 }
 0x2c1   : > { %7978 = vmatpush.bf16.msra.mxu2 %v10336_v2  ;;  %v10157_v57 = vld [vmem:[%s14114_s10 + $0x830] sm:$0xf0]  ;;  %v10608_v60 = vor.u32 %v12629_v36, %v10605_v41  ;;  %v12549_v61 = vld [vmem:[%s14114_s10 + $0x924] sm:$0xf] }
 0x2c2   : > { %7991 = vmatpush.bf16.msra.mxu3 %v10464_v6  ;;  %7957 = vmatmul.bf16.vlgmr.msra.gmra.mxu0 %v14295_v51  ;;  %v10285_v63 = vld [vmem:[%s14114_s10 + $0x930] sm:$0xf0]  ;;  %v12581_v0 = vld [vmem:[%s14114_s10 + $0xa24] sm:$0xf]  ;;  %v10160_v6 = vor.u32 %v12517_v56, %v10157_v57 }
 0x2c3   : > { %8001 = vmatpush.bf16.msrb.mxu0 %v10640_v8  ;;  %v10413_v2 = vld [vmem:[%s14114_s10 + $0xa30] sm:$0xf0]  ;;  %v12625_v3 = vld [vmem:[%s14114_s10 + $0xb84] sm:$0xf]  ;;  %v10288_v7 = vor.u32 %v12549_v61, %v10285_v63 }
 0x2c4   : > { %7966 = vmatpush.bf16.msra.mxu1 %v10192_v16  ;;  %v10589_v4 = vld [vmem:[%s14114_s10 + $0xb90] sm:$0xf0]  ;;  %v12513_v8 = vld [vmem:[%s14114_s10 + $0x804] sm:$0xf]  ;;  %v10416_v62 = vor.u32 %v12581_v0, %v10413_v2 }
 0x2c5   : > { %7979 = vmatpush.bf16.msra.mxu2 %v10320_v17  ;;  %v10141_v9 = vld [vmem:[%s14114_s10 + $0x810] sm:$0xf0]  ;;  %v12545_v10 = vld [vmem:[%s14114_s10 + $0x904] sm:$0xf]  ;;  %v10592_v11 = vor.u32 %v12625_v3, %v10589_v4  ;;  %v7726_v17 = vpop.f32.mrf.mxu2  ;;  %v7739_v21 = vpop.f32.mrf.mxu3 }
 0x2c6   : > { %7992 = vmatpush.bf16.msra.mxu3 %v10448_v5  ;;  %v10269_v12 = vld [vmem:[%s14114_s10 + $0x910] sm:$0xf0]  ;;  %v12577_v14 = vld [vmem:[%s14114_s10 + $0xa04] sm:$0xf]  ;;  %v10144_v27 = vor.u32 %v12513_v8, %v10141_v9 }
 0x2c7   : > { %8002 = vmatpush.bf16.msrb.mxu0 %v10624_v22  ;;  %v10397_v16 = vld [vmem:[%s14114_s10 + $0xa10] sm:$0xf0]  ;;  %v12621_v18 = vld [vmem:[%s14114_s10 + $0xb64] sm:$0xf]  ;;  %v10272_v31 = vor.u32 %v12545_v10, %v10269_v12 }
 0x2c8   : > { %7967 = vmatpush.bf16.msra.mxu1 %v10176_v49  ;;  %v10573_v19 = vld [vmem:[%s14114_s10 + $0xb70] sm:$0xf0]  ;;  %v12669_v5 = vld [vmem:[%s14114_s10 + $0xce4] sm:$0xf]  ;;  %v10400_v36 = vor.u32 %v12577_v14, %v10397_v16 }
 0x2c9   : > { %7980 = vmatpush.bf16.msra.mxu2 %v10304_v52  ;;  %v10765_v22 = vld [vmem:[%s14114_s10 + $0xcf0] sm:$0xf0]  ;;  %v12701_v23 = vld [vmem:[%s14114_s10 + $0xde4] sm:$0xf]  ;;  %v10576_v41 = vor.u32 %v12621_v18, %v10573_v19 }
 0x2ca   : > { %7993 = vmatpush.bf16.msra.mxu3 %v10432_v59  ;;  %v10893_v26 = vld [vmem:[%s14114_s10 + $0xdf0] sm:$0xf0]  ;;  %v12733_v33 = vld [vmem:[%s14114_s10 + $0xee4] sm:$0xf]  ;;  %v10768_v43 = vor.u32 %v12669_v5, %v10765_v22 }
 0x2cb   : > { %8003 = vmatpush.bf16.msrb.mxu0 %v10608_v60  ;;  %v11021_v35 = vld [vmem:[%s14114_s10 + $0xef0] sm:$0xf0]  ;;  %v10896_v48 = vor.u32 %v12701_v23, %v10893_v26  ;;  %v12617_v49 = vld [vmem:[%s14114_s10 + $0xb44] sm:$0xf] }
 0x2cc   : > { %7968 = vmatpush.bf16.msra.mxu1 %v10160_v6  ;;  %v10557_v52 = vld [vmem:[%s14114_s10 + $0xb50] sm:$0xf0]  ;;  %v12665_v56 = vld [vmem:[%s14114_s10 + $0xcc4] sm:$0xf]  ;;  %v11024_v57 = vor.u32 %v12733_v33, %v11021_v35 }
 0x2cd   : > { %7981 = vmatpush.bf16.msra.mxu2 %v10288_v7  ;;  %v10749_v59 = vld [vmem:[%s14114_s10 + $0xcd0] sm:$0xf0]  ;;  %v12697_v60 = vld [vmem:[%s14114_s10 + $0xdc4] sm:$0xf]  ;;  %v10560_v2 = vor.u32 %v12617_v49, %v10557_v52 }
 0x2ce   : > { %7994 = vmatpush.bf16.msra.mxu3 %v10416_v62  ;;  %v10877_v61 = vld [vmem:[%s14114_s10 + $0xdd0] sm:$0xf0]  ;;  %v12729_v63 = vld [vmem:[%s14114_s10 + $0xec4] sm:$0xf]  ;;  %v10752_v3 = vor.u32 %v12665_v56, %v10749_v59 }
 0x2cf   : > { %8004 = vmatpush.bf16.msrb.mxu0 %v10592_v11  ;;  %v11005_v0 = vld [vmem:[%s14114_s10 + $0xed0] sm:$0xf0]  ;;  %v10880_v4 = vor.u32 %v12697_v60, %v10877_v61  ;;  %v12613_v6 = vld [vmem:[%s14114_s10 + $0xb24] sm:$0xf] }
 0x2d0   : > { %7969 = vmatpush.bf16.msra.mxu1 %v10144_v27  ;;  %v10541_v7 = vld [vmem:[%s14114_s10 + $0xb30] sm:$0xf0]  ;;  %v12661_v8 = vld [vmem:[%s14114_s10 + $0xca4] sm:$0xf]  ;;  %v11008_v9 = vor.u32 %v12729_v63, %v11005_v0  ;;  %v7750_v33 = vpop.f32.mrf.mxu0 }
 0x2d1   : > { %7982 = vmatpush.bf16.msra.mxu2 %v10272_v31  ;;  %v10733_v10 = vld [vmem:[%s14114_s10 + $0xcb0] sm:$0xf0]  ;;  %v12693_v62 = vld [vmem:[%s14114_s10 + $0xda4] sm:$0xf]  ;;  %v10544_v16 = vor.u32 %v12613_v6, %v10541_v7  ;;  %v7763_v49 = vpop.f32.mrf.mxu1 }
 0x2d2   : > { %7995 = vmatpush.bf16.msra.mxu3 %v10400_v36  ;;  %v10861_v11 = vld [vmem:[%s14114_s10 + $0xdb0] sm:$0xf0]  ;;  %v12725_v12 = vld [vmem:[%s14114_s10 + $0xea4] sm:$0xf]  ;;  %v10736_v18 = vor.u32 %v12661_v8, %v10733_v10 }
 0x2d3   : > { %8005 = vmatpush.bf16.msrb.mxu0 %v10576_v41  ;;  %7970 = vmatmul.bf16.vlgmr.msra.gmra.mxu1 %v14368_v34  ;;  %v10989_v14 = vld [vmem:[%s14114_s10 + $0xeb0] sm:$0xf0]  ;;  %v12609_v17 = vld [vmem:[%s14114_s10 + $0xb04] sm:$0xf]  ;;  %v10864_v19 = vor.u32 %v12693_v62, %v10861_v11 }
 0x2d4   : > { %8014 = vmatpush.bf16.msrb.mxu1 %v10768_v43  ;;  %7983 = vmatmul.bf16.vlgmr.msra.gmra.mxu2 %v14375_v39  ;;  %v10525_v5 = vld [vmem:[%s14114_s10 + $0xb10] sm:$0xf0]  ;;  %v12657_v21 = vld [vmem:[%s14114_s10 + $0xc84] sm:$0xf]  ;;  %v10992_v23 = vor.u32 %v12725_v12, %v10989_v14  ;;  %v7751_v43 = vadd.f32 %v7750_v33, %v14818_v45 }
 0x2d5   : > { %8027 = vmatpush.bf16.msrb.mxu2 %v10896_v48  ;;  %7996 = vmatmul.bf16.vlgmr.msra.gmra.mxu3 %v14373_v38  ;;  %v10717_v22 = vld [vmem:[%s14114_s10 + $0xc90] sm:$0xf0]  ;;  %v12689_v26 = vld [vmem:[%s14114_s10 + $0xd84] sm:$0xf]  ;;  %v10528_v48 = vor.u32 %v12609_v17, %v10525_v5  ;;  %v7776_v11 = vpop.f32.mrf.mxu2 }
 0x2d6   : > { %8040 = vmatpush.bf16.msrb.mxu3 %v11024_v57  ;;  %v10845_v27 = vld [vmem:[%s14114_s10 + $0xd90] sm:$0xf0]  ;;  %v12721_v31 = vld [vmem:[%s14114_s10 + $0xe84] sm:$0xf]  ;;  %v10720_v52 = vor.u32 %v12657_v21, %v10717_v22  ;;  %v7764_v61 = vadd.f32 %v7763_v49, %v7751_v43 }
 0x2d7   : > { %8006 = vmatpush.bf16.msrb.mxu0 %v10560_v2  ;;  %v10973_v35 = vld [vmem:[%s14114_s10 + $0xe90] sm:$0xf0]  ;;  %v12765_v36 = vld [vmem:[%s14114_s10 + $0xfe4] sm:$0xf]  ;;  %v10848_v56 = vor.u32 %v12689_v26, %v10845_v27 }
 0x2d8   : > { %8015 = vmatpush.bf16.msrb.mxu1 %v10752_v3  ;;  %v11149_v41 = vld [vmem:[%s14114_s10 + $0xff0] sm:$0xf0]  ;;  %v12653_v57 = vld [vmem:[%s14114_s10 + $0xc64] sm:$0xf]  ;;  %v10976_v60 = vor.u32 %v12721_v31, %v10973_v35 }
 0x2d9   : > { %8028 = vmatpush.bf16.msrb.mxu2 %v10880_v4  ;;  %v10701_v59 = vld [vmem:[%s14114_s10 + $0xc70] sm:$0xf0]  ;;  %v11152_v63 = vor.u32 %v12765_v36, %v11149_v41  ;;  %v12685_v0 = vld [vmem:[%s14114_s10 + $0xd64] sm:$0xf]  ;;  %v7765_v26 = vpop.f32.mrf.mxu1 }
 0x2da   : > { %8041 = vmatpush.bf16.msrb.mxu3 %v11008_v9  ;;  %v10829_v2 = vld [vmem:[%s14114_s10 + $0xd70] sm:$0xf0]  ;;  %v12717_v45 = vld [vmem:[%s14114_s10 + $0xe64] sm:$0xf]  ;;  %v10704_v7 = vor.u32 %v12653_v57, %v10701_v59 }
 0x2db   : > { %8007 = vmatpush.bf16.msrb.mxu0 %v10544_v16  ;;  %v10957_v3 = vld [vmem:[%s14114_s10 + $0xe70] sm:$0xf0]  ;;  %v12761_v4 = vld [vmem:[%s14114_s10 + $0xfc4] sm:$0xf]  ;;  %v10832_v8 = vor.u32 %v12685_v0, %v10829_v2 }
 0x2dc   : > { %8016 = vmatpush.bf16.msrb.mxu1 %v10736_v18  ;;  %v11133_v6 = vld [vmem:[%s14114_s10 + $0xfd0] sm:$0xf0]  ;;  %v12649_v9 = vld [vmem:[%s14114_s10 + $0xc44] sm:$0xf]  ;;  %v10960_v62 = vor.u32 %v12717_v45, %v10957_v3  ;;  %v7777_v18 = vadd.f32 %v7776_v11, %v7764_v61 }
 0x2dd   : > { %8029 = vmatpush.bf16.msrb.mxu2 %v10864_v19  ;;  %v10685_v10 = vld [vmem:[%s14114_s10 + $0xc50] sm:$0xf0]  ;;  %v11136_v12 = vor.u32 %v12761_v4, %v11133_v6  ;;  %v12681_v14 = vld [vmem:[%s14114_s10 + $0xd44] sm:$0xf]  ;;  %v7789_v19 = vpop.f32.mrf.mxu3 }
 0x2de   : > { %8042 = vmatpush.bf16.msrb.mxu3 %v10992_v23  ;;  %v10813_v16 = vld [vmem:[%s14114_s10 + $0xd50] sm:$0xf0]  ;;  %v12713_v17 = vld [vmem:[%s14114_s10 + $0xe44] sm:$0xf]  ;;  %v7752_v23 = vpop.f32.mrf.mxu0  ;;  %v14889_v27 = vadd.f32 %v7789_v19, %v7777_v18  ;;  %v10688_v31 = vor.u32 %v12649_v9, %v10685_v10 }
 0x2df   : > { %8008 = vmatpush.bf16.msrb.mxu0 %v10528_v48  ;;  %v10941_v5 = vld [vmem:[%s14114_s10 + $0xe50] sm:$0xf0]  ;;  %v12757_v21 = vld [vmem:[%s14114_s10 + $0xfa4] sm:$0xf]  ;;  %v10816_v33 = vor.u32 %v12681_v14, %v10813_v16 }
 0x2e0   : > { %8017 = vmatpush.bf16.msrb.mxu1 %v10720_v52  ;;  %v11117_v22 = vld [vmem:[%s14114_s10 + $0xfb0] sm:$0xf0]  ;;  %v12645_v35 = vld [vmem:[%s14114_s10 + $0xc24] sm:$0xf]  ;;  %v10944_v41 = vor.u32 %v12713_v17, %v10941_v5 }
 0x2e1   : > { %8030 = vmatpush.bf16.msrb.mxu2 %v10848_v56  ;;  %v10669_v36 = vld [vmem:[%s14114_s10 + $0xc30] sm:$0xf0]  ;;  %v11120_v43 = vor.u32 %v12757_v21, %v11117_v22  ;;  %v12677_v48 = vld [vmem:[%s14114_s10 + $0xd24] sm:$0xf] }
 0x2e2   : > { %8043 = vmatpush.bf16.msrb.mxu3 %v10976_v60  ;;  %8009 = vmatmul.bf16.vlgmr.msrb.gmra.mxu0 %v14379_v42  ;;  %v10797_v49 = vld [vmem:[%s14114_s10 + $0xd30] sm:$0xf0]  ;;  %v12709_v52 = vld [vmem:[%s14114_s10 + $0xe24] sm:$0xf]  ;;  %v10672_v60 = vor.u32 %v12645_v35, %v10669_v36 }
 0x2e3   : > { %8053 = vmatpush.bf16.msra.mxu0 %v11152_v63  ;;  %v10925_v56 = vld [vmem:[%s14114_s10 + $0xe30] sm:$0xf0]  ;;  %v12753_v57 = vld [vmem:[%s14114_s10 + $0xf84] sm:$0xf]  ;;  %v10800_v61 = vor.u32 %v12677_v48, %v10797_v49 }
 0x2e4   : > { %8018 = vmatpush.bf16.msrb.mxu1 %v10704_v7  ;;  %v11101_v59 = vld [vmem:[%s14114_s10 + $0xf90] sm:$0xf0]  ;;  %v12641_v63 = vld [vmem:[%s14114_s10 + $0xc04] sm:$0xf]  ;;  %v10928_v45 = vor.u32 %v12709_v52, %v10925_v56 }
 0x2e5   : > { %8031 = vmatpush.bf16.msrb.mxu2 %v10832_v8  ;;  %v10653_v0 = vld [vmem:[%s14114_s10 + $0xc10] sm:$0xf0]  ;;  %v12673_v2 = vld [vmem:[%s14114_s10 + $0xd04] sm:$0xf]  ;;  %v11104_v3 = vor.u32 %v12753_v57, %v11101_v59  ;;  %v7778_v8 = vpop.f32.mrf.mxu2  ;;  %v7791_v11 = vpop.f32.mrf.mxu3 }
 0x2e6   : > { %8044 = vmatpush.bf16.msrb.mxu3 %v10960_v62  ;;  %v10781_v4 = vld [vmem:[%s14114_s10 + $0xd10] sm:$0xf0]  ;;  %v12705_v6 = vld [vmem:[%s14114_s10 + $0xe04] sm:$0xf]  ;;  %v10656_v17 = vor.u32 %v12641_v63, %v10653_v0 }
 0x2e7   : > { %8054 = vmatpush.bf16.msra.mxu0 %v11136_v12  ;;  %v10909_v7 = vld [vmem:[%s14114_s10 + $0xe10] sm:$0xf0]  ;;  %v12749_v9 = vld [vmem:[%s14114_s10 + $0xf64] sm:$0xf]  ;;  %v10784_v18 = vor.u32 %v12673_v2, %v10781_v4 }
 0x2e8   : > { %8019 = vmatpush.bf16.msrb.mxu1 %v10688_v31  ;;  %v11085_v10 = vld [vmem:[%s14114_s10 + $0xf70] sm:$0xf0]  ;;  %v12797_v62 = vld [vmem:[%s14114_s10 + $0x10e4] sm:$0xf]  ;;  %v10912_v21 = vor.u32 %v12705_v6, %v10909_v7 }
 0x2e9   : > { %8032 = vmatpush.bf16.msrb.mxu2 %v10816_v33  ;;  %v11277_v12 = vld [vmem:[%s14114_s10 + $0x10f0] sm:$0xf0]  ;;  %v12829_v14 = vld [vmem:[%s14114_s10 + $0x11e4] sm:$0xf]  ;;  %v11088_v22 = vor.u32 %v12749_v9, %v11085_v10 }
 0x2ea   : > { %8045 = vmatpush.bf16.msrb.mxu3 %v10944_v41  ;;  %v11405_v16 = vld [vmem:[%s14114_s10 + $0x11f0] sm:$0xf0]  ;;  %v12861_v19 = vld [vmem:[%s14114_s10 + $0x12e4] sm:$0xf]  ;;  %v11280_v23 = vor.u32 %v12797_v62, %v11277_v12 }
 0x2eb   : > { %8055 = vmatpush.bf16.msra.mxu0 %v11120_v43  ;;  %v11533_v5 = vld [vmem:[%s14114_s10 + $0x12f0] sm:$0xf0]  ;;  %v11408_v26 = vor.u32 %v12829_v14, %v11405_v16  ;;  %v12745_v31 = vld [vmem:[%s14114_s10 + $0xf44] sm:$0xf] }
 0x2ec   : > { %8020 = vmatpush.bf16.msrb.mxu1 %v10672_v60  ;;  %v11069_v33 = vld [vmem:[%s14114_s10 + $0xf50] sm:$0xf0]  ;;  %v12793_v35 = vld [vmem:[%s14114_s10 + $0x10c4] sm:$0xf]  ;;  %v11536_v36 = vor.u32 %v12861_v19, %v11533_v5 }
 0x2ed   : > { %8033 = vmatpush.bf16.msrb.mxu2 %v10800_v61  ;;  %v11261_v41 = vld [vmem:[%s14114_s10 + $0x10d0] sm:$0xf0]  ;;  %v12825_v43 = vld [vmem:[%s14114_s10 + $0x11c4] sm:$0xf]  ;;  %v11072_v56 = vor.u32 %v12745_v31, %v11069_v33 }
 0x2ee   : > { %8046 = vmatpush.bf16.msrb.mxu3 %v10928_v45  ;;  %v11389_v48 = vld [vmem:[%s14114_s10 + $0x11d0] sm:$0xf0]  ;;  %v12857_v49 = vld [vmem:[%s14114_s10 + $0x12c4] sm:$0xf]  ;;  %v11264_v57 = vor.u32 %v12793_v35, %v11261_v41 }
 0x2ef   : > { %8056 = vmatpush.bf16.msra.mxu0 %v11104_v3  ;;  %v11517_v52 = vld [vmem:[%s14114_s10 + $0x12d0] sm:$0xf0]  ;;  %v11392_v59 = vor.u32 %v12825_v43, %v11389_v48  ;;  %v12741_v60 = vld [vmem:[%s14114_s10 + $0xf24] sm:$0xf]  ;;  %v7802_v19 = vpop.f32.mrf.mxu0 }
 0x2f0   : > { %8021 = vmatpush.bf16.msrb.mxu1 %v10656_v17  ;;  %v11053_v61 = vld [vmem:[%s14114_s10 + $0xf30] sm:$0xf0]  ;;  %v12789_v63 = vld [vmem:[%s14114_s10 + $0x10a4] sm:$0xf]  ;;  %v11520_v0 = vor.u32 %v12857_v49, %v11517_v52  ;;  %v7815_v31 = vpop.f32.mrf.mxu1 }
 0x2f1   : > { %8034 = vmatpush.bf16.msrb.mxu2 %v10784_v18  ;;  %v11245_v2 = vld [vmem:[%s14114_s10 + $0x10b0] sm:$0xf0]  ;;  %v12821_v45 = vld [vmem:[%s14114_s10 + $0x11a4] sm:$0xf]  ;;  %v11056_v7 = vor.u32 %v12741_v60, %v11053_v61 }
 0x2f2   : > { %8047 = vmatpush.bf16.msrb.mxu3 %v10912_v21  ;;  %v11373_v3 = vld [vmem:[%s14114_s10 + $0x11b0] sm:$0xf0]  ;;  %v12853_v4 = vld [vmem:[%s14114_s10 + $0x12a4] sm:$0xf]  ;;  %v11248_v9 = vor.u32 %v12789_v63, %v11245_v2 }
 0x2f3   : > { %8057 = vmatpush.bf16.msra.mxu0 %v11088_v22  ;;  %8022 = vmatmul.bf16.vlgmr.msrb.gmra.mxu1 %v14450_v32  ;;  %v11501_v6 = vld [vmem:[%s14114_s10 + $0x12b0] sm:$0xf0]  ;;  %v12737_v8 = vld [vmem:[%s14114_s10 + $0xf04] sm:$0xf]  ;;  %v11376_v10 = vor.u32 %v12821_v45, %v11373_v3 }
 0x2f4   : > { %8066 = vmatpush.bf16.msra.mxu1 %v11280_v23  ;;  %8035 = vmatmul.bf16.vlgmr.msrb.gmra.mxu2 %v14457_v40  ;;  %v11037_v62 = vld [vmem:[%s14114_s10 + $0xf10] sm:$0xf0]  ;;  %v12785_v11 = vld [vmem:[%s14114_s10 + $0x1084] sm:$0xf]  ;;  %v11504_v14 = vor.u32 %v12853_v4, %v11501_v6  ;;  %v7803_v23 = vadd.f32 %v7802_v19, %v14889_v27 }
 0x2f5   : > { %8079 = vmatpush.bf16.msra.mxu2 %v11408_v26  ;;  %8048 = vmatmul.bf16.vlgmr.msrb.gmra.mxu3 %v14455_v37  ;;  %v11229_v12 = vld [vmem:[%s14114_s10 + $0x1090] sm:$0xf0]  ;;  %v12817_v16 = vld [vmem:[%s14114_s10 + $0x1184] sm:$0xf]  ;;  %v11040_v26 = vor.u32 %v12737_v8, %v11037_v62 }
 0x2f6   : > { %8092 = vmatpush.bf16.msra.mxu3 %v11536_v36  ;;  %v11357_v17 = vld [vmem:[%s14114_s10 + $0x1190] sm:$0xf0]  ;;  %v12849_v18 = vld [vmem:[%s14114_s10 + $0x1284] sm:$0xf]  ;;  %v11232_v33 = vor.u32 %v12785_v11, %v11229_v12  ;;  %v7816_v48 = vadd.f32 %v7815_v31, %v7803_v23 }
 0x2f7   : > { %8058 = vmatpush.bf16.msra.mxu0 %v11072_v56  ;;  %v11485_v5 = vld [vmem:[%s14114_s10 + $0x1290] sm:$0xf0]  ;;  %v12893_v21 = vld [vmem:[%s14114_s10 + $0x13e4] sm:$0xf]  ;;  %v11360_v35 = vor.u32 %v12817_v16, %v11357_v17  ;;  %v7828_v3 = vpop.f32.mrf.mxu2 }
 0x2f8   : > { %8067 = vmatpush.bf16.msra.mxu1 %v11264_v57  ;;  %v11661_v22 = vld [vmem:[%s14114_s10 + $0x13f0] sm:$0xf0]  ;;  %v12781_v36 = vld [vmem:[%s14114_s10 + $0x1064] sm:$0xf]  ;;  %v11488_v43 = vor.u32 %v12849_v18, %v11485_v5  ;;  %v7841_v62 = vpop.f32.mrf.mxu3  ;;  %v7817_v16 = vpop.f32.mrf.mxu1 }
 0x2f9   : > { %8080 = vmatpush.bf16.msra.mxu2 %v11392_v59  ;;  %v11213_v41 = vld [vmem:[%s14114_s10 + $0x1070] sm:$0xf0]  ;;  %v11664_v49 = vor.u32 %v12893_v21, %v11661_v22  ;;  %v12813_v52 = vld [vmem:[%s14114_s10 + $0x1164] sm:$0xf] }
 0x2fa   : > { %8093 = vmatpush.bf16.msra.mxu3 %v11520_v0  ;;  %v11341_v56 = vld [vmem:[%s14114_s10 + $0x1170] sm:$0xf0]  ;;  %v12845_v27 = vld [vmem:[%s14114_s10 + $0x1264] sm:$0xf]  ;;  %v11216_v61 = vor.u32 %v12781_v36, %v11213_v41 }
 0x2fb   : > { %8059 = vmatpush.bf16.msra.mxu0 %v11056_v7  ;;  %v11469_v57 = vld [vmem:[%s14114_s10 + $0x1270] sm:$0xf0]  ;;  %v12889_v59 = vld [vmem:[%s14114_s10 + $0x13c4] sm:$0xf]  ;;  %v11344_v63 = vor.u32 %v12813_v52, %v11341_v56 }
 0x2fc   : > { %8068 = vmatpush.bf16.msra.mxu1 %v11248_v9  ;;  %v11645_v60 = vld [vmem:[%s14114_s10 + $0x13d0] sm:$0xf0]  ;;  %v12777_v0 = vld [vmem:[%s14114_s10 + $0x1044] sm:$0xf]  ;;  %v11472_v45 = vor.u32 %v12845_v27, %v11469_v57  ;;  %v7829_v9 = vadd.f32 %v7828_v3, %v7816_v48 }
 0x2fd   : > { %8081 = vmatpush.bf16.msra.mxu2 %v11376_v10  ;;  %v11197_v2 = vld [vmem:[%s14114_s10 + $0x1050] sm:$0xf0]  ;;  %v11648_v4 = vor.u32 %v12889_v59, %v11645_v60  ;;  %v12809_v6 = vld [vmem:[%s14114_s10 + $0x1144] sm:$0xf]  ;;  %v7804_v10 = vpop.f32.mrf.mxu0 }
 0x2fe   : > { %8094 = vmatpush.bf16.msra.mxu3 %v11504_v14  ;;  %v11325_v7 = vld [vmem:[%s14114_s10 + $0x1150] sm:$0xf0]  ;;  %v12841_v8 = vld [vmem:[%s14114_s10 + $0x1244] sm:$0xf]  ;;  %v7842_v17 = vadd.f32 %v7841_v62, %v7829_v9  ;;  %v11200_v18 = vor.u32 %v12777_v0, %v11197_v2 }
 0x2ff   : > { %8060 = vmatpush.bf16.msra.mxu0 %v11040_v26  ;;  %v11453_v11 = vld [vmem:[%s14114_s10 + $0x1250] sm:$0xf0]  ;;  %v12885_v12 = vld [vmem:[%s14114_s10 + $0x13a4] sm:$0xf]  ;;  %v11328_v19 = vor.u32 %v12809_v6, %v11325_v7 }
 0x300   : > { %8069 = vmatpush.bf16.msra.mxu1 %v11232_v33  ;;  %v11629_v14 = vld [vmem:[%s14114_s10 + $0x13b0] sm:$0xf0]  ;;  %v12773_v5 = vld [vmem:[%s14114_s10 + $0x1024] sm:$0xf]  ;;  %v11456_v22 = vor.u32 %v12841_v8, %v11453_v11  ;;  %v7843_v3 = vpop.f32.mrf.mxu3 }
 0x301   : > { %8082 = vmatpush.bf16.msra.mxu2 %v11360_v35  ;;  %v11181_v21 = vld [vmem:[%s14114_s10 + $0x1030] sm:$0xf0]  ;;  %v11632_v23 = vor.u32 %v12885_v12, %v11629_v14  ;;  %v12805_v26 = vld [vmem:[%s14114_s10 + $0x1124] sm:$0xf] }
 0x302   : > { %8095 = vmatpush.bf16.msra.mxu3 %v11488_v43  ;;  %8061 = vmatmul.bf16.vlgmr.msra.gmra.mxu0 %v14461_v44  ;;  %v11309_v31 = vld [vmem:[%s14114_s10 + $0x1130] sm:$0xf0]  ;;  %v12837_v33 = vld [vmem:[%s14114_s10 + $0x1224] sm:$0xf]  ;;  %v11184_v43 = vor.u32 %v12773_v5, %v11181_v21 }
 0x303   : > { %8105 = vmatpush.bf16.msrb.mxu0 %v11664_v49  ;;  %v11437_v35 = vld [vmem:[%s14114_s10 + $0x1230] sm:$0xf0]  ;;  %v12881_v36 = vld [vmem:[%s14114_s10 + $0x1384] sm:$0xf]  ;;  %v11312_v48 = vor.u32 %v12805_v26, %v11309_v31 }
 0x304   : > { %8070 = vmatpush.bf16.msra.mxu1 %v11216_v61  ;;  %v11613_v41 = vld [vmem:[%s14114_s10 + $0x1390] sm:$0xf0]  ;;  %v12769_v49 = vld [vmem:[%s14114_s10 + $0x1004] sm:$0xf]  ;;  %v11440_v27 = vor.u32 %v12837_v33, %v11437_v35 }
 0x305   : > { %8083 = vmatpush.bf16.msra.mxu2 %v11344_v63  ;;  %v11165_v52 = vld [vmem:[%s14114_s10 + $0x1010] sm:$0xf0]  ;;  %v12801_v56 = vld [vmem:[%s14114_s10 + $0x1104] sm:$0xf]  ;;  %v11616_v57 = vor.u32 %v12881_v36, %v11613_v41  ;;  %v7830_v63 = vpop.f32.mrf.mxu2 }
 0x306   : > { %8096 = vmatpush.bf16.msra.mxu3 %v11472_v45  ;;  %v11293_v59 = vld [vmem:[%s14114_s10 + $0x1110] sm:$0xf0]  ;;  %v12833_v60 = vld [vmem:[%s14114_s10 + $0x1204] sm:$0xf]  ;;  %v11168_v10 = vor.u32 %v12769_v49, %v11165_v52 }
 0x307   : > { %8106 = vmatpush.bf16.msrb.mxu0 %v11648_v4  ;;  %v11421_v61 = vld [vmem:[%s14114_s10 + $0x1210] sm:$0xf0]  ;;  %v12877_v0 = vld [vmem:[%s14114_s10 + $0x1364] sm:$0xf]  ;;  %v7854_v4 = vpop.f32.mrf.mxu0  ;;  %v11296_v62 = vor.u32 %v12801_v56, %v11293_v59 }
 0x308   : > { %8071 = vmatpush.bf16.msra.mxu1 %v11200_v18  ;;  %v11597_v2 = vld [vmem:[%s14114_s10 + $0x1370] sm:$0xf0]  ;;  %v12925_v45 = vld [vmem:[%s14114_s10 + $0x14e4] sm:$0xf]  ;;  %v14980_v9 = vadd.f32 %v7854_v4, %v7842_v17  ;;  %v11424_v14 = vor.u32 %v12833_v60, %v11421_v61 }
 0x309   : > { %8084 = vmatpush.bf16.msra.mxu2 %v11328_v19  ;;  %v11789_v6 = vld [vmem:[%s14114_s10 + $0x14f0] sm:$0xf0]  ;;  %v12957_v7 = vld [vmem:[%s14114_s10 + $0x15e4] sm:$0xf]  ;;  %v11600_v16 = vor.u32 %v12877_v0, %v11597_v2 }
 0x30a   : > { %8097 = vmatpush.bf16.msra.mxu3 %v11456_v22  ;;  %v11917_v8 = vld [vmem:[%s14114_s10 + $0x15f0] sm:$0xf0]  ;;  %v12989_v11 = vld [vmem:[%s14114_s10 + $0x16e4] sm:$0xf]  ;;  %v11792_v18 = vor.u32 %v12925_v45, %v11789_v6 }
 0x30b   : > { %8107 = vmatpush.bf16.msrb.mxu0 %v11632_v23  ;;  %v12045_v12 = vld [vmem:[%s14114_s10 + $0x16f0] sm:$0xf0]  ;;  %v11920_v19 = vor.u32 %v12957_v7, %v11917_v8  ;;  %v12873_v5 = vld [vmem:[%s14114_s10 + $0x1344] sm:$0xf] }
 0x30c   : > { %8072 = vmatpush.bf16.msra.mxu1 %v11184_v43  ;;  %v11581_v21 = vld [vmem:[%s14114_s10 + $0x1350] sm:$0xf0]  ;;  %v12921_v22 = vld [vmem:[%s14114_s10 + $0x14c4] sm:$0xf]  ;;  %v12048_v17 = vor.u32 %v12989_v11, %v12045_v12  ;;  %v13116_v12 = vld [vmem:[%s14107_s30] sm:$0xf] }
 0x30d   : > { %8085 = vmatpush.bf16.msra.mxu2 %v11312_v48  ;;  %v11773_v23 = vld [vmem:[%s14114_s10 + $0x14d0] sm:$0xf0]  ;;  %v12953_v26 = vld [vmem:[%s14114_s10 + $0x15c4] sm:$0xf]  ;;  %v11584_v36 = vor.u32 %v12873_v5, %v11581_v21 }
 0x30e   : > { %8098 = vmatpush.bf16.msra.mxu3 %v11440_v27  ;;  %v11901_v31 = vld [vmem:[%s14114_s10 + $0x15d0] sm:$0xf0]  ;;  %v12985_v33 = vld [vmem:[%s14114_s10 + $0x16c4] sm:$0xf]  ;;  %v11776_v41 = vor.u32 %v12921_v22, %v11773_v23 }
 0x30f   : > { %8108 = vmatpush.bf16.msrb.mxu0 %v11616_v57  ;;  %v12029_v35 = vld [vmem:[%s14114_s10 + $0x16d0] sm:$0xf0]  ;;  %v11904_v43 = vor.u32 %v12953_v26, %v11901_v31  ;;  %v12869_v48 = vld [vmem:[%s14114_s10 + $0x1324] sm:$0xf]  ;;  %v7856_v60 = vpop.f32.mrf.mxu0 }
 0x310   : > { %8073 = vmatpush.bf16.msra.mxu1 %v11168_v10  ;;  %v11565_v49 = vld [vmem:[%s14114_s10 + $0x1330] sm:$0xf0]  ;;  %v12917_v52 = vld [vmem:[%s14114_s10 + $0x14a4] sm:$0xf]  ;;  %v12032_v56 = vor.u32 %v12985_v33, %v12029_v35  ;;  %v7867_v21 = vpop.f32.mrf.mxu1 }
 0x311   : > { %8086 = vmatpush.bf16.msra.mxu2 %v11296_v62  ;;  %v11757_v27 = vld [vmem:[%s14114_s10 + $0x14b0] sm:$0xf0]  ;;  %v12949_v57 = vld [vmem:[%s14114_s10 + $0x15a4] sm:$0xf]  ;;  %v11568_v0 = vor.u32 %v12869_v48, %v11565_v49 }
 0x312   : > { %8099 = vmatpush.bf16.msra.mxu3 %v11424_v14  ;;  %v11885_v59 = vld [vmem:[%s14114_s10 + $0x15b0] sm:$0xf0]  ;;  %v12981_v61 = vld [vmem:[%s14114_s10 + $0x16a4] sm:$0xf]  ;;  %v11760_v3 = vor.u32 %v12917_v52, %v11757_v27  ;;  %v3515_v14 = vperm.slane %v13116_v12, 1 }
 0x313   : > { %8109 = vmatpush.bf16.msrb.mxu0 %v11600_v16  ;;  %8074 = vmatmul.bf16.vlgmr.msra.gmra.mxu1 %v14532_v46  ;;  %v12013_v63 = vld [vmem:[%s14114_s10 + $0x16b0] sm:$0xf0]  ;;  %v12865_v2 = vld [vmem:[%s14114_s10 + $0x1304] sm:$0xf]  ;;  %v11888_v4 = vor.u32 %v12949_v57, %v11885_v59 }
 0x314   : > { %8118 = vmatpush.bf16.msrb.mxu1 %v11792_v18  ;;  %8087 = vmatmul.bf16.vlgmr.msra.gmra.mxu2 %v14539_v55  ;;  %v11549_v45 = vld [vmem:[%s14114_s10 + $0x1310] sm:$0xf0]  ;;  %v12913_v6 = vld [vmem:[%s14114_s10 + $0x1484] sm:$0xf]  ;;  %v12016_v10 = vor.u32 %v12981_v61, %v12013_v63 }
 0x315   : > { %8131 = vmatpush.bf16.msrb.mxu2 %v11920_v19  ;;  %8100 = vmatmul.bf16.vlgmr.msra.gmra.mxu3 %v14537_v54  ;;  %v11741_v7 = vld [vmem:[%s14114_s10 + $0x1490] sm:$0xf0]  ;;  %v12945_v8 = vld [vmem:[%s14114_s10 + $0x1584] sm:$0xf]  ;;  %v11552_v5 = vor.u32 %v12865_v2, %v11549_v45 }
 0x316   : > { %8144 = vmatpush.bf16.msrb.mxu3 %v12048_v17  ;;  %v11869_v62 = vld [vmem:[%s14114_s10 + $0x1590] sm:$0xf0]  ;;  %v12977_v11 = vld [vmem:[%s14114_s10 + $0x1684] sm:$0xf]  ;;  %v11744_v22 = vor.u32 %v12913_v6, %v11741_v7 }
 0x317   : > { %8110 = vmatpush.bf16.msrb.mxu0 %v11584_v36  ;;  %v11997_v16 = vld [vmem:[%s14114_s10 + $0x1690] sm:$0xf0]  ;;  %v13021_v18 = vld [vmem:[%s14114_s10 + $0x17e4] sm:$0xf]  ;;  %v11872_v17 = vor.u32 %v12945_v8, %v11869_v62  ;;  %v7880_v60 = vpop.f32.mrf.mxu2 }
 0x318   : > { %8119 = vmatpush.bf16.msrb.mxu1 %v11776_v41  ;;  %v12173_v19 = vld [vmem:[%s14114_s10 + $0x17f0] sm:$0xf0]  ;;  %v12909_v23 = vld [vmem:[%s14114_s10 + $0x1464] sm:$0xf]  ;;  %v12000_v31 = vor.u32 %v12977_v11, %v11997_v16  ;;  %v7869_v62 = vpop.f32.mrf.mxu1 }
 0x319   : > { %8132 = vmatpush.bf16.msrb.mxu2 %v11904_v43  ;;  %v11725_v26 = vld [vmem:[%s14114_s10 + $0x1470] sm:$0xf0]  ;;  %v12176_v33 = vor.u32 %v13021_v18, %v12173_v19  ;;  %v12941_v35 = vld [vmem:[%s14114_s10 + $0x1564] sm:$0xf]  ;;  %v7868_v43 = vadd.f32 %v7867_v21, %v3515_v14 }
 0x31a   : > { %8145 = vmatpush.bf16.msrb.mxu3 %v12032_v56  ;;  %v11853_v36 = vld [vmem:[%s14114_s10 + $0x1570] sm:$0xf0]  ;;  %v12973_v41 = vld [vmem:[%s14114_s10 + $0x1664] sm:$0xf]  ;;  %v11728_v56 = vor.u32 %v12909_v23, %v11725_v26 }
 0x31b   : > { %8111 = vmatpush.bf16.msrb.mxu0 %v11568_v0  ;;  %v11981_v48 = vld [vmem:[%s14114_s10 + $0x1670] sm:$0xf0]  ;;  %v13017_v49 = vld [vmem:[%s14114_s10 + $0x17c4] sm:$0xf]  ;;  %v11856_v27 = vor.u32 %v12941_v35, %v11853_v36 }
 0x31c   : > { %8120 = vmatpush.bf16.msrb.mxu1 %v11760_v3  ;;  %v12157_v52 = vld [vmem:[%s14114_s10 + $0x17d0] sm:$0xf0]  ;;  %v12905_v57 = vld [vmem:[%s14114_s10 + $0x1444] sm:$0xf]  ;;  %v11984_v61 = vor.u32 %v12973_v41, %v11981_v48  ;;  %v7881_v3 = vadd.f32 %v7880_v60, %v7868_v43 }
 0x31d   : > { %8133 = vmatpush.bf16.msrb.mxu2 %v11888_v4  ;;  %v11709_v59 = vld [vmem:[%s14114_s10 + $0x1450] sm:$0xf0]  ;;  %v12160_v63 = vor.u32 %v13017_v49, %v12157_v52  ;;  %v12937_v0 = vld [vmem:[%s14114_s10 + $0x1544] sm:$0xf]  ;;  %v7893_v4 = vpop.f32.mrf.mxu3 }
 0x31e   : > { %8146 = vmatpush.bf16.msrb.mxu3 %v12016_v10  ;;  %v11837_v2 = vld [vmem:[%s14114_s10 + $0x1550] sm:$0xf0]  ;;  %v12969_v45 = vld [vmem:[%s14114_s10 + $0x1644] sm:$0xf]  ;;  %v7894_v10 = vadd.f32 %v7893_v4, %v7881_v3  ;;  %v11712_v11 = vor.u32 %v12905_v57, %v11709_v59  ;;  %v12288_v3 = vld [vmem:[%s14114_s10 + $0xf4] sm:$0xf0] }
 0x31f   : > { %8112 = vmatpush.bf16.msrb.mxu0 %v11552_v5  ;;  %v11965_v6 = vld [vmem:[%s14114_s10 + $0x1650] sm:$0xf0]  ;;  %v13013_v7 = vld [vmem:[%s14114_s10 + $0x17a4] sm:$0xf]  ;;  %v11840_v12 = vor.u32 %v12937_v0, %v11837_v2  ;;  %v7882_v49 = vpop.f32.mrf.mxu2 }
 0x320   : > { %8121 = vmatpush.bf16.msrb.mxu1 %v11744_v22  ;;  %v12141_v8 = vld [vmem:[%s14114_s10 + $0x17b0] sm:$0xf0]  ;;  %v12901_v14 = vld [vmem:[%s14114_s10 + $0x1424] sm:$0xf]  ;;  %v11968_v18 = vor.u32 %v12969_v45, %v11965_v6  ;;  %v9235_v45 = vld [vmem:[%s14114_s10 + $0xe8] sm:$0xf] }
 0x321   : > { %8134 = vmatpush.bf16.msrb.mxu2 %v11872_v17  ;;  %v11693_v16 = vld [vmem:[%s14114_s10 + $0x1430] sm:$0xf0]  ;;  %v12144_v19 = vor.u32 %v13013_v7, %v12141_v8  ;;  %v12933_v5 = vld [vmem:[%s14114_s10 + $0x1524] sm:$0xf]  ;;  %v9363_v7 = vld [vmem:[%s14114_s10 + $0x1e8] sm:$0xf] }
 0x322   : > { %8147 = vmatpush.bf16.msrb.mxu3 %v12000_v31  ;;  %8113 = vmatmul.bf16.vlgmr.msrb.gmra.mxu0 %v14543_v58  ;;  %v11821_v21 = vld [vmem:[%s14114_s10 + $0x1530] sm:$0xf0]  ;;  %v12965_v22 = vld [vmem:[%s14114_s10 + $0x1624] sm:$0xf]  ;;  %v7906_v31 = vpop.f32.mrf.mxu0  ;;  %v12320_v8 = vld [vmem:[%s14114_s10 + $0x1f4] sm:$0xf0] }
 0x323   : > { %8157 = vmatpush.bf16.msra.mxu0 %v12176_v33  ;;  %v11949_v17 = vld [vmem:[%s14114_s10 + $0x1630] sm:$0xf0]  ;;  %v13009_v23 = vld [vmem:[%s14114_s10 + $0x1784] sm:$0xf]  ;;  %v11696_v33 = vor.u32 %v12901_v14, %v11693_v16  ;;  %v11824_v35 = vor.u32 %v12933_v5, %v11821_v21  ;;  %v15042_v48 = vadd.f32 %v7906_v31, %v7894_v10  ;;  %v9219_v21 = vld [vmem:[%s14114_s10 + $0xc8] sm:$0xf] }
 0x324   : > { %8122 = vmatpush.bf16.msrb.mxu1 %v11728_v56  ;;  %v12125_v26 = vld [vmem:[%s14114_s10 + $0x1790] sm:$0xf0]  ;;  %v12897_v36 = vld [vmem:[%s14114_s10 + $0x1404] sm:$0xf]  ;;  %v11952_v52 = vor.u32 %v12965_v22, %v11949_v17  ;;  %v12284_v22 = vld [vmem:[%s14114_s10 + $0xd4] sm:$0xf0] }
 0x325   : > { %8135 = vmatpush.bf16.msrb.mxu2 %v11856_v27  ;;  %v11677_v41 = vld [vmem:[%s14114_s10 + $0x1410] sm:$0xf0]  ;;  %v12929_v43 = vld [vmem:[%s14114_s10 + $0x1504] sm:$0xf]  ;;  %v12128_v56 = vor.u32 %v13009_v23, %v12125_v26  ;;  %v7895_v60 = vpop.f32.mrf.mxu3  ;;  %v9347_v23 = vld [vmem:[%s14114_s10 + $0x1c8] sm:$0xf] }
 0x326   : > { %8148 = vmatpush.bf16.msrb.mxu3 %v11984_v61  ;;  %v11805_v27 = vld [vmem:[%s14114_s10 + $0x1510] sm:$0xf0]  ;;  %v12961_v57 = vld [vmem:[%s14114_s10 + $0x1604] sm:$0xf]  ;;  %v11680_v4 = vor.u32 %v12897_v36, %v11677_v41  ;;  %v12316_v26 = vld [vmem:[%s14114_s10 + $0x1d4] sm:$0xf0] }
 0x327   : > { %8158 = vmatpush.bf16.msra.mxu0 %v12160_v63  ;;  %v11933_v59 = vld [vmem:[%s14114_s10 + $0x1610] sm:$0xf0]  ;;  %v13005_v61 = vld [vmem:[%s14114_s10 + $0x1764] sm:$0xf]  ;;  %v11808_v6 = vor.u32 %v12929_v43, %v11805_v27  ;;  %v9348_v49 = vor.u32 %v12316_v26, %v9347_v23  ;;  %v12280_v27 = vld [vmem:[%s14114_s10 + $0xb4] sm:$0xf0] }
 0x328   : > { %8123 = vmatpush.bf16.msrb.mxu1 %v11712_v11  ;;  %v12109_v63 = vld [vmem:[%s14114_s10 + $0x1770] sm:$0xf0]  ;;  %v13037_v0 = vld [vmem:[%s14114_s10 + $0x1864] sm:$0xf]  ;;  %v11936_v10 = vor.u32 %v12961_v57, %v11933_v59  ;;  %v9331_v57 = vld [vmem:[%s14114_s10 + $0x1a8] sm:$0xf] }
 0x329   : > { %8136 = vmatpush.bf16.msrb.mxu2 %v11840_v12  ;;  %v12237_v2 = vld [vmem:[%s14114_s10 + $0x1870] sm:$0xf0]  ;;  %v12112_v62 = vor.u32 %v13005_v61, %v12109_v63  ;;  %v9236_v12 = vor.u32 %v12288_v3, %v9235_v45  ;;  %v13001_v14 = vld [vmem:[%s14114_s10 + $0x1744] sm:$0xf]  ;;  %v12312_v59 = vld [vmem:[%s14114_s10 + $0x1b4] sm:$0xf0] }
 0x32a   : > { %8149 = vmatpush.bf16.msrb.mxu3 %v11968_v18  ;;  %v12240_v11 = vor.u32 %v13037_v0, %v12237_v2  ;;  %v12093_v16 = vld [vmem:[%s14114_s10 + $0x1750] sm:$0xf0]  ;;  %v13033_v18 = vld [vmem:[%s14114_s10 + $0x1844] sm:$0xf]  ;;  %v7908_v17 = vpop.f32.mrf.mxu0  ;;  %v9171_v23 = vld [vmem:[%s14114_s10 + $0x68] sm:$0xf] }
 0x32b   : > { %8159 = vmatpush.bf16.msra.mxu0 %v12144_v19  ;;  %v9364_v19 = vor.u32 %v12320_v8, %v9363_v7  ;;  %v12221_v5 = vld [vmem:[%s14114_s10 + $0x1850] sm:$0xf0]  ;;  %v12096_v31 = vor.u32 %v13001_v14, %v12093_v16  ;;  %v12997_v36 = vld [vmem:[%s14114_s10 + $0x1724] sm:$0xf]  ;;  %v12276_v7 = vld [vmem:[%s14114_s10 + $0x94] sm:$0xf0] }
 0x32c   : > { %8124 = vmatpush.bf16.msrb.mxu1 %v11696_v33  ;;  %v12224_v33 = vor.u32 %v13033_v18, %v12221_v5  ;;  %v12077_v41 = vld [vmem:[%s14114_s10 + $0x1730] sm:$0xf0]  ;;  %v13029_v43 = vld [vmem:[%s14114_s10 + $0x1824] sm:$0xf]  ;;  %v9315_v8 = vld [vmem:[%s14114_s10 + $0x188] sm:$0xf] }
 0x32d   : > { %8137 = vmatpush.bf16.msrb.mxu2 %v11824_v35  ;;  %v9220_v35 = vor.u32 %v12284_v22, %v9219_v21  ;;  %v12080_v60 = vor.u32 %v12997_v36, %v12077_v41  ;;  %v12993_v61 = vld [vmem:[%s14114_s10 + $0x1704] sm:$0xf]  ;;  %v12061_v2 = vld [vmem:[%s14114_s10 + $0x1710] sm:$0xf0]  ;;  %v9619_v14 = vld [vmem:[%s14114_s10 + $0x3e8] sm:$0xf] }
 0x32e   : > { %8150 = vmatpush.bf16.msrb.mxu3 %v11952_v52  ;;  %v12205_v52 = vld [vmem:[%s14114_s10 + $0x1830] sm:$0xf0]  ;;  %v13025_v45 = vld [vmem:[%s14114_s10 + $0x1804] sm:$0xf]  ;;  %v12384_v16 = vld [vmem:[%s14114_s10 + $0x3f4] sm:$0xf0] }
 0x32f   : > { %8160 = vmatpush.bf16.msra.mxu0 %v12128_v56  ;;  %v9203_v56 = vld [vmem:[%s14114_s10 + $0xa8] sm:$0xf]  ;;  %v12208_v63 = vor.u32 %v13029_v43, %v12205_v52  ;;  %v12189_v3 = vld [vmem:[%s14114_s10 + $0x1810] sm:$0xf0]  ;;  %v12272_v26 = vld [vmem:[%s14114_s10 + $0x74] sm:$0xf0] }
 0x330   : > { %8125 = vmatpush.bf16.msrb.mxu1 %v11680_v4  ;;  %v9204_v0 = vor.u32 %v12280_v27, %v9203_v56  ;;  %v9332_v4 = vor.u32 %v12312_v59, %v9331_v57  ;;  %v7919_v18 = vpop.f32.mrf.mxu1  ;;  %v9475_v36 = vld [vmem:[%s14114_s10 + $0x2c8] sm:$0xf]  ;;  %v12348_v41 = vld [vmem:[%s14114_s10 + $0x2d4] sm:$0xf0] }
 0x331   : > { %8138 = vmatpush.bf16.msrb.mxu2 %v11808_v6  ;;  %v9187_v6 = vld [vmem:[%s14114_s10 + $0x88] sm:$0xf]  ;;  %v7920_v21 = vadd.f32 %v7919_v18, %v15042_v48  ;;  %v9172_v48 = vor.u32 %v12272_v26, %v9171_v23  ;;  %v9476_v27 = vor.u32 %v12348_v41, %v9475_v36  ;;  %v12268_v59 = vld [vmem:[%s14114_s10 + $0x54] sm:$0xf0] }
 0x332   : > { %8151 = vmatpush.bf16.msrb.mxu3 %v11936_v10  ;;  %v12308_v10 = vld [vmem:[%s14114_s10 + $0x194] sm:$0xf0]  ;;  %v9188_v5 = vor.u32 %v12276_v7, %v9187_v6  ;;  %v9603_v43 = vld [vmem:[%s14114_s10 + $0x3c8] sm:$0xf] }
 0x333   : > { %8161 = vmatpush.bf16.msra.mxu0 %v12112_v62  ;;  %8126 = vmatmul.bf16.vlgmr.msrb.gmra.mxu1 %v14617_v20  ;;  %v9491_v62 = vld [vmem:[%s14114_s10 + $0x2e8] sm:$0xf]  ;;  %v9316_v22 = vor.u32 %v12308_v10, %v9315_v8  ;;  %v12376_v6 = vld [vmem:[%s14114_s10 + $0x3b4] sm:$0xf0] }
 0x334   : > { %8174 = vmatpush.bf16.msra.mxu1 %v12240_v11  ;;  %8139 = vmatmul.bf16.vlgmr.msrb.gmra.mxu2 %v14624_v25  ;;  %v12352_v11 = vld [vmem:[%s14114_s10 + $0x2f4] sm:$0xf0]  ;;  %v9155_v57 = vld [vmem:[%s14114_s10 + $0x48] sm:$0xf] }
 0x335   : > { %8183 = vmatpush.bf16.msra.mxu2 %v9236_v12  ;;  %8152 = vmatmul.bf16.vlgmr.msrb.gmra.mxu3 %v14622_v24  ;;  %v12064_v12 = vor.u32 %v12993_v61, %v12061_v2  ;;  %v9492_v17 = vor.u32 %v12352_v11, %v9491_v62  ;;  %v12300_v2 = vld [vmem:[%s14114_s10 + $0x154] sm:$0xf0]  ;;  %v9156_v10 = vor.u32 %v12268_v59, %v9155_v57  ;;  %v9555_v59 = vld [vmem:[%s14114_s10 + $0x368] sm:$0xf] }
 0x336   : > { %8196 = vmatpush.bf16.msra.mxu3 %v9364_v19  ;;  %v12192_v19 = vor.u32 %v13025_v45, %v12189_v3  ;;  %v9459_v45 = vld [vmem:[%s14114_s10 + $0x2a8] sm:$0xf]  ;;  %v12344_v3 = vld [vmem:[%s14114_s10 + $0x2b4] sm:$0xf0] }
 0x337   : > { %8162 = vmatpush.bf16.msra.mxu0 %v12096_v31  ;;  %v9299_v31 = vld [vmem:[%s14114_s10 + $0x168] sm:$0xf]  ;;  %v7932_v52 = vpop.f32.mrf.mxu2  ;;  %v9460_v11 = vor.u32 %v12344_v3, %v9459_v45  ;;  %v12372_v23 = vld [vmem:[%s14114_s10 + $0x394] sm:$0xf0] }
 0x338   : > { %8175 = vmatpush.bf16.msra.mxu1 %v12224_v33  ;;  %v9620_v33 = vor.u32 %v12384_v16, %v9619_v14  ;;  %v7933_v61 = vadd.f32 %v7932_v52, %v7920_v21  ;;  %v7921_v8 = vpop.f32.mrf.mxu1  ;;  %v12264_v14 = vld [vmem:[%s14114_s10 + $0x34] sm:$0xf0]  ;;  %v9267_v16 = vld [vmem:[%s14114_s10 + $0x128] sm:$0xf] }
 0x339   : > { %8184 = vmatpush.bf16.msra.mxu2 %v9220_v35  ;;  %v12304_v35 = vld [vmem:[%s14114_s10 + $0x174] sm:$0xf0]  ;;  %v9411_v8 = vld [vmem:[%s14114_s10 + $0x248] sm:$0xf] }
 0x33a   : > { %8197 = vmatpush.bf16.msra.mxu3 %v9348_v49  ;;  %v12380_v49 = vld [vmem:[%s14114_s10 + $0x3d4] sm:$0xf0]  ;;  %v9300_v56 = vor.u32 %v12304_v35, %v9299_v31 }
 0x33b   : > { %8163 = vmatpush.bf16.msra.mxu0 %v12080_v60  ;;  %v9283_v60 = vld [vmem:[%s14114_s10 + $0x148] sm:$0xf]  ;;  %v12340_v21 = vld [vmem:[%s14114_s10 + $0x294] sm:$0xf0] }
 0x33c   : > { %8176 = vmatpush.bf16.msra.mxu1 %v12208_v63  ;;  %v7945_v63 = vpop.f32.mrf.mxu3  ;;  %v9284_v62 = vor.u32 %v12300_v2, %v9283_v60  ;;  %v12336_v57 = vld [vmem:[%s14114_s10 + $0x274] sm:$0xf0]  ;;  %v9875_v2 = vld [vmem:[%s14114_s10 + $0x5e8] sm:$0xf] }
 0x33d   : > { %8185 = vmatpush.bf16.msra.mxu2 %v9204_v0  ;;  %v9604_v0 = vor.u32 %v12380_v49, %v9603_v43  ;;  %v7946_v7 = vadd.f32 %v7945_v63, %v7933_v61  ;;  %v12260_v43 = vld [vmem:[%s14114_s10 + $0x14] sm:$0xf0]  ;;  %v9251_v49 = vld [vmem:[%s14114_s10 + $0x108] sm:$0xf] }
 0x33e   : > { %8198 = vmatpush.bf16.msra.mxu3 %v9332_v4  ;;  %v9587_v4 = vld [vmem:[%s14114_s10 + $0x3a8] sm:$0xf]  ;;  %v12368_v60 = vld [vmem:[%s14114_s10 + $0x374] sm:$0xf0] }
 0x33f   : > { %8164 = vmatpush.bf16.msra.mxu0 %v12064_v12  ;;  %v9139_v12 = vld [vmem:[%s14114_s10 + $0x28] sm:$0xf]  ;;  %v9588_v18 = vor.u32 %v12376_v6, %v9587_v4  ;;  %v7934_v35 = vpop.f32.mrf.mxu2  ;;  %v12416_v63 = vld [vmem:[%s14114_s10 + $0x4f4] sm:$0xf0]  ;;  %v9556_v6 = vor.u32 %v12368_v60, %v9555_v59 }
 0x340   : > { %8177 = vmatpush.bf16.msra.mxu1 %v12192_v19  ;;  %v12296_v19 = vld [vmem:[%s14114_s10 + $0x134] sm:$0xf0]  ;;  %v9140_v26 = vor.u32 %v12264_v14, %v9139_v12  ;;  %v9747_v61 = vld [vmem:[%s14114_s10 + $0x4e8] sm:$0xf] }
 0x341   : > { %8186 = vmatpush.bf16.msra.mxu2 %v9188_v5  ;;  %v9443_v5 = vld [vmem:[%s14114_s10 + $0x288] sm:$0xf]  ;;  %v9268_v36 = vor.u32 %v12296_v19, %v9267_v16  ;;  %v12448_v45 = vld [vmem:[%s14114_s10 + $0x5f4] sm:$0xf0] }
 0x342   : > { %8199 = vmatpush.bf16.msra.mxu3 %v9316_v22  ;;  %8165 = vmatmul.bf16.vlgmr.msra.gmra.mxu0 %v14628_v28  ;;  %v7958_v22 = vpop.f32.mrf.mxu0  ;;  %v9444_v41 = vor.u32 %v12340_v21, %v9443_v5  ;;  %v12364_v12 = vld [vmem:[%s14114_s10 + $0x354] sm:$0xf0]  ;;  %v9731_v14 = vld [vmem:[%s14114_s10 + $0x4c8] sm:$0xf] }
 0x343   : > { %8209 = vmatpush.bf16.msrb.mxu0 %v9492_v17  ;;  %12250 = vmatmul.msk.bf16.vlgmr.msra.gmra.mxu1 %vm7529_vm1, %v14669_v1  ;;  %v9571_v17 = vld [vmem:[%s14114_s10 + $0x388] sm:$0xf]  ;;  %v15114_v31 = vadd.f32 %v7958_v22, %v7946_v7  ;;  %v9748_v7 = vor.u32 %v12416_v63, %v9747_v61  ;;  %v12412_v16 = vld [vmem:[%s14114_s10 + $0x4d4] sm:$0xf0] }
 0x344   : > { %8222 = vmatpush.bf16.msrb.mxu1 %v9620_v33  ;;  %v9123_v33 = vld [vmem:[%s14114_s10 + $0x8] sm:$0xf]  ;;  %v7947_v52 = vpop.f32.mrf.mxu3  ;;  %v12444_v5 = vld [vmem:[%s14114_s10 + $0x5d4] sm:$0xf0] }
 0x345   : > { %8187 = vmatpush.bf16.msra.mxu2 %v9172_v48  ;;  %v12292_v48 = vld [vmem:[%s14114_s10 + $0x114] sm:$0xf0]  ;;  %v9859_v19 = vld [vmem:[%s14114_s10 + $0x5c8] sm:$0xf] }
 0x346   : > { %8200 = vmatpush.bf16.msra.mxu3 %v9300_v56  ;;  %v9572_v56 = vor.u32 %v12372_v23, %v9571_v17  ;;  %v9252_v3 = vor.u32 %v12292_v48, %v9251_v49  ;;  %v9732_v17 = vor.u32 %v12412_v16, %v9731_v14  ;;  %v9395_v23 = vld [vmem:[%s14114_s10 + $0x228] sm:$0xf]  ;;  %v9860_v35 = vor.u32 %v12444_v5, %v9859_v19  ;;  %v12440_v48 = vld [vmem:[%s14114_s10 + $0x5b4] sm:$0xf0] }
 0x347   : > { %8210 = vmatpush.bf16.msrb.mxu0 %v9476_v27  ;;  %v9427_v27 = vld [vmem:[%s14114_s10 + $0x268] sm:$0xf]  ;;  %v12324_v59 = vld [vmem:[%s14114_s10 + $0x214] sm:$0xf0] }
 0x348   : > { %8223 = vmatpush.bf16.msrb.mxu1 %v9604_v0  ;;  %v9124_v0 = vor.u32 %v12260_v43, %v9123_v33  ;;  %v9428_v4 = vor.u32 %v12336_v57, %v9427_v27  ;;  %v9523_v33 = vld [vmem:[%s14114_s10 + $0x328] sm:$0xf]  ;;  %v12408_v43 = vld [vmem:[%s14114_s10 + $0x4b4] sm:$0xf0] }
 0x349   : > { %8188 = vmatpush.bf16.msra.mxu2 %v9156_v10  ;;  %v12332_v10 = vld [vmem:[%s14114_s10 + $0x254] sm:$0xf0]  ;;  %v9843_v49 = vld [vmem:[%s14114_s10 + $0x5a8] sm:$0xf] }
 0x34a   : > { %8201 = vmatpush.bf16.msra.mxu3 %v9284_v62  ;;  %v9539_v62 = vld [vmem:[%s14114_s10 + $0x348] sm:$0xf]  ;;  %v9412_v21 = vor.u32 %v12332_v10, %v9411_v8  ;;  %v12356_v61 = vld [vmem:[%s14114_s10 + $0x314] sm:$0xf0]  ;;  %v9844_v63 = vor.u32 %v12440_v48, %v9843_v49 }
 0x34b   : > { %8211 = vmatpush.bf16.msrb.mxu0 %v9460_v11  ;;  %v9876_v11 = vor.u32 %v12448_v45, %v9875_v2  ;;  %v9540_v22 = vor.u32 %v12364_v12, %v9539_v62  ;;  %v9507_v60 = vld [vmem:[%s14114_s10 + $0x308] sm:$0xf]  ;;  %v12404_v2 = vld [vmem:[%s14114_s10 + $0x494] sm:$0xf0] }
 0x34c   : > { %8224 = vmatpush.bf16.msrb.mxu1 %v9588_v18  ;;  %v7960_v18 = vpop.f32.mrf.mxu0  ;;  %v9827_v45 = vld [vmem:[%s14114_s10 + $0x588] sm:$0xf]  ;;  %v9508_v12 = vor.u32 %v12356_v61, %v9507_v60  ;;  %v12400_v5 = vld [vmem:[%s14114_s10 + $0x474] sm:$0xf0] }
 0x34d   : > { %8189 = vmatpush.bf16.msra.mxu2 %v9140_v26  ;;  %v12328_v26 = vld [vmem:[%s14114_s10 + $0x234] sm:$0xf0]  ;;  %v10131_v62 = vld [vmem:[%s14114_s10 + $0x7e8] sm:$0xf] }
 0x34e   : > { %8202 = vmatpush.bf16.msra.mxu3 %v9268_v36  ;;  %v12360_v36 = vld [vmem:[%s14114_s10 + $0x334] sm:$0xf0]  ;;  %v9396_v52 = vor.u32 %v12328_v26, %v9395_v23  ;;  %v9683_v19 = vld [vmem:[%s14114_s10 + $0x468] sm:$0xf] }
 0x34f   : > { %8212 = vmatpush.bf16.msrb.mxu0 %v9444_v41  ;;  %v9715_v41 = vld [vmem:[%s14114_s10 + $0x4a8] sm:$0xf]  ;;  %v9524_v27 = vor.u32 %v12360_v36, %v9523_v33  ;;  %v12476_v23 = vld [vmem:[%s14114_s10 + $0x6d4] sm:$0xf0] }
 0x350   : > { %8225 = vmatpush.bf16.msrb.mxu1 %v9572_v56  ;;  %v9379_v56 = vld [vmem:[%s14114_s10 + $0x208] sm:$0xf]  ;;  %v9716_v57 = vor.u32 %v12408_v43, %v9715_v41  ;;  %v12508_v33 = vld [vmem:[%s14114_s10 + $0x7d4] sm:$0xf0] }
 0x351   : > { %8190 = vmatpush.bf16.msra.mxu2 %v9124_v0  ;;  %v9699_v0 = vld [vmem:[%s14114_s10 + $0x488] sm:$0xf]  ;;  %v9380_v10 = vor.u32 %v12324_v59, %v9379_v56  ;;  %v12428_v59 = vld [vmem:[%s14114_s10 + $0x554] sm:$0xf0] }
 0x352   : > { %8203 = vmatpush.bf16.msra.mxu3 %v9252_v3  ;;  %v7971_v3 = vpop.f32.mrf.mxu1  ;;  %v9700_v14 = vor.u32 %v12404_v2, %v9699_v0  ;;  %v10115_v26 = vld [vmem:[%s14114_s10 + $0x7c8] sm:$0xf]  ;;  %v12472_v61 = vld [vmem:[%s14114_s10 + $0x6b4] sm:$0xf0] }
 0x353   : > { %8213 = vmatpush.bf16.msrb.mxu0 %v9428_v4  ;;  %v12436_v4 = vld [vmem:[%s14114_s10 + $0x594] sm:$0xf0]  ;;  %v7972_v8 = vadd.f32 %v7971_v3, %v15114_v31  ;;  %v9667_v48 = vld [vmem:[%s14114_s10 + $0x448] sm:$0xf] }
 0x354   : > { %8226 = vmatpush.bf16.msrb.mxu1 %v9556_v6  ;;  %8191 = vmatmul.bf16.vlgmr.msra.gmra.mxu2 %v14230_v29  ;;  %v10003_v6 = vld [vmem:[%s14114_s10 + $0x6e8] sm:$0xf]  ;;  %v9828_v16 = vor.u32 %v12436_v4, %v9827_v45  ;;  %v12432_v31 = vld [vmem:[%s14114_s10 + $0x574] sm:$0xf0] }
 0x355   : > { %8235 = vmatpush.bf16.msrb.mxu2 %v9748_v7  ;;  %8204 = vmatmul.bf16.vlgmr.msra.gmra.mxu3 %v14233_v30  ;;  %v12480_v7 = vld [vmem:[%s14114_s10 + $0x6f4] sm:$0xf0]  ;;  %v9795_v56 = vld [vmem:[%s14114_s10 + $0x548] sm:$0xf] }
 0x356   : > { %8248 = vmatpush.bf16.msrb.mxu3 %v9876_v11  ;;  %v12512_v11 = vld [vmem:[%s14114_s10 + $0x7f4] sm:$0xf0]  ;;  %v10004_v18 = vor.u32 %v12480_v7, %v10003_v6  ;;  %v9971_v60 = vld [vmem:[%s14114_s10 + $0x6a8] sm:$0xf]  ;;  %v9796_v4 = vor.u32 %v12428_v59, %v9795_v56 }
 0x357   : > { %8214 = vmatpush.bf16.msrb.mxu0 %v9412_v21  ;;  %v9811_v21 = vld [vmem:[%s14114_s10 + $0x568] sm:$0xf]  ;;  %v7984_v41 = vpop.f32.mrf.mxu2  ;;  %v12504_v2 = vld [vmem:[%s14114_s10 + $0x7b4] sm:$0xf0]  ;;  %v9972_v6 = vor.u32 %v12472_v61, %v9971_v60 }
 0x358   : > { %8227 = vmatpush.bf16.msrb.mxu1 %v9540_v22  ;;  %v10132_v22 = vor.u32 %v12512_v11, %v10131_v62  ;;  %v9812_v36 = vor.u32 %v12432_v31, %v9811_v21  ;;  %v7997_v49 = vpop.f32.mrf.mxu3  ;;  %v10099_v0 = vld [vmem:[%s14114_s10 + $0x7a8] sm:$0xf]  ;;  %v12424_v11 = vld [vmem:[%s14114_s10 + $0x534] sm:$0xf0] }
 0x359   : > { %8236 = vmatpush.bf16.msrb.mxu2 %v9732_v17  ;;  %v9987_v17 = vld [vmem:[%s14114_s10 + $0x6c8] sm:$0xf]  ;;  %v10100_v62 = vor.u32 %v12504_v2, %v10099_v0  ;;  %v12576_v60 = vld [vmem:[%s14114_s10 + $0x9f4] sm:$0xf0] }
 0x35a   : > { %8249 = vmatpush.bf16.msrb.mxu3 %v9860_v35  ;;  %v9684_v35 = vor.u32 %v12400_v5, %v9683_v19  ;;  %v9988_v43 = vor.u32 %v12476_v23, %v9987_v17  ;;  %v9651_v7 = vld [vmem:[%s14114_s10 + $0x428] sm:$0xf]  ;;  %v12500_v19 = vld [vmem:[%s14114_s10 + $0x794] sm:$0xf0] }
 0x35b   : > { %8215 = vmatpush.bf16.msrb.mxu0 %v9396_v52  ;;  %v12396_v52 = vld [vmem:[%s14114_s10 + $0x454] sm:$0xf0]  ;;  %v10259_v56 = vld [vmem:[%s14114_s10 + $0x8e8] sm:$0xf] }
 0x35c   : > { %8228 = vmatpush.bf16.msrb.mxu1 %v9524_v27  ;;  %v7985_v27 = vadd.f32 %v7984_v41, %v7972_v8  ;;  %v9668_v3 = vor.u32 %v12396_v52, %v9667_v48  ;;  %v12392_v8 = vld [vmem:[%s14114_s10 + $0x434] sm:$0xf0]  ;;  %v10067_v48 = vld [vmem:[%s14114_s10 + $0x768] sm:$0xf] }
 0x35d   : > { %8237 = vmatpush.bf16.msrb.mxu2 %v9716_v57  ;;  %v10116_v57 = vor.u32 %v12508_v33, %v10115_v26  ;;  %v9652_v21 = vor.u32 %v12392_v8, %v9651_v7  ;;  %v12388_v23 = vld [vmem:[%s14114_s10 + $0x414] sm:$0xf0]  ;;  %v9763_v26 = vld [vmem:[%s14114_s10 + $0x508] sm:$0xf] }
 0x35e   : > { %8250 = vmatpush.bf16.msrb.mxu3 %v9844_v63  ;;  %v7973_v63 = vpop.f32.mrf.mxu1  ;;  %v7998_v45 = vadd.f32 %v7997_v49, %v7985_v27  ;;  %v12420_v33 = vld [vmem:[%s14114_s10 + $0x514] sm:$0xf0]  ;;  %v10387_v59 = vld [vmem:[%s14114_s10 + $0x9e8] sm:$0xf] }
 0x35f   : > { %8216 = vmatpush.bf16.msrb.mxu0 %v9380_v10  ;;  %v9779_v10 = vld [vmem:[%s14114_s10 + $0x528] sm:$0xf]  ;;  %v12464_v49 = vld [vmem:[%s14114_s10 + $0x674] sm:$0xf0]  ;;  %v9764_v61 = vor.u32 %v12420_v33, %v9763_v26 }
 0x360   : > { %8229 = vmatpush.bf16.msrb.mxu1 %v9508_v12  ;;  %v9955_v12 = vld [vmem:[%s14114_s10 + $0x688] sm:$0xf]  ;;  %v9780_v31 = vor.u32 %v12424_v11, %v9779_v10  ;;  %v12496_v52 = vld [vmem:[%s14114_s10 + $0x774] sm:$0xf0] }
 0x361   : > { %8238 = vmatpush.bf16.msrb.mxu2 %v9700_v14  ;;  %v12468_v14 = vld [vmem:[%s14114_s10 + $0x694] sm:$0xf0]  ;;  %v10068_v0 = vor.u32 %v12496_v52, %v10067_v48  ;;  %v10243_v8 = vld [vmem:[%s14114_s10 + $0x8c8] sm:$0xf] }
 0x362   : > { %8251 = vmatpush.bf16.msrb.mxu3 %v9828_v16  ;;  %8217 = vmatmul.bf16.vlgmr.msrb.gmra.mxu0 %v14214_v13  ;;  %v8010_v16 = vpop.f32.mrf.mxu0  ;;  %v9956_v17 = vor.u32 %v12468_v14, %v9955_v12  ;;  %v12544_v27 = vld [vmem:[%s14114_s10 + $0x8f4] sm:$0xf0]  ;;  %v10371_v11 = vld [vmem:[%s14114_s10 + $0x9c8] sm:$0xf] }
 0x363   : > { %8261 = vmatpush.bf16.msra.mxu0 %v10004_v18  ;;  %8230 = vmatmul.bf16.vlgmr.msrb.gmra.mxu1 %v14219_v15  ;;  %v10083_v18 = vld [vmem:[%s14114_s10 + $0x788] sm:$0xf]  ;;  %v15185_v5 = vadd.f32 %v8010_v16, %v7998_v45  ;;  %v10260_v2 = vor.u32 %v12544_v27, %v10259_v56  ;;  %v12492_v7 = vld [vmem:[%s14114_s10 + $0x754] sm:$0xf0] }
 0x364   : > { %8274 = vmatpush.bf16.msra.mxu1 %v10132_v22  ;;  %v9635_v22 = vld [vmem:[%s14114_s10 + $0x408] sm:$0xf]  ;;  %v10084_v41 = vor.u32 %v12500_v19, %v10083_v18  ;;  %v12540_v10 = vld [vmem:[%s14114_s10 + $0x8d4] sm:$0xf0] }
 0x365   : > { %8239 = vmatpush.bf16.msrb.mxu2 %v9684_v35  ;;  %v7986_v35 = vpop.f32.mrf.mxu2  ;;  %v9923_v45 = vld [vmem:[%s14114_s10 + $0x648] sm:$0xf]  ;;  %v12572_v12 = vld [vmem:[%s14114_s10 + $0x9d4] sm:$0xf0]  ;;  %v10244_v18 = vor.u32 %v12540_v10, %v10243_v8 }
 0x366   : > { %8252 = vmatpush.bf16.msrb.mxu3 %v9812_v36  ;;  %v7999_v36 = vpop.f32.mrf.mxu3  ;;  %v9907_v19 = vld [vmem:[%s14114_s10 + $0x628] sm:$0xf]  ;;  %v12536_v26 = vld [vmem:[%s14114_s10 + $0x8b4] sm:$0xf0] }
 0x367   : > { %8262 = vmatpush.bf16.msra.mxu0 %v9988_v43  ;;  %v9939_v43 = vld [vmem:[%s14114_s10 + $0x668] sm:$0xf]  ;;  %v12568_v35 = vld [vmem:[%s14114_s10 + $0x9b4] sm:$0xf0] }
 0x368   : > { %8275 = vmatpush.bf16.msra.mxu1 %v10116_v57  ;;  %v9636_v57 = vor.u32 %v12388_v23, %v9635_v22  ;;  %v9940_v63 = vor.u32 %v12464_v49, %v9939_v43  ;;  %v10035_v22 = vld [vmem:[%s14114_s10 + $0x728] sm:$0xf]  ;;  %v12452_v48 = vld [vmem:[%s14114_s10 + $0x614] sm:$0xf0] }
 0x369   : > { %8240 = vmatpush.bf16.msrb.mxu2 %v9668_v3  ;;  %v12460_v3 = vld [vmem:[%s14114_s10 + $0x654] sm:$0xf0]  ;;  %v10227_v23 = vld [vmem:[%s14114_s10 + $0x8a8] sm:$0xf] }
 0x36a   : > { %8253 = vmatpush.bf16.msrb.mxu3 %v9796_v4  ;;  %v10051_v4 = vld [vmem:[%s14114_s10 + $0x748] sm:$0xf]  ;;  %v9924_v14 = vor.u32 %v12460_v3, %v9923_v45  ;;  %v10228_v49 = vor.u32 %v12536_v26, %v10227_v23  ;;  %v12484_v56 = vld [vmem:[%s14114_s10 + $0x714] sm:$0xf0] }
 0x36b   : > { %8263 = vmatpush.bf16.msra.mxu0 %v9972_v6  ;;  %v10388_v6 = vor.u32 %v12576_v60, %v10387_v59  ;;  %v10052_v16 = vor.u32 %v12492_v7, %v10051_v4  ;;  %v10355_v33 = vld [vmem:[%s14114_s10 + $0x9a8] sm:$0xf]  ;;  %v12532_v59 = vld [vmem:[%s14114_s10 + $0x894] sm:$0xf0] }
 0x36c   : > { %8276 = vmatpush.bf16.msra.mxu1 %v10100_v62  ;;  %v8012_v62 = vpop.f32.mrf.mxu0  ;;  %v10019_v52 = vld [vmem:[%s14114_s10 + $0x708] sm:$0xf]  ;;  %v10356_v27 = vor.u32 %v12568_v35, %v10355_v33 }
 0x36d   : > { %8241 = vmatpush.bf16.msrb.mxu2 %v9652_v21  ;;  %v12456_v21 = vld [vmem:[%s14114_s10 + $0x634] sm:$0xf0]  ;;  %v10339_v60 = vld [vmem:[%s14114_s10 + $0x988] sm:$0xf]  ;;  %v10020_v7 = vor.u32 %v12484_v56, %v10019_v52 }
 0x36e   : > { %8254 = vmatpush.bf16.msrb.mxu3 %v9780_v31  ;;  %v10372_v31 = vor.u32 %v12572_v12, %v10371_v11  ;;  %v9908_v36 = vor.u32 %v12456_v21, %v9907_v19  ;;  %v10643_v4 = vld [vmem:[%s14114_s10 + $0xbe8] sm:$0xf]  ;;  %v12528_v12 = vld [vmem:[%s14114_s10 + $0x874] sm:$0xf0] }
 0x36f   : > { %8264 = vmatpush.bf16.msra.mxu0 %v9956_v17  ;;  %v12488_v17 = vld [vmem:[%s14114_s10 + $0x734] sm:$0xf0]  ;;  %v10195_v11 = vld [vmem:[%s14114_s10 + $0x868] sm:$0xf] }
 0x370   : > { %8277 = vmatpush.bf16.msra.mxu1 %v10084_v41  ;;  %v9891_v41 = vld [vmem:[%s14114_s10 + $0x608] sm:$0xf]  ;;  %v10036_v43 = vor.u32 %v12488_v17, %v10035_v22  ;;  %v12604_v19 = vld [vmem:[%s14114_s10 + $0xad4] sm:$0xf0] }
 0x371   : > { %8242 = vmatpush.bf16.msrb.mxu2 %v9636_v57  ;;  %v10211_v57 = vld [vmem:[%s14114_s10 + $0x888] sm:$0xf]  ;;  %v9892_v3 = vor.u32 %v12452_v48, %v9891_v41  ;;  %v12636_v22 = vld [vmem:[%s14114_s10 + $0xbd4] sm:$0xf0] }
 0x372   : > { %8255 = vmatpush.bf16.msrb.mxu3 %v9764_v61  ;;  %v8023_v61 = vpop.f32.mrf.mxu1  ;;  %v10212_v8 = vor.u32 %v12532_v59, %v10211_v57  ;;  %v10627_v21 = vld [vmem:[%s14114_s10 + $0xbc8] sm:$0xf]  ;;  %v12556_v48 = vld [vmem:[%s14114_s10 + $0x954] sm:$0xf0] }
 0x373   : > { %8265 = vmatpush.bf16.msra.mxu0 %v9940_v63  ;;  %v12564_v63 = vld [vmem:[%s14114_s10 + $0x994] sm:$0xf0]  ;;  %v8024_v45 = vadd.f32 %v8023_v61, %v15185_v5  ;;  %v10179_v35 = vld [vmem:[%s14114_s10 + $0x848] sm:$0xf] }
 0x374   : > { %8278 = vmatpush.bf16.msra.mxu1 %v10068_v0  ;;  %8243 = vmatmul.bf16.vlgmr.msrb.gmra.mxu2 %v14293_v50  ;;  %v10515_v0 = vld [vmem:[%s14114_s10 + $0xae8] sm:$0xf]  ;;  %v10340_v10 = vor.u32 %v12564_v63, %v10339_v60  ;;  %v12560_v5 = vld [vmem:[%s14114_s10 + $0x974] sm:$0xf0] }
 0x375   : > { %8287 = vmatpush.bf16.msra.mxu2 %v10260_v2  ;;  %8256 = vmatmul.bf16.vlgmr.msrb.gmra.mxu3 %v14297_v53  ;;  %v12608_v2 = vld [vmem:[%s14114_s10 + $0xaf4] sm:$0xf0]  ;;  %v10307_v41 = vld [vmem:[%s14114_s10 + $0x948] sm:$0xf] }
 0x376   : > { %8300 = vmatpush.bf16.msra.mxu3 %v10388_v6  ;;  %v12640_v6 = vld [vmem:[%s14114_s10 + $0xbf4] sm:$0xf0]  ;;  %v10516_v62 = vor.u32 %v12608_v2, %v10515_v0  ;;  %v10483_v52 = vld [vmem:[%s14114_s10 + $0xaa8] sm:$0xf]  ;;  %v10308_v63 = vor.u32 %v12556_v48, %v10307_v41 }
 0x377   : > { %8266 = vmatpush.bf16.msra.mxu0 %v9924_v14  ;;  %v10323_v14 = vld [vmem:[%s14114_s10 + $0x968] sm:$0xf]  ;;  %v8036_v23 = vpop.f32.mrf.mxu2  ;;  %v12600_v56 = vld [vmem:[%s14114_s10 + $0xab4] sm:$0xf0] }
 0x378   : > { %8279 = vmatpush.bf16.msra.mxu1 %v10052_v16  ;;  %v10644_v16 = vor.u32 %v12640_v6, %v10643_v4  ;;  %v10324_v17 = vor.u32 %v12560_v5, %v10323_v14  ;;  %v8049_v33 = vpop.f32.mrf.mxu3  ;;  %v10611_v57 = vld [vmem:[%s14114_s10 + $0xba8] sm:$0xf]  ;;  %v12632_v59 = vld [vmem:[%s14114_s10 + $0xbb4] sm:$0xf0]  ;;  %v10484_v0 = vor.u32 %v12600_v56, %v10483_v52 }
 0x379   : > { %8288 = vmatpush.bf16.msra.mxu2 %v10244_v18  ;;  %v10499_v18 = vld [vmem:[%s14114_s10 + $0xac8] sm:$0xf]  ;;  %v10612_v4 = vor.u32 %v12632_v59, %v10611_v57  ;;  %v12552_v6 = vld [vmem:[%s14114_s10 + $0x934] sm:$0xf0] }
 0x37a   : > { %8301 = vmatpush.bf16.msra.mxu3 %v10372_v31  ;;  %v10196_v31 = vor.u32 %v12528_v12, %v10195_v11  ;;  %v10500_v26 = vor.u32 %v12604_v19, %v10499_v18  ;;  %v10163_v2 = vld [vmem:[%s14114_s10 + $0x828] sm:$0xf]  ;;  %v12628_v11 = vld [vmem:[%s14114_s10 + $0xb94] sm:$0xf0] }
 0x37b   : > { %8267 = vmatpush.bf16.msra.mxu0 %v9908_v36  ;;  %v12524_v36 = vld [vmem:[%s14114_s10 + $0x854] sm:$0xf0]  ;;  %v10771_v41 = vld [vmem:[%s14114_s10 + $0xce8] sm:$0xf] }
 0x37c   : > { %8280 = vmatpush.bf16.msra.mxu1 %v10036_v43  ;;  %v8037_v43 = vadd.f32 %v8036_v23, %v8024_v45  ;;  %v10180_v61 = vor.u32 %v12524_v36, %v10179_v35  ;;  %v12520_v45 = vld [vmem:[%s14114_s10 + $0x834] sm:$0xf0]  ;;  %v10579_v35 = vld [vmem:[%s14114_s10 + $0xb68] sm:$0xf] }
 0x37d   : > { %8289 = vmatpush.bf16.msra.mxu2 %v10228_v49  ;;  %v10628_v49 = vor.u32 %v12636_v22, %v10627_v21  ;;  %v10164_v14 = vor.u32 %v12520_v45, %v10163_v2  ;;  %v12516_v19 = vld [vmem:[%s14114_s10 + $0x814] sm:$0xf0]  ;;  %v10275_v21 = vld [vmem:[%s14114_s10 + $0x908] sm:$0xf] }
 0x37e   : > { %8302 = vmatpush.bf16.msra.mxu3 %v10356_v27  ;;  %v8025_v27 = vpop.f32.mrf.mxu1  ;;  %v8050_v60 = vadd.f32 %v8049_v33, %v8037_v43  ;;  %v12548_v22 = vld [vmem:[%s14114_s10 + $0x914] sm:$0xf0]  ;;  %v10899_v48 = vld [vmem:[%s14114_s10 + $0xde8] sm:$0xf] }
 0x37f   : > { %8268 = vmatpush.bf16.msra.mxu0 %v9892_v3  ;;  %v10291_v3 = vld [vmem:[%s14114_s10 + $0x928] sm:$0xf]  ;;  %v12592_v33 = vld [vmem:[%s14114_s10 + $0xa74] sm:$0xf0]  ;;  %v10276_v56 = vor.u32 %v12548_v22, %v10275_v21 }
 0x380   : > { %8281 = vmatpush.bf16.msra.mxu1 %v10020_v7  ;;  %v10467_v7 = vld [vmem:[%s14114_s10 + $0xa88] sm:$0xf]  ;;  %v10292_v5 = vor.u32 %v12552_v6, %v10291_v3  ;;  %v12624_v36 = vld [vmem:[%s14114_s10 + $0xb74] sm:$0xf0] }
 0x381   : > { %8290 = vmatpush.bf16.msra.mxu2 %v10212_v8  ;;  %v12596_v8 = vld [vmem:[%s14114_s10 + $0xa94] sm:$0xf0]  ;;  %v10580_v57 = vor.u32 %v12624_v36, %v10579_v35  ;;  %v10755_v45 = vld [vmem:[%s14114_s10 + $0xcc8] sm:$0xf] }
 0x382   : > { %8303 = vmatpush.bf16.msra.mxu3 %v10340_v10  ;;  %8269 = vmatmul.bf16.vlgmr.msra.gmra.mxu0 %v14289_v47  ;;  %v8062_v10 = vpop.f32.mrf.mxu0  ;;  %v10468_v18 = vor.u32 %v12596_v8, %v10467_v7  ;;  %v12672_v43 = vld [vmem:[%s14114_s10 + $0xcf4] sm:$0xf0]  ;;  %v10883_v6 = vld [vmem:[%s14114_s10 + $0xdc8] sm:$0xf] }
 0x383   : > { %8313 = vmatpush.bf16.msrb.mxu0 %v10516_v62  ;;  %8282 = vmatmul.bf16.vlgmr.msra.gmra.mxu1 %v14295_v51  ;;  %v10595_v62 = vld [vmem:[%s14114_s10 + $0xb88] sm:$0xf]  ;;  %v15256_v12 = vadd.f32 %v8062_v10, %v8050_v60  ;;  %v12704_v52 = vld [vmem:[%s14114_s10 + $0xdf4] sm:$0xf0]  ;;  %v10772_v59 = vor.u32 %v12672_v43, %v10771_v41 }
 0x384   : > { %8326 = vmatpush.bf16.msrb.mxu1 %v10644_v16  ;;  %v10147_v16 = vld [vmem:[%s14114_s10 + $0x808] sm:$0xf]  ;;  %v10596_v23 = vor.u32 %v12628_v11, %v10595_v62  ;;  %v12620_v2 = vld [vmem:[%s14114_s10 + $0xb54] sm:$0xf0] }
 0x385   : > { %8291 = vmatpush.bf16.msra.mxu2 %v10196_v31  ;;  %v8038_v31 = vpop.f32.mrf.mxu2  ;;  %v10435_v60 = vld [vmem:[%s14114_s10 + $0xa48] sm:$0xf]  ;;  %v12668_v3 = vld [vmem:[%s14114_s10 + $0xcd4] sm:$0xf0] }
 0x386   : > { %8304 = vmatpush.bf16.msra.mxu3 %v10324_v17  ;;  %v8051_v17 = vpop.f32.mrf.mxu3  ;;  %v12700_v7 = vld [vmem:[%s14114_s10 + $0xdd4] sm:$0xf0]  ;;  %v10756_v62 = vor.u32 %v12668_v3, %v10755_v45  ;;  %v10419_v11 = vld [vmem:[%s14114_s10 + $0xa28] sm:$0xf] }
 0x387   : > { %8314 = vmatpush.bf16.msrb.mxu0 %v10500_v26  ;;  %v10451_v26 = vld [vmem:[%s14114_s10 + $0xa68] sm:$0xf]  ;;  %v12664_v21 = vld [vmem:[%s14114_s10 + $0xcb4] sm:$0xf0] }
 0x388   : > { %8327 = vmatpush.bf16.msrb.mxu1 %v10628_v49  ;;  %v10148_v49 = vor.u32 %v12516_v19, %v10147_v16  ;;  %v10452_v27 = vor.u32 %v12592_v33, %v10451_v26  ;;  %v10547_v16 = vld [vmem:[%s14114_s10 + $0xb28] sm:$0xf]  ;;  %v12696_v31 = vld [vmem:[%s14114_s10 + $0xdb4] sm:$0xf0] }
 0x389   : > { %8292 = vmatpush.bf16.msra.mxu2 %v10180_v61  ;;  %v12588_v61 = vld [vmem:[%s14114_s10 + $0xa54] sm:$0xf0]  ;;  %v10739_v19 = vld [vmem:[%s14114_s10 + $0xca8] sm:$0xf] }
 0x38a   : > { %8305 = vmatpush.bf16.msra.mxu3 %v10308_v63  ;;  %v10563_v63 = vld [vmem:[%s14114_s10 + $0xb48] sm:$0xf]  ;;  %v10436_v8 = vor.u32 %v12588_v61, %v10435_v60  ;;  %v10740_v33 = vor.u32 %v12664_v21, %v10739_v19  ;;  %v12580_v35 = vld [vmem:[%s14114_s10 + $0xa14] sm:$0xf0] }
 0x38b   : > { %8315 = vmatpush.bf16.msrb.mxu0 %v10484_v0  ;;  %v10900_v0 = vor.u32 %v12704_v52, %v10899_v48  ;;  %v10564_v10 = vor.u32 %v12620_v2, %v10563_v63  ;;  %v10867_v22 = vld [vmem:[%s14114_s10 + $0xda8] sm:$0xf]  ;;  %v12612_v41 = vld [vmem:[%s14114_s10 + $0xb14] sm:$0xf0] }
 0x38c   : > { %8328 = vmatpush.bf16.msrb.mxu1 %v10612_v4  ;;  %v8064_v4 = vpop.f32.mrf.mxu0  ;;  %v10531_v36 = vld [vmem:[%s14114_s10 + $0xb08] sm:$0xf]  ;;  %v10868_v43 = vor.u32 %v12696_v31, %v10867_v22  ;;  %v12660_v48 = vld [vmem:[%s14114_s10 + $0xc94] sm:$0xf0] }
 0x38d   : > { %8293 = vmatpush.bf16.msra.mxu2 %v10164_v14  ;;  %v12584_v14 = vld [vmem:[%s14114_s10 + $0xa34] sm:$0xf0]  ;;  %v10851_v52 = vld [vmem:[%s14114_s10 + $0xd88] sm:$0xf]  ;;  %v10532_v2 = vor.u32 %v12612_v41, %v10531_v36 }
 0x38e   : > { %8306 = vmatpush.bf16.msra.mxu3 %v10292_v5  ;;  %v10884_v5 = vor.u32 %v12700_v7, %v10883_v6  ;;  %v10420_v17 = vor.u32 %v12584_v14, %v10419_v11  ;;  %v11155_v63 = vld [vmem:[%s14114_s10 + $0xfe8] sm:$0xf]  ;;  %v12656_v7 = vld [vmem:[%s14114_s10 + $0xc74] sm:$0xf0] }
 0x38f   : > { %8316 = vmatpush.bf16.msrb.mxu0 %v10468_v18  ;;  %v12616_v18 = vld [vmem:[%s14114_s10 + $0xb34] sm:$0xf0]  ;;  %v10707_v6 = vld [vmem:[%s14114_s10 + $0xc68] sm:$0xf] }
 0x390   : > { %8329 = vmatpush.bf16.msrb.mxu1 %v10596_v23  ;;  %v10403_v23 = vld [vmem:[%s14114_s10 + $0xa08] sm:$0xf]  ;;  %v10548_v26 = vor.u32 %v12616_v18, %v10547_v16  ;;  %v12732_v11 = vld [vmem:[%s14114_s10 + $0xed4] sm:$0xf0] }
 0x391   : > { %8294 = vmatpush.bf16.msra.mxu2 %v10148_v49  ;;  %v10723_v49 = vld [vmem:[%s14114_s10 + $0xc88] sm:$0xf]  ;;  %v10404_v61 = vor.u32 %v12580_v35, %v10403_v23  ;;  %v12764_v16 = vld [vmem:[%s14114_s10 + $0xfd4] sm:$0xf0] }
 0x392   : > { %8307 = vmatpush.bf16.msra.mxu3 %v10276_v56  ;;  %v8075_v56 = vpop.f32.mrf.mxu1  ;;  %v10724_v45 = vor.u32 %v12660_v48, %v10723_v49  ;;  %v11139_v14 = vld [vmem:[%s14114_s10 + $0xfc8] sm:$0xf]  ;;  %v12684_v35 = vld [vmem:[%s14114_s10 + $0xd54] sm:$0xf0] }
 0x393   : > { %8317 = vmatpush.bf16.msrb.mxu0 %v10452_v27  ;;  %v12692_v27 = vld [vmem:[%s14114_s10 + $0xd94] sm:$0xf0]  ;;  %v8076_v60 = vadd.f32 %v8075_v56, %v15256_v12  ;;  %v10691_v31 = vld [vmem:[%s14114_s10 + $0xc48] sm:$0xf] }
 0x394   : > { %8330 = vmatpush.bf16.msrb.mxu1 %v10580_v57  ;;  %8295 = vmatmul.bf16.vlgmr.msra.gmra.mxu2 %v14368_v34  ;;  %v11027_v57 = vld [vmem:[%s14114_s10 + $0xee8] sm:$0xf]  ;;  %v10852_v3 = vor.u32 %v12692_v27, %v10851_v52  ;;  %v12688_v12 = vld [vmem:[%s14114_s10 + $0xd74] sm:$0xf0] }
 0x395   : > { %8339 = vmatpush.bf16.msrb.mxu2 %v10772_v59  ;;  %8308 = vmatmul.bf16.vlgmr.msra.gmra.mxu3 %v14375_v39  ;;  %v12736_v59 = vld [vmem:[%s14114_s10 + $0xef4] sm:$0xf0]  ;;  %v10819_v23 = vld [vmem:[%s14114_s10 + $0xd48] sm:$0xf] }
 0x396   : > { %8352 = vmatpush.bf16.msrb.mxu3 %v10900_v0  ;;  %v12768_v0 = vld [vmem:[%s14114_s10 + $0xff4] sm:$0xf0]  ;;  %v11028_v4 = vor.u32 %v12736_v59, %v11027_v57  ;;  %v10995_v36 = vld [vmem:[%s14114_s10 + $0xea8] sm:$0xf]  ;;  %v10820_v27 = vor.u32 %v12684_v35, %v10819_v23 }
 0x397   : > { %8318 = vmatpush.bf16.msrb.mxu0 %v10436_v8  ;;  %v10835_v8 = vld [vmem:[%s14114_s10 + $0xd68] sm:$0xf]  ;;  %v8088_v19 = vpop.f32.mrf.mxu2  ;;  %v12728_v41 = vld [vmem:[%s14114_s10 + $0xeb4] sm:$0xf0] }
 0x398   : > { %8331 = vmatpush.bf16.msrb.mxu1 %v10564_v10  ;;  %v11156_v10 = vor.u32 %v12768_v0, %v11155_v63  ;;  %v10836_v18 = vor.u32 %v12688_v12, %v10835_v8  ;;  %v8101_v22 = vpop.f32.mrf.mxu3  ;;  %v11123_v49 = vld [vmem:[%s14114_s10 + $0xfa8] sm:$0xf]  ;;  %v12760_v48 = vld [vmem:[%s14114_s10 + $0xfb4] sm:$0xf0]  ;;  %v10996_v57 = vor.u32 %v12728_v41, %v10995_v36 }
 0x399   : > { %8340 = vmatpush.bf16.msrb.mxu2 %v10756_v62  ;;  %v11011_v62 = vld [vmem:[%s14114_s10 + $0xec8] sm:$0xf]  ;;  %v11124_v63 = vor.u32 %v12760_v48, %v11123_v49  ;;  %v12680_v0 = vld [vmem:[%s14114_s10 + $0xd34] sm:$0xf0] }
 0x39a   : > { %8353 = vmatpush.bf16.msrb.mxu3 %v10884_v5  ;;  %v10708_v5 = vor.u32 %v12656_v7, %v10707_v6  ;;  %v11012_v21 = vor.u32 %v12732_v11, %v11011_v62  ;;  %v10675_v59 = vld [vmem:[%s14114_s10 + $0xc28] sm:$0xf]  ;;  %v12756_v6 = vld [vmem:[%s14114_s10 + $0xf94] sm:$0xf0] }
 0x39b   : > { %8319 = vmatpush.bf16.msrb.mxu0 %v10420_v17  ;;  %v12652_v17 = vld [vmem:[%s14114_s10 + $0xc54] sm:$0xf0]  ;;  %v11283_v23 = vld [vmem:[%s14114_s10 + $0x10e8] sm:$0xf] }
 0x39c   : > { %8332 = vmatpush.bf16.msrb.mxu1 %v10548_v26  ;;  %v8089_v26 = vadd.f32 %v8088_v19, %v8076_v60  ;;  %v10692_v56 = vor.u32 %v12652_v17, %v10691_v31  ;;  %v12648_v60 = vld [vmem:[%s14114_s10 + $0xc34] sm:$0xf0]  ;;  %v11091_v31 = vld [vmem:[%s14114_s10 + $0xf68] sm:$0xf] }
 0x39d   : > { %8341 = vmatpush.bf16.msrb.mxu2 %v10740_v33  ;;  %v11140_v33 = vor.u32 %v12764_v16, %v11139_v14  ;;  %v10676_v8 = vor.u32 %v12648_v60, %v10675_v59  ;;  %v12644_v11 = vld [vmem:[%s14114_s10 + $0xc14] sm:$0xf0]  ;;  %v10787_v14 = vld [vmem:[%s14114_s10 + $0xd08] sm:$0xf] }
 0x39e   : > { %8354 = vmatpush.bf16.msrb.mxu3 %v10868_v43  ;;  %v8077_v43 = vpop.f32.mrf.mxu1  ;;  %v8102_v52 = vadd.f32 %v8101_v22, %v8089_v26  ;;  %v12676_v16 = vld [vmem:[%s14114_s10 + $0xd14] sm:$0xf0]  ;;  %v11411_v35 = vld [vmem:[%s14114_s10 + $0x11e8] sm:$0xf] }
 0x39f   : > { %8320 = vmatpush.bf16.msrb.mxu0 %v10404_v61  ;;  %v10803_v61 = vld [vmem:[%s14114_s10 + $0xd28] sm:$0xf]  ;;  %v12720_v22 = vld [vmem:[%s14114_s10 + $0xe74] sm:$0xf0]  ;;  %v10788_v41 = vor.u32 %v12676_v16, %v10787_v14 }
 0x3a0   : > { %8333 = vmatpush.bf16.msrb.mxu1 %v10532_v2  ;;  %v10979_v2 = vld [vmem:[%s14114_s10 + $0xe88] sm:$0xf]  ;;  %v10804_v12 = vor.u32 %v12680_v0, %v10803_v61  ;;  %v12752_v17 = vld [vmem:[%s14114_s10 + $0xf74] sm:$0xf0] }
 0x3a1   : > { %8342 = vmatpush.bf16.msrb.mxu2 %v10724_v45  ;;  %v12724_v45 = vld [vmem:[%s14114_s10 + $0xe94] sm:$0xf0]  ;;  %v11092_v49 = vor.u32 %v12752_v17, %v11091_v31  ;;  %v11267_v60 = vld [vmem:[%s14114_s10 + $0x10c8] sm:$0xf] }
 0x3a2   : > { %8355 = vmatpush.bf16.msrb.mxu3 %v10852_v3  ;;  %8321 = vmatmul.bf16.vlgmr.msrb.gmra.mxu0 %v14373_v38  ;;  %v8114_v3 = vpop.f32.mrf.mxu0  ;;  %v10980_v62 = vor.u32 %v12724_v45, %v10979_v2  ;;  %v12800_v26 = vld [vmem:[%s14114_s10 + $0x10f4] sm:$0xf0]  ;;  %v11395_v0 = vld [vmem:[%s14114_s10 + $0x11c8] sm:$0xf] }
 0x3a3   : > { %8365 = vmatpush.bf16.msra.mxu0 %v11028_v4  ;;  %8334 = vmatmul.bf16.vlgmr.msrb.gmra.mxu1 %v14379_v42  ;;  %v11107_v4 = vld [vmem:[%s14114_s10 + $0xf88] sm:$0xf]  ;;  %v15327_v7 = vadd.f32 %v8114_v3, %v8102_v52  ;;  %v12832_v36 = vld [vmem:[%s14114_s10 + $0x11f4] sm:$0xf0]  ;;  %v11284_v48 = vor.u32 %v12800_v26, %v11283_v23 }
 0x3a4   : > { %8378 = vmatpush.bf16.msra.mxu1 %v11156_v10  ;;  %v10659_v10 = vld [vmem:[%s14114_s10 + $0xc08] sm:$0xf]  ;;  %v11108_v19 = vor.u32 %v12756_v6, %v11107_v4  ;;  %v12748_v59 = vld [vmem:[%s14114_s10 + $0xf54] sm:$0xf0] }
 0x3a5   : > { %8343 = vmatpush.bf16.msrb.mxu2 %v10708_v5  ;;  %v8090_v5 = vpop.f32.mrf.mxu2  ;;  %v10947_v52 = vld [vmem:[%s14114_s10 + $0xe48] sm:$0xf]  ;;  %v12796_v61 = vld [vmem:[%s14114_s10 + $0x10d4] sm:$0xf0] }
 0x3a6   : > { %8356 = vmatpush.bf16.msrb.mxu3 %v10836_v18  ;;  %v8103_v18 = vpop.f32.mrf.mxu3  ;;  %v12828_v2 = vld [vmem:[%s14114_s10 + $0x11d4] sm:$0xf0]  ;;  %v11268_v4 = vor.u32 %v12796_v61, %v11267_v60  ;;  %v10931_v6 = vld [vmem:[%s14114_s10 + $0xe28] sm:$0xf] }
 0x3a7   : > { %8366 = vmatpush.bf16.msra.mxu0 %v11012_v21  ;;  %v10963_v21 = vld [vmem:[%s14114_s10 + $0xe68] sm:$0xf]  ;;  %v12792_v14 = vld [vmem:[%s14114_s10 + $0x10b4] sm:$0xf0] }
 0x3a8   : > { %8379 = vmatpush.bf16.msra.mxu1 %v11140_v33  ;;  %v10660_v33 = vor.u32 %v12644_v11, %v10659_v10  ;;  %v10964_v43 = vor.u32 %v12720_v22, %v10963_v21  ;;  %v11059_v10 = vld [vmem:[%s14114_s10 + $0xf28] sm:$0xf]  ;;  %v12824_v5 = vld [vmem:[%s14114_s10 + $0x11b4] sm:$0xf0] }
 0x3a9   : > { %8344 = vmatpush.bf16.msrb.mxu2 %v10692_v56  ;;  %v12716_v56 = vld [vmem:[%s14114_s10 + $0xe54] sm:$0xf0]  ;;  %v11251_v11 = vld [vmem:[%s14114_s10 + $0x10a8] sm:$0xf] }
 0x3aa   : > { %8357 = vmatpush.bf16.msrb.mxu3 %v10820_v27  ;;  %v11075_v27 = vld [vmem:[%s14114_s10 + $0xf48] sm:$0xf]  ;;  %v10948_v45 = vor.u32 %v12716_v56, %v10947_v52  ;;  %v11252_v22 = vor.u32 %v12792_v14, %v11251_v11  ;;  %v12708_v31 = vld [vmem:[%s14114_s10 + $0xe14] sm:$0xf0] }
 0x3ab   : > { %8367 = vmatpush.bf16.msra.mxu0 %v10996_v57  ;;  %v11412_v57 = vor.u32 %v12832_v36, %v11411_v35  ;;  %v11076_v3 = vor.u32 %v12748_v59, %v11075_v27  ;;  %v11379_v16 = vld [vmem:[%s14114_s10 + $0x11a8] sm:$0xf]  ;;  %v12740_v23 = vld [vmem:[%s14114_s10 + $0xf14] sm:$0xf0] }
 0x3ac   : > { %8380 = vmatpush.bf16.msra.mxu1 %v11124_v63  ;;  %v8116_v63 = vpop.f32.mrf.mxu0  ;;  %v11043_v17 = vld [vmem:[%s14114_s10 + $0xf08] sm:$0xf]  ;;  %v11380_v26 = vor.u32 %v12824_v5, %v11379_v16  ;;  %v12788_v35 = vld [vmem:[%s14114_s10 + $0x1094] sm:$0xf0] }
 0x3ad   : > { %8345 = vmatpush.bf16.msrb.mxu2 %v10676_v8  ;;  %v12712_v8 = vld [vmem:[%s14114_s10 + $0xe34] sm:$0xf0]  ;;  %v11363_v36 = vld [vmem:[%s14114_s10 + $0x1188] sm:$0xf]  ;;  %v11044_v59 = vor.u32 %v12740_v23, %v11043_v17 }
 0x3ae   : > { %8358 = vmatpush.bf16.msrb.mxu3 %v10804_v12  ;;  %v11396_v12 = vor.u32 %v12828_v2, %v11395_v0  ;;  %v10932_v18 = vor.u32 %v12712_v8, %v10931_v6  ;;  %v11667_v27 = vld [vmem:[%s14114_s10 + $0x13e8] sm:$0xf]  ;;  %v12784_v2 = vld [vmem:[%s14114_s10 + $0x1074] sm:$0xf0] }
 0x3af   : > { %8368 = vmatpush.bf16.msra.mxu0 %v10980_v62  ;;  %v12744_v62 = vld [vmem:[%s14114_s10 + $0xf34] sm:$0xf0]  ;;  %v11219_v0 = vld [vmem:[%s14114_s10 + $0x1068] sm:$0xf] }
 0x3b0   : > { %8381 = vmatpush.bf16.msra.mxu1 %v11108_v19  ;;  %v10915_v19 = vld [vmem:[%s14114_s10 + $0xe08] sm:$0xf]  ;;  %v11060_v21 = vor.u32 %v12744_v62, %v11059_v10  ;;  %v12860_v6 = vld [vmem:[%s14114_s10 + $0x12d4] sm:$0xf0] }
 0x3b1   : > { %8346 = vmatpush.bf16.msrb.mxu2 %v10660_v33  ;;  %v11235_v33 = vld [vmem:[%s14114_s10 + $0x1088] sm:$0xf]  ;;  %v10916_v56 = vor.u32 %v12708_v31, %v10915_v19  ;;  %v12892_v10 = vld [vmem:[%s14114_s10 + $0x13d4] sm:$0xf0] }
 0x3b2   : > { %8359 = vmatpush.bf16.msrb.mxu3 %v10788_v41  ;;  %v8127_v41 = vpop.f32.mrf.mxu1  ;;  %v11236_v60 = vor.u32 %v12788_v35, %v11235_v33  ;;  %v11651_v8 = vld [vmem:[%s14114_s10 + $0x13c8] sm:$0xf]  ;;  %v12812_v17 = vld [vmem:[%s14114_s10 + $0x1154] sm:$0xf0] }
 0x3b3   : > { %8369 = vmatpush.bf16.msra.mxu0 %v10964_v43  ;;  %v12820_v43 = vld [vmem:[%s14114_s10 + $0x1194] sm:$0xf0]  ;;  %v8128_v52 = vadd.f32 %v8127_v41, %v15327_v7  ;;  %v11203_v5 = vld [vmem:[%s14114_s10 + $0x1048] sm:$0xf] }
 0x3b4   : > { %8382 = vmatpush.bf16.msra.mxu1 %v11092_v49  ;;  %8347 = vmatmul.bf16.vlgmr.msrb.gmra.mxu2 %v14450_v32  ;;  %v11539_v49 = vld [vmem:[%s14114_s10 + $0x12e8] sm:$0xf]  ;;  %v11364_v61 = vor.u32 %v12820_v43, %v11363_v36  ;;  %v12816_v7 = vld [vmem:[%s14114_s10 + $0x1174] sm:$0xf0] }
 0x3b5   : > { %8391 = vmatpush.bf16.msra.mxu2 %v11284_v48  ;;  %8360 = vmatmul.bf16.vlgmr.msrb.gmra.mxu3 %v14457_v40  ;;  %v12864_v48 = vld [vmem:[%s14114_s10 + $0x12f4] sm:$0xf0]  ;;  %v11331_v19 = vld [vmem:[%s14114_s10 + $0x1148] sm:$0xf] }
 0x3b6   : > { %8404 = vmatpush.bf16.msra.mxu3 %v11412_v57  ;;  %v12896_v57 = vld [vmem:[%s14114_s10 + $0x13f4] sm:$0xf0]  ;;  %v11540_v63 = vor.u32 %v12864_v48, %v11539_v49  ;;  %v11507_v23 = vld [vmem:[%s14114_s10 + $0x12a8] sm:$0xf]  ;;  %v11332_v43 = vor.u32 %v12812_v17, %v11331_v19 }
 0x3b7   : > { %8370 = vmatpush.bf16.msra.mxu0 %v10948_v45  ;;  %v11347_v45 = vld [vmem:[%s14114_s10 + $0x1168] sm:$0xf]  ;;  %v8140_v11 = vpop.f32.mrf.mxu2  ;;  %v12888_v35 = vld [vmem:[%s14114_s10 + $0x13b4] sm:$0xf0] }
 0x3b8   : > { %8383 = vmatpush.bf16.msra.mxu1 %v11076_v3  ;;  %v11668_v3 = vor.u32 %v12896_v57, %v11667_v27  ;;  %v11348_v62 = vor.u32 %v12816_v7, %v11347_v45  ;;  %v8153_v16 = vpop.f32.mrf.mxu3  ;;  %v11635_v33 = vld [vmem:[%s14114_s10 + $0x13a8] sm:$0xf]  ;;  %v12808_v57 = vld [vmem:[%s14114_s10 + $0x1134] sm:$0xf0] }
 0x3b9   : > { %8392 = vmatpush.bf16.msra.mxu2 %v11268_v4  ;;  %v11523_v4 = vld [vmem:[%s14114_s10 + $0x12c8] sm:$0xf]  ;;  %v11636_v27 = vor.u32 %v12888_v35, %v11635_v33 }
 0x3ba   : > { %8405 = vmatpush.bf16.msra.mxu3 %v11396_v12  ;;  %v11220_v12 = vor.u32 %v12784_v2, %v11219_v0  ;;  %v11524_v14 = vor.u32 %v12860_v6, %v11523_v4  ;;  %v8129_v31 = vpop.f32.mrf.mxu1  ;;  %v11187_v48 = vld [vmem:[%s14114_s10 + $0x1028] sm:$0xf]  ;;  %v12884_v0 = vld [vmem:[%s14114_s10 + $0x1394] sm:$0xf0] }
 0x3bb   : > { %8371 = vmatpush.bf16.msra.mxu0 %v10932_v18  ;;  %v12780_v18 = vld [vmem:[%s14114_s10 + $0x1054] sm:$0xf0]  ;;  %v11795_v19 = vld [vmem:[%s14114_s10 + $0x14e8] sm:$0xf] }
 0x3bc   : > { %8384 = vmatpush.bf16.msra.mxu1 %v11060_v21  ;;  %v8141_v21 = vadd.f32 %v8140_v11, %v8128_v52  ;;  %v11204_v41 = vor.u32 %v12780_v18, %v11203_v5  ;;  %v12776_v52 = vld [vmem:[%s14114_s10 + $0x1034] sm:$0xf0]  ;;  %v11603_v5 = vld [vmem:[%s14114_s10 + $0x1368] sm:$0xf] }
 0x3bd   : > { %8393 = vmatpush.bf16.msra.mxu2 %v11252_v22  ;;  %v11652_v22 = vor.u32 %v12892_v10, %v11651_v8  ;;  %v11188_v45 = vor.u32 %v12776_v52, %v11187_v48  ;;  %v12772_v6 = vld [vmem:[%s14114_s10 + $0x1014] sm:$0xf0]  ;;  %v11299_v8 = vld [vmem:[%s14114_s10 + $0x1108] sm:$0xf] }
 0x3be   : > { %8406 = vmatpush.bf16.msra.mxu3 %v11380_v26  ;;  %v12856_v26 = vld [vmem:[%s14114_s10 + $0x12b4] sm:$0xf0]  ;;  %v8154_v36 = vadd.f32 %v8153_v16, %v8141_v21  ;;  %v11923_v17 = vld [vmem:[%s14114_s10 + $0x15e8] sm:$0xf] }
 0x3bf   : > { %8372 = vmatpush.bf16.msra.mxu0 %v10916_v56  ;;  %v11508_v49 = vor.u32 %v12856_v26, %v11507_v23  ;;  %v11315_v56 = vld [vmem:[%s14114_s10 + $0x1128] sm:$0xf]  ;;  %v12804_v10 = vld [vmem:[%s14114_s10 + $0x1114] sm:$0xf0] }
 0x3c0   : > { %8385 = vmatpush.bf16.msra.mxu1 %v11044_v59  ;;  %v11491_v59 = vld [vmem:[%s14114_s10 + $0x1288] sm:$0xf]  ;;  %v11316_v7 = vor.u32 %v12808_v57, %v11315_v56  ;;  %v12848_v16 = vld [vmem:[%s14114_s10 + $0x1274] sm:$0xf0]  ;;  %v11300_v33 = vor.u32 %v12804_v10, %v11299_v8 }
 0x3c1   : > { %8394 = vmatpush.bf16.msra.mxu2 %v11236_v60  ;;  %v12852_v60 = vld [vmem:[%s14114_s10 + $0x1294] sm:$0xf0]  ;;  %v11587_v48 = vld [vmem:[%s14114_s10 + $0x1348] sm:$0xf] }
 0x3c2   : > { %8407 = vmatpush.bf16.msra.mxu3 %v11364_v61  ;;  %8373 = vmatmul.bf16.vlgmr.msra.gmra.mxu0 %v14455_v37  ;;  %v8166_v61 = vpop.f32.mrf.mxu0  ;;  %v11492_v4 = vor.u32 %v12852_v60, %v11491_v59  ;;  %v12880_v18 = vld [vmem:[%s14114_s10 + $0x1374] sm:$0xf0]  ;;  %v11907_v60 = vld [vmem:[%s14114_s10 + $0x15c8] sm:$0xf] }
 0x3c3   : > { %8417 = vmatpush.bf16.msrb.mxu0 %v11540_v63  ;;  %8386 = vmatmul.bf16.vlgmr.msra.gmra.mxu1 %v14461_v44  ;;  %v11619_v63 = vld [vmem:[%s14114_s10 + $0x1388] sm:$0xf]  ;;  %v8167_v2 = vadd.f32 %v8166_v61, %v8154_v36  ;;  %v12928_v21 = vld [vmem:[%s14114_s10 + $0x14f4] sm:$0xf0]  ;;  %v11604_v36 = vor.u32 %v12880_v18, %v11603_v5 }
 0x3c4   : > { %8430 = vmatpush.bf16.msrb.mxu1 %v11668_v3  ;;  %v11171_v3 = vld [vmem:[%s14114_s10 + $0x1008] sm:$0xf]  ;;  %v11620_v11 = vor.u32 %v12884_v0, %v11619_v63  ;;  %v12960_v23 = vld [vmem:[%s14114_s10 + $0x15f4] sm:$0xf0] }
 0x3c5   : > { %8395 = vmatpush.bf16.msra.mxu2 %v11220_v12  ;;  %v8155_v12 = vpop.f32.mrf.mxu3  ;;  %v11172_v31 = vor.u32 %v12772_v6, %v11171_v3  ;;  %v11924_v52 = vor.u32 %v12960_v23, %v11923_v17  ;;  %v12876_v56 = vld [vmem:[%s14114_s10 + $0x1354] sm:$0xf0]  ;;  %v11763_v8 = vld [vmem:[%s14114_s10 + $0x14a8] sm:$0xf] }
 0x3c6   : > { %8408 = vmatpush.bf16.msra.mxu3 %v11348_v62  ;;  %v8142_v62 = vpop.f32.mrf.mxu2  ;;  %v12924_v57 = vld [vmem:[%s14114_s10 + $0x14d4] sm:$0xf0]  ;;  %v11588_v0 = vor.u32 %v12876_v56, %v11587_v48  ;;  %v11891_v12 = vld [vmem:[%s14114_s10 + $0x15a8] sm:$0xf] }
 0x3c7   : > { %8418 = vmatpush.bf16.msrb.mxu0 %v11524_v14  ;;  %v11475_v14 = vld [vmem:[%s14114_s10 + $0x1268] sm:$0xf]  ;;  %v12956_v61 = vld [vmem:[%s14114_s10 + $0x15d4] sm:$0xf0] }
 0x3c8   : > { %8431 = vmatpush.bf16.msrb.mxu1 %v11652_v22  ;;  %v8179_v22 = vpop.f32.mrf.mxu1  ;;  %v11476_v35 = vor.u32 %v12848_v16, %v11475_v14  ;;  %v12840_v3 = vld [vmem:[%s14114_s10 + $0x1234] sm:$0xf0]  ;;  %v11427_v16 = vld [vmem:[%s14114_s10 + $0x1208] sm:$0xf] }
 0x3c9   : > { %8396 = vmatpush.bf16.msra.mxu2 %v11204_v41  ;;  %v15410_v26 = vadd.f32 %v8179_v22, %v8167_v2  ;;  %v11796_v41 = vor.u32 %v12928_v21, %v11795_v19  ;;  %v12872_v6 = vld [vmem:[%s14114_s10 + $0x1334] sm:$0xf0]  ;;  %v11555_v21 = vld [vmem:[%s14114_s10 + $0x1308] sm:$0xf] }
 0x3ca   : > { %8409 = vmatpush.bf16.msra.mxu3 %v11332_v43  ;;  %v11459_v43 = vld [vmem:[%s14114_s10 + $0x1248] sm:$0xf]  ;;  %v8168_v59 = vpop.f32.mrf.mxu0  ;;  %v12920_v10 = vld [vmem:[%s14114_s10 + $0x14b4] sm:$0xf0] }
 0x3cb   : > { %8419 = vmatpush.bf16.msrb.mxu0 %v11508_v49  ;;  %v12844_v49 = vld [vmem:[%s14114_s10 + $0x1254] sm:$0xf0]  ;;  %v11764_v18 = vor.u32 %v12920_v10, %v11763_v8  ;;  %v11747_v17 = vld [vmem:[%s14114_s10 + $0x1488] sm:$0xf] }
 0x3cc   : > { %8432 = vmatpush.bf16.msrb.mxu1 %v11636_v27  ;;  %v11779_v27 = vld [vmem:[%s14114_s10 + $0x14c8] sm:$0xf]  ;;  %v11460_v63 = vor.u32 %v12844_v49, %v11459_v43  ;;  %v12952_v62 = vld [vmem:[%s14114_s10 + $0x15b4] sm:$0xf0] }
 0x3cd   : > { %8397 = vmatpush.bf16.msra.mxu2 %v11188_v45  ;;  %v11780_v2 = vor.u32 %v12924_v57, %v11779_v27  ;;  %v11443_v45 = vld [vmem:[%s14114_s10 + $0x1228] sm:$0xf]  ;;  %v12836_v19 = vld [vmem:[%s14114_s10 + $0x1214] sm:$0xf0] }
 0x3ce   : > { %8410 = vmatpush.bf16.msra.mxu3 %v11316_v7  ;;  %v11571_v7 = vld [vmem:[%s14114_s10 + $0x1328] sm:$0xf]  ;;  %v11444_v14 = vor.u32 %v12840_v3, %v11443_v45  ;;  %v12868_v22 = vld [vmem:[%s14114_s10 + $0x1314] sm:$0xf0]  ;;  %v11428_v43 = vor.u32 %v12836_v19, %v11427_v16 }
 0x3cf   : > { %8420 = vmatpush.bf16.msrb.mxu0 %v11492_v4  ;;  %v11908_v4 = vor.u32 %v12956_v61, %v11907_v60  ;;  %v11572_v5 = vor.u32 %v12872_v6, %v11571_v7  ;;  %v12916_v23 = vld [vmem:[%s14114_s10 + $0x1494] sm:$0xf0]  ;;  %v12179_v49 = vld [vmem:[%s14114_s10 + $0x17e8] sm:$0xf] }
 0x3d0   : > { %8433 = vmatpush.bf16.msrb.mxu1 %v11620_v11  ;;  %v8181_v11 = vpop.f32.mrf.mxu1  ;;  %v13024_v48 = vld [vmem:[%s14114_s10 + $0x17f4] sm:$0xf0]  ;;  %v11748_v56 = vor.u32 %v12916_v23, %v11747_v17  ;;  %v11731_v27 = vld [vmem:[%s14114_s10 + $0x1468] sm:$0xf] }
 0x3d1   : > { %8398 = vmatpush.bf16.msra.mxu2 %v11172_v31  ;;  %v11892_v31 = vor.u32 %v12952_v62, %v11891_v12  ;;  %v12912_v60 = vld [vmem:[%s14114_s10 + $0x1474] sm:$0xf0]  ;;  %v11859_v61 = vld [vmem:[%s14114_s10 + $0x1568] sm:$0xf] }
 0x3d2   : > { %8411 = vmatpush.bf16.msra.mxu3 %v11300_v33  ;;  %v11875_v33 = vld [vmem:[%s14114_s10 + $0x1588] sm:$0xf]  ;;  %v12944_v45 = vld [vmem:[%s14114_s10 + $0x1574] sm:$0xf0]  ;;  %v11732_v8 = vor.u32 %v12912_v60, %v11731_v27 }
 0x3d3   : > { %8421 = vmatpush.bf16.msrb.mxu0 %v11476_v35  ;;  %v12948_v35 = vld [vmem:[%s14114_s10 + $0x1594] sm:$0xf0]  ;;  %v12035_v3 = vld [vmem:[%s14114_s10 + $0x16c8] sm:$0xf]  ;;  %v11860_v12 = vor.u32 %v12944_v45, %v11859_v61 }
 0x3d4   : > { %8434 = vmatpush.bf16.msrb.mxu1 %v11604_v36  ;;  %8399 = vmatmul.bf16.vlgmr.msra.gmra.mxu2 %v14532_v46  ;;  %v12051_v36 = vld [vmem:[%s14114_s10 + $0x16e8] sm:$0xf]  ;;  %v11876_v57 = vor.u32 %v12948_v35, %v11875_v33  ;;  %v12988_v7 = vld [vmem:[%s14114_s10 + $0x16d4] sm:$0xf0] }
 0x3d5   : > { %8443 = vmatpush.bf16.msrb.mxu2 %v11796_v41  ;;  %8412 = vmatmul.bf16.vlgmr.msra.gmra.mxu3 %v14539_v55  ;;  %v12992_v41 = vld [vmem:[%s14114_s10 + $0x16f4] sm:$0xf0]  ;;  %v12036_v62 = vor.u32 %v12988_v7, %v12035_v3  ;;  %v11715_v11 = vld [vmem:[%s14114_s10 + $0x1448] sm:$0xf] }
 0x3d6   : > { %8456 = vmatpush.bf16.msrb.mxu3 %v11924_v52  ;;  %v11556_v52 = vor.u32 %v12868_v22, %v11555_v21  ;;  %v12052_v59 = vor.u32 %v12992_v41, %v12051_v36  ;;  %v13020_v6 = vld [vmem:[%s14114_s10 + $0x17d4] sm:$0xf0]  ;;  %v11843_v16 = vld [vmem:[%s14114_s10 + $0x1548] sm:$0xf] }
 0x3d7   : > { %8422 = vmatpush.bf16.msrb.mxu0 %v11460_v63  ;;  %v13117_v63 = vld [vmem:[%s14107_s30] sm:$0xf]  ;;  %v8192_v10 = vpop.f32.mrf.mxu2  ;;  %v12940_v21 = vld [vmem:[%s14114_s10 + $0x1554] sm:$0xf0]  ;;  %v12019_v22 = vld [vmem:[%s14114_s10 + $0x16a8] sm:$0xf] }
 0x3d8   : > { %8435 = vmatpush.bf16.msrb.mxu1 %v11588_v0  ;;  %v3516_v0 = vperm.slane %v13117_v63, 2  ;;  %v12147_v17 = vld [vmem:[%s14114_s10 + $0x17a8] sm:$0xf]  ;;  %v13016_v23 = vld [vmem:[%s14114_s10 + $0x17b4] sm:$0xf0]  ;;  %v11844_v36 = vor.u32 %v12940_v21, %v11843_v16 }
 0x3d9   : > { %8444 = vmatpush.bf16.msrb.mxu2 %v11780_v2  ;;  %v12180_v2 = vor.u32 %v13024_v48, %v12179_v49  ;;  %v12904_v49 = vld [vmem:[%s14114_s10 + $0x1434] sm:$0xf0]  ;;  %v11827_v48 = vld [vmem:[%s14114_s10 + $0x1528] sm:$0xf]  ;;  %v12286_v21 = vld [vmem:[%s14114_s10 + $0xec] sm:$0xf] }
 0x3da   : > { %8457 = vmatpush.bf16.msrb.mxu3 %v11908_v4  ;;  %v12163_v4 = vld [vmem:[%s14114_s10 + $0x17c8] sm:$0xf]  ;;  %v13012_v60 = vld [vmem:[%s14114_s10 + $0x1794] sm:$0xf0] }
 0x3db   : > { %8423 = vmatpush.bf16.msrb.mxu0 %v11444_v14  ;;  %v12908_v14 = vld [vmem:[%s14114_s10 + $0x1454] sm:$0xf0]  ;;  %v12164_v19 = vor.u32 %v13020_v6, %v12163_v4  ;;  %v12003_v27 = vld [vmem:[%s14114_s10 + $0x1688] sm:$0xf] }
 0x3dc   : > { %8436 = vmatpush.bf16.msrb.mxu1 %v11572_v5  ;;  %v8193_v5 = vadd.f32 %v8192_v10, %v3516_v0  ;;  %v11716_v35 = vor.u32 %v12908_v14, %v11715_v11  ;;  %v11683_v0 = vld [vmem:[%s14114_s10 + $0x1408] sm:$0xf]  ;;  %v12900_v4 = vld [vmem:[%s14114_s10 + $0x1414] sm:$0xf0] }
 0x3dd   : > { %8445 = vmatpush.bf16.msrb.mxu2 %v11764_v18  ;;  %v8205_v18 = vpop.f32.mrf.mxu3  ;;  %v11811_v6 = vld [vmem:[%s14114_s10 + $0x1508] sm:$0xf]  ;;  %v12976_v11 = vld [vmem:[%s14114_s10 + $0x1674] sm:$0xf0] }
 0x3de   : > { %8458 = vmatpush.bf16.msrb.mxu3 %v11892_v31  ;;  %v12984_v31 = vld [vmem:[%s14114_s10 + $0x16b4] sm:$0xf0]  ;;  %v15461_v33 = vadd.f32 %v8205_v18, %v8193_v5  ;;  %v12115_v14 = vld [vmem:[%s14114_s10 + $0x1768] sm:$0xf] }
 0x3df   : > { %8424 = vmatpush.bf16.msrb.mxu0 %v11428_v43  ;;  %v12020_v41 = vor.u32 %v12984_v31, %v12019_v22  ;;  %v11699_v43 = vld [vmem:[%s14114_s10 + $0x1428] sm:$0xf]  ;;  %v15471_v61 = vpop.f32.mrf.mxu0  ;;  %v8194_v45 = vpop.f32.mrf.mxu2  ;;  %v13008_v16 = vld [vmem:[%s14114_s10 + $0x1774] sm:$0xf0]  ;;  %v9237_v22 = vld [vmem:[%s14114_s10 + $0xf8] sm:$0xf0] }
 0x3e0   : > { %8437 = vmatpush.bf16.msrb.mxu1 %v11556_v52  ;;  %v12148_v52 = vor.u32 %v13016_v23, %v12147_v17  ;;  %v11700_v63 = vor.u32 %v12904_v49, %v11699_v43  ;;  %v12243_v5 = vld [vmem:[%s14114_s10 + $0x1868] sm:$0xf]  ;;  %v13040_v18 = vld [vmem:[%s14114_s10 + $0x1874] sm:$0xf0]  ;;  %v12116_v23 = vor.u32 %v13008_v16, %v12115_v14  ;;  %v9240_v49 = vor.u32 %v12286_v21, %v9237_v22 }
 0x3e1   : > { %8446 = vmatpush.bf16.msrb.mxu2 %v11748_v56  ;;  %v12936_v56 = vld [vmem:[%s14114_s10 + $0x1534] sm:$0xf0]  ;;  %v12099_v43 = vld [vmem:[%s14114_s10 + $0x1748] sm:$0xf] }
 0x3e2   : > { %8459 = vmatpush.bf16.msrb.mxu3 %v11876_v57  ;;  %8425 = vmatmul.bf16.vlgmr.msrb.gmra.mxu0 %v14537_v54  ;;  %v12980_v57 = vld [vmem:[%s14114_s10 + $0x1694] sm:$0xf0]  ;;  %v11828_v3 = vor.u32 %v12936_v56, %v11827_v48  ;;  %v11939_v16 = vld [vmem:[%s14114_s10 + $0x1608] sm:$0xf] }
 0x3e3   : > { %8469 = vmatpush.bf16.msra.mxu0 %v12052_v59  ;;  %8438 = vmatmul.bf16.vlgmr.msrb.gmra.mxu1 %v14543_v58  ;;  %v12131_v59 = vld [vmem:[%s14114_s10 + $0x1788] sm:$0xf]  ;;  %v12004_v7 = vor.u32 %v12980_v57, %v12003_v27  ;;  %v13004_v48 = vld [vmem:[%s14114_s10 + $0x1754] sm:$0xf0]  ;;  %v12282_v57 = vld [vmem:[%s14114_s10 + $0xcc] sm:$0xf] }
 0x3e4   : > { %8482 = vmatpush.bf16.msra.mxu1 %v12180_v2  ;;  %v15474_v2 = vpop.f32.mrf.mxu1  ;;  %v13036_v56 = vld [vmem:[%s14114_s10 + $0x1854] sm:$0xf0]  ;;  %v12067_v21 = vld [vmem:[%s14114_s10 + $0x1708] sm:$0xf] }
 0x3e5   : > { %8447 = vmatpush.bf16.msrb.mxu2 %v11732_v8  ;;  %v12932_v8 = vld [vmem:[%s14114_s10 + $0x1514] sm:$0xf0]  ;;  %v8207_v10 = vpop.f32.mrf.mxu3 }
 0x3e6   : > { %8460 = vmatpush.bf16.msrb.mxu3 %v11860_v12  ;;  %v12132_v12 = vor.u32 %v13012_v60, %v12131_v59  ;;  %v11812_v31 = vor.u32 %v12932_v8, %v11811_v6  ;;  %v9221_v59 = vld [vmem:[%s14114_s10 + $0xd8] sm:$0xf0]  ;;  %v13000_v8 = vld [vmem:[%s14114_s10 + $0x1734] sm:$0xf0]  ;;  %v12211_v10 = vld [vmem:[%s14114_s10 + $0x1828] sm:$0xf] }
 0x3e7   : > { %8470 = vmatpush.bf16.msra.mxu0 %v12036_v62  ;;  %v11987_v62 = vld [vmem:[%s14114_s10 + $0x1668] sm:$0xf]  ;;  %v8220_v27 = vpop.f32.mrf.mxu0  ;;  %v9224_v6 = vor.u32 %v12282_v57, %v9221_v59  ;;  %v12996_v22 = vld [vmem:[%s14114_s10 + $0x1714] sm:$0xf0]  ;;  %v9621_v57 = vld [vmem:[%s14114_s10 + $0x3f8] sm:$0xf0] }
 0x3e8   : > { %8483 = vmatpush.bf16.msra.mxu1 %v12164_v19  ;;  %v11684_v19 = vor.u32 %v12900_v4, %v11683_v0  ;;  %v11988_v17 = vor.u32 %v12976_v11, %v11987_v62  ;;  %v12100_v0 = vor.u32 %v13004_v48, %v12099_v43  ;;  %v12083_v4 = vld [vmem:[%s14114_s10 + $0x1728] sm:$0xf]  ;;  %v12278_v62 = vld [vmem:[%s14114_s10 + $0xac] sm:$0xf]  ;;  %v9205_v11 = vld [vmem:[%s14114_s10 + $0xb8] sm:$0xf0] }
 0x3e9   : > { %8448 = vmatpush.bf16.msrb.mxu2 %v11716_v35  ;;  %v12244_v35 = vor.u32 %v13040_v18, %v12243_v5  ;;  %v12964_v5 = vld [vmem:[%s14114_s10 + $0x1614] sm:$0xf0]  ;;  %v12084_v18 = vor.u32 %v13000_v8, %v12083_v4  ;;  %v12318_v43 = vld [vmem:[%s14114_s10 + $0x1ec] sm:$0xf] }
 0x3ea   : > { %8461 = vmatpush.bf16.msrb.mxu3 %v11844_v36  ;;  %v11971_v36 = vld [vmem:[%s14114_s10 + $0x1648] sm:$0xf]  ;;  %v12350_v48 = vld [vmem:[%s14114_s10 + $0x2ec] sm:$0xf] }
 0x3eb   : > { %8471 = vmatpush.bf16.msra.mxu0 %v12020_v41  ;;  %v12972_v41 = vld [vmem:[%s14114_s10 + $0x1654] sm:$0xf0]  ;;  %v12382_v27 = vld [vmem:[%s14114_s10 + $0x3ec] sm:$0xf] }
 0x3ec   : > { %8484 = vmatpush.bf16.msra.mxu1 %v12148_v52  ;;  %v12227_v52 = vld [vmem:[%s14114_s10 + $0x1848] sm:$0xf]  ;;  %v8233_v60 = vpop.f32.mrf.mxu1  ;;  %v12314_v4 = vld [vmem:[%s14114_s10 + $0x1cc] sm:$0xf] }
 0x3ed   : > { %8449 = vmatpush.bf16.msrb.mxu2 %v11700_v63  ;;  %v11972_v63 = vor.u32 %v12972_v41, %v11971_v36  ;;  %v12228_v45 = vor.u32 %v13036_v56, %v12227_v52  ;;  %v12274_v36 = vld [vmem:[%s14114_s10 + $0x8c] sm:$0xf]  ;;  %v9189_v41 = vld [vmem:[%s14114_s10 + $0x98] sm:$0xf0]  ;;  %v11940_v52 = vor.u32 %v12964_v5, %v11939_v16 }
 0x3ee   : > { %8462 = vmatpush.bf16.msrb.mxu3 %v11828_v3  ;;  %v11955_v3 = vld [vmem:[%s14114_s10 + $0x1628] sm:$0xf]  ;;  %v9493_v56 = vld [vmem:[%s14114_s10 + $0x2f8] sm:$0xf0]  ;;  %v9192_v60 = vor.u32 %v12274_v36, %v9189_v41  ;;  %v12346_v8 = vld [vmem:[%s14114_s10 + $0x2cc] sm:$0xf] }
 0x3ef   : > { %8472 = vmatpush.bf16.msra.mxu0 %v12004_v7  ;;  %v12968_v7 = vld [vmem:[%s14114_s10 + $0x1634] sm:$0xf0]  ;;  %v12266_v16 = vld [vmem:[%s14114_s10 + $0x4c] sm:$0xf]  ;;  %v9157_v5 = vld [vmem:[%s14114_s10 + $0x58] sm:$0xf0] }
 0x3f0   : > { %8485 = vmatpush.bf16.msra.mxu1 %v12132_v12  ;;  %v13032_v12 = vld [vmem:[%s14114_s10 + $0x1834] sm:$0xf0]  ;;  %v11956_v14 = vor.u32 %v12968_v7, %v11955_v3  ;;  %v9496_v3 = vor.u32 %v12350_v48, %v9493_v56  ;;  %v9624_v7 = vor.u32 %v12382_v27, %v9621_v57  ;;  %v12374_v36 = vld [vmem:[%s14114_s10 + $0x3ac] sm:$0xf]  ;;  %v9589_v41 = vld [vmem:[%s14114_s10 + $0x3b8] sm:$0xf0] }
 0x3f1   : > { %8450 = vmatpush.bf16.msrb.mxu2 %v11684_v19  ;;  %v12212_v19 = vor.u32 %v13032_v12, %v12211_v10  ;;  %v9477_v10 = vld [vmem:[%s14114_s10 + $0x2d8] sm:$0xf0]  ;;  %v12378_v12 = vld [vmem:[%s14114_s10 + $0x3cc] sm:$0xf]  ;;  %v9592_v57 = vor.u32 %v12374_v36, %v9589_v41 }
 0x3f2   : > { %8463 = vmatpush.bf16.msrb.mxu3 %v11812_v31  ;;  %v12195_v31 = vld [vmem:[%s14114_s10 + $0x1808] sm:$0xf]  ;;  %v9141_v56 = vld [vmem:[%s14114_s10 + $0x38] sm:$0xf0] }
 0x3f3   : > { %8473 = vmatpush.bf16.msra.mxu0 %v11988_v17  ;;  %v9208_v17 = vor.u32 %v12278_v62, %v9205_v11  ;;  %v9605_v62 = vld [vmem:[%s14114_s10 + $0x3d8] sm:$0xf0] }
 0x3f4   : > { %8486 = vmatpush.bf16.msra.mxu1 %v12116_v23  ;;  %8451 = vmatmul.bf16.vlgmr.msrb.gmra.mxu2 %v14617_v20  ;;  %v8219_v23 = vadd.f32 %v15471_v61, %v15461_v33  ;;  %v12068_v33 = vor.u32 %v12996_v22, %v12067_v21  ;;  %v9480_v21 = vor.u32 %v12346_v8, %v9477_v10  ;;  %v12258_v10 = vld [vmem:[%s14114_s10 + $0xc] sm:$0xf] }
 0x3f5   : > { %8499 = vmatpush.bf16.msra.mxu2 %v12244_v35  ;;  %8464 = vmatmul.bf16.vlgmr.msrb.gmra.mxu3 %v14624_v25  ;;  %v13028_v35 = vld [vmem:[%s14114_s10 + $0x1814] sm:$0xf0]  ;;  %v9608_v22 = vor.u32 %v12378_v12, %v9605_v62  ;;  %v9125_v12 = vld [vmem:[%s14114_s10 + $0x18] sm:$0xf0] }
 0x3f6   : > { %8508 = vmatpush.bf16.msra.mxu3 %v9240_v49  ;;  %v9365_v49 = vld [vmem:[%s14114_s10 + $0x1f8] sm:$0xf0]  ;;  %v12196_v61 = vor.u32 %v13028_v35, %v12195_v31  ;;  %v8232_v59 = vadd.f32 %v15474_v2, %v8219_v23  ;;  %v12310_v31 = vld [vmem:[%s14114_s10 + $0x1ac] sm:$0xf] }
 0x3f7   : > { %8474 = vmatpush.bf16.msra.mxu0 %v11972_v63  ;;  %v9368_v63 = vor.u32 %v12318_v43, %v9365_v49  ;;  %v8244_v2 = vpop.f32.mrf.mxu2  ;;  %v12342_v23 = vld [vmem:[%s14114_s10 + $0x2ac] sm:$0xf]  ;;  %v9461_v35 = vld [vmem:[%s14114_s10 + $0x2b8] sm:$0xf0]  ;;  %v9160_v49 = vor.u32 %v12266_v16, %v9157_v5 }
 0x3f8   : > { %8487 = vmatpush.bf16.msra.mxu1 %v12100_v0  ;;  %v12270_v0 = vld [vmem:[%s14114_s10 + $0x6c] sm:$0xf]  ;;  %v9464_v27 = vor.u32 %v12342_v23, %v9461_v35  ;;  %v9301_v5 = vld [vmem:[%s14114_s10 + $0x178] sm:$0xf0]  ;;  %v9128_v23 = vor.u32 %v12258_v10, %v9125_v12 }
 0x3f9   : > { %8500 = vmatpush.bf16.msra.mxu2 %v12228_v45  ;;  %v9173_v45 = vld [vmem:[%s14114_s10 + $0x78] sm:$0xf0]  ;;  %v12302_v16 = vld [vmem:[%s14114_s10 + $0x16c] sm:$0xf] }
 0x3fa   : > { %8509 = vmatpush.bf16.msra.mxu3 %v9224_v6  ;;  %v9349_v6 = vld [vmem:[%s14114_s10 + $0x1d8] sm:$0xf0]  ;;  %v9176_v11 = vor.u32 %v12270_v0, %v9173_v45  ;;  %v12370_v0 = vld [vmem:[%s14114_s10 + $0x38c] sm:$0xf]  ;;  %v9304_v35 = vor.u32 %v12302_v16, %v9301_v5 }
 0x3fb   : > { %8475 = vmatpush.bf16.msra.mxu0 %v11956_v14  ;;  %v9352_v14 = vor.u32 %v12314_v4, %v9349_v6  ;;  %v9573_v45 = vld [vmem:[%s14114_s10 + $0x398] sm:$0xf0]  ;;  %v12358_v10 = vld [vmem:[%s14114_s10 + $0x32c] sm:$0xf] }
 0x3fc   : > { %8488 = vmatpush.bf16.msra.mxu1 %v12084_v18  ;;  %v8245_v18 = vadd.f32 %v8244_v2, %v8232_v59  ;;  %v12338_v59 = vld [vmem:[%s14114_s10 + $0x28c] sm:$0xf]  ;;  %v9525_v12 = vld [vmem:[%s14114_s10 + $0x338] sm:$0xf0] }
 0x3fd   : > { %8501 = vmatpush.bf16.msra.mxu2 %v12212_v19  ;;  %v8257_v19 = vpop.f32.mrf.mxu3  ;;  %v12290_v16 = vld [vmem:[%s14114_s10 + $0x10c] sm:$0xf]  ;;  %v9253_v5 = vld [vmem:[%s14114_s10 + $0x118] sm:$0xf0] }
 0x3fe   : > { %8510 = vmatpush.bf16.msra.mxu3 %v9208_v17  ;;  %v9333_v17 = vld [vmem:[%s14114_s10 + $0x1b8] sm:$0xf0]  ;;  %v8258_v43 = vadd.f32 %v8257_v19, %v8245_v18  ;;  %v12334_v18 = vld [vmem:[%s14114_s10 + $0x26c] sm:$0xf] }
 0x3ff   : > { %8476 = vmatpush.bf16.msra.mxu0 %v11940_v52  ;;  %v9336_v48 = vor.u32 %v12310_v31, %v9333_v17  ;;  %v12262_v52 = vld [vmem:[%s14114_s10 + $0x2c] sm:$0xf]  ;;  %v8246_v4 = vpop.f32.mrf.mxu2  ;;  %v9429_v19 = vld [vmem:[%s14114_s10 + $0x278] sm:$0xf0] }
 0x400   : > { %8489 = vmatpush.bf16.msra.mxu1 %v12068_v33  ;;  %v12306_v33 = vld [vmem:[%s14114_s10 + $0x18c] sm:$0xf]  ;;  %v9144_v6 = vor.u32 %v12262_v52, %v9141_v56  ;;  %v9749_v17 = vld [vmem:[%s14114_s10 + $0x4f8] sm:$0xf0]  ;;  %v9432_v36 = vor.u32 %v12334_v18, %v9429_v19  ;;  %v9528_v19 = vor.u32 %v12358_v10, %v9525_v12 }
 0x401   : > { %8502 = vmatpush.bf16.msra.mxu2 %v12196_v61  ;;  %v9317_v61 = vld [vmem:[%s14114_s10 + $0x198] sm:$0xf0]  ;;  %v12414_v31 = vld [vmem:[%s14114_s10 + $0x4ec] sm:$0xf] }
 0x402   : > { %8511 = vmatpush.bf16.msra.mxu3 %v9192_v60  ;;  %8477 = vmatmul.bf16.vlgmr.msra.gmra.mxu0 %v14622_v24  ;;  %v8270_v60 = vpop.f32.mrf.mxu0  ;;  %v9320_v8 = vor.u32 %v12306_v33, %v9317_v61  ;;  %v9752_v52 = vor.u32 %v12414_v31, %v9749_v17  ;;  %v9413_v56 = vld [vmem:[%s14114_s10 + $0x258] sm:$0xf0]  ;;  %v12410_v61 = vld [vmem:[%s14114_s10 + $0x4cc] sm:$0xf] }
 0x403   : > { %8521 = vmatpush.bf16.msrb.mxu0 %v9368_v63  ;;  %8490 = vmatmul.bf16.vlgmr.msra.gmra.mxu1 %v14628_v28  ;;  %v9445_v63 = vld [vmem:[%s14114_s10 + $0x298] sm:$0xf0]  ;;  %v12326_v4 = vld [vmem:[%s14114_s10 + $0x22c] sm:$0xf] }
 0x404   : > { %8534 = vmatpush.bf16.msrb.mxu1 %v9496_v3  ;;  %12251 = vmatmul.msk.bf16.vlgmr.msra.gmra.mxu2 %vm7529_vm1, %v14669_v1  ;;  %v8271_v3 = vadd.f32 %v8270_v60, %v8258_v43  ;;  %v9448_v2 = vor.u32 %v12338_v59, %v9445_v63  ;;  %v12298_v43 = vld [vmem:[%s14114_s10 + $0x14c] sm:$0xf]  ;;  %v9733_v59 = vld [vmem:[%s14114_s10 + $0x4d8] sm:$0xf0] }
 0x405   : > { %8547 = vmatpush.bf16.msrb.mxu2 %v9624_v7  ;;  %v8283_v7 = vpop.f32.mrf.mxu1  ;;  %v8259_v62 = vpop.f32.mrf.mxu3  ;;  %v12354_v31 = vld [vmem:[%s14114_s10 + $0x30c] sm:$0xf]  ;;  %v9509_v17 = vld [vmem:[%s14114_s10 + $0x318] sm:$0xf0] }
 0x406   : > { %8512 = vmatpush.bf16.msra.mxu3 %v9176_v11  ;;  %v9576_v11 = vor.u32 %v12370_v0, %v9573_v45  ;;  %v12406_v62 = vld [vmem:[%s14114_s10 + $0x4ac] sm:$0xf] }
 0x407   : > { %8522 = vmatpush.bf16.msrb.mxu0 %v9352_v14  ;;  %v15552_v14 = vadd.f32 %v8283_v7, %v8271_v3  ;;  %v12294_v3 = vld [vmem:[%s14114_s10 + $0x12c] sm:$0xf]  ;;  %v9269_v7 = vld [vmem:[%s14114_s10 + $0x138] sm:$0xf0] }
 0x408   : > { %8535 = vmatpush.bf16.msrb.mxu1 %v9480_v21  ;;  %v12366_v21 = vld [vmem:[%s14114_s10 + $0x36c] sm:$0xf] }
 0x409   : > { %8548 = vmatpush.bf16.msrb.mxu2 %v9608_v22  ;;  %v9557_v22 = vld [vmem:[%s14114_s10 + $0x378] sm:$0xf0] }
 0x40a   : > { %8513 = vmatpush.bf16.msra.mxu3 %v9160_v49  ;;  %v9560_v41 = vor.u32 %v12366_v21, %v9557_v22  ;;  %v9285_v49 = vld [vmem:[%s14114_s10 + $0x158] sm:$0xf0]  ;;  %v8272_v33 = vpop.f32.mrf.mxu0  ;;  %v12322_v21 = vld [vmem:[%s14114_s10 + $0x20c] sm:$0xf] }
 0x40b   : > { %8523 = vmatpush.bf16.msrb.mxu0 %v9336_v48  ;;  %v12330_v48 = vld [vmem:[%s14114_s10 + $0x24c] sm:$0xf]  ;;  %v9288_v63 = vor.u32 %v12298_v43, %v9285_v49  ;;  %v9381_v22 = vld [vmem:[%s14114_s10 + $0x218] sm:$0xf0]  ;;  %v9256_v49 = vor.u32 %v12290_v16, %v9253_v5 }
 0x40c   : > { %8536 = vmatpush.bf16.msrb.mxu1 %v9464_v27  ;;  %v12362_v27 = vld [vmem:[%s14114_s10 + $0x34c] sm:$0xf]  ;;  %v9416_v0 = vor.u32 %v12330_v48, %v9413_v56  ;;  %v10005_v48 = vld [vmem:[%s14114_s10 + $0x6f8] sm:$0xf0] }
 0x40d   : > { %8549 = vmatpush.bf16.msrb.mxu2 %v9592_v57  ;;  %v9541_v57 = vld [vmem:[%s14114_s10 + $0x358] sm:$0xf0]  ;;  %v8285_v60 = vpop.f32.mrf.mxu1  ;;  %v12478_v43 = vld [vmem:[%s14114_s10 + $0x6ec] sm:$0xf] }
 0x40e   : > { %8514 = vmatpush.bf16.msra.mxu3 %v9144_v6  ;;  %v9544_v45 = vor.u32 %v12362_v27, %v9541_v57  ;;  %v9736_v6 = vor.u32 %v12410_v61, %v9733_v59  ;;  %v10133_v56 = vld [vmem:[%s14114_s10 + $0x7f8] sm:$0xf0]  ;;  %v9384_v27 = vor.u32 %v12322_v21, %v9381_v22  ;;  %v9512_v57 = vor.u32 %v12354_v31, %v9509_v17  ;;  %v12398_v59 = vld [vmem:[%s14114_s10 + $0x46c] sm:$0xf] }
 0x40f   : > { %8524 = vmatpush.bf16.msrb.mxu0 %v9320_v8  ;;  %v9397_v8 = vld [vmem:[%s14114_s10 + $0x238] sm:$0xf0]  ;;  %v12394_v16 = vld [vmem:[%s14114_s10 + $0x44c] sm:$0xf] }
 0x410   : > { %8537 = vmatpush.bf16.msrb.mxu1 %v9448_v2  ;;  %v9717_v2 = vld [vmem:[%s14114_s10 + $0x4b8] sm:$0xf0]  ;;  %v9400_v18 = vor.u32 %v12326_v4, %v9397_v8  ;;  %v12438_v21 = vld [vmem:[%s14114_s10 + $0x5ac] sm:$0xf] }
 0x411   : > { %8550 = vmatpush.bf16.msrb.mxu2 %v9576_v11  ;;  %v9272_v11 = vor.u32 %v12294_v3, %v9269_v7  ;;  %v9685_v60 = vld [vmem:[%s14114_s10 + $0x478] sm:$0xf0]  ;;  %v12474_v7 = vld [vmem:[%s14114_s10 + $0x6cc] sm:$0xf] }
 0x412   : > { %8515 = vmatpush.bf16.msra.mxu3 %v9128_v23  ;;  %v12402_v23 = vld [vmem:[%s14114_s10 + $0x48c] sm:$0xf]  ;;  %v9861_v3 = vld [vmem:[%s14114_s10 + $0x5d8] sm:$0xf0]  ;;  %v9688_v12 = vor.u32 %v12398_v59, %v9685_v60 }
 0x413   : > { %8525 = vmatpush.bf16.msrb.mxu0 %v9304_v35  ;;  %v9701_v35 = vld [vmem:[%s14114_s10 + $0x498] sm:$0xf0]  ;;  %v12470_v31 = vld [vmem:[%s14114_s10 + $0x6ac] sm:$0xf] }
 0x414   : > { %8538 = vmatpush.bf16.msrb.mxu1 %v9432_v36  ;;  %v12446_v36 = vld [vmem:[%s14114_s10 + $0x5ec] sm:$0xf]  ;;  %v9704_v33 = vor.u32 %v12402_v23, %v9701_v35  ;;  %v9989_v4 = vld [vmem:[%s14114_s10 + $0x6d8] sm:$0xf0] }
 0x415   : > { %8551 = vmatpush.bf16.msrb.mxu2 %v9560_v41  ;;  %8516 = vmatmul.bf16.vlgmr.msra.gmra.mxu3 %v14230_v29  ;;  %v9720_v29 = vor.u32 %v12406_v62, %v9717_v2  ;;  %v9877_v41 = vld [vmem:[%s14114_s10 + $0x5f8] sm:$0xf0]  ;;  %v12502_v23 = vld [vmem:[%s14114_s10 + $0x7ac] sm:$0xf] }
 0x416   : > { %8560 = vmatpush.bf16.msrb.mxu3 %v9752_v52  ;;  %v12510_v52 = vld [vmem:[%s14114_s10 + $0x7ec] sm:$0xf]  ;;  %v9880_v61 = vor.u32 %v12446_v36, %v9877_v41  ;;  %v10117_v8 = vld [vmem:[%s14114_s10 + $0x7d8] sm:$0xf0] }
 0x417   : > { %8526 = vmatpush.bf16.msrb.mxu0 %v9288_v63  ;;  %v10008_v63 = vor.u32 %v12478_v43, %v10005_v48  ;;  %v8296_v10 = vpop.f32.mrf.mxu2  ;;  %v9669_v5 = vld [vmem:[%s14114_s10 + $0x458] sm:$0xf0]  ;;  %v12390_v41 = vld [vmem:[%s14114_s10 + $0x42c] sm:$0xf] }
 0x418   : > { %8539 = vmatpush.bf16.msrb.mxu1 %v9416_v0  ;;  %v10136_v0 = vor.u32 %v12510_v52, %v10133_v56  ;;  %v8297_v62 = vadd.f32 %v8296_v10, %v15552_v14  ;;  %v9845_v22 = vld [vmem:[%s14114_s10 + $0x5b8] sm:$0xf0]  ;;  %v9672_v14 = vor.u32 %v12394_v16, %v9669_v5  ;;  %v12542_v16 = vld [vmem:[%s14114_s10 + $0x8ec] sm:$0xf] }
 0x419   : > { %8552 = vmatpush.bf16.msrb.mxu2 %v9544_v45  ;;  %v12442_v45 = vld [vmem:[%s14114_s10 + $0x5cc] sm:$0xf]  ;;  %v9973_v17 = vld [vmem:[%s14114_s10 + $0x6b8] sm:$0xf0]  ;;  %v9848_v36 = vor.u32 %v12438_v21, %v9845_v22 }
 0x41a   : > { %8561 = vmatpush.bf16.msrb.mxu3 %v9736_v6  ;;  %v12506_v6 = vld [vmem:[%s14114_s10 + $0x7cc] sm:$0xf]  ;;  %v9864_v2 = vor.u32 %v12442_v45, %v9861_v3  ;;  %v10101_v35 = vld [vmem:[%s14114_s10 + $0x7b8] sm:$0xf0] }
 0x41b   : > { %8527 = vmatpush.bf16.msrb.mxu0 %v9272_v11  ;;  %v8309_v11 = vpop.f32.mrf.mxu3  ;;  %v9653_v43 = vld [vmem:[%s14114_s10 + $0x438] sm:$0xf0]  ;;  %v10104_v48 = vor.u32 %v12502_v23, %v10101_v35 }
 0x41c   : > { %8540 = vmatpush.bf16.msrb.mxu1 %v9400_v18  ;;  %v9992_v18 = vor.u32 %v12474_v7, %v9989_v4  ;;  %v9829_v52 = vld [vmem:[%s14114_s10 + $0x598] sm:$0xf0]  ;;  %v9656_v60 = vor.u32 %v12390_v41, %v9653_v43  ;;  %v12538_v43 = vld [vmem:[%s14114_s10 + $0x8cc] sm:$0xf] }
 0x41d   : > { %8553 = vmatpush.bf16.msrb.mxu2 %v9528_v19  ;;  %v10120_v19 = vor.u32 %v12506_v6, %v10117_v8  ;;  %v9637_v45 = vld [vmem:[%s14114_s10 + $0x418] sm:$0xf0]  ;;  %v12430_v8 = vld [vmem:[%s14114_s10 + $0x56c] sm:$0xf] }
 0x41e   : > { %8562 = vmatpush.bf16.msrb.mxu3 %v9720_v29  ;;  %v8310_v29 = vadd.f32 %v8309_v11, %v8297_v62  ;;  %v9813_v10 = vld [vmem:[%s14114_s10 + $0x578] sm:$0xf0] }
 0x41f   : > { %8528 = vmatpush.bf16.msrb.mxu0 %v9256_v49  ;;  %v9976_v49 = vor.u32 %v12470_v31, %v9973_v17  ;;  %v8322_v56 = vpop.f32.mrf.mxu0  ;;  %v8298_v59 = vpop.f32.mrf.mxu2  ;;  %v9941_v62 = vld [vmem:[%s14114_s10 + $0x678] sm:$0xf0]  ;;  %v12426_v31 = vld [vmem:[%s14114_s10 + $0x54c] sm:$0xf] }
 0x420   : > { %8541 = vmatpush.bf16.msrb.mxu1 %v9384_v27  ;;  %v9957_v27 = vld [vmem:[%s14114_s10 + $0x698] sm:$0xf0]  ;;  %v12458_v17 = vld [vmem:[%s14114_s10 + $0x64c] sm:$0xf] }
 0x421   : > { %8554 = vmatpush.bf16.msrb.mxu2 %v9512_v57  ;;  %v10085_v57 = vld [vmem:[%s14114_s10 + $0x798] sm:$0xf0] }
 0x422   : > { %8563 = vmatpush.bf16.msrb.mxu3 %v9704_v33  ;;  %8529 = vmatmul.bf16.vlgmr.msrb.gmra.mxu0 %v14233_v30  ;;  %v12466_v30 = vld [vmem:[%s14114_s10 + $0x68c] sm:$0xf]  ;;  %v8323_v33 = vadd.f32 %v8322_v56, %v8310_v29  ;;  %v10069_v11 = vld [vmem:[%s14114_s10 + $0x778] sm:$0xf0] }
 0x423   : > { %8573 = vmatpush.bf16.msra.mxu0 %v9880_v61  ;;  %8542 = vmatmul.bf16.vlgmr.msrb.gmra.mxu1 %v14214_v13  ;;  %v12498_v13 = vld [vmem:[%s14114_s10 + $0x78c] sm:$0xf]  ;;  %v8335_v61 = vpop.f32.mrf.mxu1  ;;  %v8311_v3 = vpop.f32.mrf.mxu3  ;;  %v9960_v7 = vor.u32 %v12466_v30, %v9957_v27  ;;  %v10261_v5 = vld [vmem:[%s14114_s10 + $0x8f8] sm:$0xf0] }
 0x424   : > { %8586 = vmatpush.bf16.msra.mxu1 %v10008_v63  ;;  %8555 = vmatmul.bf16.vlgmr.msrb.gmra.mxu2 %v14219_v15  ;;  %v12434_v15 = vld [vmem:[%s14114_s10 + $0x58c] sm:$0xf]  ;;  %v10088_v4 = vor.u32 %v12498_v13, %v10085_v57  ;;  %v15623_v6 = vadd.f32 %v8335_v61, %v8323_v33  ;;  %v9797_v29 = vld [vmem:[%s14114_s10 + $0x558] sm:$0xf0]  ;;  %v10264_v23 = vor.u32 %v12542_v16, %v10261_v5 }
 0x425   : > { %8599 = vmatpush.bf16.msra.mxu2 %v10136_v0  ;;  %v9832_v63 = vor.u32 %v12434_v15, %v9829_v52  ;;  %v12386_v0 = vld [vmem:[%s14114_s10 + $0x40c] sm:$0xf]  ;;  %v9925_v35 = vld [vmem:[%s14114_s10 + $0x658] sm:$0xf0]  ;;  %v9800_v15 = vor.u32 %v12426_v31, %v9797_v29 }
 0x426   : > { %8564 = vmatpush.bf16.msrb.mxu3 %v9688_v12  ;;  %v12462_v12 = vld [vmem:[%s14114_s10 + $0x66c] sm:$0xf]  ;;  %v9928_v52 = vor.u32 %v12458_v17, %v9925_v35  ;;  %v9781_v27 = vld [vmem:[%s14114_s10 + $0x538] sm:$0xf0] }
 0x427   : > { %8574 = vmatpush.bf16.msra.mxu0 %v9864_v2  ;;  %v12494_v2 = vld [vmem:[%s14114_s10 + $0x76c] sm:$0xf]  ;;  %v9944_v21 = vor.u32 %v12462_v12, %v9941_v62  ;;  %v8324_v41 = vpop.f32.mrf.mxu0  ;;  %v9909_v33 = vld [vmem:[%s14114_s10 + $0x638] sm:$0xf0] }
 0x428   : > { %8587 = vmatpush.bf16.msra.mxu1 %v9992_v18  ;;  %v9640_v18 = vor.u32 %v12386_v0, %v9637_v45  ;;  %v10072_v22 = vor.u32 %v12494_v2, %v10069_v11  ;;  %v12422_v56 = vld [vmem:[%s14114_s10 + $0x52c] sm:$0xf]  ;;  %v10037_v59 = vld [vmem:[%s14114_s10 + $0x738] sm:$0xf0] }
 0x429   : > { %8600 = vmatpush.bf16.msra.mxu2 %v10120_v19  ;;  %v9816_v19 = vor.u32 %v12430_v8, %v9813_v10  ;;  %v12454_v13 = vld [vmem:[%s14114_s10 + $0x62c] sm:$0xf]  ;;  %v9784_v0 = vor.u32 %v12422_v56, %v9781_v27  ;;  %v9765_v3 = vld [vmem:[%s14114_s10 + $0x518] sm:$0xf0] }
 0x42a   : > { %8565 = vmatpush.bf16.msrb.mxu3 %v9672_v14  ;;  %v12490_v14 = vld [vmem:[%s14114_s10 + $0x74c] sm:$0xf]  ;;  %v9893_v8 = vld [vmem:[%s14114_s10 + $0x618] sm:$0xf0] }
 0x42b   : > { %8575 = vmatpush.bf16.msra.mxu0 %v9848_v36  ;;  %v10053_v36 = vld [vmem:[%s14114_s10 + $0x758] sm:$0xf0]  ;;  %v12486_v61 = vld [vmem:[%s14114_s10 + $0x72c] sm:$0xf] }
 0x42c   : > { %8588 = vmatpush.bf16.msra.mxu1 %v9976_v49  ;;  %v10245_v49 = vld [vmem:[%s14114_s10 + $0x8d8] sm:$0xf0]  ;;  %v10056_v30 = vor.u32 %v12490_v14, %v10053_v36  ;;  %v12418_v45 = vld [vmem:[%s14114_s10 + $0x50c] sm:$0xf] }
 0x42d   : > { %8601 = vmatpush.bf16.msra.mxu2 %v10104_v48  ;;  %v8337_v48 = vpop.f32.mrf.mxu1  ;;  %v10248_v57 = vor.u32 %v12538_v43, %v10245_v49  ;;  %v12482_v10 = vld [vmem:[%s14114_s10 + $0x70c] sm:$0xf]  ;;  %v10021_v62 = vld [vmem:[%s14114_s10 + $0x718] sm:$0xf0] }
 0x42e   : > { %8566 = vmatpush.bf16.msrb.mxu3 %v9656_v60  ;;  %v12534_v60 = vld [vmem:[%s14114_s10 + $0x8ac] sm:$0xf]  ;;  %v10213_v11 = vld [vmem:[%s14114_s10 + $0x898] sm:$0xf0]  ;;  %v10024_v17 = vor.u32 %v12482_v10, %v10021_v62 }
 0x42f   : > { %8576 = vmatpush.bf16.msra.mxu0 %v9832_v63  ;;  %v10229_v63 = vld [vmem:[%s14114_s10 + $0x8b8] sm:$0xf0]  ;;  %v12530_v2 = vld [vmem:[%s14114_s10 + $0x88c] sm:$0xf] }
 0x430   : > { %8589 = vmatpush.bf16.msra.mxu1 %v9960_v7  ;;  %v9912_v7 = vor.u32 %v12454_v13, %v9909_v33  ;;  %v10232_v12 = vor.u32 %v12534_v60, %v10229_v63  ;;  %v12574_v16 = vld [vmem:[%s14114_s10 + $0x9ec] sm:$0xf]  ;;  %v10389_v5 = vld [vmem:[%s14114_s10 + $0x9f8] sm:$0xf0] }
 0x431   : > { %8602 = vmatpush.bf16.msra.mxu2 %v10088_v4  ;;  %v10040_v4 = vor.u32 %v12486_v61, %v10037_v59  ;;  %v10645_v31 = vld [vmem:[%s14114_s10 + $0xbf8] sm:$0xf0]  ;;  %v10392_v35 = vor.u32 %v12574_v16, %v10389_v5  ;;  %v12526_v14 = vld [vmem:[%s14114_s10 + $0x86c] sm:$0xf] }
 0x432   : > { %8567 = vmatpush.bf16.msrb.mxu3 %v9640_v18  ;;  %v12606_v18 = vld [vmem:[%s14114_s10 + $0xaec] sm:$0xf]  ;;  %v10197_v36 = vld [vmem:[%s14114_s10 + $0x878] sm:$0xf0] }
 0x433   : > { %8577 = vmatpush.bf16.msra.mxu0 %v9816_v19  ;;  %v9768_v19 = vor.u32 %v12418_v45, %v9765_v3  ;;  %v12570_v49 = vld [vmem:[%s14114_s10 + $0x9cc] sm:$0xf]  ;;  %v10373_v48 = vld [vmem:[%s14114_s10 + $0x9d8] sm:$0xf0]  ;;  %v10200_v13 = vor.u32 %v12526_v14, %v10197_v36 }
 0x434   : > { %8590 = vmatpush.bf16.msra.mxu1 %v9944_v21  ;;  %v10517_v21 = vld [vmem:[%s14114_s10 + $0xaf8] sm:$0xf0]  ;;  %v10376_v33 = vor.u32 %v12570_v49, %v10373_v48  ;;  %v12522_v59 = vld [vmem:[%s14114_s10 + $0x84c] sm:$0xf] }
 0x435   : > { %8603 = vmatpush.bf16.msra.mxu2 %v10072_v22  ;;  %8568 = vmatmul.bf16.vlgmr.msrb.gmra.mxu3 %v14293_v50  ;;  %v12450_v50 = vld [vmem:[%s14114_s10 + $0x60c] sm:$0xf]  ;;  %v10520_v41 = vor.u32 %v12606_v18, %v10517_v21  ;;  %v10629_v56 = vld [vmem:[%s14114_s10 + $0xbd8] sm:$0xf0] }
 0x436   : > { %8612 = vmatpush.bf16.msra.mxu3 %v10264_v23  ;;  %v12638_v22 = vld [vmem:[%s14114_s10 + $0xbec] sm:$0xf]  ;;  %v9896_v29 = vor.u32 %v12450_v50, %v9893_v8  ;;  %v10216_v23 = vor.u32 %v12530_v2, %v10213_v11  ;;  %v10181_v60 = vld [vmem:[%s14114_s10 + $0x858] sm:$0xf0] }
 0x437   : > { %8578 = vmatpush.bf16.msra.mxu0 %v9800_v15  ;;  %v10648_v43 = vor.u32 %v12638_v22, %v10645_v31  ;;  %v12602_v15 = vld [vmem:[%s14114_s10 + $0xacc] sm:$0xf]  ;;  %v8348_v27 = vpop.f32.mrf.mxu2  ;;  %v10357_v3 = vld [vmem:[%s14114_s10 + $0x9b8] sm:$0xf0]  ;;  %v10184_v10 = vor.u32 %v12522_v59, %v10181_v60 }
 0x438   : > { %8591 = vmatpush.bf16.msra.mxu1 %v9928_v52  ;;  %v10501_v52 = vld [vmem:[%s14114_s10 + $0xad8] sm:$0xf0]  ;;  %v8361_v61 = vpop.f32.mrf.mxu3  ;;  %v12566_v45 = vld [vmem:[%s14114_s10 + $0x9ac] sm:$0xf] }
 0x439   : > { %8604 = vmatpush.bf16.msra.mxu2 %v10056_v30  ;;  %v12634_v30 = vld [vmem:[%s14114_s10 + $0xbcc] sm:$0xf]  ;;  %v10504_v63 = vor.u32 %v12602_v15, %v10501_v52  ;;  %v10613_v8 = vld [vmem:[%s14114_s10 + $0xbb8] sm:$0xf0] }
 0x43a   : > { %8613 = vmatpush.bf16.msra.mxu3 %v10248_v57  ;;  %v8349_v57 = vadd.f32 %v8348_v27, %v15623_v6  ;;  %v12630_v50 = vld [vmem:[%s14114_s10 + $0xbac] sm:$0xf]  ;;  %v10341_v16 = vld [vmem:[%s14114_s10 + $0x998] sm:$0xf0] }
 0x43b   : > { %8579 = vmatpush.bf16.msra.mxu0 %v9784_v0  ;;  %v10632_v0 = vor.u32 %v12634_v30, %v10629_v56  ;;  %v12518_v62 = vld [vmem:[%s14114_s10 + $0x82c] sm:$0xf]  ;;  %v10616_v2 = vor.u32 %v12630_v50, %v10613_v8  ;;  %v10597_v21 = vld [vmem:[%s14114_s10 + $0xb98] sm:$0xf0] }
 0x43c   : > { %8592 = vmatpush.bf16.msra.mxu1 %v9912_v7  ;;  %v12598_v7 = vld [vmem:[%s14114_s10 + $0xaac] sm:$0xf]  ;;  %v8362_v6 = vadd.f32 %v8361_v61, %v8349_v57  ;;  %v10149_v14 = vld [vmem:[%s14114_s10 + $0x818] sm:$0xf0] }
 0x43d   : > { %8605 = vmatpush.bf16.msra.mxu2 %v10040_v4  ;;  %v10485_v4 = vld [vmem:[%s14114_s10 + $0xab8] sm:$0xf0]  ;;  %v12562_v11 = vld [vmem:[%s14114_s10 + $0x98c] sm:$0xf] }
 0x43e   : > { %8614 = vmatpush.bf16.msra.mxu3 %v10232_v12  ;;  %v10360_v12 = vor.u32 %v12566_v45, %v10357_v3  ;;  %v12594_v5 = vld [vmem:[%s14114_s10 + $0xa8c] sm:$0xf]  ;;  %v10325_v15 = vld [vmem:[%s14114_s10 + $0x978] sm:$0xf0] }
 0x43f   : > { %8580 = vmatpush.bf16.msra.mxu0 %v9768_v19  ;;  %v8374_v18 = vpop.f32.mrf.mxu0  ;;  %v10469_v19 = vld [vmem:[%s14114_s10 + $0xa98] sm:$0xf0]  ;;  %v12558_v48 = vld [vmem:[%s14114_s10 + $0x96c] sm:$0xf] }
 0x440   : > { %8593 = vmatpush.bf16.msra.mxu1 %v9896_v29  ;;  %v8375_v22 = vadd.f32 %v8374_v18, %v8362_v6  ;;  %v8387_v31 = vpop.f32.mrf.mxu1  ;;  %v8350_v29 = vpop.f32.mrf.mxu2  ;;  %v12590_v52 = vld [vmem:[%s14114_s10 + $0xa6c] sm:$0xf]  ;;  %v10453_v30 = vld [vmem:[%s14114_s10 + $0xa78] sm:$0xf0]  ;;  %v10328_v61 = vor.u32 %v12558_v48, %v10325_v15 }
 0x441   : > { %8606 = vmatpush.bf16.msra.mxu2 %v10024_v17  ;;  %v8363_v36 = vpop.f32.mrf.mxu3  ;;  %v12622_v56 = vld [vmem:[%s14114_s10 + $0xb6c] sm:$0xf]  ;;  %v10581_v27 = vld [vmem:[%s14114_s10 + $0xb78] sm:$0xf0]  ;;  %v10456_v59 = vor.u32 %v12590_v52, %v10453_v30 }
 0x442   : > { %8615 = vmatpush.bf16.msra.mxu3 %v10216_v23  ;;  %8581 = vmatmul.bf16.vlgmr.msra.gmra.mxu0 %v14297_v53  ;;  %v10488_v53 = vor.u32 %v12598_v7, %v10485_v4  ;;  %v10344_v23 = vor.u32 %v12562_v11, %v10341_v16  ;;  %v15694_v49 = vadd.f32 %v8387_v31, %v8375_v22  ;;  %v10773_v57 = vld [vmem:[%s14114_s10 + $0xcf8] sm:$0xf0]  ;;  %v12586_v45 = vld [vmem:[%s14114_s10 + $0xa4c] sm:$0xf] }
 0x443   : > { %8625 = vmatpush.bf16.msrb.mxu0 %v10392_v35  ;;  %8594 = vmatmul.bf16.vlgmr.msra.gmra.mxu1 %v14289_v47  ;;  %v12626_v47 = vld [vmem:[%s14114_s10 + $0xb8c] sm:$0xf]  ;;  %v10584_v60 = vor.u32 %v12622_v56, %v10581_v27  ;;  %v10437_v7 = vld [vmem:[%s14114_s10 + $0xa58] sm:$0xf0] }
 0x444   : > { %8638 = vmatpush.bf16.msrb.mxu1 %v10520_v41  ;;  %8607 = vmatmul.bf16.vlgmr.msra.gmra.mxu2 %v14295_v51  ;;  %v10165_v51 = vld [vmem:[%s14114_s10 + $0x838] sm:$0xf0]  ;;  %v12514_v35 = vld [vmem:[%s14114_s10 + $0x80c] sm:$0xf]  ;;  %v10472_v41 = vor.u32 %v12594_v5, %v10469_v19 }
 0x445   : > { %8651 = vmatpush.bf16.msrb.mxu2 %v10648_v43  ;;  %v10168_v17 = vor.u32 %v12518_v62, %v10165_v51  ;;  %v10600_v43 = vor.u32 %v12626_v47, %v10597_v21  ;;  %v12618_v6 = vld [vmem:[%s14114_s10 + $0xb4c] sm:$0xf]  ;;  %v10565_v4 = vld [vmem:[%s14114_s10 + $0xb58] sm:$0xf0]  ;;  %v10440_v51 = vor.u32 %v12586_v45, %v10437_v7 }
 0x446   : > { %8616 = vmatpush.bf16.msra.mxu3 %v10200_v13  ;;  %v12670_v13 = vld [vmem:[%s14114_s10 + $0xcec] sm:$0xf]  ;;  %v10293_v11 = vld [vmem:[%s14114_s10 + $0x938] sm:$0xf0] }
 0x447   : > { %8626 = vmatpush.bf16.msrb.mxu0 %v10376_v33  ;;  %v10152_v33 = vor.u32 %v12514_v35, %v10149_v14  ;;  %v10776_v3 = vor.u32 %v12670_v13, %v10773_v57  ;;  %v8376_v50 = vpop.f32.mrf.mxu0  ;;  %v12666_v8 = vld [vmem:[%s14114_s10 + $0xccc] sm:$0xf]  ;;  %v10421_v18 = vld [vmem:[%s14114_s10 + $0xa38] sm:$0xf0] }
 0x448   : > { %8639 = vmatpush.bf16.msrb.mxu1 %v10504_v63  ;;  %v12554_v63 = vld [vmem:[%s14114_s10 + $0x94c] sm:$0xf]  ;;  %v10549_v47 = vld [vmem:[%s14114_s10 + $0xb38] sm:$0xf0] }
 0x449   : > { %8652 = vmatpush.bf16.msrb.mxu2 %v10632_v0  ;;  %v10309_v0 = vld [vmem:[%s14114_s10 + $0x958] sm:$0xf0]  ;;  %v12582_v16 = vld [vmem:[%s14114_s10 + $0xa2c] sm:$0xf] }
 0x44a   : > { %8617 = vmatpush.bf16.msra.mxu3 %v10184_v10  ;;  %v10757_v10 = vld [vmem:[%s14114_s10 + $0xcd8] sm:$0xf0]  ;;  %v10312_v62 = vor.u32 %v12554_v63, %v10309_v0  ;;  %v12614_v19 = vld [vmem:[%s14114_s10 + $0xb2c] sm:$0xf] }
 0x44b   : > { %8627 = vmatpush.bf16.msrb.mxu0 %v10360_v12  ;;  %v8389_v12 = vpop.f32.mrf.mxu1  ;;  %v10760_v5 = vor.u32 %v12666_v8, %v10757_v10  ;;  %v12662_v21 = vld [vmem:[%s14114_s10 + $0xcac] sm:$0xf]  ;;  %v10741_v22 = vld [vmem:[%s14114_s10 + $0xcb8] sm:$0xf0]  ;;  %v10552_v35 = vor.u32 %v12614_v19, %v10549_v47 }
 0x44c   : > { %8640 = vmatpush.bf16.msrb.mxu1 %v10488_v53  ;;  %v10568_v53 = vor.u32 %v12618_v6, %v10565_v4  ;;  %v12546_v29 = vld [vmem:[%s14114_s10 + $0x90c] sm:$0xf]  ;;  %v10405_v14 = vld [vmem:[%s14114_s10 + $0xa18] sm:$0xf0] }
 0x44d   : > { %8653 = vmatpush.bf16.msrb.mxu2 %v10616_v2  ;;  %v12550_v2 = vld [vmem:[%s14114_s10 + $0x92c] sm:$0xf]  ;;  %v10725_v15 = vld [vmem:[%s14114_s10 + $0xc98] sm:$0xf0] }
 0x44e   : > { %8618 = vmatpush.bf16.msra.mxu3 %v10168_v17  ;;  %v10296_v31 = vor.u32 %v12550_v2, %v10293_v11  ;;  %v10277_v17 = vld [vmem:[%s14114_s10 + $0x918] sm:$0xf0]  ;;  %v12610_v36 = vld [vmem:[%s14114_s10 + $0xb0c] sm:$0xf] }
 0x44f   : > { %8628 = vmatpush.bf16.msrb.mxu0 %v10344_v23  ;;  %v10424_v23 = vor.u32 %v12582_v16, %v10421_v18  ;;  %v12658_v48 = vld [vmem:[%s14114_s10 + $0xc8c] sm:$0xf]  ;;  %v10901_v30 = vld [vmem:[%s14114_s10 + $0xdf8] sm:$0xf0]  ;;  %v10280_v27 = vor.u32 %v12546_v29, %v10277_v17 }
 0x450   : > { %8641 = vmatpush.bf16.msrb.mxu1 %v10472_v41  ;;  %v10744_v41 = vor.u32 %v12662_v21, %v10741_v22  ;;  %v12702_v52 = vld [vmem:[%s14114_s10 + $0xdec] sm:$0xf]  ;;  %v11029_v13 = vld [vmem:[%s14114_s10 + $0xef8] sm:$0xf0] }
 0x451   : > { %8654 = vmatpush.bf16.msrb.mxu2 %v10600_v43  ;;  %v10533_v43 = vld [vmem:[%s14114_s10 + $0xb18] sm:$0xf0]  ;;  %v12734_v56 = vld [vmem:[%s14114_s10 + $0xeec] sm:$0xf]  ;;  %v10904_v63 = vor.u32 %v12702_v52, %v10901_v30 }
 0x452   : > { %8619 = vmatpush.bf16.msra.mxu3 %v10152_v33  ;;  %v12766_v57 = vld [vmem:[%s14114_s10 + $0xfec] sm:$0xf]  ;;  %v11157_v33 = vld [vmem:[%s14114_s10 + $0xff8] sm:$0xf0] }
 0x453   : > { %8629 = vmatpush.bf16.msrb.mxu0 %v10328_v61  ;;  %v12654_v0 = vld [vmem:[%s14114_s10 + $0xc6c] sm:$0xf]  ;;  %v10709_v45 = vld [vmem:[%s14114_s10 + $0xc78] sm:$0xf0]  ;;  %v11160_v7 = vor.u32 %v12766_v57, %v11157_v33 }
 0x454   : > { %8642 = vmatpush.bf16.msrb.mxu1 %v10456_v59  ;;  %v10536_v59 = vor.u32 %v12610_v36, %v10533_v43  ;;  %v12698_v6 = vld [vmem:[%s14114_s10 + $0xdcc] sm:$0xf]  ;;  %v10885_v4 = vld [vmem:[%s14114_s10 + $0xdd8] sm:$0xf0] }
 0x455   : > { %8655 = vmatpush.bf16.msrb.mxu2 %v10584_v60  ;;  %8620 = vmatmul.bf16.vlgmr.msra.gmra.mxu3 %v14368_v34  ;;  %v12578_v34 = vld [vmem:[%s14114_s10 + $0xa0c] sm:$0xf]  ;;  %v10728_v60 = vor.u32 %v12658_v48, %v10725_v15  ;;  %v11013_v8 = vld [vmem:[%s14114_s10 + $0xed8] sm:$0xf0]  ;;  %v10888_v2 = vor.u32 %v12698_v6, %v10885_v4 }
 0x456   : > { %8664 = vmatpush.bf16.msrb.mxu3 %v10776_v3  ;;  %v10408_v61 = vor.u32 %v12578_v34, %v10405_v14  ;;  %v11032_v3 = vor.u32 %v12734_v56, %v11029_v13  ;;  %v12730_v50 = vld [vmem:[%s14114_s10 + $0xecc] sm:$0xf]  ;;  %v11141_v12 = vld [vmem:[%s14114_s10 + $0xfd8] sm:$0xf0] }
 0x457   : > { %8630 = vmatpush.bf16.msrb.mxu0 %v10312_v62  ;;  %v12762_v10 = vld [vmem:[%s14114_s10 + $0xfcc] sm:$0xf]  ;;  %v8400_v62 = vpop.f32.mrf.mxu2  ;;  %v11016_v18 = vor.u32 %v12730_v50, %v11013_v8  ;;  %v10869_v21 = vld [vmem:[%s14114_s10 + $0xdb8] sm:$0xf0] }
 0x458   : > { %8643 = vmatpush.bf16.msrb.mxu1 %v10440_v51  ;;  %v10712_v51 = vor.u32 %v12654_v0, %v10709_v45  ;;  %v8413_v11 = vpop.f32.mrf.mxu3  ;;  %v12650_v16 = vld [vmem:[%s14114_s10 + $0xc4c] sm:$0xf]  ;;  %v11144_v19 = vor.u32 %v12762_v10, %v11141_v12  ;;  %v11125_v17 = vld [vmem:[%s14114_s10 + $0xfb8] sm:$0xf0] }
 0x459   : > { %8656 = vmatpush.bf16.msrb.mxu2 %v10568_v53  ;;  %v8401_v53 = vadd.f32 %v8400_v62, %v15694_v49  ;;  %v12694_v47 = vld [vmem:[%s14114_s10 + $0xdac] sm:$0xf]  ;;  %v10981_v15 = vld [vmem:[%s14114_s10 + $0xe98] sm:$0xf0] }
 0x45a   : > { %8665 = vmatpush.bf16.msrb.mxu3 %v10760_v5  ;;  %v10693_v5 = vld [vmem:[%s14114_s10 + $0xc58] sm:$0xf0]  ;;  %v12726_v22 = vld [vmem:[%s14114_s10 + $0xeac] sm:$0xf] }
 0x45b   : > { %8631 = vmatpush.bf16.msrb.mxu0 %v10296_v31  ;;  %v8414_v49 = vadd.f32 %v8413_v11, %v8401_v53  ;;  %v10997_v31 = vld [vmem:[%s14114_s10 + $0xeb8] sm:$0xf0]  ;;  %v12758_v29 = vld [vmem:[%s14114_s10 + $0xfac] sm:$0xf] }
 0x45c   : > { %8644 = vmatpush.bf16.msrb.mxu1 %v10424_v23  ;;  %v10696_v23 = vor.u32 %v12650_v16, %v10693_v5  ;;  %v12646_v34 = vld [vmem:[%s14114_s10 + $0xc2c] sm:$0xf]  ;;  %v11128_v14 = vor.u32 %v12758_v29, %v11125_v17  ;;  %v11109_v52 = vld [vmem:[%s14114_s10 + $0xf98] sm:$0xf0] }
 0x45d   : > { %8657 = vmatpush.bf16.msrb.mxu2 %v10552_v35  ;;  %v10872_v35 = vor.u32 %v12694_v47, %v10869_v21  ;;  %v12690_v36 = vld [vmem:[%s14114_s10 + $0xd8c] sm:$0xf]  ;;  %v10965_v6 = vld [vmem:[%s14114_s10 + $0xe78] sm:$0xf0] }
 0x45e   : > { %8666 = vmatpush.bf16.msrb.mxu3 %v10744_v41  ;;  %v10853_v41 = vld [vmem:[%s14114_s10 + $0xd98] sm:$0xf0]  ;;  %v12722_v43 = vld [vmem:[%s14114_s10 + $0xe8c] sm:$0xf] }
 0x45f   : > { %8632 = vmatpush.bf16.msrb.mxu0 %v10280_v27  ;;  %v8426_v48 = vpop.f32.mrf.mxu0  ;;  %v8402_v27 = vpop.f32.mrf.mxu2  ;;  %v10856_v57 = vor.u32 %v12690_v36, %v10853_v41  ;;  %v12642_v33 = vld [vmem:[%s14114_s10 + $0xc0c] sm:$0xf]  ;;  %v11093_v50 = vld [vmem:[%s14114_s10 + $0xf78] sm:$0xf0] }
 0x460   : > { %8645 = vmatpush.bf16.msrb.mxu1 %v10408_v61  ;;  %v8427_v30 = vadd.f32 %v8426_v48, %v8414_v49  ;;  %v8439_v56 = vpop.f32.mrf.mxu1  ;;  %v10661_v61 = vld [vmem:[%s14114_s10 + $0xc18] sm:$0xf0]  ;;  %v12686_v45 = vld [vmem:[%s14114_s10 + $0xd6c] sm:$0xf] }
 0x461   : > { %8658 = vmatpush.bf16.msrb.mxu2 %v10536_v59  ;;  %v8415_v59 = vpop.f32.mrf.mxu3  ;;  %v12750_v4 = vld [vmem:[%s14114_s10 + $0xf6c] sm:$0xf]  ;;  %v11285_v10 = vld [vmem:[%s14114_s10 + $0x10f8] sm:$0xf0]  ;;  %v10664_v12 = vor.u32 %v12642_v33, %v10661_v61 }
 0x462   : > { %8667 = vmatpush.bf16.msrb.mxu3 %v10728_v60  ;;  %8633 = vmatmul.bf16.vlgmr.msrb.gmra.mxu0 %v14375_v39  ;;  %v10677_v39 = vld [vmem:[%s14114_s10 + $0xc38] sm:$0xf0]  ;;  %v10984_v60 = vor.u32 %v12722_v43, %v10981_v15  ;;  %v15765_v0 = vadd.f32 %v8439_v56, %v8427_v30  ;;  %v12798_v8 = vld [vmem:[%s14114_s10 + $0x10ec] sm:$0xf]  ;;  %v11096_v53 = vor.u32 %v12750_v4, %v11093_v50 }
 0x463   : > { %8677 = vmatpush.bf16.msra.mxu0 %v10904_v63  ;;  %8646 = vmatmul.bf16.vlgmr.msrb.gmra.mxu1 %v14373_v38  ;;  %v12754_v38 = vld [vmem:[%s14114_s10 + $0xf8c] sm:$0xf]  ;;  %v10680_v13 = vor.u32 %v12646_v34, %v10677_v39  ;;  %v10821_v11 = vld [vmem:[%s14114_s10 + $0xd58] sm:$0xf0]  ;;  %v11288_v5 = vor.u32 %v12798_v8, %v11285_v10 }
 0x464   : > { %8690 = vmatpush.bf16.msra.mxu1 %v11032_v3  ;;  %8659 = vmatmul.bf16.vlgmr.msrb.gmra.mxu2 %v14379_v42  ;;  %v11000_v42 = vor.u32 %v12726_v22, %v10997_v31  ;;  %v11112_v63 = vor.u32 %v12754_v38, %v11109_v52  ;;  %v10837_v3 = vld [vmem:[%s14114_s10 + $0xd78] sm:$0xf0]  ;;  %v12714_v16 = vld [vmem:[%s14114_s10 + $0xe4c] sm:$0xf] }
 0x465   : > { %8703 = vmatpush.bf16.msra.mxu2 %v11160_v7  ;;  %v12718_v7 = vld [vmem:[%s14114_s10 + $0xe6c] sm:$0xf]  ;;  %v10840_v62 = vor.u32 %v12686_v45, %v10837_v3  ;;  %v11077_v47 = vld [vmem:[%s14114_s10 + $0xf58] sm:$0xf0] }
 0x466   : > { %8668 = vmatpush.bf16.msrb.mxu3 %v10712_v51  ;;  %v10968_v51 = vor.u32 %v12718_v7, %v10965_v6  ;;  %v12794_v22 = vld [vmem:[%s14114_s10 + $0x10cc] sm:$0xf]  ;;  %v11269_v49 = vld [vmem:[%s14114_s10 + $0x10d8] sm:$0xf0] }
 0x467   : > { %8678 = vmatpush.bf16.msra.mxu0 %v10888_v2  ;;  %v12682_v2 = vld [vmem:[%s14114_s10 + $0xd4c] sm:$0xf]  ;;  %v8428_v21 = vpop.f32.mrf.mxu0  ;;  %v10805_v34 = vld [vmem:[%s14114_s10 + $0xd38] sm:$0xf0] }
 0x468   : > { %8691 = vmatpush.bf16.msra.mxu1 %v11016_v18  ;;  %v10949_v18 = vld [vmem:[%s14114_s10 + $0xe58] sm:$0xf0]  ;;  %v8441_v31 = vpop.f32.mrf.mxu1  ;;  %v10824_v29 = vor.u32 %v12682_v2, %v10821_v11  ;;  %v12710_v39 = vld [vmem:[%s14114_s10 + $0xe2c] sm:$0xf] }
 0x469   : > { %8704 = vmatpush.bf16.msra.mxu2 %v11144_v19  ;;  %v12746_v19 = vld [vmem:[%s14114_s10 + $0xf4c] sm:$0xf]  ;;  %v10952_v17 = vor.u32 %v12714_v16, %v10949_v18  ;;  %v11061_v41 = vld [vmem:[%s14114_s10 + $0xf38] sm:$0xf0] }
 0x46a   : > { %8669 = vmatpush.bf16.msrb.mxu3 %v10696_v23  ;;  %v11080_v23 = vor.u32 %v12746_v19, %v11077_v47  ;;  %v12742_v36 = vld [vmem:[%s14114_s10 + $0xf2c] sm:$0xf]  ;;  %v11253_v48 = vld [vmem:[%s14114_s10 + $0x10b8] sm:$0xf0] }
 0x46b   : > { %8679 = vmatpush.bf16.msra.mxu0 %v10872_v35  ;;  %v12678_v35 = vld [vmem:[%s14114_s10 + $0xd2c] sm:$0xf]  ;;  %v10789_v52 = vld [vmem:[%s14114_s10 + $0xd18] sm:$0xf0]  ;;  %v11064_v56 = vor.u32 %v12742_v36, %v11061_v41 }
 0x46c   : > { %8692 = vmatpush.bf16.msra.mxu1 %v11000_v42  ;;  %v11272_v42 = vor.u32 %v12794_v22, %v11269_v49  ;;  %v12790_v43 = vld [vmem:[%s14114_s10 + $0x10ac] sm:$0xf]  ;;  %v10808_v15 = vor.u32 %v12678_v35, %v10805_v34  ;;  %v10917_v27 = vld [vmem:[%s14114_s10 + $0xe18] sm:$0xf0] }
 0x46d   : > { %8705 = vmatpush.bf16.msra.mxu2 %v11128_v14  ;;  %v10933_v14 = vld [vmem:[%s14114_s10 + $0xe38] sm:$0xf0]  ;;  %v12674_v38 = vld [vmem:[%s14114_s10 + $0xd0c] sm:$0xf] }
 0x46e   : > { %8670 = vmatpush.bf16.msrb.mxu3 %v10680_v13  ;;  %v10936_v30 = vor.u32 %v12710_v39, %v10933_v14  ;;  %v12738_v13 = vld [vmem:[%s14114_s10 + $0xf0c] sm:$0xf]  ;;  %v11045_v33 = vld [vmem:[%s14114_s10 + $0xf18] sm:$0xf0]  ;;  %v10792_v3 = vor.u32 %v12674_v38, %v10789_v52 }
 0x46f   : > { %8680 = vmatpush.bf16.msra.mxu0 %v10856_v57  ;;  %v11256_v57 = vor.u32 %v12790_v43, %v11253_v48  ;;  %v12786_v61 = vld [vmem:[%s14114_s10 + $0x108c] sm:$0xf]  ;;  %v11237_v59 = vld [vmem:[%s14114_s10 + $0x1098] sm:$0xf0]  ;;  %v11048_v8 = vor.u32 %v12738_v13, %v11045_v33 }
 0x470   : > { %8693 = vmatpush.bf16.msra.mxu1 %v10984_v60  ;;  %v12830_v60 = vld [vmem:[%s14114_s10 + $0x11ec] sm:$0xf]  ;;  %v11541_v7 = vld [vmem:[%s14114_s10 + $0x12f8] sm:$0xf0]  ;;  %v11240_v10 = vor.u32 %v12786_v61, %v11237_v59 }
 0x471   : > { %8706 = vmatpush.bf16.msra.mxu2 %v11112_v63  ;;  %v11413_v63 = vld [vmem:[%s14114_s10 + $0x11f8] sm:$0xf0]  ;;  %v12862_v45 = vld [vmem:[%s14114_s10 + $0x12ec] sm:$0xf] }
 0x472   : > { %8671 = vmatpush.bf16.msrb.mxu3 %v10664_v12  ;;  %v12894_v6 = vld [vmem:[%s14114_s10 + $0x13ec] sm:$0xf]  ;;  %v11669_v4 = vld [vmem:[%s14114_s10 + $0x13f8] sm:$0xf0]  ;;  %v11416_v12 = vor.u32 %v12830_v60, %v11413_v63 }
 0x473   : > { %8681 = vmatpush.bf16.msra.mxu0 %v10840_v62  ;;  %v12782_v62 = vld [vmem:[%s14114_s10 + $0x106c] sm:$0xf]  ;;  %v11672_v2 = vor.u32 %v12894_v6, %v11669_v4  ;;  %v11397_v16 = vld [vmem:[%s14114_s10 + $0x11d8] sm:$0xf0] }
 0x474   : > { %8694 = vmatpush.bf16.msra.mxu1 %v10968_v51  ;;  %v11221_v51 = vld [vmem:[%s14114_s10 + $0x1078] sm:$0xf0]  ;;  %v12826_v11 = vld [vmem:[%s14114_s10 + $0x11cc] sm:$0xf] }
 0x475   : > { %8707 = vmatpush.bf16.msra.mxu2 %v11096_v53  ;;  %8672 = vmatmul.bf16.vlgmr.msrb.gmra.mxu3 %v14450_v32  ;;  %v12706_v32 = vld [vmem:[%s14114_s10 + $0xe0c] sm:$0xf]  ;;  %v11544_v53 = vor.u32 %v12862_v45, %v11541_v7  ;;  %v11525_v18 = vld [vmem:[%s14114_s10 + $0x12d8] sm:$0xf0]  ;;  %v11224_v22 = vor.u32 %v12782_v62, %v11221_v51  ;;  %v11400_v31 = vor.u32 %v12826_v11, %v11397_v16 }
 0x476   : > { %8716 = vmatpush.bf16.msra.mxu3 %v11288_v5  ;;  %v10920_v50 = vor.u32 %v12706_v32, %v10917_v27  ;;  %v12858_v5 = vld [vmem:[%s14114_s10 + $0x12cc] sm:$0xf]  ;;  %v11653_v47 = vld [vmem:[%s14114_s10 + $0x13d8] sm:$0xf0] }
 0x477   : > { %8682 = vmatpush.bf16.msra.mxu0 %v10824_v29  ;;  %v12890_v19 = vld [vmem:[%s14114_s10 + $0x13cc] sm:$0xf]  ;;  %v8452_v21 = vpop.f32.mrf.mxu2  ;;  %v11528_v35 = vor.u32 %v12858_v5, %v11525_v18  ;;  %v11509_v36 = vld [vmem:[%s14114_s10 + $0x12b8] sm:$0xf0] }
 0x478   : > { %8695 = vmatpush.bf16.msra.mxu1 %v10952_v17  ;;  %v8453_v49 = vadd.f32 %v8452_v21, %v15765_v0  ;;  %v8465_v29 = vpop.f32.mrf.mxu3  ;;  %v12778_v17 = vld [vmem:[%s14114_s10 + $0x104c] sm:$0xf]  ;;  %v11656_v34 = vor.u32 %v12890_v19, %v11653_v47  ;;  %v11637_v43 = vld [vmem:[%s14114_s10 + $0x13b8] sm:$0xf0] }
 0x479   : > { %8708 = vmatpush.bf16.msra.mxu2 %v11080_v23  ;;  %v11205_v23 = vld [vmem:[%s14114_s10 + $0x1058] sm:$0xf0]  ;;  %v12822_v39 = vld [vmem:[%s14114_s10 + $0x11ac] sm:$0xf] }
 0x47a   : > { %8717 = vmatpush.bf16.msra.mxu3 %v11272_v42  ;;  %v11381_v42 = vld [vmem:[%s14114_s10 + $0x11b8] sm:$0xf0]  ;;  %v12854_v14 = vld [vmem:[%s14114_s10 + $0x12ac] sm:$0xf]  ;;  %v8466_v0 = vadd.f32 %v8465_v29, %v8453_v49  ;;  %v11208_v48 = vor.u32 %v12778_v17, %v11205_v23 }
 0x47b   : > { %8683 = vmatpush.bf16.msra.mxu0 %v10808_v15  ;;  %v12886_v41 = vld [vmem:[%s14114_s10 + $0x13ac] sm:$0xf]  ;;  %v11384_v15 = vor.u32 %v12822_v39, %v11381_v42  ;;  %v11493_v27 = vld [vmem:[%s14114_s10 + $0x1298] sm:$0xf0] }
 0x47c   : > { %8696 = vmatpush.bf16.msra.mxu1 %v10936_v30  ;;  %v12774_v38 = vld [vmem:[%s14114_s10 + $0x102c] sm:$0xf]  ;;  %v11640_v52 = vor.u32 %v12886_v41, %v11637_v43  ;;  %v11477_v62 = vld [vmem:[%s14114_s10 + $0x1278] sm:$0xf0] }
 0x47d   : > { %8709 = vmatpush.bf16.msra.mxu2 %v11064_v56  ;;  %v12818_v30 = vld [vmem:[%s14114_s10 + $0x118c] sm:$0xf]  ;;  %v11365_v56 = vld [vmem:[%s14114_s10 + $0x1198] sm:$0xf0] }
 0x47e   : > { %8718 = vmatpush.bf16.msra.mxu3 %v11256_v57  ;;  %v12850_v32 = vld [vmem:[%s14114_s10 + $0x128c] sm:$0xf]  ;;  %v11621_v57 = vld [vmem:[%s14114_s10 + $0x1398] sm:$0xf0]  ;;  %v11368_v60 = vor.u32 %v12818_v30, %v11365_v56 }
 0x47f   : > { %8684 = vmatpush.bf16.msra.mxu0 %v10792_v3  ;;  %v12882_v13 = vld [vmem:[%s14114_s10 + $0x138c] sm:$0xf]  ;;  %v8454_v33 = vpop.f32.mrf.mxu2  ;;  %v11173_v3 = vld [vmem:[%s14114_s10 + $0x1018] sm:$0xf0]  ;;  %v11496_v6 = vor.u32 %v12850_v32, %v11493_v27 }
 0x480   : > { %8697 = vmatpush.bf16.msra.mxu1 %v10920_v50  ;;  %v8491_v63 = vpop.f32.mrf.mxu1  ;;  %v12770_v45 = vld [vmem:[%s14114_s10 + $0x100c] sm:$0xf]  ;;  %v8467_v7 = vpop.f32.mrf.mxu3  ;;  %v11624_v4 = vor.u32 %v12882_v13, %v11621_v57  ;;  %v11797_v11 = vld [vmem:[%s14114_s10 + $0x14f8] sm:$0xf0] }
 0x481   : > { %8710 = vmatpush.bf16.msra.mxu2 %v11048_v8  ;;  %v12814_v50 = vld [vmem:[%s14114_s10 + $0x116c] sm:$0xf]  ;;  %v11349_v8 = vld [vmem:[%s14114_s10 + $0x1178] sm:$0xf0]  ;;  %v11176_v16 = vor.u32 %v12770_v45, %v11173_v3 }
 0x482   : > { %8719 = vmatpush.bf16.msra.mxu3 %v11240_v10  ;;  %8685 = vmatmul.bf16.vlgmr.msra.gmra.mxu0 %v14457_v40  ;;  %v11189_v40 = vld [vmem:[%s14114_s10 + $0x1038] sm:$0xf0]  ;;  %v12846_v10 = vld [vmem:[%s14114_s10 + $0x126c] sm:$0xf]  ;;  %v11352_v5 = vor.u32 %v12814_v50, %v11349_v8 }
 0x483   : > { %8729 = vmatpush.bf16.msrb.mxu0 %v11416_v12  ;;  %8698 = vmatmul.bf16.vlgmr.msra.gmra.mxu1 %v14455_v37  ;;  %v8478_v37 = vpop.f32.mrf.mxu0  ;;  %v11192_v59 = vor.u32 %v12774_v38, %v11189_v40  ;;  %v12878_v51 = vld [vmem:[%s14114_s10 + $0x136c] sm:$0xf]  ;;  %v11480_v18 = vor.u32 %v12846_v10, %v11477_v62  ;;  %v11333_v21 = vld [vmem:[%s14114_s10 + $0x1158] sm:$0xf0] }
 0x484   : > { %8742 = vmatpush.bf16.msrb.mxu1 %v11544_v53  ;;  %8711 = vmatmul.bf16.vlgmr.msra.gmra.mxu2 %v14461_v44  ;;  %v11512_v44 = vor.u32 %v12854_v14, %v11509_v36  ;;  %v8479_v61 = vadd.f32 %v8478_v37, %v8466_v0  ;;  %v11605_v53 = vld [vmem:[%s14114_s10 + $0x1378] sm:$0xf0]  ;;  %v12810_v47 = vld [vmem:[%s14114_s10 + $0x114c] sm:$0xf] }
 0x485   : > { %8755 = vmatpush.bf16.msrb.mxu2 %v11672_v2  ;;  %v12926_v2 = vld [vmem:[%s14114_s10 + $0x14ec] sm:$0xf]  ;;  %v11608_v19 = vor.u32 %v12878_v51, %v11605_v53  ;;  %v11589_v17 = vld [vmem:[%s14114_s10 + $0x1358] sm:$0xf0]  ;;  %v11336_v39 = vor.u32 %v12810_v47, %v11333_v21 }
 0x486   : > { %8720 = vmatpush.bf16.msra.mxu3 %v11224_v22  ;;  %v8492_v12 = vadd.f32 %v8491_v63, %v8479_v61  ;;  %v12842_v22 = vld [vmem:[%s14114_s10 + $0x124c] sm:$0xf]  ;;  %v11800_v49 = vor.u32 %v12926_v2, %v11797_v11  ;;  %v11317_v43 = vld [vmem:[%s14114_s10 + $0x1138] sm:$0xf0] }
 0x487   : > { %8730 = vmatpush.bf16.msrb.mxu0 %v11400_v31  ;;  %v11461_v31 = vld [vmem:[%s14114_s10 + $0x1258] sm:$0xf0]  ;;  %v12874_v29 = vld [vmem:[%s14114_s10 + $0x134c] sm:$0xf]  ;;  %v8504_v14 = vpop.f32.mrf.mxu2 }
 0x488   : > { %8743 = vmatpush.bf16.msrb.mxu1 %v11528_v35  ;;  %v12922_v23 = vld [vmem:[%s14114_s10 + $0x14cc] sm:$0xf]  ;;  %v11781_v35 = vld [vmem:[%s14114_s10 + $0x14d8] sm:$0xf0]  ;;  %v8493_v42 = vpop.f32.mrf.mxu1  ;;  %v11464_v0 = vor.u32 %v12842_v22, %v11461_v31  ;;  %v11592_v36 = vor.u32 %v12874_v29, %v11589_v17 }
 0x489   : > { %8756 = vmatpush.bf16.msrb.mxu2 %v11656_v34  ;;  %v12806_v41 = vld [vmem:[%s14114_s10 + $0x112c] sm:$0xf]  ;;  %v11784_v38 = vor.u32 %v12922_v23, %v11781_v35  ;;  %v11445_v40 = vld [vmem:[%s14114_s10 + $0x1238] sm:$0xf0] }
 0x48a   : > { %8721 = vmatpush.bf16.msra.mxu3 %v11208_v48  ;;  %v12838_v48 = vld [vmem:[%s14114_s10 + $0x122c] sm:$0xf]  ;;  %v11765_v56 = vld [vmem:[%s14114_s10 + $0x14b8] sm:$0xf0]  ;;  %v11320_v32 = vor.u32 %v12806_v41, %v11317_v43 }
 0x48b   : > { %8731 = vmatpush.bf16.msrb.mxu0 %v11384_v15  ;;  %v8480_v34 = vpop.f32.mrf.mxu0  ;;  %v15855_v15 = vadd.f32 %v8504_v14, %v8492_v12  ;;  %v12918_v30 = vld [vmem:[%s14114_s10 + $0x14ac] sm:$0xf]  ;;  %v11301_v13 = vld [vmem:[%s14114_s10 + $0x1118] sm:$0xf0]  ;;  %v11448_v57 = vor.u32 %v12838_v48, %v11445_v40 }
 0x48c   : > { %8744 = vmatpush.bf16.msrb.mxu1 %v11512_v44  ;;  %v12870_v44 = vld [vmem:[%s14114_s10 + $0x132c] sm:$0xf]  ;;  %v11429_v33 = vld [vmem:[%s14114_s10 + $0x1218] sm:$0xf0]  ;;  %v13118_v34 = vld [vmem:[%s14107_s30] sm:$0xf] }
 0x48d   : > { %8757 = vmatpush.bf16.msrb.mxu2 %v11640_v52  ;;  %v11573_v52 = vld [vmem:[%s14114_s10 + $0x1338] sm:$0xf0]  ;;  %v12802_v27 = vld [vmem:[%s14114_s10 + $0x110c] sm:$0xf] }
 0x48e   : > { %8722 = vmatpush.bf16.msra.mxu3 %v11192_v59  ;;  %v11576_v37 = vor.u32 %v12870_v44, %v11573_v52  ;;  %v12866_v61 = vld [vmem:[%s14114_s10 + $0x130c] sm:$0xf]  ;;  %v11768_v59 = vor.u32 %v12918_v30, %v11765_v56  ;;  %v11749_v45 = vld [vmem:[%s14114_s10 + $0x1498] sm:$0xf0] }
 0x48f   : > { %8732 = vmatpush.bf16.msrb.mxu0 %v11368_v60  ;;  %v11557_v60 = vld [vmem:[%s14114_s10 + $0x1318] sm:$0xf0]  ;;  %v12914_v63 = vld [vmem:[%s14114_s10 + $0x148c] sm:$0xf]  ;;  %v8506_v51 = vpop.f32.mrf.mxu2 }
 0x490   : > { %8745 = vmatpush.bf16.msrb.mxu1 %v11496_v6  ;;  %v12958_v3 = vld [vmem:[%s14114_s10 + $0x15ec] sm:$0xf]  ;;  %v11925_v7 = vld [vmem:[%s14114_s10 + $0x15f8] sm:$0xf0]  ;;  %v11560_v62 = vor.u32 %v12866_v61, %v11557_v60  ;;  %v11752_v53 = vor.u32 %v12914_v63, %v11749_v45 }
 0x491   : > { %8758 = vmatpush.bf16.msrb.mxu2 %v11624_v4  ;;  %v12990_v6 = vld [vmem:[%s14114_s10 + $0x16ec] sm:$0xf]  ;;  %v11304_v4 = vor.u32 %v12802_v27, %v11301_v13  ;;  %v12053_v50 = vld [vmem:[%s14114_s10 + $0x16f8] sm:$0xf0]  ;;  %v11928_v2 = vor.u32 %v12958_v3, %v11925_v7 }
 0x492   : > { %8723 = vmatpush.bf16.msra.mxu3 %v11176_v16  ;;  %v13022_v8 = vld [vmem:[%s14114_s10 + $0x17ec] sm:$0xf]  ;;  %v12181_v10 = vld [vmem:[%s14114_s10 + $0x17f8] sm:$0xf0] }
 0x493   : > { %8733 = vmatpush.bf16.msrb.mxu0 %v11352_v5  ;;  %v12910_v11 = vld [vmem:[%s14114_s10 + $0x146c] sm:$0xf]  ;;  %v11733_v16 = vld [vmem:[%s14114_s10 + $0x1478] sm:$0xf0]  ;;  %v12056_v5 = vor.u32 %v12990_v6, %v12053_v50 }
 0x494   : > { %8746 = vmatpush.bf16.msrb.mxu1 %v11480_v18  ;;  %v12184_v18 = vor.u32 %v13022_v8, %v12181_v10  ;;  %v11909_v47 = vld [vmem:[%s14114_s10 + $0x15d8] sm:$0xf0]  ;;  %v12986_v21 = vld [vmem:[%s14114_s10 + $0x16cc] sm:$0xf]  ;;  %v11736_v29 = vor.u32 %v12910_v11, %v11733_v16 }
 0x495   : > { %8759 = vmatpush.bf16.msrb.mxu2 %v11608_v19  ;;  %8724 = vmatmul.bf16.vlgmr.msra.gmra.mxu3 %v14532_v46  ;;  %v12834_v46 = vld [vmem:[%s14114_s10 + $0x120c] sm:$0xf]  ;;  %v12037_v22 = vld [vmem:[%s14114_s10 + $0x16d8] sm:$0xf0] }
 0x496   : > { %8768 = vmatpush.bf16.msrb.mxu3 %v11800_v49  ;;  %v11432_v12 = vor.u32 %v12834_v46, %v11429_v33  ;;  %v12954_v19 = vld [vmem:[%s14114_s10 + $0x15cc] sm:$0xf]  ;;  %v12165_v31 = vld [vmem:[%s14114_s10 + $0x17d8] sm:$0xf0]  ;;  %v12040_v14 = vor.u32 %v12986_v21, %v12037_v22 }
 0x497   : > { %8734 = vmatpush.bf16.msrb.mxu0 %v11336_v39  ;;  %v13018_v49 = vld [vmem:[%s14114_s10 + $0x17cc] sm:$0xf]  ;;  %v11912_v17 = vor.u32 %v12954_v19, %v11909_v47  ;;  %v11717_v35 = vld [vmem:[%s14114_s10 + $0x1458] sm:$0xf0]  ;;  %v3517_v39 = vperm.slane %v13118_v34, 3 }
 0x498   : > { %8747 = vmatpush.bf16.msrb.mxu1 %v11464_v0  ;;  %v12906_v23 = vld [vmem:[%s14114_s10 + $0x144c] sm:$0xf]  ;;  %v8517_v42 = vpop.f32.mrf.mxu3  ;;  %v12168_v0 = vor.u32 %v13018_v49, %v12165_v31  ;;  %v11893_v41 = vld [vmem:[%s14114_s10 + $0x15b8] sm:$0xf0] }
 0x499   : > { %8760 = vmatpush.bf16.msrb.mxu2 %v11592_v36  ;;  %v12950_v36 = vld [vmem:[%s14114_s10 + $0x15ac] sm:$0xf]  ;;  %v12021_v48 = vld [vmem:[%s14114_s10 + $0x16b8] sm:$0xf0]  ;;  %v11720_v44 = vor.u32 %v12906_v23, %v11717_v35 }
 0x49a   : > { %8769 = vmatpush.bf16.msrb.mxu3 %v11784_v38  ;;  %v12982_v43 = vld [vmem:[%s14114_s10 + $0x16ac] sm:$0xf]  ;;  %v12149_v40 = vld [vmem:[%s14114_s10 + $0x17b8] sm:$0xf0]  ;;  %v11896_v52 = vor.u32 %v12950_v36, %v11893_v41 }
 0x49b   : > { %8735 = vmatpush.bf16.msrb.mxu0 %v11320_v32  ;;  %v13014_v38 = vld [vmem:[%s14114_s10 + $0x17ac] sm:$0xf]  ;;  %v11701_v56 = vld [vmem:[%s14114_s10 + $0x1438] sm:$0xf0] }
 0x49c   : > { %8748 = vmatpush.bf16.msrb.mxu1 %v11448_v57  ;;  %v12902_v30 = vld [vmem:[%s14114_s10 + $0x142c] sm:$0xf]  ;;  %v12152_v32 = vor.u32 %v13014_v38, %v12149_v40  ;;  %v11877_v13 = vld [vmem:[%s14114_s10 + $0x1598] sm:$0xf0] }
 0x49d   : > { %8761 = vmatpush.bf16.msrb.mxu2 %v11576_v37  ;;  %v12946_v27 = vld [vmem:[%s14114_s10 + $0x158c] sm:$0xf]  ;;  %v12005_v37 = vld [vmem:[%s14114_s10 + $0x1698] sm:$0xf0]  ;;  %v11704_v61 = vor.u32 %v12902_v30, %v11701_v56 }
 0x49e   : > { %8770 = vmatpush.bf16.msrb.mxu3 %v11768_v59  ;;  %v12978_v57 = vld [vmem:[%s14114_s10 + $0x168c] sm:$0xf]  ;;  %v12133_v46 = vld [vmem:[%s14114_s10 + $0x1798] sm:$0xf0]  ;;  %v11880_v59 = vor.u32 %v12946_v27, %v11877_v13 }
 0x49f   : > { %8736 = vmatpush.bf16.msrb.mxu0 %v11304_v4  ;;  %v8530_v33 = vpop.f32.mrf.mxu0  ;;  %v12898_v60 = vld [vmem:[%s14114_s10 + $0x140c] sm:$0xf]  ;;  %v11685_v63 = vld [vmem:[%s14114_s10 + $0x1418] sm:$0xf0]  ;;  %v12008_v6 = vor.u32 %v12978_v57, %v12005_v37 }
 0x4a0   : > { %8749 = vmatpush.bf16.msrb.mxu1 %v11432_v12  ;;  %v8543_v3 = vpop.f32.mrf.mxu1  ;;  %v8519_v7 = vpop.f32.mrf.mxu3  ;;  %v12942_v50 = vld [vmem:[%s14114_s10 + $0x156c] sm:$0xf]  ;;  %v11861_v8 = vld [vmem:[%s14114_s10 + $0x1578] sm:$0xf0]  ;;  %v11688_v16 = vor.u32 %v12898_v60, %v11685_v63 }
 0x4a1   : > { %8762 = vmatpush.bf16.msrb.mxu2 %v11560_v62  ;;  %v12974_v10 = vld [vmem:[%s14114_s10 + $0x166c] sm:$0xf]  ;;  %v11989_v12 = vld [vmem:[%s14114_s10 + $0x1678] sm:$0xf0] }
 0x4a2   : > { %8771 = vmatpush.bf16.msrb.mxu3 %v11752_v53  ;;  %8737 = vmatmul.bf16.vlgmr.msrb.gmra.mxu0 %v14539_v55  ;;  %v8518_v55 = vadd.f32 %v8517_v42, %v3517_v39  ;;  %v13006_v62 = vld [vmem:[%s14114_s10 + $0x176c] sm:$0xf]  ;;  %v12117_v51 = vld [vmem:[%s14114_s10 + $0x1778] sm:$0xf0] }
 0x4a3   : > { %8781 = vmatpush.bf16.msra.mxu0 %v11928_v2  ;;  %8750 = vmatmul.bf16.vlgmr.msrb.gmra.mxu1 %v14537_v54  ;;  %v13010_v54 = vld [vmem:[%s14114_s10 + $0x178c] sm:$0xf]  ;;  %v12245_v11 = vld [vmem:[%s14114_s10 + $0x1878] sm:$0xf0]  ;;  %v12120_v19 = vor.u32 %v13006_v62, %v12117_v51  ;;  %v8880_v62 = vld [vmem:[%s14112_s9 + $0x170] sm:$0xff] }
 0x4a4   : > { %8794 = vmatpush.bf16.msra.mxu1 %v12056_v5  ;;  %8763 = vmatmul.bf16.vlgmr.msrb.gmra.mxu2 %v14543_v58  ;;  %v12024_v58 = vor.u32 %v12982_v43, %v12021_v48  ;;  %v8531_v45 = vadd.f32 %v8530_v33, %v8518_v55  ;;  %v12136_v4 = vor.u32 %v13010_v54, %v12133_v46  ;;  %v13038_v2 = vld [vmem:[%s14114_s10 + $0x186c] sm:$0xf]  ;;  %v11845_v21 = vld [vmem:[%s14114_s10 + $0x1558] sm:$0xf0] }
 0x4a5   : > { %8807 = vmatpush.bf16.msra.mxu2 %v12184_v18  ;;  %v11864_v5 = vor.u32 %v12942_v50, %v11861_v8  ;;  %v11992_v18 = vor.u32 %v12974_v10, %v11989_v12  ;;  %v12938_v47 = vld [vmem:[%s14114_s10 + $0x154c] sm:$0xf]  ;;  %v12248_v31 = vor.u32 %v13038_v2, %v12245_v11  ;;  %v12101_v23 = vld [vmem:[%s14114_s10 + $0x1758] sm:$0xf0]  ;;  %v8848_v8 = vld [vmem:[%s14112_s9 + $0x70] sm:$0xff] }
 0x4a6   : > { %8772 = vmatpush.bf16.msrb.mxu3 %v11736_v29  ;;  %v8544_v53 = vadd.f32 %v8543_v3, %v8531_v45  ;;  %v12970_v22 = vld [vmem:[%s14114_s10 + $0x164c] sm:$0xf]  ;;  %v11973_v29 = vld [vmem:[%s14114_s10 + $0x1658] sm:$0xf0]  ;;  %v8864_v12 = vld [vmem:[%s14112_s9 + $0xf0] sm:$0xff] }
 0x4a7   : > { %8782 = vmatpush.bf16.msra.mxu0 %v11912_v17  ;;  %v8556_v49 = vpop.f32.mrf.mxu2  ;;  %v13002_v17 = vld [vmem:[%s14114_s10 + $0x174c] sm:$0xf]  ;;  %v12229_v39 = vld [vmem:[%s14114_s10 + $0x1858] sm:$0xf0]  ;;  %v8532_v42 = vpop.f32.mrf.mxu0  ;;  %v11976_v36 = vor.u32 %v12970_v22, %v11973_v29 }
 0x4a8   : > { %8795 = vmatpush.bf16.msra.mxu1 %v12040_v14  ;;  %v8557_v35 = vadd.f32 %v8556_v49, %v8544_v53  ;;  %v13034_v34 = vld [vmem:[%s14114_s10 + $0x184c] sm:$0xf]  ;;  %v11848_v14 = vor.u32 %v12938_v47, %v11845_v21  ;;  %v12104_v41 = vor.u32 %v13002_v17, %v12101_v23  ;;  %v11829_v48 = vld [vmem:[%s14114_s10 + $0x1538] sm:$0xf0]  ;;  %v8844_v47 = vld [vmem:[%s14112_s9 + $0x50] sm:$0xff] }
 0x4a9   : > { %8808 = vmatpush.bf16.msra.mxu2 %v12168_v0  ;;  %v8545_v0 = vpop.f32.mrf.mxu1  ;;  %v12934_v43 = vld [vmem:[%s14114_s10 + $0x152c] sm:$0xf]  ;;  %v12232_v40 = vor.u32 %v13034_v34, %v12229_v39  ;;  %v12085_v30 = vld [vmem:[%s14114_s10 + $0x1738] sm:$0xf0]  ;;  %v8860_v49 = vld [vmem:[%s14112_s9 + $0xd0] sm:$0xff] }
 0x4aa   : > { %8773 = vmatpush.bf16.msrb.mxu3 %v11720_v44  ;;  %v12966_v38 = vld [vmem:[%s14114_s10 + $0x162c] sm:$0xf]  ;;  %v11957_v44 = vld [vmem:[%s14114_s10 + $0x1638] sm:$0xf0]  ;;  %v8842_v34 = vld [vmem:[%s14112_s9 + $0x40] sm:$0xff] }
 0x4ab   : > { %8783 = vmatpush.bf16.msra.mxu0 %v11896_v52  ;;  %v12998_v52 = vld [vmem:[%s14114_s10 + $0x172c] sm:$0xf]  ;;  %v12213_v55 = vld [vmem:[%s14114_s10 + $0x1838] sm:$0xf0]  ;;  %v8858_v39 = vld [vmem:[%s14112_s9 + $0xc0] sm:$0xff] }
 0x4ac   : > { %8796 = vmatpush.bf16.msra.mxu1 %v12024_v58  ;;  %v13030_v56 = vld [vmem:[%s14114_s10 + $0x182c] sm:$0xf]  ;;  %v11832_v58 = vor.u32 %v12934_v43, %v11829_v48  ;;  %v12088_v27 = vor.u32 %v12998_v52, %v12085_v30  ;;  %v11813_v57 = vld [vmem:[%s14114_s10 + $0x1518] sm:$0xf0]  ;;  %v8874_v42 = vld [vmem:[%s14112_s9 + $0x140] sm:$0xff] }
 0x4ad   : > { %8809 = vmatpush.bf16.msra.mxu2 %v12152_v32  ;;  %v11960_v32 = vor.u32 %v12966_v38, %v11957_v44  ;;  %v12930_v13 = vld [vmem:[%s14114_s10 + $0x150c] sm:$0xf]  ;;  %v11941_v46 = vld [vmem:[%s14114_s10 + $0x1618] sm:$0xf0]  ;;  %v8840_v38 = vld [vmem:[%s14112_s9 + $0x30] sm:$0xff] }
 0x4ae   : > { %8774 = vmatpush.bf16.msrb.mxu3 %v11704_v61  ;;  %v12962_v37 = vld [vmem:[%s14114_s10 + $0x160c] sm:$0xf]  ;;  %v12069_v61 = vld [vmem:[%s14114_s10 + $0x1718] sm:$0xf0]  ;;  %v8856_v44 = vld [vmem:[%s14112_s9 + $0xb0] sm:$0xff] }
 0x4af   : > { %8784 = vmatpush.bf16.msra.mxu0 %v11880_v59  ;;  %v8558_v54 = vpop.f32.mrf.mxu2  ;;  %v12994_v33 = vld [vmem:[%s14114_s10 + $0x170c] sm:$0xf]  ;;  %v11816_v59 = vor.u32 %v12930_v13, %v11813_v57  ;;  %v12197_v63 = vld [vmem:[%s14114_s10 + $0x1818] sm:$0xf0]  ;;  %v11944_v45 = vor.u32 %v12962_v37, %v11941_v46  ;;  %v8872_v52 = vld [vmem:[%s14112_s9 + $0x130] sm:$0xff] }
 0x4b0   : > { %8797 = vmatpush.bf16.msra.mxu1 %v12008_v6  ;;  %v13026_v60 = vld [vmem:[%s14114_s10 + $0x180c] sm:$0xf]  ;;  %v12072_v3 = vor.u32 %v12994_v33, %v12069_v61  ;;  %v8849_v7 = vld [vmem:[%s14112_s9 + $0x78] sm:$0xff]  ;;  %v8852_v46 = vld [vmem:[%s14112_s9 + $0x90] sm:$0xff] }
 0x4b1   : > { %8810 = vmatpush.bf16.msra.mxu2 %v12136_v4  ;;  %v8865_v6 = vld [vmem:[%s14112_s9 + $0xf8] sm:$0xff]  ;;  %v12200_v4 = vor.u32 %v13026_v60, %v12197_v63  ;;  %v8847_v53 = vld [vmem:[%s14112_s9 + $0x68] sm:$0xff]  ;;  %v8868_v33 = vld [vmem:[%s14112_s9 + $0x110] sm:$0xff] }
 0x4b2   : > { %8775 = vmatpush.bf16.msrb.mxu3 %v11688_v16  ;;  %v8881_v50 = vld [vmem:[%s14112_s9 + $0x178] sm:$0xff]  ;;  %v8863_v2 = vld [vmem:[%s14112_s9 + $0xe8] sm:$0xff]  ;;  %v8846_v16 = vld [vmem:[%s14112_s9 + $0x60] sm:$0xff] }
 0x4b3   : > { %8785 = vmatpush.bf16.msra.mxu0 %v11864_v5  ;;  %v8879_v11 = vld [vmem:[%s14112_s9 + $0x168] sm:$0xff]  ;;  %v8878_v5 = vld [vmem:[%s14112_s9 + $0x160] sm:$0xff]  ;;  %v8841_v0 = vld [vmem:[%s14112_s9 + $0x38] sm:$0xff] }
 0x4b4   : > { %8798 = vmatpush.bf16.msra.mxu1 %v11992_v18  ;;  %v8877_v18 = vld [vmem:[%s14112_s9 + $0x158] sm:$0xff]  ;;  %v8843_v29 = vld [vmem:[%s14112_s9 + $0x48] sm:$0xff]  ;;  %v8834_v63 = vld [vmem:[%s14112_s9] sm:$0xff] }
 0x4b5   : > { %8811 = vmatpush.bf16.msra.mxu2 %v12120_v19  ;;  %8776 = vmatmul.bf16.vlgmr.msrb.gmra.mxu3 %v14617_v20  ;;  %v12216_v20 = vor.u32 %v13030_v56, %v12213_v55  ;;  %v8859_v23 = vld [vmem:[%s14112_s9 + $0xc8] sm:$0xff]  ;;  %v8873_v43 = vld [vmem:[%s14112_s9 + $0x138] sm:$0xff] }
 0x4b6   : > { %8824 = vmatpush.bf16.msra.mxu3 %v12248_v31  ;;  %v8876_v31 = vld [vmem:[%s14112_s9 + $0x150] sm:$0xff]  ;;  %v8839_v30 = vld [vmem:[%s14112_s9 + $0x28] sm:$0xff]  ;;  %v8837_v57 = vld [vmem:[%s14112_s9 + $0x18] sm:$0xff] }
 0x4b7   : > { %8786 = vmatpush.bf16.msra.mxu0 %v11848_v14  ;;  %v8855_v56 = vld [vmem:[%s14112_s9 + $0xa8] sm:$0xff]  ;;  %v8853_v37 = vld [vmem:[%s14112_s9 + $0x98] sm:$0xff] }
 0x4b8   : > { %8799 = vmatpush.bf16.msra.mxu1 %v11976_v36  ;;  %v8569_v10 = vpop.f32.mrf.mxu3  ;;  %v8871_v55 = vld [vmem:[%s14112_s9 + $0x128] sm:$0xff]  ;;  %v8869_v54 = vld [vmem:[%s14112_s9 + $0x118] sm:$0xff] }
 0x4b9   : > { %8812 = vmatpush.bf16.msra.mxu2 %v12104_v41  ;;  %v8570_v51 = vadd.f32 %v8569_v10, %v8557_v35  ;;  %v8875_v35 = vld [vmem:[%s14112_s9 + $0x148] sm:$0xff]  ;;  %v8857_v41 = vld [vmem:[%s14112_s9 + $0xb8] sm:$0xff] }
 0x4ba   : > { %8825 = vmatpush.bf16.msra.mxu3 %v12232_v40  ;;  %v8835_v61 = vld [vmem:[%s14112_s9 + $0x8] sm:$0xff] }
 0x4bb   : > { %8787 = vmatpush.bf16.msra.mxu0 %v11832_v58  ;;  %v8838_v58 = vld [vmem:[%s14112_s9 + $0x20] sm:$0xff]  ;;  %v8867_v60 = vld [vmem:[%s14112_s9 + $0x108] sm:$0xff] }
 0x4bc   : > { %8800 = vmatpush.bf16.msra.mxu1 %v11960_v32  ;;  %v8854_v32 = vld [vmem:[%s14112_s9 + $0xa0] sm:$0xff] }
 0x4bd   : > { %8813 = vmatpush.bf16.msra.mxu2 %v12088_v27  ;;  %v8870_v27 = vld [vmem:[%s14112_s9 + $0x120] sm:$0xff] }
 0x4be   : > { %8826 = vmatpush.bf16.msra.mxu3 %v12216_v20  ;;  %v8836_v20 = vld [vmem:[%s14112_s9 + $0x10] sm:$0xff] }
 0x4bf   : > { %8788 = vmatpush.bf16.msra.mxu0 %v11816_v59  ;;  %v8582_v19 = vpop.f32.mrf.mxu0  ;;  %v8851_v59 = vld [vmem:[%s14112_s9 + $0x88] sm:$0xff] }
 0x4c0   : > { %8801 = vmatpush.bf16.msra.mxu1 %v11944_v45  ;;  %v8583_v21 = vadd.f32 %v8582_v19, %v8570_v51  ;;  %v8571_v22 = vpop.f32.mrf.mxu3  ;;  %v8850_v45 = vld [vmem:[%s14112_s9 + $0x80] sm:$0xff] }
 0x4c1   : > { %8814 = vmatpush.bf16.msra.mxu2 %v12072_v3  ;;  %v8866_v3 = vld [vmem:[%s14112_s9 + $0x100] sm:$0xff] }
 0x4c2   : > { %8827 = vmatpush.bf16.msra.mxu3 %v12200_v4  ;;  %8789 = vmatmul.bf16.vlgmr.msra.gmra.mxu0 %v14624_v25  ;;  %v8862_v25 = vld [vmem:[%s14112_s9 + $0xe0] sm:$0xff] }
 0x4c3   : > { %8898 = vmatpush.msrb.mxu0 %v8849_v7  ;;  %8802 = vmatmul.bf16.vlgmr.msra.gmra.mxu1 %v14622_v24  ;;  %v8845_v24 = vld [vmem:[%s14112_s9 + $0x58] sm:$0xff] }
 0x4c4   : > { %8918 = vmatpush.msrb.mxu1 %v8865_v6  ;;  %8815 = vmatmul.bf16.vlgmr.msra.gmra.mxu2 %v14628_v28  ;;  %v8861_v28 = vld [vmem:[%s14112_s9 + $0xd8] sm:$0xff] }
 0x4c5   : > { %8938 = vmatpush.msrb.mxu2 %v8881_v50  ;;  %8899 = vmatpush.msrb.mxu0 %v8848_v8 }
 0x4c6   : > { %8919 = vmatpush.msrb.mxu1 %v8864_v12  ;;  %12252 = vmatmul.msk.bf16.vlgmr.msra.gmra.mxu3 %vm7529_vm1, %v14669_v1  ;;  %v8595_v1 = vpop.f32.mrf.mxu1 }
 0x4c7   : > { %8939 = vmatpush.msrb.mxu2 %v8880_v62  ;;  %8900 = vmatpush.msrb.mxu0 %v8847_v53  ;;  %v8596_v17 = vadd.f32 %v8595_v1, %v8583_v21  ;;  %v8608_v14 = vpop.f32.mrf.mxu2  ;;  %v8584_v48 = vpop.f32.mrf.mxu0  ;;  %v8893_v21 = vld [vmem:[%s14112_s9 + $0x1d8] sm:$0xff]  ;;  %v8892_v1 = vld [vmem:[%s14112_s9 + $0x1d0] sm:$0xff] }
 0x4c8   : > { %8920 = vmatpush.msrb.mxu1 %v8863_v2  ;;  %v8883_v48 = vld [vmem:[%s14112_s9 + $0x188] sm:$0xff] }
 0x4c9   : > { %8940 = vmatpush.msrb.mxu2 %v8879_v11  ;;  %8901 = vmatpush.msrb.mxu0 %v8846_v16  ;;  %v8609_v36 = vadd.f32 %v8608_v14, %v8596_v17  ;;  %v8889_v17 = vld [vmem:[%s14112_s9 + $0x1b8] sm:$0xff]  ;;  %v8886_v14 = vld [vmem:[%s14112_s9 + $0x1a0] sm:$0xff] }
 0x4ca   : > { %8921 = vmatpush.msrb.mxu1 %v8862_v25 }
 0x4cb   : > { %8941 = vmatpush.msrb.mxu2 %v8878_v5  ;;  %8902 = vmatpush.msrb.mxu0 %v8845_v24  ;;  %v8896_v5 = vld [vmem:[%s14112_s9 + $0x1f0] sm:$0xff] }
 0x4cc   : > { %8922 = vmatpush.msrb.mxu1 %v8861_v28  ;;  %v8895_v28 = vld [vmem:[%s14112_s9 + $0x1e8] sm:$0xff] }
 0x4cd   : > { %8942 = vmatpush.msrb.mxu2 %v8877_v18  ;;  %8903 = vmatpush.msrb.mxu0 %v8844_v47  ;;  %v8894_v47 = vld [vmem:[%s14112_s9 + $0x1e0] sm:$0xff] }
 0x4ce   : > { %8923 = vmatpush.msrb.mxu1 %v8860_v49  ;;  %v8597_v40 = vpop.f32.mrf.mxu1  ;;  %v8891_v49 = vld [vmem:[%s14112_s9 + $0x1c8] sm:$0xff] }
 0x4cf   : > { %8943 = vmatpush.msrb.mxu2 %v8876_v31  ;;  %8904 = vmatpush.msrb.mxu0 %v8843_v29  ;;  %v8610_v13 = vpop.f32.mrf.mxu2  ;;  %v8890_v31 = vld [vmem:[%s14112_s9 + $0x1c0] sm:$0xff] }
 0x4d0   : > { %8924 = vmatpush.msrb.mxu1 %v8859_v23  ;;  %v8888_v23 = vld [vmem:[%s14112_s9 + $0x1b0] sm:$0xff]  ;;  %v8882_v40 = vld [vmem:[%s14112_s9 + $0x180] sm:$0xff] }
 0x4d1   : > { %8944 = vmatpush.msrb.mxu2 %v8875_v35  ;;  %8905 = vmatpush.msrb.mxu0 %v8842_v34 }
 0x4d2   : > { %8925 = vmatpush.msrb.mxu1 %v8858_v39 }
 0x4d3   : > { %8945 = vmatpush.msrb.mxu2 %v8874_v42  ;;  %8906 = vmatpush.msrb.mxu0 %v8841_v0  ;;  %v8887_v42 = vld [vmem:[%s14112_s9 + $0x1a8] sm:$0xff]  ;;  %v8885_v0 = vld [vmem:[%s14112_s9 + $0x198] sm:$0xff] }
 0x4d4   : > { %8926 = vmatpush.msrb.mxu1 %v8857_v41  ;;  %v8884_v41 = vld [vmem:[%s14112_s9 + $0x190] sm:$0xff] }
 0x4d5   : > { %8946 = vmatpush.msrb.mxu2 %v8873_v43  ;;  %8907 = vmatpush.msrb.mxu0 %v8840_v38 }
 0x4d6   : > { %8927 = vmatpush.msrb.mxu1 %v8856_v44 }
 0x4d7   : > { %8947 = vmatpush.msrb.mxu2 %v8872_v52  ;;  %8908 = vmatpush.msrb.mxu0 %v8839_v30 }
 0x4d8   : > { %8928 = vmatpush.msrb.mxu1 %v8855_v56  ;;  %v8621_v7 = vpop.f32.mrf.mxu3 }
 0x4d9   : > { %8948 = vmatpush.msrb.mxu2 %v8871_v55  ;;  %8909 = vmatpush.msrb.mxu0 %v8838_v58  ;;  %v8622_v6 = vadd.f32 %v8621_v7, %v8609_v36 }
 0x4da   : > { %8929 = vmatpush.msrb.mxu1 %v8854_v32 }
 0x4db   : > { %8949 = vmatpush.msrb.mxu2 %v8870_v27  ;;  %8910 = vmatpush.msrb.mxu0 %v8837_v57 }
 0x4dc   : > { %8930 = vmatpush.msrb.mxu1 %v8853_v37 }
 0x4dd   : > { %8950 = vmatpush.msrb.mxu2 %v8869_v54  ;;  %8911 = vmatpush.msrb.mxu0 %v8836_v20 }
 0x4de   : > { %8931 = vmatpush.msrb.mxu1 %v8852_v46 }
 0x4df   : > { %8951 = vmatpush.msrb.mxu2 %v8868_v33  ;;  %8912 = vmatpush.msrb.mxu0 %v8835_v61  ;;  %v8634_v4 = vpop.f32.mrf.mxu0 }
 0x4e0   : > { %8932 = vmatpush.msrb.mxu1 %v8851_v59  ;;  %v8635_v50 = vadd.f32 %v8634_v4, %v8622_v6  ;;  %v8647_v8 = vpop.f32.mrf.mxu1  ;;  %v8623_v10 = vpop.f32.mrf.mxu3 }
 0x4e1   : > { %8952 = vmatpush.msrb.mxu2 %v8867_v60  ;;  %8913 = vmatpush.msrb.mxu0 %v8834_v63 }
 0x4e2   : > { %8933 = vmatpush.msrb.mxu1 %v8850_v45  ;;  %8914 = vmatmul.f32.vlgmr.msrb.gmra.mxu0 %v14980_v9  ;;  %v8648_v12 = vadd.f32 %v8647_v8, %v8635_v50 }
 0x4e3   : > { %8953 = vmatpush.msrb.mxu2 %v8866_v3  ;;  %8934 = vmatmul.f32.vlgmr.msrb.gmra.mxu1 %v15410_v26 }
 0x4e4   : > { %8954 = vmatmul.f32.vlgmr.msrb.gmra.mxu2 %v15855_v15  ;;  %v8897_v15 = vld [vmem:[%s14112_s9 + $0x1f8] sm:$0xff] }
 0x4e5   : > { %8958 = vmatpush.msrb.mxu3 %v8897_v15 }
 0x4e7   : > { %v8660_v62 = vpop.f32.mrf.mxu2  ;;  %v8636_v53 = vpop.f32.mrf.mxu0  ;;  %8959 = vmatpush.msrb.mxu3 %v8896_v5 }
 0x4e8   : > { %v8661_v51 = vadd.f32 %v8660_v62, %v8648_v12  ;;  %v8649_v2 = vpop.f32.mrf.mxu1 }
 0x4e9   : > { %8960 = vmatpush.msrb.mxu3 %v8895_v28 }
 0x4eb   : > { %8961 = vmatpush.msrb.mxu3 %v8894_v47 }
 0x4ed   : > { %8962 = vmatpush.msrb.mxu3 %v8893_v21 }
 0x4ef   : > { %v8662_v11 = vpop.f32.mrf.mxu2  ;;  %8963 = vmatpush.msrb.mxu3 %v8892_v1 }
 0x4f1   : > { %8964 = vmatpush.msrb.mxu3 %v8891_v49 }
 0x4f3   : > { %8965 = vmatpush.msrb.mxu3 %v8890_v31 }
 0x4f5   : > { %8966 = vmatpush.msrb.mxu3 %v8889_v17 }
 0x4f7   : > { %8967 = vmatpush.msrb.mxu3 %v8888_v23 }
 0x4f8   : > { %v8673_v9 = vpop.f32.mrf.mxu3 }
 0x4f9   : > { %8968 = vmatpush.msrb.mxu3 %v8887_v42  ;;  %v8674_v44 = vadd.f32 %v8673_v9, %v8661_v51  ;;  %v8833_v51 = vld [vmem:[%s16038_s5] sm:$0xff] }
 0x4fb   : > { %8969 = vmatpush.msrb.mxu3 %v8886_v14 }
 0x4fd   : > { %8970 = vmatpush.msrb.mxu3 %v8885_v0 }
 0x4ff   : > { %v8686_v26 = vpop.f32.mrf.mxu0  ;;  %8971 = vmatpush.msrb.mxu3 %v8884_v41 }
 0x500   : > { %v8699_v16 = vpop.f32.mrf.mxu1  ;;  %v8675_v25 = vpop.f32.mrf.mxu3  ;;  %v8687_v52 = vadd.f32 %v8686_v26, %v8674_v44 }
 0x501   : > { %8972 = vmatpush.msrb.mxu3 %v8883_v48 }
 0x502   : > { %v8700_v56 = vadd.f32 %v8699_v16, %v8687_v52 }
 0x503   : > { %8973 = vmatpush.msrb.mxu3 %v8882_v40 }
 0x507   : > { %v8712_v24 = vpop.f32.mrf.mxu2  ;;  %v8688_v18 = vpop.f32.mrf.mxu0 }
 0x508   : > { %v8701_v19 = vpop.f32.mrf.mxu1  ;;  %v8713_v55 = vadd.f32 %v8712_v24, %v8700_v56 }
 0x50f   : > { %v8714_v22 = vpop.f32.mrf.mxu2 }
 0x518   : > { %v8725_v29 = vpop.f32.mrf.mxu3 }
 0x519   : > { %v8726_v58 = vadd.f32 %v8725_v29, %v8713_v55 }
 0x51f   : > { %v8738_v35 = vpop.f32.mrf.mxu0 }
 0x520   : > { %v8751_v34 = vpop.f32.mrf.mxu1  ;;  %v8727_v39 = vpop.f32.mrf.mxu3  ;;  %v8739_v32 = vadd.f32 %v8738_v35, %v8726_v58 }
 0x522   : > { %v8752_v13 = vadd.f32 %v8751_v34, %v8739_v32 }
 0x527   : > { %v8764_v36 = vpop.f32.mrf.mxu2  ;;  %v8740_v43 = vpop.f32.mrf.mxu0 }
 0x528   : > { %v8753_v38 = vpop.f32.mrf.mxu1  ;;  %v8765_v57 = vadd.f32 %v8764_v36, %v8752_v13 }
 0x52f   : > { %v8766_v30 = vpop.f32.mrf.mxu2 }
 0x538   : > { %v8777_v27 = vpop.f32.mrf.mxu3 }
 0x539   : > { %v8778_v37 = vadd.f32 %v8777_v27, %v8765_v57 }
 0x53f   : > { %v8790_v54 = vpop.f32.mrf.mxu0 }
 0x540   : > { %v8803_v20 = vpop.f32.mrf.mxu1  ;;  %v8779_v46 = vpop.f32.mrf.mxu3  ;;  %v8791_v33 = vadd.f32 %v8790_v54, %v8778_v37 }
 0x542   : > { %v8804_v61 = vadd.f32 %v8803_v20, %v8791_v33 }
 0x547   : > { %v8816_v59 = vpop.f32.mrf.mxu2  ;;  %v8792_v63 = vpop.f32.mrf.mxu0 }
 0x548   : > { %v8817_v60 = vadd.f32 %v8816_v59, %v8804_v61  ;;  %v8805_v45 = vpop.f32.mrf.mxu1 }
 0x549   : > { %v8829_v3 = vpop.f32.mrf.mxu3 }
 0x54a   : > { %v8830_v7 = vadd.f32 %v8829_v3, %v8817_v60 }
 0x54c   : > { %8974 = vmatmul.f32.vlgmr.msrb.gmra.mxu3 %v8830_v7 }
 0x54f   : > { %v8818_v6 = vpop.f32.mrf.mxu2 }
 0x551   : > { %v8831_v4 = vpop.f32.mrf.mxu3 }
 0x55f   : > { %v8915_v50 = vpop.f32.mrf.mxu0 }
 0x560   : > { %v8935_v8 = vpop.f32.mrf.mxu1 }
 0x561   : > { %v8936_v12 = vadd.f32 %v8935_v8, %v8915_v50 }
 0x567   : > { %v8955_v10 = vpop.f32.mrf.mxu2 }
 0x568   : > { %v8956_v62 = vadd.f32 %v8955_v10, %v8936_v12 }
 0x5cf   : > { %v8975_v53 = vpop.f32.mrf.mxu3 }
 0x5d0   : > { %v8976_v2 = vadd.f32 %v8975_v53, %v8956_v62 }
 0x5d2   : > { %v8978_v11 = vadd.f32 %v8976_v2, %v8833_v51 }
 0x5d4   : > { %8980 = vst.msk [vmem:[%s16038_s5] sm:$0xff] %vm8979_vm2, %v8978_v11 }
 0x5d5 PF: > { %s15_s22 = sadd.s32 1, %s13173_s22   ;;  %s16044_s18 = smov %s13161_s19 }
 0x5d6   : > { %p12_p0 = scmp.ge.s32.totalorder %s15_s22, 4   ;;  %s16045_s19 = smov %s13256_s26 }
 0x5d7   : > { %s16046_s20 = smov %s13169_s21  ;;  %s16047_s21 = smov %s16049_s23 }
 0x5d8   :  { %14 = sbr.rel (!%p12_p0) target bundleno = 3 (0x3), region = 138 }

</bundles_post_ra>
